<compile_context>
chip_gen: v7x
topology: tpu7x:2x2x1
jax: 0.10.0
libtpu: 0.0.40
codegen_flags: <defaults>
</compile_context>

<pallas_src>
import numpy as np

import jax
import jax.numpy as jnp
from jax.experimental import pallas as pl
from jax.experimental.pallas import tpu as pltpu

# ----------------------- configuration (small shapes) -----------------------
B, CIN, H, W = 2, 4, 16, 16          # input  [2, 4, 16, 16]
COUT = 16                            # out_channels
KSIZE, STRIDE, PAD = 3, 1, 1         # conv_cbam conv
RATIO = 8
CHID = COUT // RATIO                 # channel-attention hidden width
SA_K, SA_PAD = 7, 3                  # spatial-attention conv
EPS = 1e-5                           # BatchNorm eps

HW = H * W                           # 256 (>=128, multiple of 128)
BHW = B * HW                         # 512: lane dimension of the working layout
W_SHIFT = W.bit_length() - 1         # log2(W) = 4

# packed-parameter lane offsets: [w_conv | gamma | beta | w1 | w2^T]
KW = CIN * KSIZE * KSIZE             # 36
OFF_GAMMA = KW
OFF_BETA = KW + 1
OFF_W1 = KW + 2
OFF_W2 = KW + 2 + CHID
PK_W = KW + 2 + 2 * CHID             # 42


def _sigmoid(v):
    # exact sigmoid (keeps the 1e-4 tolerance); exp runs on the EUP slot.
    return 1.0 / (1.0 + jnp.exp(-v))


# ------------------------------ fused Pallas kernel -----------------------------
def cnn_cbam_kernel(p_ref, pk_ref, wsa_ref, o_ref):
    pk = pk_ref[...]                                             # (COUT, 42)
    w_mat = pk[:, 0:KW]                                          # (COUT, 36)
    gamma = pk[:, OFF_GAMMA:OFF_GAMMA + 1]                       # (COUT, 1)
    beta = pk[:, OFF_BETA:OFF_BETA + 1]                          # (COUT, 1)

    # -------- Conv2d: single MXU matmul, lane-dense (COUT, B*HW) output --------
    # (bf16 cast of both operands is the v6e/v7x lever; kept f32 for exactness here.)
    z = jnp.dot(w_mat, p_ref[...], preferred_element_type=jnp.float32)  # (COUT, BHW)

    # ----- BatchNorm2d (training-mode batch stats), one pass, folded FMA + ReLU -----
    # TODO(synk): eval-mode BN (running_mean/running_var) would need those as extra inputs.
    inv_n = 1.0 / float(BHW)
    s1 = jnp.sum(z, axis=1, keepdims=True)                       # (COUT, 1)
    s2 = jnp.sum(z * z, axis=1, keepdims=True)                   # (COUT, 1)
    mean = s1 * inv_n
    var = s2 * inv_n - mean * mean                               # biased variance
    scale = gamma * jax.lax.rsqrt(var + EPS)
    shift = beta - mean * scale
    y = jnp.maximum(z * scale + shift, 0.0)                      # (COUT, BHW)

    # ----- Channel attention: per-batch avg/max pools -> shared MLP (merged pass) -----
    inv_hw = 1.0 / float(HW)
    pools = [jnp.sum(y[:, b * HW:(b + 1) * HW], axis=1, keepdims=True) * inv_hw
             for b in range(B)]
    pools += [jnp.max(y[:, b * HW:(b + 1) * HW], axis=1, keepdims=True)
              for b in range(B)]
    pooled = jnp.concatenate(pools, axis=1)                      # (COUT, 2B): avg..., max...

    ca_pre = jnp.zeros((COUT, 2 * B), jnp.float32)
    for r in range(CHID):
        w1c = pk[:, OFF_W1 + r:OFF_W1 + r + 1]                   # (COUT, 1)
        w2c = pk[:, OFF_W2 + r:OFF_W2 + r + 1]                   # (COUT, 1)
        h_r = jnp.sum(w1c * pooled, axis=0, keepdims=True)       # (1, 2B)
        ca_pre = ca_pre + jnp.maximum(h_r, 0.0) * w2c            # (COUT, 2B)
    ca = _sigmoid(ca_pre[:, 0:B] + ca_pre[:, B:2 * B])           # (COUT, B)

    x1 = jnp.concatenate(
        [y[:, b * HW:(b + 1) * HW] * ca[:, b:b + 1] for b in range(B)], axis=1)  # (COUT, BHW)

    # ------- Spatial attention: 7x7 conv via in-register lane rolls + masks -------
    avg_c = jnp.mean(x1, axis=0, keepdims=True)                  # (1, BHW)
    max_c = jnp.max(x1, axis=0, keepdims=True)                   # (1, BHW)
    m = jnp.concatenate([avg_c, max_c], axis=0)                  # (2, BHW)

    idx = jax.lax.broadcasted_iota(jnp.int32, (1, BHW), 1)
    col = jnp.bitwise_and(idx, W - 1)                            # within-row column
    row = jnp.right_shift(jnp.bitwise_and(idx, HW - 1), W_SHIFT)  # within-image row
    col_ok = [jnp.logical_and(col + c >= 0, col + c <= W - 1)
              for c in range(-SA_PAD, SA_PAD + 1)]
    row_ok = [jnp.logical_and(row + a >= 0, row + a <= H - 1)
              for a in range(-SA_PAD, SA_PAD + 1)]

    s = jnp.zeros((1, BHW), jnp.float32)
    for ai, a in enumerate(range(-SA_PAD, SA_PAD + 1)):          # vertical tap offset
        for ci, c in enumerate(range(-SA_PAD, SA_PAD + 1)):      # horizontal tap offset
            k = a * W + c
            # rolled[:, i] = m[:, (i + k) mod BHW]; out-of-image wraps are masked to zero,
            # emulating the conv's zero padding.
            rolled = pltpu.roll(m, (-k) % BHW, 1) if k != 0 else m
            mask = jnp.where(jnp.logical_and(row_ok[ai], col_ok[ci]), 1.0, 0.0)
            w_avg = wsa_ref[ai * SA_K + ci]                      # SMEM scalars
            w_max = wsa_ref[SA_K * SA_K + ai * SA_K + ci]
            s = s + mask * (w_avg * rolled[0:1, :] + w_max * rolled[1:2, :])

    sa = _sigmoid(s)                                             # (1, BHW)
    out = jnp.maximum(x1 * sa, 0.0)                              # (COUT, BHW)

    # lane-dense NCHW-flat stores, one (COUT, HW) slab per batch
    for b in range(B):
        o_ref[b] = out[:, b * HW:(b + 1) * HW]


# ------------------------------- glue + wrapper --------------------------------
def _vmem_spec(shape):
    nd = len(shape)
    return pl.BlockSpec(shape, lambda i, nd=nd: (0,) * nd)


@jax.jit
def cnn_cbam_forward(x, params):
    # Replicate pad (padding_mode='replicate') + lane-dense im2col patches (36, B*HW).
    # TODO(synk): 3x3 patch extraction stays in (XLA-fused) glue; relayout is cheaper here.
    xp = jnp.pad(x, ((0, 0), (0, 0), (PAD, PAD), (PAD, PAD)), mode="edge")
    slices = [xp[:, :, di:di + H, dj:dj + W]
              for di in range(KSIZE) for dj in range(KSIZE)]
    patches = jnp.stack(slices, axis=2).reshape(B, KW, HW)
    patches = patches.transpose(1, 0, 2).reshape(KW, BHW)        # (36, 512)

    # Pack all small parameters into ONE (COUT, 42) VMEM input.
    w_mat = params["w_conv"].reshape(COUT, KW)                   # (16, 36)
    gamma = params["gamma"].reshape(COUT, 1)
    beta = params["beta"].reshape(COUT, 1)
    w1 = params["w1"]                                            # (COUT, CHID)
    w2t = params["w2"].T                                         # (COUT, CHID)
    packed = jnp.concatenate([w_mat, gamma, beta, w1, w2t], axis=1)  # (16, 42)
    w_sa = params["w_sa"].reshape(-1)                            # (2*49,), (c, kh, kw) order

    # NOTE(v7x): grid=(1,) uses a single TensorCore; with many independent inputs one
    # could add a leading 'parallel' grid axis (needs per-group or running-stat BN).
    out_flat = pl.pallas_call(
        cnn_cbam_kernel,
        grid=(1,),
        in_specs=[
            _vmem_spec(patches.shape),
            _vmem_spec(packed.shape),
            pl.BlockSpec(memory_space=pltpu.MemorySpace.SMEM),   # SA conv weights as scalars
        ],
        out_specs=_vmem_spec((B, COUT, HW)),
        out_shape=jax.ShapeDtypeStruct((B, COUT, HW), jnp.float32),
        compiler_params=pltpu.CompilerParams(dimension_semantics=("arbitrary",)),
    )(patches, packed, w_sa)

    return out_flat.reshape(B, COUT, H, W)   # already NCHW-ordered, no transpose needed


# ------------------------- pure-JAX reference (check) --------------------------
def reference(x, params):
    xp = jnp.pad(x, ((0, 0), (0, 0), (PAD, PAD), (PAD, PAD)), mode="edge")
    z = jax.lax.conv_general_dilated(xp, params["w_conv"], (STRIDE, STRIDE), "VALID",
                                     dimension_numbers=("NCHW", "OIHW", "NCHW"))
    mean = z.mean(axis=(0, 2, 3), keepdims=True)
    var = ((z - mean) ** 2).mean(axis=(0, 2, 3), keepdims=True)
    y = (z - mean) * jax.lax.rsqrt(var + EPS)
    y = y * params["gamma"].reshape(1, -1, 1, 1) + params["beta"].reshape(1, -1, 1, 1)
    y = jnp.maximum(y, 0.0)

    avg = y.mean(axis=(2, 3))
    mx = y.max(axis=(2, 3))
    mlp = lambda v: jnp.maximum(v @ params["w1"], 0.0) @ params["w2"]
    ca = _sigmoid(mlp(avg) + mlp(mx))
    x1 = y * ca[:, :, None, None]

    m = jnp.concatenate([x1.mean(axis=1, keepdims=True), x1.max(axis=1, keepdims=True)], axis=1)
    s = jax.lax.conv_general_dilated(m, params["w_sa"], (1, 1), [(SA_PAD, SA_PAD)] * 2,
                                     dimension_numbers=("NCHW", "OIHW", "NCHW"))
    return jnp.maximum(x1 * _sigmoid(s), 0.0)


# ----------------------------------- main --------------------------------------
if __name__ == "__main__":
    key = jax.random.PRNGKey(0)
    ks = jax.random.split(key, 5)
    x = jax.random.normal(ks[0], (B, CIN, H, W), jnp.float32)
    params = {
        # Conv2d(in=4, out=16, k=3, padding_mode='replicate') weight, OIHW
        "w_conv": jax.random.normal(ks[1], (COUT, CIN, KSIZE, KSIZE), jnp.float32) * 0.1,
        # BatchNorm2d default affine init
        "gamma": jnp.ones((COUT,), jnp.float32),
        "beta": jnp.zeros((COUT,), jnp.float32),
        # shared MLP (1x1 convs, no bias) stored as right-multiply matrices
        "w1": jax.random.normal(ks[2], (COUT, CHID), jnp.float32) * 0.2,
        "w2": jax.random.normal(ks[3], (CHID, COUT), jnp.float32) * 0.2,
        # SpatialAttention Conv2d(2, 1, 7, padding=3, bias=False), OIHW
        "w_sa": jax.random.normal(ks[4], (1, 2, SA_K, SA_K), jnp.float32) * 0.1,
    }

    out = jax.block_until_ready(cnn_cbam_forward(x, params))
    ref = jax.block_until_ready(reference(x, params))

    assert out.shape == (B, COUT, H, W)
    np.testing.assert_allclose(np.asarray(out), np.asarray(ref), rtol=1e-4, atol=1e-4)
    print("KERNEL_OK")
</pallas_src>

<mosaic_0001>
module attributes {stable_mosaic.version = 11 : i64} {
  func.func @cnn_cbam_kernel(%arg0: i32, %arg1: memref<36x512xf32, #tpu.memory_space<vmem>>, %arg2: memref<16x42xf32, #tpu.memory_space<vmem>>, %arg3: memref<98xf32, #tpu.memory_space<smem>>, %arg4: memref<2x16x256xf32, #tpu.memory_space<vmem>>) attributes {dimension_semantics = [#tpu.dimension_semantics<arbitrary>], iteration_bounds = array<i64: 1>, scalar_prefetch = 0 : i64, scratch_operands = 0 : i64, tpu.core_type = #tpu.core_type<tc>, window_params = [{pipeline_mode = #tpu.pipeline_mode<synchronous>, transform_indices = @transform_0, window_bounds = array<i64: 36, 512>}, {pipeline_mode = #tpu.pipeline_mode<synchronous>, transform_indices = @transform_1, window_bounds = array<i64: 16, 42>}, {transform_indices = @transform_2, window_bounds = array<i64: 98>}, {pipeline_mode = #tpu.pipeline_mode<synchronous>, transform_indices = @transform_3, window_bounds = array<i64: 2, 16, 256>}]} {
    %c0 = arith.constant 0 : index
    %c0_0 = arith.constant 0 : index
    %0 = vector.load %arg2[%c0, %c0_0] : memref<16x42xf32, #tpu.memory_space<vmem>>, vector<16x42xf32>
    %1 = vector.extract_strided_slice %0 {offsets = [0, 0], sizes = [16, 36], strides = [1, 1]} : vector<16x42xf32> to vector<16x36xf32>
    %2 = vector.extract_strided_slice %0 {offsets = [0, 36], sizes = [16, 1], strides = [1, 1]} : vector<16x42xf32> to vector<16x1xf32>
    %3 = vector.extract_strided_slice %0 {offsets = [0, 37], sizes = [16, 1], strides = [1, 1]} : vector<16x42xf32> to vector<16x1xf32>
    %c0_1 = arith.constant 0 : index
    %c0_2 = arith.constant 0 : index
    %4 = vector.load %arg1[%c0_1, %c0_2] : memref<36x512xf32, #tpu.memory_space<vmem>>, vector<36x512xf32>
    %cst = arith.constant dense<0.000000e+00> : vector<16x512xf32>
    %5 = tpu.matmul %1, %4, %cst {dimension_numbers = #tpu.dot_dimension_numbers<[1], [0], [0], [1], [0, 0, 1, 1], [], []>} : vector<16x36xf32>, vector<36x512xf32>, vector<16x512xf32> -> vector<16x512xf32>
    %cst_3 = arith.constant dense<0.000000e+00> : vector<16xf32>
    %6 = vector.multi_reduction <add>, %5, %cst_3 [1] : vector<16x512xf32> to vector<16xf32>
    %7 = vector.shape_cast %6 : vector<16xf32> to vector<16x1xf32>
    %8 = arith.mulf %5, %5 : vector<16x512xf32>
    %cst_4 = arith.constant dense<0.000000e+00> : vector<16xf32>
    %9 = vector.multi_reduction <add>, %8, %cst_4 [1] : vector<16x512xf32> to vector<16xf32>
    %10 = vector.shape_cast %9 : vector<16xf32> to vector<16x1xf32>
    %cst_5 = arith.constant 0.001953125 : f32
    %11 = vector.broadcast %cst_5 : f32 to vector<16x1xf32>
    %12 = arith.mulf %7, %11 : vector<16x1xf32>
    %cst_6 = arith.constant 0.001953125 : f32
    %13 = vector.broadcast %cst_6 : f32 to vector<16x1xf32>
    %14 = arith.mulf %10, %13 : vector<16x1xf32>
    %15 = arith.mulf %12, %12 : vector<16x1xf32>
    %16 = arith.subf %14, %15 : vector<16x1xf32>
    %cst_7 = arith.constant 9.99999974E-6 : f32
    %17 = vector.broadcast %cst_7 : f32 to vector<16x1xf32>
    %18 = arith.addf %16, %17 : vector<16x1xf32>
    %19 = math.rsqrt %18 : vector<16x1xf32>
    %20 = arith.mulf %2, %19 : vector<16x1xf32>
    %21 = arith.mulf %12, %20 : vector<16x1xf32>
    %22 = arith.subf %3, %21 : vector<16x1xf32>
    %23 = vector.broadcast %20 : vector<16x1xf32> to vector<16x512xf32>
    %24 = arith.mulf %5, %23 : vector<16x512xf32>
    %25 = vector.broadcast %22 : vector<16x1xf32> to vector<16x512xf32>
    %26 = arith.addf %24, %25 : vector<16x512xf32>
    %cst_8 = arith.constant 0.000000e+00 : f32
    %27 = vector.broadcast %cst_8 : f32 to vector<16x512xf32>
    %28 = arith.maximumf %26, %27 : vector<16x512xf32>
    %29 = vector.extract_strided_slice %28 {offsets = [0, 0], sizes = [16, 256], strides = [1, 1]} : vector<16x512xf32> to vector<16x256xf32>
    %cst_9 = arith.constant dense<0.000000e+00> : vector<16xf32>
    %30 = vector.multi_reduction <add>, %29, %cst_9 [1] : vector<16x256xf32> to vector<16xf32>
    %31 = vector.shape_cast %30 : vector<16xf32> to vector<16x1xf32>
    %cst_10 = arith.constant 3.906250e-03 : f32
    %32 = vector.broadcast %cst_10 : f32 to vector<16x1xf32>
    %33 = arith.mulf %31, %32 : vector<16x1xf32>
    %34 = vector.extract_strided_slice %28 {offsets = [0, 256], sizes = [16, 256], strides = [1, 1]} : vector<16x512xf32> to vector<16x256xf32>
    %cst_11 = arith.constant dense<0.000000e+00> : vector<16xf32>
    %35 = vector.multi_reduction <add>, %34, %cst_11 [1] : vector<16x256xf32> to vector<16xf32>
    %36 = vector.shape_cast %35 : vector<16xf32> to vector<16x1xf32>
    %cst_12 = arith.constant 3.906250e-03 : f32
    %37 = vector.broadcast %cst_12 : f32 to vector<16x1xf32>
    %38 = arith.mulf %36, %37 : vector<16x1xf32>
    %39 = vector.extract_strided_slice %28 {offsets = [0, 0], sizes = [16, 256], strides = [1, 1]} : vector<16x512xf32> to vector<16x256xf32>
    %cst_13 = arith.constant dense<0xFF800000> : vector<16xf32>
    %40 = vector.multi_reduction <maximumf>, %39, %cst_13 [1] : vector<16x256xf32> to vector<16xf32>
    %41 = vector.shape_cast %40 : vector<16xf32> to vector<16x1xf32>
    %42 = vector.extract_strided_slice %28 {offsets = [0, 256], sizes = [16, 256], strides = [1, 1]} : vector<16x512xf32> to vector<16x256xf32>
    %cst_14 = arith.constant dense<0xFF800000> : vector<16xf32>
    %43 = vector.multi_reduction <maximumf>, %42, %cst_14 [1] : vector<16x256xf32> to vector<16xf32>
    %44 = vector.shape_cast %43 : vector<16xf32> to vector<16x1xf32>
    %45 = tpu.concatenate %33, %38, %41, %44 in 1 : vector<16x1xf32>, vector<16x1xf32>, vector<16x1xf32>, vector<16x1xf32> -> vector<16x4xf32>
    %cst_15 = arith.constant 0.000000e+00 : f32
    %46 = vector.broadcast %cst_15 : f32 to vector<16x4xf32>
    %47 = vector.extract_strided_slice %0 {offsets = [0, 38], sizes = [16, 1], strides = [1, 1]} : vector<16x42xf32> to vector<16x1xf32>
    %48 = vector.extract_strided_slice %0 {offsets = [0, 40], sizes = [16, 1], strides = [1, 1]} : vector<16x42xf32> to vector<16x1xf32>
    %49 = vector.broadcast %47 : vector<16x1xf32> to vector<16x4xf32>
    %50 = arith.mulf %49, %45 : vector<16x4xf32>
    %cst_16 = arith.constant dense<0.000000e+00> : vector<4xf32>
    %51 = vector.multi_reduction <add>, %50, %cst_16 [0] : vector<16x4xf32> to vector<4xf32>
    %52 = vector.shape_cast %51 : vector<4xf32> to vector<1x4xf32>
    %cst_17 = arith.constant 0.000000e+00 : f32
    %53 = vector.broadcast %cst_17 : f32 to vector<1x4xf32>
    %54 = arith.maximumf %52, %53 : vector<1x4xf32>
    %55 = vector.broadcast %54 : vector<1x4xf32> to vector<16x4xf32>
    %56 = vector.broadcast %48 : vector<16x1xf32> to vector<16x4xf32>
    %57 = arith.mulf %55, %56 : vector<16x4xf32>
    %58 = arith.addf %46, %57 : vector<16x4xf32>
    %59 = vector.extract_strided_slice %0 {offsets = [0, 39], sizes = [16, 1], strides = [1, 1]} : vector<16x42xf32> to vector<16x1xf32>
    %60 = vector.extract_strided_slice %0 {offsets = [0, 41], sizes = [16, 1], strides = [1, 1]} : vector<16x42xf32> to vector<16x1xf32>
    %61 = vector.broadcast %59 : vector<16x1xf32> to vector<16x4xf32>
    %62 = arith.mulf %61, %45 : vector<16x4xf32>
    %cst_18 = arith.constant dense<0.000000e+00> : vector<4xf32>
    %63 = vector.multi_reduction <add>, %62, %cst_18 [0] : vector<16x4xf32> to vector<4xf32>
    %64 = vector.shape_cast %63 : vector<4xf32> to vector<1x4xf32>
    %cst_19 = arith.constant 0.000000e+00 : f32
    %65 = vector.broadcast %cst_19 : f32 to vector<1x4xf32>
    %66 = arith.maximumf %64, %65 : vector<1x4xf32>
    %67 = vector.broadcast %66 : vector<1x4xf32> to vector<16x4xf32>
    %68 = vector.broadcast %60 : vector<16x1xf32> to vector<16x4xf32>
    %69 = arith.mulf %67, %68 : vector<16x4xf32>
    %70 = arith.addf %58, %69 : vector<16x4xf32>
    %71 = vector.extract_strided_slice %70 {offsets = [0, 0], sizes = [16, 2], strides = [1, 1]} : vector<16x4xf32> to vector<16x2xf32>
    %72 = vector.extract_strided_slice %70 {offsets = [0, 2], sizes = [16, 2], strides = [1, 1]} : vector<16x4xf32> to vector<16x2xf32>
    %73 = arith.addf %71, %72 : vector<16x2xf32>
    %cst_20 = arith.constant 0.000000e+00 : f32
    %74 = vector.broadcast %cst_20 : f32 to vector<16x2xf32>
    %75 = arith.subf %74, %73 : vector<16x2xf32>
    %76 = math.exp %75 : vector<16x2xf32>
    %cst_21 = arith.constant 1.000000e+00 : f32
    %77 = vector.broadcast %cst_21 : f32 to vector<16x2xf32>
    %78 = arith.addf %77, %76 : vector<16x2xf32>
    %cst_22 = arith.constant 1.000000e+00 : f32
    %79 = vector.broadcast %cst_22 : f32 to vector<16x2xf32>
    %80 = arith.divf %79, %78 : vector<16x2xf32>
    %81 = vector.extract_strided_slice %28 {offsets = [0, 0], sizes = [16, 256], strides = [1, 1]} : vector<16x512xf32> to vector<16x256xf32>
    %82 = vector.extract_strided_slice %80 {offsets = [0, 0], sizes = [16, 1], strides = [1, 1]} : vector<16x2xf32> to vector<16x1xf32>
    %83 = vector.broadcast %82 : vector<16x1xf32> to vector<16x256xf32>
    %84 = arith.mulf %81, %83 : vector<16x256xf32>
    %85 = vector.extract_strided_slice %28 {offsets = [0, 256], sizes = [16, 256], strides = [1, 1]} : vector<16x512xf32> to vector<16x256xf32>
    %86 = vector.extract_strided_slice %80 {offsets = [0, 1], sizes = [16, 1], strides = [1, 1]} : vector<16x2xf32> to vector<16x1xf32>
    %87 = vector.broadcast %86 : vector<16x1xf32> to vector<16x256xf32>
    %88 = arith.mulf %85, %87 : vector<16x256xf32>
    %89 = tpu.concatenate %84, %88 in 1 : vector<16x256xf32>, vector<16x256xf32> -> vector<16x512xf32>
    %cst_23 = arith.constant dense<0.000000e+00> : vector<512xf32>
    %90 = vector.multi_reduction <add>, %89, %cst_23 [0] : vector<16x512xf32> to vector<512xf32>
    %91 = vector.shape_cast %90 : vector<512xf32> to vector<1x512xf32>
    %cst_24 = arith.constant 1.600000e+01 : f32
    %92 = vector.broadcast %cst_24 : f32 to vector<1x512xf32>
    %93 = arith.divf %91, %92 : vector<1x512xf32>
    %cst_25 = arith.constant dense<0xFF800000> : vector<512xf32>
    %94 = vector.multi_reduction <maximumf>, %89, %cst_25 [0] : vector<16x512xf32> to vector<512xf32>
    %95 = vector.shape_cast %94 : vector<512xf32> to vector<1x512xf32>
    %96 = tpu.concatenate %93, %95 in 0 : vector<1x512xf32>, vector<1x512xf32> -> vector<2x512xf32>
    %97 = tpu.iota {dimensions = array<i32: 1>} : vector<1x512xi32>
    %c15_i32 = arith.constant 15 : i32
    %98 = vector.broadcast %c15_i32 : i32 to vector<1x512xi32>
    %99 = arith.andi %97, %98 : vector<1x512xi32>
    %c255_i32 = arith.constant 255 : i32
    %100 = vector.broadcast %c255_i32 : i32 to vector<1x512xi32>
    %101 = arith.andi %97, %100 : vector<1x512xi32>
    %c4_i32 = arith.constant 4 : i32
    %102 = vector.broadcast %c4_i32 : i32 to vector<1x512xi32>
    %103 = arith.shrsi %101, %102 : vector<1x512xi32>
    %c-3_i32 = arith.constant -3 : i32
    %104 = vector.broadcast %c-3_i32 : i32 to vector<1x512xi32>
    %105 = arith.addi %99, %104 : vector<1x512xi32>
    %c0_i32 = arith.constant 0 : i32
    %106 = vector.broadcast %c0_i32 : i32 to vector<1x512xi32>
    %107 = arith.cmpi sge, %105, %106 : vector<1x512xi32>
    %c-3_i32_26 = arith.constant -3 : i32
    %108 = vector.broadcast %c-3_i32_26 : i32 to vector<1x512xi32>
    %109 = arith.addi %99, %108 : vector<1x512xi32>
    %c15_i32_27 = arith.constant 15 : i32
    %110 = vector.broadcast %c15_i32_27 : i32 to vector<1x512xi32>
    %111 = arith.cmpi sle, %109, %110 : vector<1x512xi32>
    %112 = arith.andi %107, %111 : vector<1x512xi1>
    %c-2_i32 = arith.constant -2 : i32
    %113 = vector.broadcast %c-2_i32 : i32 to vector<1x512xi32>
    %114 = arith.addi %99, %113 : vector<1x512xi32>
    %c0_i32_28 = arith.constant 0 : i32
    %115 = vector.broadcast %c0_i32_28 : i32 to vector<1x512xi32>
    %116 = arith.cmpi sge, %114, %115 : vector<1x512xi32>
    %c-2_i32_29 = arith.constant -2 : i32
    %117 = vector.broadcast %c-2_i32_29 : i32 to vector<1x512xi32>
    %118 = arith.addi %99, %117 : vector<1x512xi32>
    %c15_i32_30 = arith.constant 15 : i32
    %119 = vector.broadcast %c15_i32_30 : i32 to vector<1x512xi32>
    %120 = arith.cmpi sle, %118, %119 : vector<1x512xi32>
    %121 = arith.andi %116, %120 : vector<1x512xi1>
    %c-1_i32 = arith.constant -1 : i32
    %122 = vector.broadcast %c-1_i32 : i32 to vector<1x512xi32>
    %123 = arith.addi %99, %122 : vector<1x512xi32>
    %c0_i32_31 = arith.constant 0 : i32
    %124 = vector.broadcast %c0_i32_31 : i32 to vector<1x512xi32>
    %125 = arith.cmpi sge, %123, %124 : vector<1x512xi32>
    %c-1_i32_32 = arith.constant -1 : i32
    %126 = vector.broadcast %c-1_i32_32 : i32 to vector<1x512xi32>
    %127 = arith.addi %99, %126 : vector<1x512xi32>
    %c15_i32_33 = arith.constant 15 : i32
    %128 = vector.broadcast %c15_i32_33 : i32 to vector<1x512xi32>
    %129 = arith.cmpi sle, %127, %128 : vector<1x512xi32>
    %130 = arith.andi %125, %129 : vector<1x512xi1>
    %c0_i32_34 = arith.constant 0 : i32
    %131 = vector.broadcast %c0_i32_34 : i32 to vector<1x512xi32>
    %132 = arith.addi %99, %131 : vector<1x512xi32>
    %c0_i32_35 = arith.constant 0 : i32
    %133 = vector.broadcast %c0_i32_35 : i32 to vector<1x512xi32>
    %134 = arith.cmpi sge, %132, %133 : vector<1x512xi32>
    %c0_i32_36 = arith.constant 0 : i32
    %135 = vector.broadcast %c0_i32_36 : i32 to vector<1x512xi32>
    %136 = arith.addi %99, %135 : vector<1x512xi32>
    %c15_i32_37 = arith.constant 15 : i32
    %137 = vector.broadcast %c15_i32_37 : i32 to vector<1x512xi32>
    %138 = arith.cmpi sle, %136, %137 : vector<1x512xi32>
    %139 = arith.andi %134, %138 : vector<1x512xi1>
    %c1_i32 = arith.constant 1 : i32
    %140 = vector.broadcast %c1_i32 : i32 to vector<1x512xi32>
    %141 = arith.addi %99, %140 : vector<1x512xi32>
    %c0_i32_38 = arith.constant 0 : i32
    %142 = vector.broadcast %c0_i32_38 : i32 to vector<1x512xi32>
    %143 = arith.cmpi sge, %141, %142 : vector<1x512xi32>
    %c1_i32_39 = arith.constant 1 : i32
    %144 = vector.broadcast %c1_i32_39 : i32 to vector<1x512xi32>
    %145 = arith.addi %99, %144 : vector<1x512xi32>
    %c15_i32_40 = arith.constant 15 : i32
    %146 = vector.broadcast %c15_i32_40 : i32 to vector<1x512xi32>
    %147 = arith.cmpi sle, %145, %146 : vector<1x512xi32>
    %148 = arith.andi %143, %147 : vector<1x512xi1>
    %c2_i32 = arith.constant 2 : i32
    %149 = vector.broadcast %c2_i32 : i32 to vector<1x512xi32>
    %150 = arith.addi %99, %149 : vector<1x512xi32>
    %c0_i32_41 = arith.constant 0 : i32
    %151 = vector.broadcast %c0_i32_41 : i32 to vector<1x512xi32>
    %152 = arith.cmpi sge, %150, %151 : vector<1x512xi32>
    %c2_i32_42 = arith.constant 2 : i32
    %153 = vector.broadcast %c2_i32_42 : i32 to vector<1x512xi32>
    %154 = arith.addi %99, %153 : vector<1x512xi32>
    %c15_i32_43 = arith.constant 15 : i32
    %155 = vector.broadcast %c15_i32_43 : i32 to vector<1x512xi32>
    %156 = arith.cmpi sle, %154, %155 : vector<1x512xi32>
    %157 = arith.andi %152, %156 : vector<1x512xi1>
    %c3_i32 = arith.constant 3 : i32
    %158 = vector.broadcast %c3_i32 : i32 to vector<1x512xi32>
    %159 = arith.addi %99, %158 : vector<1x512xi32>
    %c0_i32_44 = arith.constant 0 : i32
    %160 = vector.broadcast %c0_i32_44 : i32 to vector<1x512xi32>
    %161 = arith.cmpi sge, %159, %160 : vector<1x512xi32>
    %c3_i32_45 = arith.constant 3 : i32
    %162 = vector.broadcast %c3_i32_45 : i32 to vector<1x512xi32>
    %163 = arith.addi %99, %162 : vector<1x512xi32>
    %c15_i32_46 = arith.constant 15 : i32
    %164 = vector.broadcast %c15_i32_46 : i32 to vector<1x512xi32>
    %165 = arith.cmpi sle, %163, %164 : vector<1x512xi32>
    %166 = arith.andi %161, %165 : vector<1x512xi1>
    %c-3_i32_47 = arith.constant -3 : i32
    %167 = vector.broadcast %c-3_i32_47 : i32 to vector<1x512xi32>
    %168 = arith.addi %103, %167 : vector<1x512xi32>
    %c0_i32_48 = arith.constant 0 : i32
    %169 = vector.broadcast %c0_i32_48 : i32 to vector<1x512xi32>
    %170 = arith.cmpi sge, %168, %169 : vector<1x512xi32>
    %c-3_i32_49 = arith.constant -3 : i32
    %171 = vector.broadcast %c-3_i32_49 : i32 to vector<1x512xi32>
    %172 = arith.addi %103, %171 : vector<1x512xi32>
    %c15_i32_50 = arith.constant 15 : i32
    %173 = vector.broadcast %c15_i32_50 : i32 to vector<1x512xi32>
    %174 = arith.cmpi sle, %172, %173 : vector<1x512xi32>
    %175 = arith.andi %170, %174 : vector<1x512xi1>
    %c-2_i32_51 = arith.constant -2 : i32
    %176 = vector.broadcast %c-2_i32_51 : i32 to vector<1x512xi32>
    %177 = arith.addi %103, %176 : vector<1x512xi32>
    %c0_i32_52 = arith.constant 0 : i32
    %178 = vector.broadcast %c0_i32_52 : i32 to vector<1x512xi32>
    %179 = arith.cmpi sge, %177, %178 : vector<1x512xi32>
    %c-2_i32_53 = arith.constant -2 : i32
    %180 = vector.broadcast %c-2_i32_53 : i32 to vector<1x512xi32>
    %181 = arith.addi %103, %180 : vector<1x512xi32>
    %c15_i32_54 = arith.constant 15 : i32
    %182 = vector.broadcast %c15_i32_54 : i32 to vector<1x512xi32>
    %183 = arith.cmpi sle, %181, %182 : vector<1x512xi32>
    %184 = arith.andi %179, %183 : vector<1x512xi1>
    %c-1_i32_55 = arith.constant -1 : i32
    %185 = vector.broadcast %c-1_i32_55 : i32 to vector<1x512xi32>
    %186 = arith.addi %103, %185 : vector<1x512xi32>
    %c0_i32_56 = arith.constant 0 : i32
    %187 = vector.broadcast %c0_i32_56 : i32 to vector<1x512xi32>
    %188 = arith.cmpi sge, %186, %187 : vector<1x512xi32>
    %c-1_i32_57 = arith.constant -1 : i32
    %189 = vector.broadcast %c-1_i32_57 : i32 to vector<1x512xi32>
    %190 = arith.addi %103, %189 : vector<1x512xi32>
    %c15_i32_58 = arith.constant 15 : i32
    %191 = vector.broadcast %c15_i32_58 : i32 to vector<1x512xi32>
    %192 = arith.cmpi sle, %190, %191 : vector<1x512xi32>
    %193 = arith.andi %188, %192 : vector<1x512xi1>
    %c0_i32_59 = arith.constant 0 : i32
    %194 = vector.broadcast %c0_i32_59 : i32 to vector<1x512xi32>
    %195 = arith.addi %103, %194 : vector<1x512xi32>
    %c0_i32_60 = arith.constant 0 : i32
    %196 = vector.broadcast %c0_i32_60 : i32 to vector<1x512xi32>
    %197 = arith.cmpi sge, %195, %196 : vector<1x512xi32>
    %c0_i32_61 = arith.constant 0 : i32
    %198 = vector.broadcast %c0_i32_61 : i32 to vector<1x512xi32>
    %199 = arith.addi %103, %198 : vector<1x512xi32>
    %c15_i32_62 = arith.constant 15 : i32
    %200 = vector.broadcast %c15_i32_62 : i32 to vector<1x512xi32>
    %201 = arith.cmpi sle, %199, %200 : vector<1x512xi32>
    %202 = arith.andi %197, %201 : vector<1x512xi1>
    %c1_i32_63 = arith.constant 1 : i32
    %203 = vector.broadcast %c1_i32_63 : i32 to vector<1x512xi32>
    %204 = arith.addi %103, %203 : vector<1x512xi32>
    %c0_i32_64 = arith.constant 0 : i32
    %205 = vector.broadcast %c0_i32_64 : i32 to vector<1x512xi32>
    %206 = arith.cmpi sge, %204, %205 : vector<1x512xi32>
    %c1_i32_65 = arith.constant 1 : i32
    %207 = vector.broadcast %c1_i32_65 : i32 to vector<1x512xi32>
    %208 = arith.addi %103, %207 : vector<1x512xi32>
    %c15_i32_66 = arith.constant 15 : i32
    %209 = vector.broadcast %c15_i32_66 : i32 to vector<1x512xi32>
    %210 = arith.cmpi sle, %208, %209 : vector<1x512xi32>
    %211 = arith.andi %206, %210 : vector<1x512xi1>
    %c2_i32_67 = arith.constant 2 : i32
    %212 = vector.broadcast %c2_i32_67 : i32 to vector<1x512xi32>
    %213 = arith.addi %103, %212 : vector<1x512xi32>
    %c0_i32_68 = arith.constant 0 : i32
    %214 = vector.broadcast %c0_i32_68 : i32 to vector<1x512xi32>
    %215 = arith.cmpi sge, %213, %214 : vector<1x512xi32>
    %c2_i32_69 = arith.constant 2 : i32
    %216 = vector.broadcast %c2_i32_69 : i32 to vector<1x512xi32>
    %217 = arith.addi %103, %216 : vector<1x512xi32>
    %c15_i32_70 = arith.constant 15 : i32
    %218 = vector.broadcast %c15_i32_70 : i32 to vector<1x512xi32>
    %219 = arith.cmpi sle, %217, %218 : vector<1x512xi32>
    %220 = arith.andi %215, %219 : vector<1x512xi1>
    %c3_i32_71 = arith.constant 3 : i32
    %221 = vector.broadcast %c3_i32_71 : i32 to vector<1x512xi32>
    %222 = arith.addi %103, %221 : vector<1x512xi32>
    %c0_i32_72 = arith.constant 0 : i32
    %223 = vector.broadcast %c0_i32_72 : i32 to vector<1x512xi32>
    %224 = arith.cmpi sge, %222, %223 : vector<1x512xi32>
    %c3_i32_73 = arith.constant 3 : i32
    %225 = vector.broadcast %c3_i32_73 : i32 to vector<1x512xi32>
    %226 = arith.addi %103, %225 : vector<1x512xi32>
    %c15_i32_74 = arith.constant 15 : i32
    %227 = vector.broadcast %c15_i32_74 : i32 to vector<1x512xi32>
    %228 = arith.cmpi sle, %226, %227 : vector<1x512xi32>
    %229 = arith.andi %224, %228 : vector<1x512xi1>
    %cst_75 = arith.constant 0.000000e+00 : f32
    %230 = vector.broadcast %cst_75 : f32 to vector<1x512xf32>
    %c51_i32 = arith.constant 51 : i32
    %231 = tpu.dynamic_rotate %96 by %c51_i32 dim 1 : vector<2x512xf32>, i32 -> vector<2x512xf32>
    %232 = arith.andi %175, %112 : vector<1x512xi1>
    %cst_76 = arith.constant 1.000000e+00 : f32
    %cst_77 = arith.constant 0.000000e+00 : f32
    %233 = vector.broadcast %cst_76 : f32 to vector<1x512xf32>
    %234 = vector.broadcast %cst_77 : f32 to vector<1x512xf32>
    %235 = arith.select %232, %233, %234 : vector<1x512xi1>, vector<1x512xf32>
    %c0_78 = arith.constant 0 : index
    %236 = memref.load %arg3[%c0_78] : memref<98xf32, #tpu.memory_space<smem>>
    %c49 = arith.constant 49 : index
    %237 = memref.load %arg3[%c49] : memref<98xf32, #tpu.memory_space<smem>>
    %238 = vector.extract_strided_slice %231 {offsets = [0, 0], sizes = [1, 512], strides = [1, 1]} : vector<2x512xf32> to vector<1x512xf32>
    %239 = vector.broadcast %236 : f32 to vector<1x512xf32>
    %240 = arith.mulf %239, %238 : vector<1x512xf32>
    %241 = vector.extract_strided_slice %231 {offsets = [1, 0], sizes = [1, 512], strides = [1, 1]} : vector<2x512xf32> to vector<1x512xf32>
    %242 = vector.broadcast %237 : f32 to vector<1x512xf32>
    %243 = arith.mulf %242, %241 : vector<1x512xf32>
    %244 = arith.addf %240, %243 : vector<1x512xf32>
    %245 = arith.mulf %235, %244 : vector<1x512xf32>
    %246 = arith.addf %230, %245 : vector<1x512xf32>
    %c50_i32 = arith.constant 50 : i32
    %247 = tpu.dynamic_rotate %96 by %c50_i32 dim 1 : vector<2x512xf32>, i32 -> vector<2x512xf32>
    %248 = arith.andi %175, %121 : vector<1x512xi1>
    %cst_79 = arith.constant 1.000000e+00 : f32
    %cst_80 = arith.constant 0.000000e+00 : f32
    %249 = vector.broadcast %cst_79 : f32 to vector<1x512xf32>
    %250 = vector.broadcast %cst_80 : f32 to vector<1x512xf32>
    %251 = arith.select %248, %249, %250 : vector<1x512xi1>, vector<1x512xf32>
    %c1 = arith.constant 1 : index
    %252 = memref.load %arg3[%c1] : memref<98xf32, #tpu.memory_space<smem>>
    %c50 = arith.constant 50 : index
    %253 = memref.load %arg3[%c50] : memref<98xf32, #tpu.memory_space<smem>>
    %254 = vector.extract_strided_slice %247 {offsets = [0, 0], sizes = [1, 512], strides = [1, 1]} : vector<2x512xf32> to vector<1x512xf32>
    %255 = vector.broadcast %252 : f32 to vector<1x512xf32>
    %256 = arith.mulf %255, %254 : vector<1x512xf32>
    %257 = vector.extract_strided_slice %247 {offsets = [1, 0], sizes = [1, 512], strides = [1, 1]} : vector<2x512xf32> to vector<1x512xf32>
    %258 = vector.broadcast %253 : f32 to vector<1x512xf32>
    %259 = arith.mulf %258, %257 : vector<1x512xf32>
    %260 = arith.addf %256, %259 : vector<1x512xf32>
    %261 = arith.mulf %251, %260 : vector<1x512xf32>
    %262 = arith.addf %246, %261 : vector<1x512xf32>
    %c49_i32 = arith.constant 49 : i32
    %263 = tpu.dynamic_rotate %96 by %c49_i32 dim 1 : vector<2x512xf32>, i32 -> vector<2x512xf32>
    %264 = arith.andi %175, %130 : vector<1x512xi1>
    %cst_81 = arith.constant 1.000000e+00 : f32
    %cst_82 = arith.constant 0.000000e+00 : f32
    %265 = vector.broadcast %cst_81 : f32 to vector<1x512xf32>
    %266 = vector.broadcast %cst_82 : f32 to vector<1x512xf32>
    %267 = arith.select %264, %265, %266 : vector<1x512xi1>, vector<1x512xf32>
    %c2 = arith.constant 2 : index
    %268 = memref.load %arg3[%c2] : memref<98xf32, #tpu.memory_space<smem>>
    %c51 = arith.constant 51 : index
    %269 = memref.load %arg3[%c51] : memref<98xf32, #tpu.memory_space<smem>>
    %270 = vector.extract_strided_slice %263 {offsets = [0, 0], sizes = [1, 512], strides = [1, 1]} : vector<2x512xf32> to vector<1x512xf32>
    %271 = vector.broadcast %268 : f32 to vector<1x512xf32>
    %272 = arith.mulf %271, %270 : vector<1x512xf32>
    %273 = vector.extract_strided_slice %263 {offsets = [1, 0], sizes = [1, 512], strides = [1, 1]} : vector<2x512xf32> to vector<1x512xf32>
    %274 = vector.broadcast %269 : f32 to vector<1x512xf32>
    %275 = arith.mulf %274, %273 : vector<1x512xf32>
    %276 = arith.addf %272, %275 : vector<1x512xf32>
    %277 = arith.mulf %267, %276 : vector<1x512xf32>
    %278 = arith.addf %262, %277 : vector<1x512xf32>
    %c48_i32 = arith.constant 48 : i32
    %279 = tpu.dynamic_rotate %96 by %c48_i32 dim 1 : vector<2x512xf32>, i32 -> vector<2x512xf32>
    %280 = arith.andi %175, %139 : vector<1x512xi1>
    %cst_83 = arith.constant 1.000000e+00 : f32
    %cst_84 = arith.constant 0.000000e+00 : f32
    %281 = vector.broadcast %cst_83 : f32 to vector<1x512xf32>
    %282 = vector.broadcast %cst_84 : f32 to vector<1x512xf32>
    %283 = arith.select %280, %281, %282 : vector<1x512xi1>, vector<1x512xf32>
    %c3 = arith.constant 3 : index
    %284 = memref.load %arg3[%c3] : memref<98xf32, #tpu.memory_space<smem>>
    %c52 = arith.constant 52 : index
    %285 = memref.load %arg3[%c52] : memref<98xf32, #tpu.memory_space<smem>>
    %286 = vector.extract_strided_slice %279 {offsets = [0, 0], sizes = [1, 512], strides = [1, 1]} : vector<2x512xf32> to vector<1x512xf32>
    %287 = vector.broadcast %284 : f32 to vector<1x512xf32>
    %288 = arith.mulf %287, %286 : vector<1x512xf32>
    %289 = vector.extract_strided_slice %279 {offsets = [1, 0], sizes = [1, 512], strides = [1, 1]} : vector<2x512xf32> to vector<1x512xf32>
    %290 = vector.broadcast %285 : f32 to vector<1x512xf32>
    %291 = arith.mulf %290, %289 : vector<1x512xf32>
    %292 = arith.addf %288, %291 : vector<1x512xf32>
    %293 = arith.mulf %283, %292 : vector<1x512xf32>
    %294 = arith.addf %278, %293 : vector<1x512xf32>
    %c47_i32 = arith.constant 47 : i32
    %295 = tpu.dynamic_rotate %96 by %c47_i32 dim 1 : vector<2x512xf32>, i32 -> vector<2x512xf32>
    %296 = arith.andi %175, %148 : vector<1x512xi1>
    %cst_85 = arith.constant 1.000000e+00 : f32
    %cst_86 = arith.constant 0.000000e+00 : f32
    %297 = vector.broadcast %cst_85 : f32 to vector<1x512xf32>
    %298 = vector.broadcast %cst_86 : f32 to vector<1x512xf32>
    %299 = arith.select %296, %297, %298 : vector<1x512xi1>, vector<1x512xf32>
    %c4 = arith.constant 4 : index
    %300 = memref.load %arg3[%c4] : memref<98xf32, #tpu.memory_space<smem>>
    %c53 = arith.constant 53 : index
    %301 = memref.load %arg3[%c53] : memref<98xf32, #tpu.memory_space<smem>>
    %302 = vector.extract_strided_slice %295 {offsets = [0, 0], sizes = [1, 512], strides = [1, 1]} : vector<2x512xf32> to vector<1x512xf32>
    %303 = vector.broadcast %300 : f32 to vector<1x512xf32>
    %304 = arith.mulf %303, %302 : vector<1x512xf32>
    %305 = vector.extract_strided_slice %295 {offsets = [1, 0], sizes = [1, 512], strides = [1, 1]} : vector<2x512xf32> to vector<1x512xf32>
    %306 = vector.broadcast %301 : f32 to vector<1x512xf32>
    %307 = arith.mulf %306, %305 : vector<1x512xf32>
    %308 = arith.addf %304, %307 : vector<1x512xf32>
    %309 = arith.mulf %299, %308 : vector<1x512xf32>
    %310 = arith.addf %294, %309 : vector<1x512xf32>
    %c46_i32 = arith.constant 46 : i32
    %311 = tpu.dynamic_rotate %96 by %c46_i32 dim 1 : vector<2x512xf32>, i32 -> vector<2x512xf32>
    %312 = arith.andi %175, %157 : vector<1x512xi1>
    %cst_87 = arith.constant 1.000000e+00 : f32
    %cst_88 = arith.constant 0.000000e+00 : f32
    %313 = vector.broadcast %cst_87 : f32 to vector<1x512xf32>
    %314 = vector.broadcast %cst_88 : f32 to vector<1x512xf32>
    %315 = arith.select %312, %313, %314 : vector<1x512xi1>, vector<1x512xf32>
    %c5 = arith.constant 5 : index
    %316 = memref.load %arg3[%c5] : memref<98xf32, #tpu.memory_space<smem>>
    %c54 = arith.constant 54 : index
    %317 = memref.load %arg3[%c54] : memref<98xf32, #tpu.memory_space<smem>>
    %318 = vector.extract_strided_slice %311 {offsets = [0, 0], sizes = [1, 512], strides = [1, 1]} : vector<2x512xf32> to vector<1x512xf32>
    %319 = vector.broadcast %316 : f32 to vector<1x512xf32>
    %320 = arith.mulf %319, %318 : vector<1x512xf32>
    %321 = vector.extract_strided_slice %311 {offsets = [1, 0], sizes = [1, 512], strides = [1, 1]} : vector<2x512xf32> to vector<1x512xf32>
    %322 = vector.broadcast %317 : f32 to vector<1x512xf32>
    %323 = arith.mulf %322, %321 : vector<1x512xf32>
    %324 = arith.addf %320, %323 : vector<1x512xf32>
    %325 = arith.mulf %315, %324 : vector<1x512xf32>
    %326 = arith.addf %310, %325 : vector<1x512xf32>
    %c45_i32 = arith.constant 45 : i32
    %327 = tpu.dynamic_rotate %96 by %c45_i32 dim 1 : vector<2x512xf32>, i32 -> vector<2x512xf32>
    %328 = arith.andi %175, %166 : vector<1x512xi1>
    %cst_89 = arith.constant 1.000000e+00 : f32
    %cst_90 = arith.constant 0.000000e+00 : f32
    %329 = vector.broadcast %cst_89 : f32 to vector<1x512xf32>
    %330 = vector.broadcast %cst_90 : f32 to vector<1x512xf32>
    %331 = arith.select %328, %329, %330 : vector<1x512xi1>, vector<1x512xf32>
    %c6 = arith.constant 6 : index
    %332 = memref.load %arg3[%c6] : memref<98xf32, #tpu.memory_space<smem>>
    %c55 = arith.constant 55 : index
    %333 = memref.load %arg3[%c55] : memref<98xf32, #tpu.memory_space<smem>>
    %334 = vector.extract_strided_slice %327 {offsets = [0, 0], sizes = [1, 512], strides = [1, 1]} : vector<2x512xf32> to vector<1x512xf32>
    %335 = vector.broadcast %332 : f32 to vector<1x512xf32>
    %336 = arith.mulf %335, %334 : vector<1x512xf32>
    %337 = vector.extract_strided_slice %327 {offsets = [1, 0], sizes = [1, 512], strides = [1, 1]} : vector<2x512xf32> to vector<1x512xf32>
    %338 = vector.broadcast %333 : f32 to vector<1x512xf32>
    %339 = arith.mulf %338, %337 : vector<1x512xf32>
    %340 = arith.addf %336, %339 : vector<1x512xf32>
    %341 = arith.mulf %331, %340 : vector<1x512xf32>
    %342 = arith.addf %326, %341 : vector<1x512xf32>
    %c35_i32 = arith.constant 35 : i32
    %343 = tpu.dynamic_rotate %96 by %c35_i32 dim 1 : vector<2x512xf32>, i32 -> vector<2x512xf32>
    %344 = arith.andi %184, %112 : vector<1x512xi1>
    %cst_91 = arith.constant 1.000000e+00 : f32
    %cst_92 = arith.constant 0.000000e+00 : f32
    %345 = vector.broadcast %cst_91 : f32 to vector<1x512xf32>
    %346 = vector.broadcast %cst_92 : f32 to vector<1x512xf32>
    %347 = arith.select %344, %345, %346 : vector<1x512xi1>, vector<1x512xf32>
    %c7 = arith.constant 7 : index
    %348 = memref.load %arg3[%c7] : memref<98xf32, #tpu.memory_space<smem>>
    %c56 = arith.constant 56 : index
    %349 = memref.load %arg3[%c56] : memref<98xf32, #tpu.memory_space<smem>>
    %350 = vector.extract_strided_slice %343 {offsets = [0, 0], sizes = [1, 512], strides = [1, 1]} : vector<2x512xf32> to vector<1x512xf32>
    %351 = vector.broadcast %348 : f32 to vector<1x512xf32>
    %352 = arith.mulf %351, %350 : vector<1x512xf32>
    %353 = vector.extract_strided_slice %343 {offsets = [1, 0], sizes = [1, 512], strides = [1, 1]} : vector<2x512xf32> to vector<1x512xf32>
    %354 = vector.broadcast %349 : f32 to vector<1x512xf32>
    %355 = arith.mulf %354, %353 : vector<1x512xf32>
    %356 = arith.addf %352, %355 : vector<1x512xf32>
    %357 = arith.mulf %347, %356 : vector<1x512xf32>
    %358 = arith.addf %342, %357 : vector<1x512xf32>
    %c34_i32 = arith.constant 34 : i32
    %359 = tpu.dynamic_rotate %96 by %c34_i32 dim 1 : vector<2x512xf32>, i32 -> vector<2x512xf32>
    %360 = arith.andi %184, %121 : vector<1x512xi1>
    %cst_93 = arith.constant 1.000000e+00 : f32
    %cst_94 = arith.constant 0.000000e+00 : f32
    %361 = vector.broadcast %cst_93 : f32 to vector<1x512xf32>
    %362 = vector.broadcast %cst_94 : f32 to vector<1x512xf32>
    %363 = arith.select %360, %361, %362 : vector<1x512xi1>, vector<1x512xf32>
    %c8 = arith.constant 8 : index
    %364 = memref.load %arg3[%c8] : memref<98xf32, #tpu.memory_space<smem>>
    %c57 = arith.constant 57 : index
    %365 = memref.load %arg3[%c57] : memref<98xf32, #tpu.memory_space<smem>>
    %366 = vector.extract_strided_slice %359 {offsets = [0, 0], sizes = [1, 512], strides = [1, 1]} : vector<2x512xf32> to vector<1x512xf32>
    %367 = vector.broadcast %364 : f32 to vector<1x512xf32>
    %368 = arith.mulf %367, %366 : vector<1x512xf32>
    %369 = vector.extract_strided_slice %359 {offsets = [1, 0], sizes = [1, 512], strides = [1, 1]} : vector<2x512xf32> to vector<1x512xf32>
    %370 = vector.broadcast %365 : f32 to vector<1x512xf32>
    %371 = arith.mulf %370, %369 : vector<1x512xf32>
    %372 = arith.addf %368, %371 : vector<1x512xf32>
    %373 = arith.mulf %363, %372 : vector<1x512xf32>
    %374 = arith.addf %358, %373 : vector<1x512xf32>
    %c33_i32 = arith.constant 33 : i32
    %375 = tpu.dynamic_rotate %96 by %c33_i32 dim 1 : vector<2x512xf32>, i32 -> vector<2x512xf32>
    %376 = arith.andi %184, %130 : vector<1x512xi1>
    %cst_95 = arith.constant 1.000000e+00 : f32
    %cst_96 = arith.constant 0.000000e+00 : f32
    %377 = vector.broadcast %cst_95 : f32 to vector<1x512xf32>
    %378 = vector.broadcast %cst_96 : f32 to vector<1x512xf32>
    %379 = arith.select %376, %377, %378 : vector<1x512xi1>, vector<1x512xf32>
    %c9 = arith.constant 9 : index
    %380 = memref.load %arg3[%c9] : memref<98xf32, #tpu.memory_space<smem>>
    %c58 = arith.constant 58 : index
    %381 = memref.load %arg3[%c58] : memref<98xf32, #tpu.memory_space<smem>>
    %382 = vector.extract_strided_slice %375 {offsets = [0, 0], sizes = [1, 512], strides = [1, 1]} : vector<2x512xf32> to vector<1x512xf32>
    %383 = vector.broadcast %380 : f32 to vector<1x512xf32>
    %384 = arith.mulf %383, %382 : vector<1x512xf32>
    %385 = vector.extract_strided_slice %375 {offsets = [1, 0], sizes = [1, 512], strides = [1, 1]} : vector<2x512xf32> to vector<1x512xf32>
    %386 = vector.broadcast %381 : f32 to vector<1x512xf32>
    %387 = arith.mulf %386, %385 : vector<1x512xf32>
    %388 = arith.addf %384, %387 : vector<1x512xf32>
    %389 = arith.mulf %379, %388 : vector<1x512xf32>
    %390 = arith.addf %374, %389 : vector<1x512xf32>
    %c32_i32 = arith.constant 32 : i32
    %391 = tpu.dynamic_rotate %96 by %c32_i32 dim 1 : vector<2x512xf32>, i32 -> vector<2x512xf32>
    %392 = arith.andi %184, %139 : vector<1x512xi1>
    %cst_97 = arith.constant 1.000000e+00 : f32
    %cst_98 = arith.constant 0.000000e+00 : f32
    %393 = vector.broadcast %cst_97 : f32 to vector<1x512xf32>
    %394 = vector.broadcast %cst_98 : f32 to vector<1x512xf32>
    %395 = arith.select %392, %393, %394 : vector<1x512xi1>, vector<1x512xf32>
    %c10 = arith.constant 10 : index
    %396 = memref.load %arg3[%c10] : memref<98xf32, #tpu.memory_space<smem>>
    %c59 = arith.constant 59 : index
    %397 = memref.load %arg3[%c59] : memref<98xf32, #tpu.memory_space<smem>>
    %398 = vector.extract_strided_slice %391 {offsets = [0, 0], sizes = [1, 512], strides = [1, 1]} : vector<2x512xf32> to vector<1x512xf32>
    %399 = vector.broadcast %396 : f32 to vector<1x512xf32>
    %400 = arith.mulf %399, %398 : vector<1x512xf32>
    %401 = vector.extract_strided_slice %391 {offsets = [1, 0], sizes = [1, 512], strides = [1, 1]} : vector<2x512xf32> to vector<1x512xf32>
    %402 = vector.broadcast %397 : f32 to vector<1x512xf32>
    %403 = arith.mulf %402, %401 : vector<1x512xf32>
    %404 = arith.addf %400, %403 : vector<1x512xf32>
    %405 = arith.mulf %395, %404 : vector<1x512xf32>
    %406 = arith.addf %390, %405 : vector<1x512xf32>
    %c31_i32 = arith.constant 31 : i32
    %407 = tpu.dynamic_rotate %96 by %c31_i32 dim 1 : vector<2x512xf32>, i32 -> vector<2x512xf32>
    %408 = arith.andi %184, %148 : vector<1x512xi1>
    %cst_99 = arith.constant 1.000000e+00 : f32
    %cst_100 = arith.constant 0.000000e+00 : f32
    %409 = vector.broadcast %cst_99 : f32 to vector<1x512xf32>
    %410 = vector.broadcast %cst_100 : f32 to vector<1x512xf32>
    %411 = arith.select %408, %409, %410 : vector<1x512xi1>, vector<1x512xf32>
    %c11 = arith.constant 11 : index
    %412 = memref.load %arg3[%c11] : memref<98xf32, #tpu.memory_space<smem>>
    %c60 = arith.constant 60 : index
    %413 = memref.load %arg3[%c60] : memref<98xf32, #tpu.memory_space<smem>>
    %414 = vector.extract_strided_slice %407 {offsets = [0, 0], sizes = [1, 512], strides = [1, 1]} : vector<2x512xf32> to vector<1x512xf32>
    %415 = vector.broadcast %412 : f32 to vector<1x512xf32>
    %416 = arith.mulf %415, %414 : vector<1x512xf32>
    %417 = vector.extract_strided_slice %407 {offsets = [1, 0], sizes = [1, 512], strides = [1, 1]} : vector<2x512xf32> to vector<1x512xf32>
    %418 = vector.broadcast %413 : f32 to vector<1x512xf32>
    %419 = arith.mulf %418, %417 : vector<1x512xf32>
    %420 = arith.addf %416, %419 : vector<1x512xf32>
    %421 = arith.mulf %411, %420 : vector<1x512xf32>
    %422 = arith.addf %406, %421 : vector<1x512xf32>
    %c30_i32 = arith.constant 30 : i32
    %423 = tpu.dynamic_rotate %96 by %c30_i32 dim 1 : vector<2x512xf32>, i32 -> vector<2x512xf32>
    %424 = arith.andi %184, %157 : vector<1x512xi1>
    %cst_101 = arith.constant 1.000000e+00 : f32
    %cst_102 = arith.constant 0.000000e+00 : f32
    %425 = vector.broadcast %cst_101 : f32 to vector<1x512xf32>
    %426 = vector.broadcast %cst_102 : f32 to vector<1x512xf32>
    %427 = arith.select %424, %425, %426 : vector<1x512xi1>, vector<1x512xf32>
    %c12 = arith.constant 12 : index
    %428 = memref.load %arg3[%c12] : memref<98xf32, #tpu.memory_space<smem>>
    %c61 = arith.constant 61 : index
    %429 = memref.load %arg3[%c61] : memref<98xf32, #tpu.memory_space<smem>>
    %430 = vector.extract_strided_slice %423 {offsets = [0, 0], sizes = [1, 512], strides = [1, 1]} : vector<2x512xf32> to vector<1x512xf32>
    %431 = vector.broadcast %428 : f32 to vector<1x512xf32>
    %432 = arith.mulf %431, %430 : vector<1x512xf32>
    %433 = vector.extract_strided_slice %423 {offsets = [1, 0], sizes = [1, 512], strides = [1, 1]} : vector<2x512xf32> to vector<1x512xf32>
    %434 = vector.broadcast %429 : f32 to vector<1x512xf32>
    %435 = arith.mulf %434, %433 : vector<1x512xf32>
    %436 = arith.addf %432, %435 : vector<1x512xf32>
    %437 = arith.mulf %427, %436 : vector<1x512xf32>
    %438 = arith.addf %422, %437 : vector<1x512xf32>
    %c29_i32 = arith.constant 29 : i32
    %439 = tpu.dynamic_rotate %96 by %c29_i32 dim 1 : vector<2x512xf32>, i32 -> vector<2x512xf32>
    %440 = arith.andi %184, %166 : vector<1x512xi1>
    %cst_103 = arith.constant 1.000000e+00 : f32
    %cst_104 = arith.constant 0.000000e+00 : f32
    %441 = vector.broadcast %cst_103 : f32 to vector<1x512xf32>
    %442 = vector.broadcast %cst_104 : f32 to vector<1x512xf32>
    %443 = arith.select %440, %441, %442 : vector<1x512xi1>, vector<1x512xf32>
    %c13 = arith.constant 13 : index
    %444 = memref.load %arg3[%c13] : memref<98xf32, #tpu.memory_space<smem>>
    %c62 = arith.constant 62 : index
    %445 = memref.load %arg3[%c62] : memref<98xf32, #tpu.memory_space<smem>>
    %446 = vector.extract_strided_slice %439 {offsets = [0, 0], sizes = [1, 512], strides = [1, 1]} : vector<2x512xf32> to vector<1x512xf32>
    %447 = vector.broadcast %444 : f32 to vector<1x512xf32>
    %448 = arith.mulf %447, %446 : vector<1x512xf32>
    %449 = vector.extract_strided_slice %439 {offsets = [1, 0], sizes = [1, 512], strides = [1, 1]} : vector<2x512xf32> to vector<1x512xf32>
    %450 = vector.broadcast %445 : f32 to vector<1x512xf32>
    %451 = arith.mulf %450, %449 : vector<1x512xf32>
    %452 = arith.addf %448, %451 : vector<1x512xf32>
    %453 = arith.mulf %443, %452 : vector<1x512xf32>
    %454 = arith.addf %438, %453 : vector<1x512xf32>
    %c19_i32 = arith.constant 19 : i32
    %455 = tpu.dynamic_rotate %96 by %c19_i32 dim 1 : vector<2x512xf32>, i32 -> vector<2x512xf32>
    %456 = arith.andi %193, %112 : vector<1x512xi1>
    %cst_105 = arith.constant 1.000000e+00 : f32
    %cst_106 = arith.constant 0.000000e+00 : f32
    %457 = vector.broadcast %cst_105 : f32 to vector<1x512xf32>
    %458 = vector.broadcast %cst_106 : f32 to vector<1x512xf32>
    %459 = arith.select %456, %457, %458 : vector<1x512xi1>, vector<1x512xf32>
    %c14 = arith.constant 14 : index
    %460 = memref.load %arg3[%c14] : memref<98xf32, #tpu.memory_space<smem>>
    %c63 = arith.constant 63 : index
    %461 = memref.load %arg3[%c63] : memref<98xf32, #tpu.memory_space<smem>>
    %462 = vector.extract_strided_slice %455 {offsets = [0, 0], sizes = [1, 512], strides = [1, 1]} : vector<2x512xf32> to vector<1x512xf32>
    %463 = vector.broadcast %460 : f32 to vector<1x512xf32>
    %464 = arith.mulf %463, %462 : vector<1x512xf32>
    %465 = vector.extract_strided_slice %455 {offsets = [1, 0], sizes = [1, 512], strides = [1, 1]} : vector<2x512xf32> to vector<1x512xf32>
    %466 = vector.broadcast %461 : f32 to vector<1x512xf32>
    %467 = arith.mulf %466, %465 : vector<1x512xf32>
    %468 = arith.addf %464, %467 : vector<1x512xf32>
    %469 = arith.mulf %459, %468 : vector<1x512xf32>
    %470 = arith.addf %454, %469 : vector<1x512xf32>
    %c18_i32 = arith.constant 18 : i32
    %471 = tpu.dynamic_rotate %96 by %c18_i32 dim 1 : vector<2x512xf32>, i32 -> vector<2x512xf32>
    %472 = arith.andi %193, %121 : vector<1x512xi1>
    %cst_107 = arith.constant 1.000000e+00 : f32
    %cst_108 = arith.constant 0.000000e+00 : f32
    %473 = vector.broadcast %cst_107 : f32 to vector<1x512xf32>
    %474 = vector.broadcast %cst_108 : f32 to vector<1x512xf32>
    %475 = arith.select %472, %473, %474 : vector<1x512xi1>, vector<1x512xf32>
    %c15 = arith.constant 15 : index
    %476 = memref.load %arg3[%c15] : memref<98xf32, #tpu.memory_space<smem>>
    %c64 = arith.constant 64 : index
    %477 = memref.load %arg3[%c64] : memref<98xf32, #tpu.memory_space<smem>>
    %478 = vector.extract_strided_slice %471 {offsets = [0, 0], sizes = [1, 512], strides = [1, 1]} : vector<2x512xf32> to vector<1x512xf32>
    %479 = vector.broadcast %476 : f32 to vector<1x512xf32>
    %480 = arith.mulf %479, %478 : vector<1x512xf32>
    %481 = vector.extract_strided_slice %471 {offsets = [1, 0], sizes = [1, 512], strides = [1, 1]} : vector<2x512xf32> to vector<1x512xf32>
    %482 = vector.broadcast %477 : f32 to vector<1x512xf32>
    %483 = arith.mulf %482, %481 : vector<1x512xf32>
    %484 = arith.addf %480, %483 : vector<1x512xf32>
    %485 = arith.mulf %475, %484 : vector<1x512xf32>
    %486 = arith.addf %470, %485 : vector<1x512xf32>
    %c17_i32 = arith.constant 17 : i32
    %487 = tpu.dynamic_rotate %96 by %c17_i32 dim 1 : vector<2x512xf32>, i32 -> vector<2x512xf32>
    %488 = arith.andi %193, %130 : vector<1x512xi1>
    %cst_109 = arith.constant 1.000000e+00 : f32
    %cst_110 = arith.constant 0.000000e+00 : f32
    %489 = vector.broadcast %cst_109 : f32 to vector<1x512xf32>
    %490 = vector.broadcast %cst_110 : f32 to vector<1x512xf32>
    %491 = arith.select %488, %489, %490 : vector<1x512xi1>, vector<1x512xf32>
    %c16 = arith.constant 16 : index
    %492 = memref.load %arg3[%c16] : memref<98xf32, #tpu.memory_space<smem>>
    %c65 = arith.constant 65 : index
    %493 = memref.load %arg3[%c65] : memref<98xf32, #tpu.memory_space<smem>>
    %494 = vector.extract_strided_slice %487 {offsets = [0, 0], sizes = [1, 512], strides = [1, 1]} : vector<2x512xf32> to vector<1x512xf32>
    %495 = vector.broadcast %492 : f32 to vector<1x512xf32>
    %496 = arith.mulf %495, %494 : vector<1x512xf32>
    %497 = vector.extract_strided_slice %487 {offsets = [1, 0], sizes = [1, 512], strides = [1, 1]} : vector<2x512xf32> to vector<1x512xf32>
    %498 = vector.broadcast %493 : f32 to vector<1x512xf32>
    %499 = arith.mulf %498, %497 : vector<1x512xf32>
    %500 = arith.addf %496, %499 : vector<1x512xf32>
    %501 = arith.mulf %491, %500 : vector<1x512xf32>
    %502 = arith.addf %486, %501 : vector<1x512xf32>
    %c16_i32 = arith.constant 16 : i32
    %503 = tpu.dynamic_rotate %96 by %c16_i32 dim 1 : vector<2x512xf32>, i32 -> vector<2x512xf32>
    %504 = arith.andi %193, %139 : vector<1x512xi1>
    %cst_111 = arith.constant 1.000000e+00 : f32
    %cst_112 = arith.constant 0.000000e+00 : f32
    %505 = vector.broadcast %cst_111 : f32 to vector<1x512xf32>
    %506 = vector.broadcast %cst_112 : f32 to vector<1x512xf32>
    %507 = arith.select %504, %505, %506 : vector<1x512xi1>, vector<1x512xf32>
    %c17 = arith.constant 17 : index
    %508 = memref.load %arg3[%c17] : memref<98xf32, #tpu.memory_space<smem>>
    %c66 = arith.constant 66 : index
    %509 = memref.load %arg3[%c66] : memref<98xf32, #tpu.memory_space<smem>>
    %510 = vector.extract_strided_slice %503 {offsets = [0, 0], sizes = [1, 512], strides = [1, 1]} : vector<2x512xf32> to vector<1x512xf32>
    %511 = vector.broadcast %508 : f32 to vector<1x512xf32>
    %512 = arith.mulf %511, %510 : vector<1x512xf32>
    %513 = vector.extract_strided_slice %503 {offsets = [1, 0], sizes = [1, 512], strides = [1, 1]} : vector<2x512xf32> to vector<1x512xf32>
    %514 = vector.broadcast %509 : f32 to vector<1x512xf32>
    %515 = arith.mulf %514, %513 : vector<1x512xf32>
    %516 = arith.addf %512, %515 : vector<1x512xf32>
    %517 = arith.mulf %507, %516 : vector<1x512xf32>
    %518 = arith.addf %502, %517 : vector<1x512xf32>
    %c15_i32_113 = arith.constant 15 : i32
    %519 = tpu.dynamic_rotate %96 by %c15_i32_113 dim 1 : vector<2x512xf32>, i32 -> vector<2x512xf32>
    %520 = arith.andi %193, %148 : vector<1x512xi1>
    %cst_114 = arith.constant 1.000000e+00 : f32
    %cst_115 = arith.constant 0.000000e+00 : f32
    %521 = vector.broadcast %cst_114 : f32 to vector<1x512xf32>
    %522 = vector.broadcast %cst_115 : f32 to vector<1x512xf32>
    %523 = arith.select %520, %521, %522 : vector<1x512xi1>, vector<1x512xf32>
    %c18 = arith.constant 18 : index
    %524 = memref.load %arg3[%c18] : memref<98xf32, #tpu.memory_space<smem>>
    %c67 = arith.constant 67 : index
    %525 = memref.load %arg3[%c67] : memref<98xf32, #tpu.memory_space<smem>>
    %526 = vector.extract_strided_slice %519 {offsets = [0, 0], sizes = [1, 512], strides = [1, 1]} : vector<2x512xf32> to vector<1x512xf32>
    %527 = vector.broadcast %524 : f32 to vector<1x512xf32>
    %528 = arith.mulf %527, %526 : vector<1x512xf32>
    %529 = vector.extract_strided_slice %519 {offsets = [1, 0], sizes = [1, 512], strides = [1, 1]} : vector<2x512xf32> to vector<1x512xf32>
    %530 = vector.broadcast %525 : f32 to vector<1x512xf32>
    %531 = arith.mulf %530, %529 : vector<1x512xf32>
    %532 = arith.addf %528, %531 : vector<1x512xf32>
    %533 = arith.mulf %523, %532 : vector<1x512xf32>
    %534 = arith.addf %518, %533 : vector<1x512xf32>
    %c14_i32 = arith.constant 14 : i32
    %535 = tpu.dynamic_rotate %96 by %c14_i32 dim 1 : vector<2x512xf32>, i32 -> vector<2x512xf32>
    %536 = arith.andi %193, %157 : vector<1x512xi1>
    %cst_116 = arith.constant 1.000000e+00 : f32
    %cst_117 = arith.constant 0.000000e+00 : f32
    %537 = vector.broadcast %cst_116 : f32 to vector<1x512xf32>
    %538 = vector.broadcast %cst_117 : f32 to vector<1x512xf32>
    %539 = arith.select %536, %537, %538 : vector<1x512xi1>, vector<1x512xf32>
    %c19 = arith.constant 19 : index
    %540 = memref.load %arg3[%c19] : memref<98xf32, #tpu.memory_space<smem>>
    %c68 = arith.constant 68 : index
    %541 = memref.load %arg3[%c68] : memref<98xf32, #tpu.memory_space<smem>>
    %542 = vector.extract_strided_slice %535 {offsets = [0, 0], sizes = [1, 512], strides = [1, 1]} : vector<2x512xf32> to vector<1x512xf32>
    %543 = vector.broadcast %540 : f32 to vector<1x512xf32>
    %544 = arith.mulf %543, %542 : vector<1x512xf32>
    %545 = vector.extract_strided_slice %535 {offsets = [1, 0], sizes = [1, 512], strides = [1, 1]} : vector<2x512xf32> to vector<1x512xf32>
    %546 = vector.broadcast %541 : f32 to vector<1x512xf32>
    %547 = arith.mulf %546, %545 : vector<1x512xf32>
    %548 = arith.addf %544, %547 : vector<1x512xf32>
    %549 = arith.mulf %539, %548 : vector<1x512xf32>
    %550 = arith.addf %534, %549 : vector<1x512xf32>
    %c13_i32 = arith.constant 13 : i32
    %551 = tpu.dynamic_rotate %96 by %c13_i32 dim 1 : vector<2x512xf32>, i32 -> vector<2x512xf32>
    %552 = arith.andi %193, %166 : vector<1x512xi1>
    %cst_118 = arith.constant 1.000000e+00 : f32
    %cst_119 = arith.constant 0.000000e+00 : f32
    %553 = vector.broadcast %cst_118 : f32 to vector<1x512xf32>
    %554 = vector.broadcast %cst_119 : f32 to vector<1x512xf32>
    %555 = arith.select %552, %553, %554 : vector<1x512xi1>, vector<1x512xf32>
    %c20 = arith.constant 20 : index
    %556 = memref.load %arg3[%c20] : memref<98xf32, #tpu.memory_space<smem>>
    %c69 = arith.constant 69 : index
    %557 = memref.load %arg3[%c69] : memref<98xf32, #tpu.memory_space<smem>>
    %558 = vector.extract_strided_slice %551 {offsets = [0, 0], sizes = [1, 512], strides = [1, 1]} : vector<2x512xf32> to vector<1x512xf32>
    %559 = vector.broadcast %556 : f32 to vector<1x512xf32>
    %560 = arith.mulf %559, %558 : vector<1x512xf32>
    %561 = vector.extract_strided_slice %551 {offsets = [1, 0], sizes = [1, 512], strides = [1, 1]} : vector<2x512xf32> to vector<1x512xf32>
    %562 = vector.broadcast %557 : f32 to vector<1x512xf32>
    %563 = arith.mulf %562, %561 : vector<1x512xf32>
    %564 = arith.addf %560, %563 : vector<1x512xf32>
    %565 = arith.mulf %555, %564 : vector<1x512xf32>
    %566 = arith.addf %550, %565 : vector<1x512xf32>
    %c3_i32_120 = arith.constant 3 : i32
    %567 = tpu.dynamic_rotate %96 by %c3_i32_120 dim 1 : vector<2x512xf32>, i32 -> vector<2x512xf32>
    %568 = arith.andi %202, %112 : vector<1x512xi1>
    %cst_121 = arith.constant 1.000000e+00 : f32
    %cst_122 = arith.constant 0.000000e+00 : f32
    %569 = vector.broadcast %cst_121 : f32 to vector<1x512xf32>
    %570 = vector.broadcast %cst_122 : f32 to vector<1x512xf32>
    %571 = arith.select %568, %569, %570 : vector<1x512xi1>, vector<1x512xf32>
    %c21 = arith.constant 21 : index
    %572 = memref.load %arg3[%c21] : memref<98xf32, #tpu.memory_space<smem>>
    %c70 = arith.constant 70 : index
    %573 = memref.load %arg3[%c70] : memref<98xf32, #tpu.memory_space<smem>>
    %574 = vector.extract_strided_slice %567 {offsets = [0, 0], sizes = [1, 512], strides = [1, 1]} : vector<2x512xf32> to vector<1x512xf32>
    %575 = vector.broadcast %572 : f32 to vector<1x512xf32>
    %576 = arith.mulf %575, %574 : vector<1x512xf32>
    %577 = vector.extract_strided_slice %567 {offsets = [1, 0], sizes = [1, 512], strides = [1, 1]} : vector<2x512xf32> to vector<1x512xf32>
    %578 = vector.broadcast %573 : f32 to vector<1x512xf32>
    %579 = arith.mulf %578, %577 : vector<1x512xf32>
    %580 = arith.addf %576, %579 : vector<1x512xf32>
    %581 = arith.mulf %571, %580 : vector<1x512xf32>
    %582 = arith.addf %566, %581 : vector<1x512xf32>
    %c2_i32_123 = arith.constant 2 : i32
    %583 = tpu.dynamic_rotate %96 by %c2_i32_123 dim 1 : vector<2x512xf32>, i32 -> vector<2x512xf32>
    %584 = arith.andi %202, %121 : vector<1x512xi1>
    %cst_124 = arith.constant 1.000000e+00 : f32
    %cst_125 = arith.constant 0.000000e+00 : f32
    %585 = vector.broadcast %cst_124 : f32 to vector<1x512xf32>
    %586 = vector.broadcast %cst_125 : f32 to vector<1x512xf32>
    %587 = arith.select %584, %585, %586 : vector<1x512xi1>, vector<1x512xf32>
    %c22 = arith.constant 22 : index
    %588 = memref.load %arg3[%c22] : memref<98xf32, #tpu.memory_space<smem>>
    %c71 = arith.constant 71 : index
    %589 = memref.load %arg3[%c71] : memref<98xf32, #tpu.memory_space<smem>>
    %590 = vector.extract_strided_slice %583 {offsets = [0, 0], sizes = [1, 512], strides = [1, 1]} : vector<2x512xf32> to vector<1x512xf32>
    %591 = vector.broadcast %588 : f32 to vector<1x512xf32>
    %592 = arith.mulf %591, %590 : vector<1x512xf32>
    %593 = vector.extract_strided_slice %583 {offsets = [1, 0], sizes = [1, 512], strides = [1, 1]} : vector<2x512xf32> to vector<1x512xf32>
    %594 = vector.broadcast %589 : f32 to vector<1x512xf32>
    %595 = arith.mulf %594, %593 : vector<1x512xf32>
    %596 = arith.addf %592, %595 : vector<1x512xf32>
    %597 = arith.mulf %587, %596 : vector<1x512xf32>
    %598 = arith.addf %582, %597 : vector<1x512xf32>
    %c1_i32_126 = arith.constant 1 : i32
    %599 = tpu.dynamic_rotate %96 by %c1_i32_126 dim 1 : vector<2x512xf32>, i32 -> vector<2x512xf32>
    %600 = arith.andi %202, %130 : vector<1x512xi1>
    %cst_127 = arith.constant 1.000000e+00 : f32
    %cst_128 = arith.constant 0.000000e+00 : f32
    %601 = vector.broadcast %cst_127 : f32 to vector<1x512xf32>
    %602 = vector.broadcast %cst_128 : f32 to vector<1x512xf32>
    %603 = arith.select %600, %601, %602 : vector<1x512xi1>, vector<1x512xf32>
    %c23 = arith.constant 23 : index
    %604 = memref.load %arg3[%c23] : memref<98xf32, #tpu.memory_space<smem>>
    %c72 = arith.constant 72 : index
    %605 = memref.load %arg3[%c72] : memref<98xf32, #tpu.memory_space<smem>>
    %606 = vector.extract_strided_slice %599 {offsets = [0, 0], sizes = [1, 512], strides = [1, 1]} : vector<2x512xf32> to vector<1x512xf32>
    %607 = vector.broadcast %604 : f32 to vector<1x512xf32>
    %608 = arith.mulf %607, %606 : vector<1x512xf32>
    %609 = vector.extract_strided_slice %599 {offsets = [1, 0], sizes = [1, 512], strides = [1, 1]} : vector<2x512xf32> to vector<1x512xf32>
    %610 = vector.broadcast %605 : f32 to vector<1x512xf32>
    %611 = arith.mulf %610, %609 : vector<1x512xf32>
    %612 = arith.addf %608, %611 : vector<1x512xf32>
    %613 = arith.mulf %603, %612 : vector<1x512xf32>
    %614 = arith.addf %598, %613 : vector<1x512xf32>
    %615 = arith.andi %202, %139 : vector<1x512xi1>
    %cst_129 = arith.constant 1.000000e+00 : f32
    %cst_130 = arith.constant 0.000000e+00 : f32
    %616 = vector.broadcast %cst_129 : f32 to vector<1x512xf32>
    %617 = vector.broadcast %cst_130 : f32 to vector<1x512xf32>
    %618 = arith.select %615, %616, %617 : vector<1x512xi1>, vector<1x512xf32>
    %c24 = arith.constant 24 : index
    %619 = memref.load %arg3[%c24] : memref<98xf32, #tpu.memory_space<smem>>
    %c73 = arith.constant 73 : index
    %620 = memref.load %arg3[%c73] : memref<98xf32, #tpu.memory_space<smem>>
    %621 = vector.extract_strided_slice %96 {offsets = [0, 0], sizes = [1, 512], strides = [1, 1]} : vector<2x512xf32> to vector<1x512xf32>
    %622 = vector.broadcast %619 : f32 to vector<1x512xf32>
    %623 = arith.mulf %622, %621 : vector<1x512xf32>
    %624 = vector.extract_strided_slice %96 {offsets = [1, 0], sizes = [1, 512], strides = [1, 1]} : vector<2x512xf32> to vector<1x512xf32>
    %625 = vector.broadcast %620 : f32 to vector<1x512xf32>
    %626 = arith.mulf %625, %624 : vector<1x512xf32>
    %627 = arith.addf %623, %626 : vector<1x512xf32>
    %628 = arith.mulf %618, %627 : vector<1x512xf32>
    %629 = arith.addf %614, %628 : vector<1x512xf32>
    %c511_i32 = arith.constant 511 : i32
    %630 = tpu.dynamic_rotate %96 by %c511_i32 dim 1 : vector<2x512xf32>, i32 -> vector<2x512xf32>
    %631 = arith.andi %202, %148 : vector<1x512xi1>
    %cst_131 = arith.constant 1.000000e+00 : f32
    %cst_132 = arith.constant 0.000000e+00 : f32
    %632 = vector.broadcast %cst_131 : f32 to vector<1x512xf32>
    %633 = vector.broadcast %cst_132 : f32 to vector<1x512xf32>
    %634 = arith.select %631, %632, %633 : vector<1x512xi1>, vector<1x512xf32>
    %c25 = arith.constant 25 : index
    %635 = memref.load %arg3[%c25] : memref<98xf32, #tpu.memory_space<smem>>
    %c74 = arith.constant 74 : index
    %636 = memref.load %arg3[%c74] : memref<98xf32, #tpu.memory_space<smem>>
    %637 = vector.extract_strided_slice %630 {offsets = [0, 0], sizes = [1, 512], strides = [1, 1]} : vector<2x512xf32> to vector<1x512xf32>
    %638 = vector.broadcast %635 : f32 to vector<1x512xf32>
    %639 = arith.mulf %638, %637 : vector<1x512xf32>
    %640 = vector.extract_strided_slice %630 {offsets = [1, 0], sizes = [1, 512], strides = [1, 1]} : vector<2x512xf32> to vector<1x512xf32>
    %641 = vector.broadcast %636 : f32 to vector<1x512xf32>
    %642 = arith.mulf %641, %640 : vector<1x512xf32>
    %643 = arith.addf %639, %642 : vector<1x512xf32>
    %644 = arith.mulf %634, %643 : vector<1x512xf32>
    %645 = arith.addf %629, %644 : vector<1x512xf32>
    %c510_i32 = arith.constant 510 : i32
    %646 = tpu.dynamic_rotate %96 by %c510_i32 dim 1 : vector<2x512xf32>, i32 -> vector<2x512xf32>
    %647 = arith.andi %202, %157 : vector<1x512xi1>
    %cst_133 = arith.constant 1.000000e+00 : f32
    %cst_134 = arith.constant 0.000000e+00 : f32
    %648 = vector.broadcast %cst_133 : f32 to vector<1x512xf32>
    %649 = vector.broadcast %cst_134 : f32 to vector<1x512xf32>
    %650 = arith.select %647, %648, %649 : vector<1x512xi1>, vector<1x512xf32>
    %c26 = arith.constant 26 : index
    %651 = memref.load %arg3[%c26] : memref<98xf32, #tpu.memory_space<smem>>
    %c75 = arith.constant 75 : index
    %652 = memref.load %arg3[%c75] : memref<98xf32, #tpu.memory_space<smem>>
    %653 = vector.extract_strided_slice %646 {offsets = [0, 0], sizes = [1, 512], strides = [1, 1]} : vector<2x512xf32> to vector<1x512xf32>
    %654 = vector.broadcast %651 : f32 to vector<1x512xf32>
    %655 = arith.mulf %654, %653 : vector<1x512xf32>
    %656 = vector.extract_strided_slice %646 {offsets = [1, 0], sizes = [1, 512], strides = [1, 1]} : vector<2x512xf32> to vector<1x512xf32>
    %657 = vector.broadcast %652 : f32 to vector<1x512xf32>
    %658 = arith.mulf %657, %656 : vector<1x512xf32>
    %659 = arith.addf %655, %658 : vector<1x512xf32>
    %660 = arith.mulf %650, %659 : vector<1x512xf32>
    %661 = arith.addf %645, %660 : vector<1x512xf32>
    %c509_i32 = arith.constant 509 : i32
    %662 = tpu.dynamic_rotate %96 by %c509_i32 dim 1 : vector<2x512xf32>, i32 -> vector<2x512xf32>
    %663 = arith.andi %202, %166 : vector<1x512xi1>
    %cst_135 = arith.constant 1.000000e+00 : f32
    %cst_136 = arith.constant 0.000000e+00 : f32
    %664 = vector.broadcast %cst_135 : f32 to vector<1x512xf32>
    %665 = vector.broadcast %cst_136 : f32 to vector<1x512xf32>
    %666 = arith.select %663, %664, %665 : vector<1x512xi1>, vector<1x512xf32>
    %c27 = arith.constant 27 : index
    %667 = memref.load %arg3[%c27] : memref<98xf32, #tpu.memory_space<smem>>
    %c76 = arith.constant 76 : index
    %668 = memref.load %arg3[%c76] : memref<98xf32, #tpu.memory_space<smem>>
    %669 = vector.extract_strided_slice %662 {offsets = [0, 0], sizes = [1, 512], strides = [1, 1]} : vector<2x512xf32> to vector<1x512xf32>
    %670 = vector.broadcast %667 : f32 to vector<1x512xf32>
    %671 = arith.mulf %670, %669 : vector<1x512xf32>
    %672 = vector.extract_strided_slice %662 {offsets = [1, 0], sizes = [1, 512], strides = [1, 1]} : vector<2x512xf32> to vector<1x512xf32>
    %673 = vector.broadcast %668 : f32 to vector<1x512xf32>
    %674 = arith.mulf %673, %672 : vector<1x512xf32>
    %675 = arith.addf %671, %674 : vector<1x512xf32>
    %676 = arith.mulf %666, %675 : vector<1x512xf32>
    %677 = arith.addf %661, %676 : vector<1x512xf32>
    %c499_i32 = arith.constant 499 : i32
    %678 = tpu.dynamic_rotate %96 by %c499_i32 dim 1 : vector<2x512xf32>, i32 -> vector<2x512xf32>
    %679 = arith.andi %211, %112 : vector<1x512xi1>
    %cst_137 = arith.constant 1.000000e+00 : f32
    %cst_138 = arith.constant 0.000000e+00 : f32
    %680 = vector.broadcast %cst_137 : f32 to vector<1x512xf32>
    %681 = vector.broadcast %cst_138 : f32 to vector<1x512xf32>
    %682 = arith.select %679, %680, %681 : vector<1x512xi1>, vector<1x512xf32>
    %c28 = arith.constant 28 : index
    %683 = memref.load %arg3[%c28] : memref<98xf32, #tpu.memory_space<smem>>
    %c77 = arith.constant 77 : index
    %684 = memref.load %arg3[%c77] : memref<98xf32, #tpu.memory_space<smem>>
    %685 = vector.extract_strided_slice %678 {offsets = [0, 0], sizes = [1, 512], strides = [1, 1]} : vector<2x512xf32> to vector<1x512xf32>
    %686 = vector.broadcast %683 : f32 to vector<1x512xf32>
    %687 = arith.mulf %686, %685 : vector<1x512xf32>
    %688 = vector.extract_strided_slice %678 {offsets = [1, 0], sizes = [1, 512], strides = [1, 1]} : vector<2x512xf32> to vector<1x512xf32>
    %689 = vector.broadcast %684 : f32 to vector<1x512xf32>
    %690 = arith.mulf %689, %688 : vector<1x512xf32>
    %691 = arith.addf %687, %690 : vector<1x512xf32>
    %692 = arith.mulf %682, %691 : vector<1x512xf32>
    %693 = arith.addf %677, %692 : vector<1x512xf32>
    %c498_i32 = arith.constant 498 : i32
    %694 = tpu.dynamic_rotate %96 by %c498_i32 dim 1 : vector<2x512xf32>, i32 -> vector<2x512xf32>
    %695 = arith.andi %211, %121 : vector<1x512xi1>
    %cst_139 = arith.constant 1.000000e+00 : f32
    %cst_140 = arith.constant 0.000000e+00 : f32
    %696 = vector.broadcast %cst_139 : f32 to vector<1x512xf32>
    %697 = vector.broadcast %cst_140 : f32 to vector<1x512xf32>
    %698 = arith.select %695, %696, %697 : vector<1x512xi1>, vector<1x512xf32>
    %c29 = arith.constant 29 : index
    %699 = memref.load %arg3[%c29] : memref<98xf32, #tpu.memory_space<smem>>
    %c78 = arith.constant 78 : index
    %700 = memref.load %arg3[%c78] : memref<98xf32, #tpu.memory_space<smem>>
    %701 = vector.extract_strided_slice %694 {offsets = [0, 0], sizes = [1, 512], strides = [1, 1]} : vector<2x512xf32> to vector<1x512xf32>
    %702 = vector.broadcast %699 : f32 to vector<1x512xf32>
    %703 = arith.mulf %702, %701 : vector<1x512xf32>
    %704 = vector.extract_strided_slice %694 {offsets = [1, 0], sizes = [1, 512], strides = [1, 1]} : vector<2x512xf32> to vector<1x512xf32>
    %705 = vector.broadcast %700 : f32 to vector<1x512xf32>
    %706 = arith.mulf %705, %704 : vector<1x512xf32>
    %707 = arith.addf %703, %706 : vector<1x512xf32>
    %708 = arith.mulf %698, %707 : vector<1x512xf32>
    %709 = arith.addf %693, %708 : vector<1x512xf32>
    %c497_i32 = arith.constant 497 : i32
    %710 = tpu.dynamic_rotate %96 by %c497_i32 dim 1 : vector<2x512xf32>, i32 -> vector<2x512xf32>
    %711 = arith.andi %211, %130 : vector<1x512xi1>
    %cst_141 = arith.constant 1.000000e+00 : f32
    %cst_142 = arith.constant 0.000000e+00 : f32
    %712 = vector.broadcast %cst_141 : f32 to vector<1x512xf32>
    %713 = vector.broadcast %cst_142 : f32 to vector<1x512xf32>
    %714 = arith.select %711, %712, %713 : vector<1x512xi1>, vector<1x512xf32>
    %c30 = arith.constant 30 : index
    %715 = memref.load %arg3[%c30] : memref<98xf32, #tpu.memory_space<smem>>
    %c79 = arith.constant 79 : index
    %716 = memref.load %arg3[%c79] : memref<98xf32, #tpu.memory_space<smem>>
    %717 = vector.extract_strided_slice %710 {offsets = [0, 0], sizes = [1, 512], strides = [1, 1]} : vector<2x512xf32> to vector<1x512xf32>
    %718 = vector.broadcast %715 : f32 to vector<1x512xf32>
    %719 = arith.mulf %718, %717 : vector<1x512xf32>
    %720 = vector.extract_strided_slice %710 {offsets = [1, 0], sizes = [1, 512], strides = [1, 1]} : vector<2x512xf32> to vector<1x512xf32>
    %721 = vector.broadcast %716 : f32 to vector<1x512xf32>
    %722 = arith.mulf %721, %720 : vector<1x512xf32>
    %723 = arith.addf %719, %722 : vector<1x512xf32>
    %724 = arith.mulf %714, %723 : vector<1x512xf32>
    %725 = arith.addf %709, %724 : vector<1x512xf32>
    %c496_i32 = arith.constant 496 : i32
    %726 = tpu.dynamic_rotate %96 by %c496_i32 dim 1 : vector<2x512xf32>, i32 -> vector<2x512xf32>
    %727 = arith.andi %211, %139 : vector<1x512xi1>
    %cst_143 = arith.constant 1.000000e+00 : f32
    %cst_144 = arith.constant 0.000000e+00 : f32
    %728 = vector.broadcast %cst_143 : f32 to vector<1x512xf32>
    %729 = vector.broadcast %cst_144 : f32 to vector<1x512xf32>
    %730 = arith.select %727, %728, %729 : vector<1x512xi1>, vector<1x512xf32>
    %c31 = arith.constant 31 : index
    %731 = memref.load %arg3[%c31] : memref<98xf32, #tpu.memory_space<smem>>
    %c80 = arith.constant 80 : index
    %732 = memref.load %arg3[%c80] : memref<98xf32, #tpu.memory_space<smem>>
    %733 = vector.extract_strided_slice %726 {offsets = [0, 0], sizes = [1, 512], strides = [1, 1]} : vector<2x512xf32> to vector<1x512xf32>
    %734 = vector.broadcast %731 : f32 to vector<1x512xf32>
    %735 = arith.mulf %734, %733 : vector<1x512xf32>
    %736 = vector.extract_strided_slice %726 {offsets = [1, 0], sizes = [1, 512], strides = [1, 1]} : vector<2x512xf32> to vector<1x512xf32>
    %737 = vector.broadcast %732 : f32 to vector<1x512xf32>
    %738 = arith.mulf %737, %736 : vector<1x512xf32>
    %739 = arith.addf %735, %738 : vector<1x512xf32>
    %740 = arith.mulf %730, %739 : vector<1x512xf32>
    %741 = arith.addf %725, %740 : vector<1x512xf32>
    %c495_i32 = arith.constant 495 : i32
    %742 = tpu.dynamic_rotate %96 by %c495_i32 dim 1 : vector<2x512xf32>, i32 -> vector<2x512xf32>
    %743 = arith.andi %211, %148 : vector<1x512xi1>
    %cst_145 = arith.constant 1.000000e+00 : f32
    %cst_146 = arith.constant 0.000000e+00 : f32
    %744 = vector.broadcast %cst_145 : f32 to vector<1x512xf32>
    %745 = vector.broadcast %cst_146 : f32 to vector<1x512xf32>
    %746 = arith.select %743, %744, %745 : vector<1x512xi1>, vector<1x512xf32>
    %c32 = arith.constant 32 : index
    %747 = memref.load %arg3[%c32] : memref<98xf32, #tpu.memory_space<smem>>
    %c81 = arith.constant 81 : index
    %748 = memref.load %arg3[%c81] : memref<98xf32, #tpu.memory_space<smem>>
    %749 = vector.extract_strided_slice %742 {offsets = [0, 0], sizes = [1, 512], strides = [1, 1]} : vector<2x512xf32> to vector<1x512xf32>
    %750 = vector.broadcast %747 : f32 to vector<1x512xf32>
    %751 = arith.mulf %750, %749 : vector<1x512xf32>
    %752 = vector.extract_strided_slice %742 {offsets = [1, 0], sizes = [1, 512], strides = [1, 1]} : vector<2x512xf32> to vector<1x512xf32>
    %753 = vector.broadcast %748 : f32 to vector<1x512xf32>
    %754 = arith.mulf %753, %752 : vector<1x512xf32>
    %755 = arith.addf %751, %754 : vector<1x512xf32>
    %756 = arith.mulf %746, %755 : vector<1x512xf32>
    %757 = arith.addf %741, %756 : vector<1x512xf32>
    %c494_i32 = arith.constant 494 : i32
    %758 = tpu.dynamic_rotate %96 by %c494_i32 dim 1 : vector<2x512xf32>, i32 -> vector<2x512xf32>
    %759 = arith.andi %211, %157 : vector<1x512xi1>
    %cst_147 = arith.constant 1.000000e+00 : f32
    %cst_148 = arith.constant 0.000000e+00 : f32
    %760 = vector.broadcast %cst_147 : f32 to vector<1x512xf32>
    %761 = vector.broadcast %cst_148 : f32 to vector<1x512xf32>
    %762 = arith.select %759, %760, %761 : vector<1x512xi1>, vector<1x512xf32>
    %c33 = arith.constant 33 : index
    %763 = memref.load %arg3[%c33] : memref<98xf32, #tpu.memory_space<smem>>
    %c82 = arith.constant 82 : index
    %764 = memref.load %arg3[%c82] : memref<98xf32, #tpu.memory_space<smem>>
    %765 = vector.extract_strided_slice %758 {offsets = [0, 0], sizes = [1, 512], strides = [1, 1]} : vector<2x512xf32> to vector<1x512xf32>
    %766 = vector.broadcast %763 : f32 to vector<1x512xf32>
    %767 = arith.mulf %766, %765 : vector<1x512xf32>
    %768 = vector.extract_strided_slice %758 {offsets = [1, 0], sizes = [1, 512], strides = [1, 1]} : vector<2x512xf32> to vector<1x512xf32>
    %769 = vector.broadcast %764 : f32 to vector<1x512xf32>
    %770 = arith.mulf %769, %768 : vector<1x512xf32>
    %771 = arith.addf %767, %770 : vector<1x512xf32>
    %772 = arith.mulf %762, %771 : vector<1x512xf32>
    %773 = arith.addf %757, %772 : vector<1x512xf32>
    %c493_i32 = arith.constant 493 : i32
    %774 = tpu.dynamic_rotate %96 by %c493_i32 dim 1 : vector<2x512xf32>, i32 -> vector<2x512xf32>
    %775 = arith.andi %211, %166 : vector<1x512xi1>
    %cst_149 = arith.constant 1.000000e+00 : f32
    %cst_150 = arith.constant 0.000000e+00 : f32
    %776 = vector.broadcast %cst_149 : f32 to vector<1x512xf32>
    %777 = vector.broadcast %cst_150 : f32 to vector<1x512xf32>
    %778 = arith.select %775, %776, %777 : vector<1x512xi1>, vector<1x512xf32>
    %c34 = arith.constant 34 : index
    %779 = memref.load %arg3[%c34] : memref<98xf32, #tpu.memory_space<smem>>
    %c83 = arith.constant 83 : index
    %780 = memref.load %arg3[%c83] : memref<98xf32, #tpu.memory_space<smem>>
    %781 = vector.extract_strided_slice %774 {offsets = [0, 0], sizes = [1, 512], strides = [1, 1]} : vector<2x512xf32> to vector<1x512xf32>
    %782 = vector.broadcast %779 : f32 to vector<1x512xf32>
    %783 = arith.mulf %782, %781 : vector<1x512xf32>
    %784 = vector.extract_strided_slice %774 {offsets = [1, 0], sizes = [1, 512], strides = [1, 1]} : vector<2x512xf32> to vector<1x512xf32>
    %785 = vector.broadcast %780 : f32 to vector<1x512xf32>
    %786 = arith.mulf %785, %784 : vector<1x512xf32>
    %787 = arith.addf %783, %786 : vector<1x512xf32>
    %788 = arith.mulf %778, %787 : vector<1x512xf32>
    %789 = arith.addf %773, %788 : vector<1x512xf32>
    %c483_i32 = arith.constant 483 : i32
    %790 = tpu.dynamic_rotate %96 by %c483_i32 dim 1 : vector<2x512xf32>, i32 -> vector<2x512xf32>
    %791 = arith.andi %220, %112 : vector<1x512xi1>
    %cst_151 = arith.constant 1.000000e+00 : f32
    %cst_152 = arith.constant 0.000000e+00 : f32
    %792 = vector.broadcast %cst_151 : f32 to vector<1x512xf32>
    %793 = vector.broadcast %cst_152 : f32 to vector<1x512xf32>
    %794 = arith.select %791, %792, %793 : vector<1x512xi1>, vector<1x512xf32>
    %c35 = arith.constant 35 : index
    %795 = memref.load %arg3[%c35] : memref<98xf32, #tpu.memory_space<smem>>
    %c84 = arith.constant 84 : index
    %796 = memref.load %arg3[%c84] : memref<98xf32, #tpu.memory_space<smem>>
    %797 = vector.extract_strided_slice %790 {offsets = [0, 0], sizes = [1, 512], strides = [1, 1]} : vector<2x512xf32> to vector<1x512xf32>
    %798 = vector.broadcast %795 : f32 to vector<1x512xf32>
    %799 = arith.mulf %798, %797 : vector<1x512xf32>
    %800 = vector.extract_strided_slice %790 {offsets = [1, 0], sizes = [1, 512], strides = [1, 1]} : vector<2x512xf32> to vector<1x512xf32>
    %801 = vector.broadcast %796 : f32 to vector<1x512xf32>
    %802 = arith.mulf %801, %800 : vector<1x512xf32>
    %803 = arith.addf %799, %802 : vector<1x512xf32>
    %804 = arith.mulf %794, %803 : vector<1x512xf32>
    %805 = arith.addf %789, %804 : vector<1x512xf32>
    %c482_i32 = arith.constant 482 : i32
    %806 = tpu.dynamic_rotate %96 by %c482_i32 dim 1 : vector<2x512xf32>, i32 -> vector<2x512xf32>
    %807 = arith.andi %220, %121 : vector<1x512xi1>
    %cst_153 = arith.constant 1.000000e+00 : f32
    %cst_154 = arith.constant 0.000000e+00 : f32
    %808 = vector.broadcast %cst_153 : f32 to vector<1x512xf32>
    %809 = vector.broadcast %cst_154 : f32 to vector<1x512xf32>
    %810 = arith.select %807, %808, %809 : vector<1x512xi1>, vector<1x512xf32>
    %c36 = arith.constant 36 : index
    %811 = memref.load %arg3[%c36] : memref<98xf32, #tpu.memory_space<smem>>
    %c85 = arith.constant 85 : index
    %812 = memref.load %arg3[%c85] : memref<98xf32, #tpu.memory_space<smem>>
    %813 = vector.extract_strided_slice %806 {offsets = [0, 0], sizes = [1, 512], strides = [1, 1]} : vector<2x512xf32> to vector<1x512xf32>
    %814 = vector.broadcast %811 : f32 to vector<1x512xf32>
    %815 = arith.mulf %814, %813 : vector<1x512xf32>
    %816 = vector.extract_strided_slice %806 {offsets = [1, 0], sizes = [1, 512], strides = [1, 1]} : vector<2x512xf32> to vector<1x512xf32>
    %817 = vector.broadcast %812 : f32 to vector<1x512xf32>
    %818 = arith.mulf %817, %816 : vector<1x512xf32>
    %819 = arith.addf %815, %818 : vector<1x512xf32>
    %820 = arith.mulf %810, %819 : vector<1x512xf32>
    %821 = arith.addf %805, %820 : vector<1x512xf32>
    %c481_i32 = arith.constant 481 : i32
    %822 = tpu.dynamic_rotate %96 by %c481_i32 dim 1 : vector<2x512xf32>, i32 -> vector<2x512xf32>
    %823 = arith.andi %220, %130 : vector<1x512xi1>
    %cst_155 = arith.constant 1.000000e+00 : f32
    %cst_156 = arith.constant 0.000000e+00 : f32
    %824 = vector.broadcast %cst_155 : f32 to vector<1x512xf32>
    %825 = vector.broadcast %cst_156 : f32 to vector<1x512xf32>
    %826 = arith.select %823, %824, %825 : vector<1x512xi1>, vector<1x512xf32>
    %c37 = arith.constant 37 : index
    %827 = memref.load %arg3[%c37] : memref<98xf32, #tpu.memory_space<smem>>
    %c86 = arith.constant 86 : index
    %828 = memref.load %arg3[%c86] : memref<98xf32, #tpu.memory_space<smem>>
    %829 = vector.extract_strided_slice %822 {offsets = [0, 0], sizes = [1, 512], strides = [1, 1]} : vector<2x512xf32> to vector<1x512xf32>
    %830 = vector.broadcast %827 : f32 to vector<1x512xf32>
    %831 = arith.mulf %830, %829 : vector<1x512xf32>
    %832 = vector.extract_strided_slice %822 {offsets = [1, 0], sizes = [1, 512], strides = [1, 1]} : vector<2x512xf32> to vector<1x512xf32>
    %833 = vector.broadcast %828 : f32 to vector<1x512xf32>
    %834 = arith.mulf %833, %832 : vector<1x512xf32>
    %835 = arith.addf %831, %834 : vector<1x512xf32>
    %836 = arith.mulf %826, %835 : vector<1x512xf32>
    %837 = arith.addf %821, %836 : vector<1x512xf32>
    %c480_i32 = arith.constant 480 : i32
    %838 = tpu.dynamic_rotate %96 by %c480_i32 dim 1 : vector<2x512xf32>, i32 -> vector<2x512xf32>
    %839 = arith.andi %220, %139 : vector<1x512xi1>
    %cst_157 = arith.constant 1.000000e+00 : f32
    %cst_158 = arith.constant 0.000000e+00 : f32
    %840 = vector.broadcast %cst_157 : f32 to vector<1x512xf32>
    %841 = vector.broadcast %cst_158 : f32 to vector<1x512xf32>
    %842 = arith.select %839, %840, %841 : vector<1x512xi1>, vector<1x512xf32>
    %c38 = arith.constant 38 : index
    %843 = memref.load %arg3[%c38] : memref<98xf32, #tpu.memory_space<smem>>
    %c87 = arith.constant 87 : index
    %844 = memref.load %arg3[%c87] : memref<98xf32, #tpu.memory_space<smem>>
    %845 = vector.extract_strided_slice %838 {offsets = [0, 0], sizes = [1, 512], strides = [1, 1]} : vector<2x512xf32> to vector<1x512xf32>
    %846 = vector.broadcast %843 : f32 to vector<1x512xf32>
    %847 = arith.mulf %846, %845 : vector<1x512xf32>
    %848 = vector.extract_strided_slice %838 {offsets = [1, 0], sizes = [1, 512], strides = [1, 1]} : vector<2x512xf32> to vector<1x512xf32>
    %849 = vector.broadcast %844 : f32 to vector<1x512xf32>
    %850 = arith.mulf %849, %848 : vector<1x512xf32>
    %851 = arith.addf %847, %850 : vector<1x512xf32>
    %852 = arith.mulf %842, %851 : vector<1x512xf32>
    %853 = arith.addf %837, %852 : vector<1x512xf32>
    %c479_i32 = arith.constant 479 : i32
    %854 = tpu.dynamic_rotate %96 by %c479_i32 dim 1 : vector<2x512xf32>, i32 -> vector<2x512xf32>
    %855 = arith.andi %220, %148 : vector<1x512xi1>
    %cst_159 = arith.constant 1.000000e+00 : f32
    %cst_160 = arith.constant 0.000000e+00 : f32
    %856 = vector.broadcast %cst_159 : f32 to vector<1x512xf32>
    %857 = vector.broadcast %cst_160 : f32 to vector<1x512xf32>
    %858 = arith.select %855, %856, %857 : vector<1x512xi1>, vector<1x512xf32>
    %c39 = arith.constant 39 : index
    %859 = memref.load %arg3[%c39] : memref<98xf32, #tpu.memory_space<smem>>
    %c88 = arith.constant 88 : index
    %860 = memref.load %arg3[%c88] : memref<98xf32, #tpu.memory_space<smem>>
    %861 = vector.extract_strided_slice %854 {offsets = [0, 0], sizes = [1, 512], strides = [1, 1]} : vector<2x512xf32> to vector<1x512xf32>
    %862 = vector.broadcast %859 : f32 to vector<1x512xf32>
    %863 = arith.mulf %862, %861 : vector<1x512xf32>
    %864 = vector.extract_strided_slice %854 {offsets = [1, 0], sizes = [1, 512], strides = [1, 1]} : vector<2x512xf32> to vector<1x512xf32>
    %865 = vector.broadcast %860 : f32 to vector<1x512xf32>
    %866 = arith.mulf %865, %864 : vector<1x512xf32>
    %867 = arith.addf %863, %866 : vector<1x512xf32>
    %868 = arith.mulf %858, %867 : vector<1x512xf32>
    %869 = arith.addf %853, %868 : vector<1x512xf32>
    %c478_i32 = arith.constant 478 : i32
    %870 = tpu.dynamic_rotate %96 by %c478_i32 dim 1 : vector<2x512xf32>, i32 -> vector<2x512xf32>
    %871 = arith.andi %220, %157 : vector<1x512xi1>
    %cst_161 = arith.constant 1.000000e+00 : f32
    %cst_162 = arith.constant 0.000000e+00 : f32
    %872 = vector.broadcast %cst_161 : f32 to vector<1x512xf32>
    %873 = vector.broadcast %cst_162 : f32 to vector<1x512xf32>
    %874 = arith.select %871, %872, %873 : vector<1x512xi1>, vector<1x512xf32>
    %c40 = arith.constant 40 : index
    %875 = memref.load %arg3[%c40] : memref<98xf32, #tpu.memory_space<smem>>
    %c89 = arith.constant 89 : index
    %876 = memref.load %arg3[%c89] : memref<98xf32, #tpu.memory_space<smem>>
    %877 = vector.extract_strided_slice %870 {offsets = [0, 0], sizes = [1, 512], strides = [1, 1]} : vector<2x512xf32> to vector<1x512xf32>
    %878 = vector.broadcast %875 : f32 to vector<1x512xf32>
    %879 = arith.mulf %878, %877 : vector<1x512xf32>
    %880 = vector.extract_strided_slice %870 {offsets = [1, 0], sizes = [1, 512], strides = [1, 1]} : vector<2x512xf32> to vector<1x512xf32>
    %881 = vector.broadcast %876 : f32 to vector<1x512xf32>
    %882 = arith.mulf %881, %880 : vector<1x512xf32>
    %883 = arith.addf %879, %882 : vector<1x512xf32>
    %884 = arith.mulf %874, %883 : vector<1x512xf32>
    %885 = arith.addf %869, %884 : vector<1x512xf32>
    %c477_i32 = arith.constant 477 : i32
    %886 = tpu.dynamic_rotate %96 by %c477_i32 dim 1 : vector<2x512xf32>, i32 -> vector<2x512xf32>
    %887 = arith.andi %220, %166 : vector<1x512xi1>
    %cst_163 = arith.constant 1.000000e+00 : f32
    %cst_164 = arith.constant 0.000000e+00 : f32
    %888 = vector.broadcast %cst_163 : f32 to vector<1x512xf32>
    %889 = vector.broadcast %cst_164 : f32 to vector<1x512xf32>
    %890 = arith.select %887, %888, %889 : vector<1x512xi1>, vector<1x512xf32>
    %c41 = arith.constant 41 : index
    %891 = memref.load %arg3[%c41] : memref<98xf32, #tpu.memory_space<smem>>
    %c90 = arith.constant 90 : index
    %892 = memref.load %arg3[%c90] : memref<98xf32, #tpu.memory_space<smem>>
    %893 = vector.extract_strided_slice %886 {offsets = [0, 0], sizes = [1, 512], strides = [1, 1]} : vector<2x512xf32> to vector<1x512xf32>
    %894 = vector.broadcast %891 : f32 to vector<1x512xf32>
    %895 = arith.mulf %894, %893 : vector<1x512xf32>
    %896 = vector.extract_strided_slice %886 {offsets = [1, 0], sizes = [1, 512], strides = [1, 1]} : vector<2x512xf32> to vector<1x512xf32>
    %897 = vector.broadcast %892 : f32 to vector<1x512xf32>
    %898 = arith.mulf %897, %896 : vector<1x512xf32>
    %899 = arith.addf %895, %898 : vector<1x512xf32>
    %900 = arith.mulf %890, %899 : vector<1x512xf32>
    %901 = arith.addf %885, %900 : vector<1x512xf32>
    %c467_i32 = arith.constant 467 : i32
    %902 = tpu.dynamic_rotate %96 by %c467_i32 dim 1 : vector<2x512xf32>, i32 -> vector<2x512xf32>
    %903 = arith.andi %229, %112 : vector<1x512xi1>
    %cst_165 = arith.constant 1.000000e+00 : f32
    %cst_166 = arith.constant 0.000000e+00 : f32
    %904 = vector.broadcast %cst_165 : f32 to vector<1x512xf32>
    %905 = vector.broadcast %cst_166 : f32 to vector<1x512xf32>
    %906 = arith.select %903, %904, %905 : vector<1x512xi1>, vector<1x512xf32>
    %c42 = arith.constant 42 : index
    %907 = memref.load %arg3[%c42] : memref<98xf32, #tpu.memory_space<smem>>
    %c91 = arith.constant 91 : index
    %908 = memref.load %arg3[%c91] : memref<98xf32, #tpu.memory_space<smem>>
    %909 = vector.extract_strided_slice %902 {offsets = [0, 0], sizes = [1, 512], strides = [1, 1]} : vector<2x512xf32> to vector<1x512xf32>
    %910 = vector.broadcast %907 : f32 to vector<1x512xf32>
    %911 = arith.mulf %910, %909 : vector<1x512xf32>
    %912 = vector.extract_strided_slice %902 {offsets = [1, 0], sizes = [1, 512], strides = [1, 1]} : vector<2x512xf32> to vector<1x512xf32>
    %913 = vector.broadcast %908 : f32 to vector<1x512xf32>
    %914 = arith.mulf %913, %912 : vector<1x512xf32>
    %915 = arith.addf %911, %914 : vector<1x512xf32>
    %916 = arith.mulf %906, %915 : vector<1x512xf32>
    %917 = arith.addf %901, %916 : vector<1x512xf32>
    %c466_i32 = arith.constant 466 : i32
    %918 = tpu.dynamic_rotate %96 by %c466_i32 dim 1 : vector<2x512xf32>, i32 -> vector<2x512xf32>
    %919 = arith.andi %229, %121 : vector<1x512xi1>
    %cst_167 = arith.constant 1.000000e+00 : f32
    %cst_168 = arith.constant 0.000000e+00 : f32
    %920 = vector.broadcast %cst_167 : f32 to vector<1x512xf32>
    %921 = vector.broadcast %cst_168 : f32 to vector<1x512xf32>
    %922 = arith.select %919, %920, %921 : vector<1x512xi1>, vector<1x512xf32>
    %c43 = arith.constant 43 : index
    %923 = memref.load %arg3[%c43] : memref<98xf32, #tpu.memory_space<smem>>
    %c92 = arith.constant 92 : index
    %924 = memref.load %arg3[%c92] : memref<98xf32, #tpu.memory_space<smem>>
    %925 = vector.extract_strided_slice %918 {offsets = [0, 0], sizes = [1, 512], strides = [1, 1]} : vector<2x512xf32> to vector<1x512xf32>
    %926 = vector.broadcast %923 : f32 to vector<1x512xf32>
    %927 = arith.mulf %926, %925 : vector<1x512xf32>
    %928 = vector.extract_strided_slice %918 {offsets = [1, 0], sizes = [1, 512], strides = [1, 1]} : vector<2x512xf32> to vector<1x512xf32>
    %929 = vector.broadcast %924 : f32 to vector<1x512xf32>
    %930 = arith.mulf %929, %928 : vector<1x512xf32>
    %931 = arith.addf %927, %930 : vector<1x512xf32>
    %932 = arith.mulf %922, %931 : vector<1x512xf32>
    %933 = arith.addf %917, %932 : vector<1x512xf32>
    %c465_i32 = arith.constant 465 : i32
    %934 = tpu.dynamic_rotate %96 by %c465_i32 dim 1 : vector<2x512xf32>, i32 -> vector<2x512xf32>
    %935 = arith.andi %229, %130 : vector<1x512xi1>
    %cst_169 = arith.constant 1.000000e+00 : f32
    %cst_170 = arith.constant 0.000000e+00 : f32
    %936 = vector.broadcast %cst_169 : f32 to vector<1x512xf32>
    %937 = vector.broadcast %cst_170 : f32 to vector<1x512xf32>
    %938 = arith.select %935, %936, %937 : vector<1x512xi1>, vector<1x512xf32>
    %c44 = arith.constant 44 : index
    %939 = memref.load %arg3[%c44] : memref<98xf32, #tpu.memory_space<smem>>
    %c93 = arith.constant 93 : index
    %940 = memref.load %arg3[%c93] : memref<98xf32, #tpu.memory_space<smem>>
    %941 = vector.extract_strided_slice %934 {offsets = [0, 0], sizes = [1, 512], strides = [1, 1]} : vector<2x512xf32> to vector<1x512xf32>
    %942 = vector.broadcast %939 : f32 to vector<1x512xf32>
    %943 = arith.mulf %942, %941 : vector<1x512xf32>
    %944 = vector.extract_strided_slice %934 {offsets = [1, 0], sizes = [1, 512], strides = [1, 1]} : vector<2x512xf32> to vector<1x512xf32>
    %945 = vector.broadcast %940 : f32 to vector<1x512xf32>
    %946 = arith.mulf %945, %944 : vector<1x512xf32>
    %947 = arith.addf %943, %946 : vector<1x512xf32>
    %948 = arith.mulf %938, %947 : vector<1x512xf32>
    %949 = arith.addf %933, %948 : vector<1x512xf32>
    %c464_i32 = arith.constant 464 : i32
    %950 = tpu.dynamic_rotate %96 by %c464_i32 dim 1 : vector<2x512xf32>, i32 -> vector<2x512xf32>
    %951 = arith.andi %229, %139 : vector<1x512xi1>
    %cst_171 = arith.constant 1.000000e+00 : f32
    %cst_172 = arith.constant 0.000000e+00 : f32
    %952 = vector.broadcast %cst_171 : f32 to vector<1x512xf32>
    %953 = vector.broadcast %cst_172 : f32 to vector<1x512xf32>
    %954 = arith.select %951, %952, %953 : vector<1x512xi1>, vector<1x512xf32>
    %c45 = arith.constant 45 : index
    %955 = memref.load %arg3[%c45] : memref<98xf32, #tpu.memory_space<smem>>
    %c94 = arith.constant 94 : index
    %956 = memref.load %arg3[%c94] : memref<98xf32, #tpu.memory_space<smem>>
    %957 = vector.extract_strided_slice %950 {offsets = [0, 0], sizes = [1, 512], strides = [1, 1]} : vector<2x512xf32> to vector<1x512xf32>
    %958 = vector.broadcast %955 : f32 to vector<1x512xf32>
    %959 = arith.mulf %958, %957 : vector<1x512xf32>
    %960 = vector.extract_strided_slice %950 {offsets = [1, 0], sizes = [1, 512], strides = [1, 1]} : vector<2x512xf32> to vector<1x512xf32>
    %961 = vector.broadcast %956 : f32 to vector<1x512xf32>
    %962 = arith.mulf %961, %960 : vector<1x512xf32>
    %963 = arith.addf %959, %962 : vector<1x512xf32>
    %964 = arith.mulf %954, %963 : vector<1x512xf32>
    %965 = arith.addf %949, %964 : vector<1x512xf32>
    %c463_i32 = arith.constant 463 : i32
    %966 = tpu.dynamic_rotate %96 by %c463_i32 dim 1 : vector<2x512xf32>, i32 -> vector<2x512xf32>
    %967 = arith.andi %229, %148 : vector<1x512xi1>
    %cst_173 = arith.constant 1.000000e+00 : f32
    %cst_174 = arith.constant 0.000000e+00 : f32
    %968 = vector.broadcast %cst_173 : f32 to vector<1x512xf32>
    %969 = vector.broadcast %cst_174 : f32 to vector<1x512xf32>
    %970 = arith.select %967, %968, %969 : vector<1x512xi1>, vector<1x512xf32>
    %c46 = arith.constant 46 : index
    %971 = memref.load %arg3[%c46] : memref<98xf32, #tpu.memory_space<smem>>
    %c95 = arith.constant 95 : index
    %972 = memref.load %arg3[%c95] : memref<98xf32, #tpu.memory_space<smem>>
    %973 = vector.extract_strided_slice %966 {offsets = [0, 0], sizes = [1, 512], strides = [1, 1]} : vector<2x512xf32> to vector<1x512xf32>
    %974 = vector.broadcast %971 : f32 to vector<1x512xf32>
    %975 = arith.mulf %974, %973 : vector<1x512xf32>
    %976 = vector.extract_strided_slice %966 {offsets = [1, 0], sizes = [1, 512], strides = [1, 1]} : vector<2x512xf32> to vector<1x512xf32>
    %977 = vector.broadcast %972 : f32 to vector<1x512xf32>
    %978 = arith.mulf %977, %976 : vector<1x512xf32>
    %979 = arith.addf %975, %978 : vector<1x512xf32>
    %980 = arith.mulf %970, %979 : vector<1x512xf32>
    %981 = arith.addf %965, %980 : vector<1x512xf32>
    %c462_i32 = arith.constant 462 : i32
    %982 = tpu.dynamic_rotate %96 by %c462_i32 dim 1 : vector<2x512xf32>, i32 -> vector<2x512xf32>
    %983 = arith.andi %229, %157 : vector<1x512xi1>
    %cst_175 = arith.constant 1.000000e+00 : f32
    %cst_176 = arith.constant 0.000000e+00 : f32
    %984 = vector.broadcast %cst_175 : f32 to vector<1x512xf32>
    %985 = vector.broadcast %cst_176 : f32 to vector<1x512xf32>
    %986 = arith.select %983, %984, %985 : vector<1x512xi1>, vector<1x512xf32>
    %c47 = arith.constant 47 : index
    %987 = memref.load %arg3[%c47] : memref<98xf32, #tpu.memory_space<smem>>
    %c96 = arith.constant 96 : index
    %988 = memref.load %arg3[%c96] : memref<98xf32, #tpu.memory_space<smem>>
    %989 = vector.extract_strided_slice %982 {offsets = [0, 0], sizes = [1, 512], strides = [1, 1]} : vector<2x512xf32> to vector<1x512xf32>
    %990 = vector.broadcast %987 : f32 to vector<1x512xf32>
    %991 = arith.mulf %990, %989 : vector<1x512xf32>
    %992 = vector.extract_strided_slice %982 {offsets = [1, 0], sizes = [1, 512], strides = [1, 1]} : vector<2x512xf32> to vector<1x512xf32>
    %993 = vector.broadcast %988 : f32 to vector<1x512xf32>
    %994 = arith.mulf %993, %992 : vector<1x512xf32>
    %995 = arith.addf %991, %994 : vector<1x512xf32>
    %996 = arith.mulf %986, %995 : vector<1x512xf32>
    %997 = arith.addf %981, %996 : vector<1x512xf32>
    %c461_i32 = arith.constant 461 : i32
    %998 = tpu.dynamic_rotate %96 by %c461_i32 dim 1 : vector<2x512xf32>, i32 -> vector<2x512xf32>
    %999 = arith.andi %229, %166 : vector<1x512xi1>
    %cst_177 = arith.constant 1.000000e+00 : f32
    %cst_178 = arith.constant 0.000000e+00 : f32
    %1000 = vector.broadcast %cst_177 : f32 to vector<1x512xf32>
    %1001 = vector.broadcast %cst_178 : f32 to vector<1x512xf32>
    %1002 = arith.select %999, %1000, %1001 : vector<1x512xi1>, vector<1x512xf32>
    %c48 = arith.constant 48 : index
    %1003 = memref.load %arg3[%c48] : memref<98xf32, #tpu.memory_space<smem>>
    %c97 = arith.constant 97 : index
    %1004 = memref.load %arg3[%c97] : memref<98xf32, #tpu.memory_space<smem>>
    %1005 = vector.extract_strided_slice %998 {offsets = [0, 0], sizes = [1, 512], strides = [1, 1]} : vector<2x512xf32> to vector<1x512xf32>
    %1006 = vector.broadcast %1003 : f32 to vector<1x512xf32>
    %1007 = arith.mulf %1006, %1005 : vector<1x512xf32>
    %1008 = vector.extract_strided_slice %998 {offsets = [1, 0], sizes = [1, 512], strides = [1, 1]} : vector<2x512xf32> to vector<1x512xf32>
    %1009 = vector.broadcast %1004 : f32 to vector<1x512xf32>
    %1010 = arith.mulf %1009, %1008 : vector<1x512xf32>
    %1011 = arith.addf %1007, %1010 : vector<1x512xf32>
    %1012 = arith.mulf %1002, %1011 : vector<1x512xf32>
    %1013 = arith.addf %997, %1012 : vector<1x512xf32>
    %cst_179 = arith.constant 0.000000e+00 : f32
    %1014 = vector.broadcast %cst_179 : f32 to vector<1x512xf32>
    %1015 = arith.subf %1014, %1013 : vector<1x512xf32>
    %1016 = math.exp %1015 : vector<1x512xf32>
    %cst_180 = arith.constant 1.000000e+00 : f32
    %1017 = vector.broadcast %cst_180 : f32 to vector<1x512xf32>
    %1018 = arith.addf %1017, %1016 : vector<1x512xf32>
    %cst_181 = arith.constant 1.000000e+00 : f32
    %1019 = vector.broadcast %cst_181 : f32 to vector<1x512xf32>
    %1020 = arith.divf %1019, %1018 : vector<1x512xf32>
    %1021 = vector.broadcast %1020 : vector<1x512xf32> to vector<16x512xf32>
    %1022 = arith.mulf %89, %1021 : vector<16x512xf32>
    %cst_182 = arith.constant 0.000000e+00 : f32
    %1023 = vector.broadcast %cst_182 : f32 to vector<16x512xf32>
    %1024 = arith.maximumf %1022, %1023 : vector<16x512xf32>
    %1025 = vector.extract_strided_slice %1024 {offsets = [0, 0], sizes = [16, 256], strides = [1, 1]} : vector<16x512xf32> to vector<16x256xf32>
    %c0_183 = arith.constant 0 : index
    %c0_184 = arith.constant 0 : index
    %c0_185 = arith.constant 0 : index
    %1026 = vector.load %arg4[%c0_183, %c0_184, %c0_185] : memref<2x16x256xf32, #tpu.memory_space<vmem>>, vector<1x16x256xf32>
    %1027 = vector.shape_cast %1026 : vector<1x16x256xf32> to vector<16x256xf32>
    %1028 = vector.shape_cast %1025 : vector<16x256xf32> to vector<1x16x256xf32>
    tpu.vector_store %arg4[%c0_183, %c0_184, %c0_185], %1028 {strides = array<i32>} : memref<2x16x256xf32, #tpu.memory_space<vmem>>, vector<1x16x256xf32>,
    %1029 = vector.extract_strided_slice %1024 {offsets = [0, 256], sizes = [16, 256], strides = [1, 1]} : vector<16x512xf32> to vector<16x256xf32>
    %c1_186 = arith.constant 1 : index
    %c0_187 = arith.constant 0 : index
    %c0_188 = arith.constant 0 : index
    %1030 = vector.load %arg4[%c1_186, %c0_187, %c0_188] : memref<2x16x256xf32, #tpu.memory_space<vmem>>, vector<1x16x256xf32>
    %1031 = vector.shape_cast %1030 : vector<1x16x256xf32> to vector<16x256xf32>
    %1032 = vector.shape_cast %1029 : vector<16x256xf32> to vector<1x16x256xf32>
    tpu.vector_store %arg4[%c1_186, %c0_187, %c0_188], %1032 {strides = array<i32>} : memref<2x16x256xf32, #tpu.memory_space<vmem>>, vector<1x16x256xf32>,
    return
  }
  func.func @transform_0(%arg0: i32) -> (i32, i32) {
    %c0_i32 = arith.constant 0 : i32
    %c0_i32_0 = arith.constant 0 : i32
    %c0_i32_1 = arith.constant 0 : i32
    return %c0_i32, %c0_i32_0 : i32, i32
  }
  func.func @transform_1(%arg0: i32) -> (i32, i32) {
    %c0_i32 = arith.constant 0 : i32
    %c0_i32_0 = arith.constant 0 : i32
    %c0_i32_1 = arith.constant 0 : i32
    return %c0_i32, %c0_i32_0 : i32, i32
  }
  func.func @transform_2(%arg0: i32) -> i32 {
    %c0_i32 = arith.constant 0 : i32
    %c0_i32_0 = arith.constant 0 : i32
    return %c0_i32 : i32
  }
  func.func @transform_3(%arg0: i32) -> (i32, i32, i32) {
    %c0_i32 = arith.constant 0 : i32
    %c0_i32_0 = arith.constant 0 : i32
    %c0_i32_1 = arith.constant 0 : i32
    %c0_i32_2 = arith.constant 0 : i32
    return %c0_i32, %c0_i32_0, %c0_i32_1 : i32, i32, i32
  }
}

</mosaic_0001>

<bundles_post_ra>
// kernel: cnn_cbam_forward.1
= control target key start
LH: loop header
LB: loop body
LE: loop exit
PB: predicated region body
PF: predicated region fallthrough
CT: control target
= control target key end

     0   :  { %8 = vsyncpa [#allocation3], 0  ;;  %s8257_s0 = inlined_call_operand.vmem [shape: f32[36,512], index: 0, kind: input, shape index: {}]   ;;  %s8258_s1 = inlined_call_operand.vmem [shape: f32[16,42], index: 1, kind: input, shape index: {}]   ;;  %s8259_s2 = inlined_call_operand.vmem [shape: f32[98], index: 2, kind: input, shape index: {}]   ;;  %s8260_s3 = inlined_call_operand.vmem [shape: f32[2,16,256], index: 3, kind: output, shape index: {}]  }
   0x1   :  { %s19_s14 = sshll.u32 %s8259_s2, 4  ;;  %s20_s14 = int_to_ptr.vmem [resolvable:$true] %s19_s14 }
   0x2   :  { %s3843_s15 = scalar_lea.vmem %s20_s14, 16  ;;  %p3848_p1 = scmp.lt.s32.totalorder %s20_s14, %s20_s14 }
   0x3   :  { %p3844_p0 = scmp.ne.s32.totalorder %s20_s14, %s3843_s15  ;;  %p3849_p2 = scmp.lt.s32.totalorder %s3843_s15, %s3843_s15 }
   0x5   :  { %p3850_p3 = por %p3849_p2, %p3848_p1 }
   0x7   :  { %p3851_p4 = pnand %p3850_p3, %p3844_p0 }
   0x9   :  { %3854 = shalt.err (!%p3851_p4)
}
   0xa   :  { %s3857_s16 = smov [#allocation2]  }
   0xb   :  { %22 = dma.vmem_to_smem %s20_s14, 16, %s3857_s16, [#allocation3]  }
   0xc   :  { %3855 = dma.done.wait [#allocation3], 16  }
   0xd   :  { %3856 = vsyncadd [#allocation3], 4294967280 }
   0xe   :  { %26 = sfence }
   0xf   :  { %v30_v0 = vld [vmem:[%s8257_s0 + $0x8] sm:$0xff]  ;;  %v29_v2 = vld [vmem:[%s8257_s0] sm:$0xff]  ;;  %v32_v5 = vld [vmem:[%s8257_s0 + $0x18] sm:$0xff]  ;;  %v8264_v7 = vmov 0.0   ;;  %vm56_vm0 = vcmask 1043456   ;;  %vm49_vm1 = vcmask 293888  }
  0x10   :  { %v34_v1 = vld [vmem:[%s8257_s0 + $0x28] sm:$0xff]  ;;  %v33_v4 = vld [vmem:[%s8257_s0 + $0x20] sm:$0xff]  ;;  %v36_v6 = vld [vmem:[%s8257_s0 + $0x38] sm:$0xff]  ;;  %133 = vmatprep.mubr.f32.mxu0 %v8264_v7  ;;  %210 = vmatprep.mubr.f32.mxu1 %v8264_v7  ;;  %v3859_v59 = vmov 36   ;;  %v3860_v60 = vmov 38   ;;  %vm349_vm2 = vcmask 7168  }
  0x11   :  { %v3729_v3 = vpack.c.bf16 %v34_v1, %v30_v0  ;;  %v3731_v8 = vpack.c.bf16 %v33_v4, %v29_v2  ;;  %v3737_v9 = vpack.c.bf16 %v36_v6, %v32_v5  ;;  %v31_v10 = vld [vmem:[%s8257_s0 + $0x10] sm:$0xff]  ;;  %v38_v12 = vld [vmem:[%s8257_s0 + $0x48] sm:$0xff]  ;;  %v37_v15 = vld [vmem:[%s8257_s0 + $0x40] sm:$0xff]  ;;  %3803 = vset.pattern.permute.xlu1 %v3859_v59  ;;  %3805 = vset.pattern.permute.xlu0 %v3860_v60  ;;  %vm352_vm3 = vcmask 15360   ;;  %s3869_s5 = smov 51   ;;  %s3870_s6 = smov 50  }
  0x12   :  { %v35_v11 = vld [vmem:[%s8257_s0 + $0x30] sm:$0xff]  ;;  %v42_v14 = vld [vmem:[%s8257_s0 + $0x68] sm:$0xff]  ;;  %v41_v16 = vld [vmem:[%s8257_s0 + $0x60] sm:$0xff]  ;;  %vm355_vm4 = vcmask 23552   ;;  %vm368_vm5 = vcmask 31744   ;;  %vm532_vm6 = vcmask 1040384  }
  0x13   :  { %3730 = vmatprep.subr.bf16.mxu0 %v3729_v3  ;;  %v3739_v13 = vpack.c.bf16 %v35_v11, %v31_v10  ;;  %3738 = vmatprep.subr.bf16.mxu1 %v3737_v9  ;;  %v3733_v17 = vpack.c.bf16 %v42_v14, %v38_v12  ;;  %v3735_v18 = vpack.c.bf16 %v41_v16, %v37_v15  ;;  %v40_v19 = vld [vmem:[%s8257_s0 + $0x58] sm:$0xff]  ;;  %v39_v21 = vld [vmem:[%s8257_s0 + $0x50] sm:$0xff]  ;;  %v46_v25 = vld [vmem:[%s8257_s0 + $0x88] sm:$0xf]  ;;  %s3871_s7 = smov 49   ;;  %s3872_s8 = smov 48  }
  0x14   :  { %3732 = vmatpush1.bf16.msra.mxu0 %v3731_v8  ;;  %v44_v20 = vld [vmem:[%s8257_s0 + $0x78] sm:$0xff]  ;;  %v43_v23 = vld [vmem:[%s8257_s0 + $0x70] sm:$0xff]  ;;  %v45_v27 = vld [vmem:[%s8257_s0 + $0x80] sm:$0xf]  ;;  %s3873_s9 = smov 47   ;;  %s3874_s10 = smov 46  }
  0x15   :  { %3740 = vmatpush1.bf16.msra.mxu1 %v3739_v13  ;;  %v3741_v22 = vpack.c.bf16 %v44_v20, %v40_v19  ;;  %3734 = vmatprep.subr.bf16.mxu0 %v3733_v17  ;;  %v3743_v24 = vpack.c.bf16 %v43_v23, %v39_v21  ;;  %v48_v26 = vld [vmem:[%s8257_s0 + $0x98] sm:$0xf]  ;;  %v4000_v28 = vld [vmem:[%s8258_s1] sm:$0xff]  ;;  %v47_v29 = vld [vmem:[%s8257_s0 + $0x90] sm:$0xf]  ;;  %s3861_s0 = smov 1  }
  0x16   :  { %v4011_v30 = vld [vmem:[%s8258_s1 + $0x8] sm:$0xff]  ;;  %v3863_v19 = vmov 39   ;;  %v3864_v20 = vmov 40   ;;  %v3865_v21 = vmov 41   ;;  %s3866_s1 = smov 126   ;;  %s3875_s11 = smov 45  }
  0x17   :  { %3742 = vmatprep.subr.bf16.mxu1 %v3741_v22  ;;  %s3876_s12 = smov 35   ;;  %s3877_s13 = smov 34  }
  0x18   :  { %3736 = vmatpush1.bf16.msra.mxu0 %v3735_v18  ;;  %v3862_v18 = vmov 37   ;;  %s3675_s14 = sld [smem:[#allocation2 + $0x18]]  ;;  %s3676_s15 = sld [smem:[#allocation2 + $0x49]] }
  0x19   :  { %3744 = vmatpush1.bf16.msra.mxu1 %v3743_v24  ;;  %3620 = vmatprep.subr.msk.mxu0 %vm56_vm0, %v46_v25  ;;  %s791_s16 = sld [smem:[#allocation2]]  ;;  %s3628_s17 = sld [smem:[#allocation2 + $0x31]] }
  0x1a   :  { %3624 = vmatprep.subr.msk.mxu1 %vm56_vm0, %v48_v26  ;;  %s3878_s18 = smov 33   ;;  %s3879_s19 = smov 32  }
  0x1b   :  { %s4420_s20 = sld [smem:[#allocation2 + $0x1]]  ;;  %s4452_s2 = sld [smem:[#allocation2 + $0x32]] }
  0x1c   :  { %3621 = vmatpush1.msk.msra.mxu0 %vm56_vm0, %v45_v27  ;;  %s3880_s21 = smov 31   ;;  %s4488_s22 = sld [smem:[#allocation2 + $0x2]] }
  0x1d   :  { %3622 = vmatmul.mubr.msk.f32.vlgmr.msra.gmra.mrb[0].mxu0 %vm49_vm1, %v4000_v28  ;;  %3625 = vmatpush1.msk.msra.mxu1 %vm56_vm0, %v47_v29  ;;  %s4506_s23 = sld [smem:[#allocation2 + $0x33]]  ;;  %s4554_s25 = sld [smem:[#allocation2 + $0x34]] }
  0x1e   :  { %3626 = vmatmul.mubr.msk.f32.vlgmr.msra.gmra.mrb[0].mxu1 %vm49_vm1, %v4000_v28  ;;  %139 = vmatprep.mubr.f32.mxu0 %v8264_v7  ;;  %s4540_s24 = sld [smem:[#allocation2 + $0x3]]  ;;  %s4576_s26 = sld [smem:[#allocation2 + $0x4]] }
  0x1f   :  { %216 = vmatprep.mubr.f32.mxu1 %v8264_v7  ;;  %s4620_s27 = sld [smem:[#allocation2 + $0x35]]  ;;  %s3881_s28 = smov 30  }
  0x20   :  { %s4655_s29 = sld [smem:[#allocation2 + $0x5]]  ;;  %s4742_s30 = sld [smem:[#allocation2 + $0x36]] }
  0x21   :  { %3623 = vmatmul.mubr.msk.f32.gmra.mrb[2].mxu0 %vm49_vm1, %v4011_v30  ;;  %s4744_s4 = sld [smem:[#allocation2 + $0x6]] }
  0x22   :  { %3627 = vmatmul.mubr.msk.f32.gmra.mrb[2].mxu1 %vm49_vm1, %v4011_v30 }
  0xf0   :  { %v4016_v31 = vpop.f32.mrb[0].mxu0 }
  0xf1   :  { %v233_v32 = vmul.f32 %v4016_v31, %v4016_v31  ;;  %v4020_v33 = vpop.f32.mrb[1].mxu0  ;;  %v4022_v34 = vpop.f32.mrb[0].mxu1 }
  0xf2   :  { %v223_v35 = vadd.f32 %v4020_v33, %v4016_v31  ;;  %v234_v36 = vmul.f32 %v4020_v33, %v4020_v33  ;;  %v4028_v37 = vpop.f32.mrb[1].mxu1  ;;  %v235_v38 = vmul.f32 %v4022_v34, %v4022_v34 }
  0xf3   :  { %v236_v50 = vmul.f32 %v4028_v37, %v4028_v37 }
  0xf4   :  { %v4032_v39 = vpop.f32.mrb[2].mxu0  ;;  %v224_v40 = vadd.f32 %v223_v35, %v4022_v34  ;;  %v241_v41 = vadd.f32 %v234_v36, %v233_v32 }
  0xf5   :  { %v237_v42 = vmul.f32 %v4032_v39, %v4032_v39  ;;  %v4037_v43 = vpop.f32.mrb[3].mxu0  ;;  %v4039_v44 = vpop.f32.mrb[2].mxu1 }
  0xf6   :  { %v228_v45 = vadd.f32 %v4037_v43, %v4032_v39  ;;  %v238_v46 = vmul.f32 %v4037_v43, %v4037_v43  ;;  %v239_v47 = vmul.f32 %v4039_v44, %v4039_v44  ;;  %v225_v48 = vadd.f32 %v224_v40, %v4028_v37  ;;  %v4048_v49 = vpop.f32.mrb[3].mxu1 }
  0xf7   :  { %v242_v51 = vadd.f32 %v241_v41, %v235_v38  ;;  %v240_v53 = vmul.f32 %v4048_v49, %v4048_v49 }
  0xf8   :  { %v246_v52 = vadd.f32 %v238_v46, %v237_v42  ;;  %226 = vadd.xlane.f32.xlu0 %v225_v48  ;;  %v229_v54 = vadd.f32 %v228_v45, %v4039_v44 }
  0xf9   :  { %v243_v55 = vadd.f32 %v242_v51, %v236_v50 }
  0xfa   :  { %v230_v56 = vadd.f32 %v229_v54, %v4048_v49  ;;  %v247_v57 = vadd.f32 %v246_v52, %v239_v47 }
  0xfb   :  { %244 = vadd.xlane.f32.xlu1 %v243_v55 }
  0xfc   :  { %231 = vadd.xlane.f32.xlu0 %v230_v56  ;;  %v248_v58 = vadd.f32 %v247_v57, %v240_v53 }
  0xff   :  { %249 = vadd.xlane.f32.xlu1 %v248_v58 }
 0x185   :  { %v227_v61 = vpop.xlane.xlu0 %226 }
 0x186   :  { %v251_v62 = vmul.f32 0.001953125, %v227_v61 }
 0x188   :  { %v255_v63 = vmul.f32 %v251_v62, %v251_v62  ;;  %v245_v0 = vpop.xlane.xlu1 %244 }
 0x189   :  { %v253_v1 = vmul.f32 0.001953125, %v245_v0  ;;  %v232_v2 = vpop.xlane.xlu0 %231 }
 0x18a   :  { %v252_v3 = vmul.f32 0.001953125, %v232_v2 }
 0x18b   :  { %v257_v4 = vsub.f32 %v253_v1, %v255_v63 }
 0x18c   :  { %v256_v5 = vmul.f32 %v252_v3, %v252_v3  ;;  %v250_v6 = vpop.xlane.xlu1 %249 }
 0x18d   :  { %v259_v8 = vadd.f32 1e-05, %v257_v4  ;;  %v254_v9 = vmul.f32 0.001953125, %v250_v6 }
 0x18f   :  { %3815 = vrsqrt.f32 %v259_v8  ;;  %v258_v10 = vsub.f32 %v254_v9, %v256_v5 }
 0x191   :  { %v260_v11 = vadd.f32 1e-05, %v258_v10 }
 0x193   :  { %3817 = vrsqrt.f32 %v260_v11 }
 0x199   :  { %v3816_v12 = vpop.eup %3815 }
 0x19a   :  { %v263_v13 = vmul.f32 %v3816_v12, %v4000_v28 }
 0x19c   :  { %279 = vperm.xlu1 %3803, %v263_v13   ;;  %v265_v14 = vmul.f32 %v263_v13, %v251_v62 }
 0x19d   :  { %v3818_v15 = vpop.eup %3817 }
 0x19e   :  { %269 = vrot.lane.b32.xlu0 %v265_v14, %s3861_s0  ;;  %v264_v16 = vmul.f32 %v3818_v15, %v4011_v30 }
 0x1a0   :  { %v266_v17 = vmul.f32 %v264_v16, %v252_v3 }
 0x1a2   :  { %271 = vrot.lane.b32.xlu1 %v266_v17, %s3861_s0  ;;  %363 = vperm.xlu0 %3805, %v4011_v30  }
 0x1a6   :  { %284 = vperm.xlu1 %3803, %v264_v16   ;;  %3809 = vset.pattern.permute.xlu0 %v3862_v18 }
 0x1aa   :  { %3804 = vset.pattern.permute.xlu1 %v3860_v60 }
 0x1ab   :  { %359 = vperm.xlu1 %3804, %v4000_v28  }
 0x1af   :  { %3806 = vset.pattern.permute.xlu1 %v3863_v19 }
 0x1b0   :  { %392 = vperm.xlu1 %3806, %v4000_v28  }
 0x1b4   :  { %396 = vperm.xlu1 %3806, %v4011_v30  }
 0x1b8   :  { %3807 = vset.pattern.permute.xlu1 %v3864_v20 }
 0x1b9   :  { %380 = vperm.xlu1 %3807, %v4000_v28  }
 0x1bd   :  { %384 = vperm.xlu1 %3807, %v4011_v30  }
 0x1c1   :  { %3808 = vset.pattern.permute.xlu1 %v3865_v21 }
 0x1c2   :  { %412 = vperm.xlu1 %3808, %v4000_v28  }
 0x1c6   :  { %416 = vperm.xlu1 %3808, %v4011_v30  }
 0x1ca   :  { %3810 = vset.pattern.permute.xlu1 %v3862_v18 }
 0x210   :  { %v270_v22 = vpop.permute.xlu0 %269 }
 0x211   :  { %v275_v23 = vsub.f32 %v4000_v28, %v270_v22 }
 0x213   :  { %297 = vperm.xlu0 %3809, %v275_v23  }
 0x21b   :  { %v280_v24 = vpop.permute.xlu1 %279 }
 0x21c   :  { %v289_v28 = vmul.f32 %v280_v24, %v4022_v34  ;;  %v290_v41 = vmul.f32 %v280_v24, %v4028_v37  ;;  %v288_v42 = vmul.f32 %v280_v24, %v4020_v33 }
 0x21f   :  { %v272_v25 = vpop.permute.xlu1 %271 }
 0x220   :  { %v276_v26 = vsub.f32 %v4011_v30, %v272_v25  ;;  %v287_v30 = vmul.f32 %v280_v24, %v4016_v31 }
 0x221   :  { %v4078_v38 = vpop.permute.xlu0 %363 }
 0x222   :  { %302 = vperm.xlu1 %3810, %v276_v26  }
 0x225   :  { %v285_v27 = vpop.permute.xlu1 %284 }
 0x226   :  { %v291_v57 = vmul.f32 %v285_v27, %v4032_v39  ;;  %v292_v58 = vmul.f32 %v285_v27, %v4037_v43  ;;  %v293_v59 = vmul.f32 %v285_v27, %v4039_v44  ;;  %v294_v60 = vmul.f32 %v285_v27, %v4048_v49 }
 0x22a   :  { %v4070_v29 = vpop.permute.xlu1 %359 }
 0x22f   :  { %v4072_v32 = vpop.permute.xlu1 %392 }
 0x233   :  { %v4074_v35 = vpop.permute.xlu1 %396 }
 0x238   :  { %v4076_v36 = vpop.permute.xlu1 %380 }
 0x23c   :  { %v4080_v40 = vpop.permute.xlu1 %384 }
 0x241   :  { %v4094_v34 = vpop.permute.xlu1 %412 }
 0x245   :  { %v4102_v55 = vpop.permute.xlu1 %416 }
 0x292   :  { %v298_v45 = vpop.permute.xlu0 %297 }
 0x293   :  { %v307_v46 = vadd.f32 %v298_v45, %v289_v28  ;;  %v308_v47 = vadd.f32 %v298_v45, %v290_v41  ;;  %v305_v48 = vadd.f32 %v298_v45, %v287_v30  ;;  %v306_v50 = vadd.f32 %v298_v45, %v288_v42 }
 0x295   :  { %v4086_v51 = vmax.f32 %v307_v46, 0.0  ;;  %v4088_v52 = vmax.f32 %v308_v47, 0.0  ;;  %v4090_v53 = vmax.f32 %v305_v48, 0.0  ;;  %v4092_v54 = vmax.f32 %v306_v50, 0.0 }
 0x297   :  { %v329_v31 = vadd.f32 %v4088_v52, %v4086_v51  ;;  %v321_v33 = vadd.f32 %v4092_v54, %v4090_v53  ;;  %v337_v37 = vmax.f32 %v4090_v53, %v4092_v54  ;;  %v343_v56 = vmax.f32 %v4086_v51, %v4088_v52 }
 0x299   :  { %330 = vadd.xlane.f32.xlu0 %v329_v31  ;;  %322 = vadd.xlane.f32.xlu1 %v321_v33 }
 0x29d   :  { %338 = vmax.xlane.f32.xlu1 %v337_v37 }
 0x2a1   :  { %v303_v61 = vpop.permute.xlu1 %302  ;;  %344 = vmax.xlane.f32.xlu1 %v343_v56 }
 0x2a2   :  { %v309_v62 = vadd.f32 %v303_v61, %v291_v57  ;;  %v310_v63 = vadd.f32 %v303_v61, %v292_v58  ;;  %v311_v0 = vadd.f32 %v303_v61, %v293_v59  ;;  %v312_v1 = vadd.f32 %v303_v61, %v294_v60 }
 0x2a4   :  { %v4110_v2 = vmax.f32 %v309_v62, 0.0  ;;  %v4112_v3 = vmax.f32 %v310_v63, 0.0  ;;  %v4116_v39 = vmax.f32 %v311_v0, 0.0  ;;  %v4118_v43 = vmax.f32 %v312_v1, 0.0 }
 0x2a6   :  { %v324_v4 = vadd.f32 %v4112_v3, %v4110_v2  ;;  %v332_v44 = vadd.f32 %v4118_v43, %v4116_v39  ;;  %v340_v49 = vmax.f32 %v4110_v2, %v4112_v3  ;;  %v346_v5 = vmax.f32 %v4116_v39, %v4118_v43 }
 0x2a8   :  { %325 = vadd.xlane.f32.xlu0 %v324_v4 }
 0x2ac   :  { %333 = vadd.xlane.f32.xlu0 %v332_v44  ;;  %v3867_v44 = vmov 0  }
 0x2ad   :  { %3811 = vset.pattern.permute.xlu0 %v3867_v44  ;;  %3812 = vset.pattern.permute.xlu1 %v3867_v44 }
 0x2b0   :  { %341 = vmax.xlane.f32.xlu0 %v340_v49 }
 0x2b4   :  { %347 = vmax.xlane.f32.xlu0 %v346_v5 }
 0x326   :  { %v323_v6 = vpop.xlane.xlu1 %322  ;;  %v331_v8 = vpop.xlane.xlu0 %330 }
 0x327   :  { %v335_v11 = vmul.f32 0.00390625, %v331_v8  ;;  %v327_v12 = vmul.f32 0.00390625, %v323_v6 }
 0x329   :  { %v350_v14 = vsel %vm349_vm2, %v327_v12, %v335_v11 }
 0x32a   :  { %v339_v9 = vpop.xlane.xlu1 %338 }
 0x32b   :  { %v353_v18 = vsel %vm352_vm3, %v350_v14, %v339_v9 }
 0x32e   :  { %v345_v16 = vpop.xlane.xlu1 %344 }
 0x32f   :  { %v356_v20 = vsel %vm355_vm4, %v353_v18, %v345_v16 }
 0x330   :  { %v366_v22 = vmul.f32 %v4070_v29, %v356_v20  ;;  %v399_v23 = vmul.f32 %v4072_v32, %v356_v20 }
 0x332   :  { %v369_v41 = vsel %vm368_vm5, %v366_v22, 0.0  ;;  %v401_v30 = vsel %vm368_vm5, %v399_v23, 0.0 }
 0x335   :  { %v326_v10 = vpop.xlane.xlu0 %325 }
 0x336   :  { %v328_v17 = vmul.f32 0.00390625, %v326_v10 }
 0x339   :  { %v334_v13 = vpop.xlane.xlu0 %333 }
 0x33a   :  { %v336_v15 = vmul.f32 0.00390625, %v334_v13 }
 0x33c   :  { %v351_v21 = vsel %vm349_vm2, %v328_v17, %v336_v15  ;;  %v3868_v15 = vmov 1  }
 0x33d   :  { %v342_v19 = vpop.xlane.xlu0 %341 }
 0x33e   :  { %v354_v24 = vsel %vm352_vm3, %v351_v21, %v342_v19 }
 0x341   :  { %v348_v25 = vpop.xlane.xlu0 %347 }
 0x342   :  { %v357_v26 = vsel %vm355_vm4, %v354_v24, %v348_v25 }
 0x343   :  { %v367_v27 = vmul.f32 %v4078_v38, %v357_v26  ;;  %v400_v28 = vmul.f32 %v4074_v35, %v357_v26 }
 0x345   :  { %v370_v42 = vsel %vm368_vm5, %v367_v27, 0.0  ;;  %v402_v45 = vsel %vm368_vm5, %v400_v28, 0.0 }
 0x346   :  { %v371_v46 = vadd.f32 %v370_v42, %v369_v41  ;;  %v403_v47 = vadd.f32 %v402_v45, %v401_v30 }
 0x348   :  { %v372_v48 = vrot.slane %v371_v46, 4  ;;  %v404_v50 = vrot.slane %v403_v47, 4 }
 0x34a   :  { %v373_v31 = vadd.f32 %v372_v48, %v371_v46  ;;  %v405_v29 = vadd.f32 %v404_v50, %v403_v47 }
 0x34c   :  { %v374_v33 = vrot.slane %v373_v31, 2  ;;  %v406_v32 = vrot.slane %v405_v29, 2 }
 0x34e   :  { %v375_v37 = vadd.f32 %v374_v33, %v373_v31  ;;  %v407_v56 = vadd.f32 %v406_v32, %v405_v29 }
 0x350   :  { %v376_v57 = vrot.slane %v375_v37, 1  ;;  %v408_v58 = vrot.slane %v407_v56, 1 }
 0x352   :  { %v377_v59 = vadd.f32 %v376_v57, %v375_v37  ;;  %v409_v38 = vadd.f32 %v408_v58, %v407_v56 }
 0x354   :  { %v378_v60 = vmax.f32 %v377_v59, 0.0  ;;  %v410_v35 = vmax.f32 %v409_v38, 0.0 }
 0x356   :  { %v387_v61 = vmul.f32 %v4076_v36, %v378_v60  ;;  %v419_v62 = vmul.f32 %v4094_v34, %v410_v35  ;;  %v388_v0 = vmul.f32 %v4080_v40, %v378_v60  ;;  %v420_v1 = vmul.f32 %v4102_v55, %v410_v35 }
 0x358   :  { %v421_v63 = vadd.f32 %v419_v62, %v387_v61  ;;  %v422_v4 = vadd.f32 %v420_v1, %v388_v0 }
 0x35a   :  { %425 = vrot.lane.b32.xlu1 %v421_v63, %s3866_s1 }
 0x35e   :  { %427 = vrot.lane.b32.xlu1 %v422_v4, %s3866_s1 }
 0x3cc   :  { %v426_v49 = vpop.permute.xlu1 %425 }
 0x3cd   :  { %v431_v5 = vadd.f32 %v426_v49, %v421_v63 }
 0x3cf   :  { %v433_v6 = vsub.f32 0.0, %v431_v5 }
 0x3d0   :  { %v428_v36 = vpop.permute.xlu1 %427 }
 0x3d1   :  { %v435_v8 = vmul.f32 1.442695, %v433_v6  ;;  %v432_v34 = vadd.f32 %v428_v36, %v422_v4 }
 0x3d3   :  { %3819 = vpow2.f32 %v435_v8  ;;  %v434_v9 = vsub.f32 0.0, %v432_v34 }
 0x3d5   :  { %v437_v40 = vmul.f32 1.442695, %v434_v9 }
 0x3d7   :  { %3821 = vpow2.f32 %v437_v40 }
 0x3dd   :  { %v3820_v55 = vpop.eup %3819 }
 0x3de   :  { %v439_v10 = vadd.f32 1.0, %v3820_v55 }
 0x3e0   :  { %3823 = vrcp.f32 %v439_v10 }
 0x3e1   :  { %v3822_v11 = vpop.eup %3821 }
 0x3e2   :  { %v440_v12 = vadd.f32 1.0, %v3822_v11 }
 0x3e4   :  { %3825 = vrcp.f32 %v440_v12 }
 0x3ea   :  { %v3824_v13 = vpop.eup %3823 }
 0x3eb   :  { %447 = vperm.xlu0 %3811, %v3824_v13  }
 0x3ee   :  { %v3826_v14 = vpop.eup %3825 }
 0x3ef   :  { %3814 = vset.pattern.permute.xlu0 %v3868_v15  ;;  %452 = vperm.xlu1 %3812, %v3826_v14  }
 0x3f0   :  { %464 = vperm.xlu0 %3814, %v3826_v14  }
 0x3f3   :  { %3813 = vset.pattern.permute.xlu1 %v3868_v15 }
 0x3f4   :  { %460 = vperm.xlu1 %3813, %v3824_v13  }
 0x46a   :  { %v448_v16 = vpop.permute.xlu0 %447 }
 0x46b   :  { %v4137_v18 = vmul.f32 %v448_v16, %v4090_v53  ;;  %v4140_v19 = vmul.f32 %v448_v16, %v4092_v54 }
 0x46d   :  { %8405 = vst [vmem:[#allocation5_spill] sm:$0xff] %v4137_v18  ;;  %8406 = vst [vmem:[#allocation6_spill] sm:$0xff] %v4140_v19 }
 0x46e   :  { %v453_v17 = vpop.permute.xlu1 %452 }
 0x46f   :  { %v4143_v20 = vmul.f32 %v453_v17, %v4110_v2  ;;  %v4146_v21 = vmul.f32 %v453_v17, %v4112_v3  ;;  %v465_v54 = vpop.permute.xlu0 %464 }
 0x470   :  { %v4157_v3 = vmul.f32 %v465_v54, %v4116_v39  ;;  %v4160_v41 = vmul.f32 %v465_v54, %v4118_v43 }
 0x471   :  { %8407 = vst [vmem:[#allocation7_spill] sm:$0xff] %v4143_v20  ;;  %8408 = vst [vmem:[#allocation8_spill] sm:$0xff] %v4146_v21  ;;  %v471_v22 = vadd.f32 %v4143_v20, %v4137_v18  ;;  %v478_v23 = vadd.f32 %v4146_v21, %v4140_v19  ;;  %v504_v24 = vmax.f32 %v4137_v18, %v4143_v20  ;;  %v8482_v18 = vmov 0 }
 0x472   :  { %v511_v53 = vmax.f32 %v4140_v19, %v4146_v21  ;;  %8409 = vst [vmem:[#allocation9_spill] sm:$0xff] %v4157_v3  ;;  %8410 = vst [vmem:[#allocation10_spill] sm:$0xff] %v4160_v41 }
 0x473   :  { %v472_v25 = vrot.slane %v471_v22, 4  ;;  %v479_v26 = vrot.slane %v478_v23, 4  ;;  %v505_v2 = vrot.slane %v504_v24, 4  ;;  %v461_v28 = vpop.permute.xlu1 %460 }
 0x474   :  { %v512_v27 = vrot.slane %v511_v53, 4  ;;  %v4163_v30 = vmul.f32 %v461_v28, %v4086_v51  ;;  %v4166_v42 = vmul.f32 %v461_v28, %v4088_v52 }
 0x475   :  { %v473_v45 = vadd.f32 %v472_v25, %v471_v22  ;;  %v480_v46 = vadd.f32 %v479_v26, %v478_v23  ;;  %v506_v47 = vmax.f32 %v504_v24, %v505_v2 }
 0x476   :  { %8411 = vst [vmem:[#allocation11_spill] sm:$0xff] %v4163_v30  ;;  %8412 = vst [vmem:[#allocation12_spill] sm:$0xff] %v4166_v42  ;;  %v513_v48 = vmax.f32 %v511_v53, %v512_v27  ;;  %v485_v50 = vadd.f32 %v4157_v3, %v4163_v30  ;;  %v492_v39 = vadd.f32 %v4160_v41, %v4166_v42 }
 0x477   :  { %v518_v43 = vmax.f32 %v4163_v30, %v4157_v3  ;;  %v525_v51 = vmax.f32 %v4166_v42, %v4160_v41  ;;  %v474_v31 = vrot.slane %v473_v45, 2  ;;  %v481_v29 = vrot.slane %v480_v46, 2 }
 0x478   :  { %v507_v52 = vrot.slane %v506_v47, 2  ;;  %v514_v33 = vrot.slane %v513_v48, 2  ;;  %v486_v32 = vrot.slane %v485_v50, 4  ;;  %v493_v37 = vrot.slane %v492_v39, 4 }
 0x479   :  { %v519_v56 = vrot.slane %v518_v43, 4  ;;  %v526_v57 = vrot.slane %v525_v51, 4  ;;  %v475_v58 = vadd.f32 %v474_v31, %v473_v45  ;;  %v482_v59 = vadd.f32 %v481_v29, %v480_v46 }
 0x47a   :  { %v508_v38 = vmax.f32 %v506_v47, %v507_v52  ;;  %v487_v60 = vadd.f32 %v486_v32, %v485_v50  ;;  %v494_v35 = vadd.f32 %v493_v37, %v492_v39  ;;  %v515_v4 = vmax.f32 %v513_v48, %v514_v33 }
 0x47b   :  { %v520_v61 = vmax.f32 %v518_v43, %v519_v56  ;;  %v527_v62 = vmax.f32 %v525_v51, %v526_v57  ;;  %v476_v63 = vrot.slane %v475_v58, 1  ;;  %v483_v0 = vrot.slane %v482_v59, 1 }
 0x47c   :  { %v509_v1 = vrot.slane %v508_v38, 1  ;;  %v488_v44 = vrot.slane %v487_v60, 2  ;;  %v495_v49 = vrot.slane %v494_v35, 2  ;;  %v516_v11 = vrot.slane %v515_v4, 1 }
 0x47d   :  { %v521_v5 = vrot.slane %v520_v61, 2  ;;  %v528_v6 = vrot.slane %v527_v62, 2  ;;  %v477_v36 = vadd.f32 %v476_v63, %v475_v58  ;;  %v484_v8 = vadd.f32 %v483_v0, %v482_v59 }
 0x47e   :  { %v489_v34 = vadd.f32 %v488_v44, %v487_v60  ;;  %v496_v9 = vadd.f32 %v495_v49, %v494_v35  ;;  %v510_v10 = vmax.f32 %v508_v38, %v509_v1  ;;  %v517_v24 = vmax.f32 %v515_v4, %v516_v11 }
 0x47f   :  { %v522_v40 = vmax.f32 %v520_v61, %v521_v5  ;;  %v500_v55 = vmul.f32 0.0625, %v477_v36  ;;  %v529_v12 = vmax.f32 %v527_v62, %v528_v6  ;;  %v501_v16 = vmul.f32 0.0625, %v484_v8 }
 0x480   :  { %v490_v13 = vrot.slane %v489_v34, 1  ;;  %v497_v14 = vrot.slane %v496_v9, 1  ;;  %v8263_v46 = vlaneseq  ;;  %v8418_v59 = vmov 0 }
 0x481   :  { %v523_v15 = vrot.slane %v522_v40, 1  ;;  %v4177_v17 = vsel %vm532_vm6, %v500_v55, %v510_v10  ;;  %v530_v53 = vrot.slane %v529_v12, 1  ;;  %v4181_v26 = vsel %vm532_vm6, %v501_v16, %v517_v24 }
 0x482   :  { %v491_v22 = vadd.f32 %v490_v13, %v489_v34  ;;  %v498_v23 = vadd.f32 %v497_v14, %v496_v9  ;;  %770 = vrot.lane.b32.xlu1 %v4177_v17, %s3869_s5  ;;  %v4214_v47 = vand.u32 127, %v8263_v46  ;;  %v8421_v38 = vmov 0 }
 0x483   :  { %v524_v25 = vmax.f32 %v522_v40, %v523_v15  ;;  %v531_v28 = vmax.f32 %v529_v12, %v530_v53  ;;  %v8424_v60 = vmov 0  ;;  %v8426_v35 = vmov 0 }
 0x484   :  { %v502_v54 = vmul.f32 0.0625, %v491_v22  ;;  %v503_v2 = vmul.f32 0.0625, %v498_v23  ;;  %v539_v48 = vadd.s32 128, %v4214_v47  ;;  %v540_v50 = vadd.s32 256, %v4214_v47 }
 0x485   :  { %v541_v43 = vadd.s32 384, %v4214_v47  ;;  %v546_v51 = vand.u32 255, %v4214_v47  ;;  %v8429_v63 = vmov 0  ;;  %v4283_v0 = vand.u32 15, %v4214_v47 }
 0x486   :  { %v4184_v27 = vsel %vm532_vm6, %v502_v54, %v524_v25  ;;  %772 = vrot.lane.b32.xlu1 %v4181_v26, %s3869_s5  ;;  %v4189_v45 = vsel %vm532_vm6, %v503_v2, %v531_v28  ;;  %v547_v39 = vand.u32 255, %v539_v48  ;;  %v548_v31 = vand.u32 255, %v540_v50 }
 0x487   :  { %774 = vrot.lane.b32.xlu0 %v4184_v27, %s3869_s5  ;;  %v549_v52 = vand.u32 255, %v541_v43  ;;  %v4229_v33 = vand.u32 15, %v539_v48  ;;  %v4231_v32 = vshra.s32 %v546_v51, 4  ;;  %v4271_v61 = vand.u32 15, %v540_v50 }
 0x488   :  { %v4226_v29 = vshra.s32 %v547_v39, 4  ;;  %v4235_v56 = vshra.s32 %v548_v31, 4  ;;  %v4285_v1 = vand.u32 15, %v541_v43  ;;  %v4287_v4 = vstv %s3675_s14  ;;  %s5041_s14 = sld [smem:[#allocation2 + $0x3b]] }
 0x489   :  { %8414 = vst [vmem:[#allocation14_spill] sm:$0xff] %v4231_v32  ;;  %v4237_v57 = vshra.s32 %v549_v52, 4  ;;  %v4243_v58 = vadd.s32 4294967293, %v4229_v33  ;;  %vm710_vm9 = vcmp.ge.s32.totalorder %v4231_v32, 0  ;;  %vm714_vm10 = vcmp.le.s32.totalorder %v4231_v32, 15 }
 0x48a   :  { %776 = vrot.lane.b32.xlu1 %v4189_v45, %s3869_s5  ;;  %8413 = vst [vmem:[#allocation13_spill] sm:$0xff] %v4226_v29  ;;  %v663_v37 = vadd.s32 4294967293, %v4226_v29  ;;  %8415 = vst [vmem:[#allocation15_spill] sm:$0xff] %v4235_v56  ;;  %vm711_vm7 = vcmp.ge.s32.totalorder %v4226_v29, 0  ;;  %vm715_vm8 = vcmp.le.s32.totalorder %v4226_v29, 15  ;;  %vm712_vm14 = vcmp.ge.s32.totalorder %v4235_v56, 0 }
 0x48b   :  { %827 = vrot.lane.b32.xlu0 %v4177_v17, %s3870_s6  ;;  %8416 = vst [vmem:[#allocation16_spill] sm:$0xff] %v4237_v57  ;;  %8417 = vst [vmem:[#allocation17_spill] sm:$0xff] %v4243_v58  ;;  %vm716_vm15 = vcmp.le.s32.totalorder %v4235_v56, 15  ;;  %vm713_vm0 = vcmp.ge.s32.totalorder %v4237_v57, 0  ;;  %vm717_vm1 = vcmp.le.s32.totalorder %v4237_v57, 15  ;;  %vm8261_vm3 = vcmp.ge.s32.totalorder %v4243_v58, 0 }
 0x48c   :  { %vm667_vm11 = vcmp.ge.s32.totalorder %v663_v37, 0  ;;  %vm671_vm12 = vcmp.le.s32.totalorder %v663_v37, 15  ;;  %vm4248_vm13 = vmand %vm711_vm7, %vm715_vm8  ;;  %v664_v62 = vadd.s32 4294967293, %v4235_v56  ;;  %v662_v44 = vadd.s32 4294967293, %v4231_v32  ;;  %s4794_s5 = sld [smem:[#allocation2 + $0x37]] }
 0x48d   :  { %v8419_v59 = vsel %vm4248_vm13, 4294967295, %v8418_v59  ;;  %vm4256_vm2 = vmand %vm710_vm9, %vm714_vm10  ;;  %v2153_v5 = vstv %s3676_s15  ;;  %v4299_v6 = vsel %vm4248_vm13, 1.0, %v8264_v7  ;;  %v4302_v36 = vstv %s791_s16  ;;  %s5043_s15 = sld [smem:[#allocation2 + $0xb]]  ;;  %s5074_s16 = sld [smem:[#allocation2 + $0x3c]] }
 0x48e   :  { %829 = vrot.lane.b32.xlu1 %v4181_v26, %s3870_s6  ;;  %8420 = vst [vmem:[#allocation18_spill] sm:$0xff] %v8419_v59  ;;  %v8422_v38 = vsel %vm4256_vm2, 4294967295, %v8421_v38  ;;  %vm4262_vm4 = vmand %vm667_vm11, %vm671_vm12  ;;  %v4294_v49 = vsel %vm4256_vm2, 1.0, %v8264_v7  ;;  %v4304_v8 = vstv %s3628_s17  ;;  %v4320_v55 = vadd.s32 4294967293, %v4271_v61  ;;  %s5104_s17 = sld [smem:[#allocation2 + $0xc]] }
 0x48f   :  { %831 = vrot.lane.b32.xlu0 %v4184_v27, %s3870_s6  ;;  %8423 = vst [vmem:[#allocation19_spill] sm:$0xff] %v8422_v38  ;;  %v8425_v60 = vsel %vm4262_vm4, 4294967295, %v8424_v60  ;;  %vm4267_vm5 = vmand %vm712_vm14, %vm716_vm15  ;;  %vm668_vm8 = vcmp.ge.s32.totalorder %v664_v62, 0  ;;  %v665_v10 = vadd.s32 4294967293, %v4237_v57  ;;  %vm672_vm9 = vcmp.le.s32.totalorder %v664_v62, 15 }
 0x490   :  { %v8427_v35 = vsel %vm4267_vm5, 4294967295, %v8426_v35  ;;  %vm4274_vm6 = vmand %vm713_vm0, %vm717_vm1  ;;  %8432 = vst [vmem:[#allocation22_spill] sm:$0xff] %v4302_v36  ;;  %v4309_v34 = vsel %vm4267_vm5, 1.0, %v8264_v7  ;;  %v4324_v11 = vadd.s32 4294967293, %v4283_v0  ;;  %v4327_v12 = vadd.s32 4294967293, %v4285_v1 }
 0x491   :  { %8428 = vst [vmem:[#allocation20_spill] sm:$0xff] %v8427_v35  ;;  %v8430_v63 = vsel %vm4274_vm6, 4294967295, %v8429_v63  ;;  %vm784_vm7 = vmand %vm4262_vm4, %vm8261_vm3  ;;  %v4314_v9 = vsel %vm4274_vm6, 1.0, %v8264_v7  ;;  %v4330_v13 = vadd.s32 4294967294, %v4229_v33  ;;  %vm666_vm10 = vcmp.ge.s32.totalorder %v662_v44, 0 }
 0x492   :  { %833 = vrot.lane.b32.xlu1 %v4189_v45, %s3870_s6  ;;  %8431 = vst [vmem:[#allocation21_spill] sm:$0xff] %v8430_v63  ;;  %8433 = vst [vmem:[#allocation23_spill] sm:$0xff] %v4304_v8  ;;  %v4317_v40 = vsel %vm784_vm7, 1.0, %v8264_v7  ;;  %v4334_v14 = vadd.s32 4294967294, %v4271_v61  ;;  %v4337_v15 = vadd.s32 4294967294, %v4283_v0  ;;  %v4340_v16 = vadd.s32 4294967294, %v4285_v1 }
 0x493   :  { %884 = vrot.lane.b32.xlu0 %v4177_v17, %s3871_s7  ;;  %8434 = vst [vmem:[#allocation24_spill] sm:$0xff] %v4317_v40  ;;  %8435 = vst [vmem:[#allocation25_spill] sm:$0xff] %v4320_v55  ;;  %vm670_vm11 = vcmp.le.s32.totalorder %v662_v44, 15  ;;  %v4345_v22 = vadd.s32 4294967295, %v4229_v33  ;;  %v4348_v23 = vadd.s32 4294967295, %v4271_v61  ;;  %v4351_v24 = vmul.f32 %v2153_v5, %v4177_v17  ;;  %s4796_s6 = sld [smem:[#allocation2 + $0x7]] }
 0x494   :  { %8436 = vst [vmem:[#allocation26_spill] sm:$0xff] %v4324_v11  ;;  %8437 = vst [vmem:[#allocation27_spill] sm:$0xff] %v4327_v12  ;;  %vm673_vm14 = vcmp.le.s32.totalorder %v665_v10, 15  ;;  %v4354_v53 = vadd.s32 4294967295, %v4283_v0  ;;  %v4357_v54 = vadd.s32 4294967295, %v4285_v1  ;;  %vm8262_vm1 = vcmp.ge.s32.totalorder %v4324_v11, 0 }
 0x495   :  { %8438 = vst [vmem:[#allocation28_spill] sm:$0xff] %v4330_v13  ;;  %8439 = vst [vmem:[#allocation29_spill] sm:$0xff] %v4334_v14  ;;  %vm8274_vm15 = vcmp.ge.s32.totalorder %v4334_v14, 0  ;;  %v4380_v28 = vadd.s32 1, %v4229_v33  ;;  %vm8451_vm3 = vcmp.ge.s32.totalorder %v665_v10, 0  ;;  %v4393_v50 = vadd.s32 1, %v4271_v61 }
 0x496   :  { %886 = vrot.lane.b32.xlu1 %v4181_v26, %s3871_s7  ;;  %8440 = vst [vmem:[#allocation30_spill] sm:$0xff] %v4337_v15  ;;  %8441 = vst [vmem:[#allocation31_spill] sm:$0xff] %v4340_v16  ;;  %v4407_v51 = vadd.s32 1, %v4283_v0  ;;  %v4410_v31 = vmul.f32 %v2153_v5, %v4181_v26  ;;  %v4423_v37 = vadd.s32 1, %v4285_v1  ;;  %v4426_v62 = vadd.s32 2, %v4229_v33 }
 0x497   :  { %888 = vrot.lane.b32.xlu0 %v4184_v27, %s3871_s7  ;;  %8442 = vst [vmem:[#allocation32_spill] sm:$0xff] %v4345_v22  ;;  %8443 = vst [vmem:[#allocation33_spill] sm:$0xff] %v4348_v23  ;;  %v4429_v44 = vmul.f32 %v2153_v5, %v4184_v27  ;;  %v4432_v10 = vmul.f32 %v2153_v5, %v4189_v45  ;;  %v4456_v5 = vadd.s32 2, %v4271_v61  ;;  %v4459_v7 = vadd.s32 2, %v4283_v0 }
 0x498   :  { %8444 = vst [vmem:[#allocation34_spill] sm:$0xff] %v4354_v53  ;;  %8445 = vst [vmem:[#allocation35_spill] sm:$0xff] %v4357_v54  ;;  %v679_v41 = vadd.s32 4294967294, %v4226_v29  ;;  %v8471_v42 = vmov 0  ;;  %v8474_v3 = vmov 0  ;;  %vm8476_vm6 = vcmp.ge.s32.totalorder %v4340_v16, 0 }
 0x499   :  { %vm4362_vm0 = vmand %vm668_vm8, %vm672_vm9  ;;  %8450 = vst [vmem:[#allocation36_spill] sm:$0xff] %v4380_v28  ;;  %vm8455_vm9 = vcmp.ge.s32.totalorder %v4320_v55, 0  ;;  %v8477_v30 = vmov 0  ;;  %v4492_v21 = vadd.s32 2, %v4285_v1  ;;  %v4495_v19 = vadd.s32 3, %v4229_v33 }
 0x49a   :  { %890 = vrot.lane.b32.xlu1 %v4189_v45, %s3871_s7  ;;  %vm4372_vm12 = vmand %vm666_vm10, %vm670_vm11  ;;  %8454 = vst [vmem:[#allocation37_spill] sm:$0xff] %v4393_v50  ;;  %v680_v20 = vadd.s32 4294967294, %v4235_v56  ;;  %v4510_v63 = vadd.s32 3, %v4271_v61  ;;  %v4513_v33 = vadd.s32 3, %v4283_v0  ;;  %v678_v38 = vadd.s32 4294967294, %v4231_v32  ;;  %s4869_s7 = sld [smem:[#allocation2 + $0x38]] }
 0x49b   :  { %941 = vrot.lane.b32.xlu0 %v4177_v17, %s3872_s8  ;;  %vm4386_vm7 = vmand %vm8451_vm3, %vm673_vm14  ;;  %8458 = vst [vmem:[#allocation38_spill] sm:$0xff] %v4407_v51  ;;  %vm8466_vm14 = vcmp.ge.s32.totalorder %v4330_v13, 0  ;;  %vm8486_vm5 = vcmp.ge.s32.totalorder %v4348_v23, 0  ;;  %v8487_v35 = vmov 0  ;;  %v4527_v61 = vadd.s32 3, %v4285_v1 }
 0x49c   :  { %vm4400_vm8 = vmand %vm4362_vm0, %vm8455_vm9  ;;  %8461 = vst [vmem:[#allocation39_spill] sm:$0xff] %v4423_v37  ;;  %vm8463_vm9 = vcmp.ge.s32.totalorder %v4327_v12, 0  ;;  %v681_v0 = vadd.s32 4294967294, %v4237_v57  ;;  %v8491_v59 = vmov 0  ;;  %v8494_v1 = vmov 0 }
 0x49d   :  { %vm4416_vm11 = vmand %vm4372_vm12, %vm8262_vm1  ;;  %8462 = vst [vmem:[#allocation40_spill] sm:$0xff] %v4426_v62  ;;  %v8497_v40 = vmov 0  ;;  %v8500_v36 = vmov 0  ;;  %v8503_v8 = vmov 0  ;;  %v8506_v57 = vmov 0 }
 0x49e   :  { %943 = vrot.lane.b32.xlu1 %v4181_v26, %s3872_s8  ;;  %vm4440_vm1 = vmand %vm4386_vm7, %vm8463_vm9  ;;  %8469 = vst [vmem:[#allocation41_spill] sm:$0xff] %v4456_v5  ;;  %vm8473_vm9 = vcmp.ge.s32.totalorder %v4337_v15, 0  ;;  %vm8508_vm13 = vcmp.le.s32.totalorder %v4426_v62, 15  ;;  %v8509_v32 = vmov 0  ;;  %v2163_v62 = vrot.slane %v4410_v31, 1 }
 0x49f   :  { %945 = vrot.lane.b32.xlu0 %v4184_v27, %s3872_s8  ;;  %vm4448_vm3 = vmand %vm4262_vm4, %vm8466_vm14  ;;  %8470 = vst [vmem:[#allocation42_spill] sm:$0xff] %v4459_v7  ;;  %v8522_v43 = vmov 0 }
 0x4a0   :  { %vm4468_vm14 = vmand %vm4362_vm0, %vm8274_vm15  ;;  %8479 = vst [vmem:[#allocation43_spill] sm:$0xff] %v4492_v21  ;;  %vm8512_vm15 = vcmp.ge.s32.totalorder %v679_v41, 0 }
 0x4a1   :  { %v8472_v42 = vsel %vm4468_vm14, 4294967295, %v8471_v42  ;;  %vm4476_vm10 = vmand %vm4372_vm12, %vm8473_vm9  ;;  %8480 = vst [vmem:[#allocation44_spill] sm:$0xff] %v4495_v19  ;;  %vm8481_vm9 = vcmp.ge.s32.totalorder %v4345_v22, 0 }
 0x4a2   :  { %947 = vrot.lane.b32.xlu1 %v4189_v45, %s3872_s8  ;;  %v8475_v3 = vsel %vm4476_vm10, 4294967295, %v8474_v3  ;;  %vm4484_vm2 = vmand %vm4386_vm7, %vm8476_vm6  ;;  %8484 = vst [vmem:[#allocation45_spill] sm:$0xff] %v4510_v63  ;;  %vm8493_vm10 = vcmp.ge.s32.totalorder %v4357_v54, 0  ;;  %s4871_s8 = sld [smem:[#allocation2 + $0x8]] }
 0x4a3   :  { %998 = vrot.lane.b32.xlu0 %v4177_v17, %s3873_s9  ;;  %v8478_v30 = vsel %vm4484_vm2, 4294967295, %v8477_v30  ;;  %vm4502_vm6 = vmand %vm4262_vm4, %vm8481_vm9  ;;  %8485 = vst [vmem:[#allocation46_spill] sm:$0xff] %v4513_v33  ;;  %vm8496_vm2 = vcmp.le.s32.totalorder %v4380_v28, 15 }
 0x4a4   :  { %v8483_v18 = vsel %vm4502_vm6, 4294967295, %v8482_v18  ;;  %vm4520_vm9 = vmand %vm4362_vm0, %vm8486_vm5  ;;  %8489 = vst [vmem:[#allocation47_spill] sm:$0xff] %v4527_v61  ;;  %vm8490_vm6 = vcmp.ge.s32.totalorder %v4354_v53, 0 }
 0x4a5   :  { %v8488_v35 = vsel %vm4520_vm9, 4294967295, %v8487_v35  ;;  %vm4536_vm5 = vmand %vm4372_vm12, %vm8490_vm6  ;;  %vm8511_vm6 = vcmp.le.s32.totalorder %v679_v41, 15  ;;  %v8519_v41 = vmov 0 }
 0x4a6   :  { %1000 = vrot.lane.b32.xlu1 %v4181_v26, %s3873_s9  ;;  %v8492_v59 = vsel %vm4536_vm5, 4294967295, %v8491_v59  ;;  %vm4550_vm14 = vmand %vm4386_vm7, %vm8493_vm10  ;;  %vm8499_vm10 = vcmp.le.s32.totalorder %v4393_v50, 15  ;;  %v4618_v50 = vstv %s4420_s20  ;;  %s5169_s20 = sld [smem:[#allocation2 + $0xd]] }
 0x4a7   :  { %1002 = vrot.lane.b32.xlu0 %v4184_v27, %s3873_s9  ;;  %v8495_v1 = vsel %vm4550_vm14, 4294967295, %v8494_v1  ;;  %vm4562_vm5 = vmand %vm4262_vm4, %vm8496_vm2  ;;  %vm8502_vm2 = vcmp.le.s32.totalorder %v4407_v51, 15  ;;  %8517 = vst [vmem:[#allocation49_spill] sm:$0xff] %v4618_v50  ;;  %v2164_v50 = vrot.slane %v4429_v44, 1  ;;  %v5026_v44 = vstv %s4794_s5  ;;  %s5622_s5 = sld [smem:[#allocation2 + $0x12]] }
 0x4a8   :  { %v8498_v40 = vsel %vm4562_vm5, 4294967295, %v8497_v40  ;;  %vm4570_vm14 = vmand %vm4362_vm0, %vm8499_vm10  ;;  %vm8505_vm10 = vcmp.le.s32.totalorder %v4423_v37, 15  ;;  %v8515_v37 = vmov 0.0   ;;  %8641 = vst [vmem:[#allocation76_spill] sm:$0xff] %v5026_v44  ;;  %v8759_v44 = vld [vmem:[#allocation23_spill] sm:$0xff] }
 0x4a9   :  { %v8501_v36 = vsel %vm4570_vm14, 4294967295, %v8500_v36  ;;  %vm4582_vm5 = vmand %vm4372_vm12, %vm8502_vm2  ;;  %v4615_v51 = vsel %vm4400_vm8, 1.0, %v8515_v37  ;;  %vm8524_vm8 = vcmp.le.s32.totalorder %v680_v20, 15  ;;  %v4889_v25 = vsel %vm4372_vm12, 1.0, %v8515_v37 }
 0x4aa   :  { %1004 = vrot.lane.b32.xlu1 %v4189_v45, %s3873_s9  ;;  %v8504_v8 = vsel %vm4582_vm5, 4294967295, %v8503_v8  ;;  %vm4590_vm14 = vmand %vm4386_vm7, %vm8505_vm10  ;;  %8516 = vst [vmem:[#allocation48_spill] sm:$0xff] %v4615_v51  ;;  %v2149_v51 = vmul.f32 %v4287_v4, %v4177_v17  ;;  %s3882_s9 = smov 29  }
 0x4ab   :  { %1055 = vrot.lane.b32.xlu0 %v4177_v17, %s3874_s10  ;;  %v8507_v57 = vsel %vm4590_vm14, 4294967295, %v8506_v57  ;;  %vm4598_vm9 = vmand %vm4262_vm4, %vm8508_vm13  ;;  %vm8518_vm13 = vcmp.le.s32.totalorder %v4456_v5, 15  ;;  %vm8525_vm14 = vcmp.ge.s32.totalorder %v680_v20, 0  ;;  %v4653_v5 = vstv %s4488_s22  ;;  %s5215_s22 = sld [smem:[#allocation2 + $0x3f]] }
 0x4ac   :  { %v8510_v32 = vsel %vm4598_vm9, 4294967295, %v8509_v32  ;;  %vm4605_vm5 = vmand %vm8512_vm15, %vm8511_vm6  ;;  %vm8521_vm6 = vcmp.le.s32.totalorder %v4459_v7, 15  ;;  %v4650_v7 = vstv %s4452_s2  ;;  %8529 = vst [vmem:[#allocation51_spill] sm:$0xff] %v4653_v5  ;;  %v8531_v20 = vmov 0  ;;  %s5171_s2 = sld [smem:[#allocation2 + $0x3e]] }
 0x4ad   :  { %vm4626_vm15 = vmand %vm4362_vm0, %vm8518_vm13  ;;  %8528 = vst [vmem:[#allocation50_spill] sm:$0xff] %v4650_v7  ;;  %v8537_v5 = vmov 0  ;;  %v8541_v7 = vmov 0  ;;  %vm8544_vm9 = vcmp.ge.s32.totalorder %v678_v38, 0 }
 0x4ae   :  { %1057 = vrot.lane.b32.xlu1 %v4181_v26, %s3874_s10  ;;  %v8520_v41 = vsel %vm4626_vm15, 4294967295, %v8519_v41  ;;  %vm4634_vm10 = vmand %vm4372_vm12, %vm8521_vm6  ;;  %vm8533_vm6 = vcmp.le.s32.totalorder %v4495_v19, 15 }
 0x4af   :  { %1059 = vrot.lane.b32.xlu0 %v4184_v27, %s3874_s10  ;;  %v8523_v43 = vsel %vm4634_vm10, 4294967295, %v8522_v43  ;;  %vm4640_vm2 = vmand %vm8525_vm14, %vm8524_vm8  ;;  %vm8530_vm14 = vcmp.le.s32.totalorder %v4492_v21, 15  ;;  %vm8536_vm10 = vcmp.le.s32.totalorder %v4510_v63, 15  ;;  %v2150_v63 = vmul.f32 %v4287_v4, %v4181_v26 }
 0x4b0   :  { %vm4661_vm13 = vmand %vm4386_vm7, %vm8530_vm14  ;;  %vm8540_vm14 = vcmp.le.s32.totalorder %v4513_v33, 15  ;;  %v2165_v21 = vrot.slane %v4432_v10, 1  ;;  %v4701_v33 = vsel %vm4416_vm11, 1.0, %v8515_v37  ;;  %vm8555_vm11 = vcmp.le.s32.totalorder %v681_v0, 15 }
 0x4b1   :  { %v8532_v20 = vsel %vm4661_vm13, 4294967295, %v8531_v20  ;;  %vm4669_vm8 = vmand %vm4262_vm4, %vm8533_vm6  ;;  %vm8543_vm6 = vcmp.le.s32.totalorder %v678_v38, 15  ;;  %8547 = vst [vmem:[#allocation53_spill] sm:$0xff] %v4701_v33  ;;  %v8559_v33 = vrot.slane %v4351_v24, 1  ;;  %v8561_v24 = vmov 0 }
 0x4b2   :  { %1061 = vrot.lane.b32.xlu1 %v4189_v45, %s3874_s10  ;;  %vm4677_vm15 = vmand %vm4362_vm0, %vm8536_vm10  ;;  %vm8549_vm10 = vcmp.le.s32.totalorder %v4527_v61, 15  ;;  %v2151_v61 = vmul.f32 %v4287_v4, %v4184_v27  ;;  %v2171_v46 = vadd.f32 %v2163_v62, %v2150_v63  ;;  %v4792_v62 = vstv %s4554_s25  ;;  %s4925_s10 = sld [smem:[#allocation2 + $0x39]]  ;;  %s5337_s25 = sld [smem:[#allocation2 + $0x10]] }
 0x4b3   :  { %1112 = vrot.lane.b32.xlu0 %v4177_v17, %s3875_s11  ;;  %v8538_v5 = vsel %vm4677_vm15, 4294967295, %v8537_v5  ;;  %vm4685_vm13 = vmand %vm4372_vm12, %vm8540_vm14  ;;  %vm8552_vm14 = vcmp.ge.s32.totalorder %v4243_v58, 0  ;;  %v4735_v58 = vsel %vm4440_vm1, 1.0, %v8515_v37  ;;  %vm8563_vm1 = vnez %v8472_v42  ;;  %8573 = vst [vmem:[#allocation58_spill] sm:$0xff] %v4792_v62 }
 0x4b4   :  { %8539 = vst [vmem:[#allocation52_spill] sm:$0xff] %v8538_v5  ;;  %v8542_v7 = vsel %vm4685_vm13, 4294967295, %v8541_v7  ;;  %vm4691_vm4 = vmand %vm8544_vm9, %vm8543_vm6  ;;  %v4704_v5 = vstv %s4506_s23  ;;  %vm8556_vm13 = vcmp.ge.s32.totalorder %v681_v0, 0  ;;  %v4740_v0 = vsel %vm4448_vm3, 1.0, %v8515_v37  ;;  %s5262_s23 = sld [smem:[#allocation2 + $0xf]] }
 0x4b5   :  { %8548 = vst [vmem:[#allocation54_spill] sm:$0xff] %v4704_v5  ;;  %vm4710_vm9 = vmand %vm4386_vm7, %vm8549_vm10  ;;  %v2170_v5 = vadd.f32 %v8559_v33, %v2149_v51  ;;  %v2152_v51 = vmul.f32 %v4287_v4, %v4189_v45  ;;  %v4761_v39 = vsel %vm8563_vm1, 1.0, %v8515_v37  ;;  %vm8564_vm3 = vnez %v8475_v3 }
 0x4b6   :  { %1114 = vrot.lane.b32.xlu1 %v4181_v26, %s3875_s11  ;;  %vm4718_vm6 = vmand %vm4605_vm5, %vm8552_vm14  ;;  %v4766_v33 = vsel %vm8564_vm3, 1.0, %v8515_v37  ;;  %vm8565_vm14 = vnez %v8478_v30  ;;  %v8568_v4 = vmov 0  ;;  %v2172_v42 = vadd.f32 %v2164_v50, %v2151_v61 }
 0x4b7   :  { %1116 = vrot.lane.b32.xlu0 %v4184_v27, %s3875_s11  ;;  %vm4724_vm15 = vmand %vm8556_vm13, %vm8555_vm11  ;;  %vm8560_vm13 = vcmp.ge.s32.totalorder %v4320_v55, 0  ;;  %v4771_v63 = vsel %vm8565_vm14, 1.0, %v8515_v37  ;;  %vm8567_vm11 = vcmp.ge.s32.totalorder %v4324_v11, 0  ;;  %vm8570_vm1 = vnez %v8483_v18 }
 0x4b8   :  { %vm4750_vm10 = vmand %vm4640_vm2, %vm8560_vm13  ;;  %8566 = vst [vmem:[#allocation55_spill] sm:$0xff] %v4771_v63  ;;  %v4786_v3 = vsel %vm8570_vm1, 1.0, %v8515_v37  ;;  %v4789_v30 = vstv %s4540_s24  ;;  %vm8574_vm3 = vcmp.ge.s32.totalorder %v4327_v12, 0  ;;  %v8575_v50 = vmov 0  ;;  %s5264_s24 = sld [smem:[#allocation2 + $0x40]] }
 0x4b9   :  { %v8562_v24 = vsel %vm4750_vm10, 4294967295, %v8561_v24  ;;  %vm4777_vm13 = vmand %vm4691_vm4, %vm8567_vm11  ;;  %8571 = vst [vmem:[#allocation56_spill] sm:$0xff] %v4786_v3  ;;  %vm8577_vm11 = vcmp.ge.s32.totalorder %v4330_v13, 0  ;;  %v8578_v18 = vmov 0  ;;  %v8581_v61 = vmov 0 }
 0x4ba   :  { %1118 = vrot.lane.b32.xlu1 %v4189_v45, %s3875_s11  ;;  %v8569_v4 = vsel %vm4777_vm13, 4294967295, %v8568_v4  ;;  %8572 = vst [vmem:[#allocation57_spill] sm:$0xff] %v4789_v30  ;;  %vm4802_vm14 = vmand %vm4724_vm15, %vm8574_vm3  ;;  %vm8580_vm13 = vcmp.ge.s32.totalorder %v4334_v14, 0  ;;  %v2173_v30 = vadd.f32 %v2165_v21, %v2152_v51  ;;  %vm8583_vm3 = vnez %v8488_v35  ;;  %s4927_s11 = sld [smem:[#allocation2 + $0x9]] }
 0x4bb   :  { %1169 = vrot.lane.b32.xlu0 %v4177_v17, %s3876_s12  ;;  %v8576_v50 = vsel %vm4802_vm14, 4294967295, %v8575_v50  ;;  %vm4810_vm1 = vmand %vm4605_vm5, %vm8577_vm11  ;;  %v4825_v3 = vsel %vm8583_vm3, 1.0, %v8515_v37  ;;  %vm8584_vm11 = vnez %v8492_v59  ;;  %vm8590_vm3 = vcmp.ge.s32.totalorder %v4340_v16, 0 }
 0x4bc   :  { %v8579_v18 = vsel %vm4810_vm1, 4294967295, %v8578_v18  ;;  %vm4818_vm10 = vmand %vm4640_vm2, %vm8580_vm13  ;;  %v4830_v62 = vsel %vm8584_vm11, 1.0, %v8515_v37  ;;  %vm8585_vm1 = vnez %v8495_v1  ;;  %vm8587_vm13 = vcmp.ge.s32.totalorder %v4337_v15, 0 }
 0x4bd   :  { %v8582_v61 = vsel %vm4818_vm10, 4294967295, %v8581_v61  ;;  %v4835_v63 = vsel %vm8585_vm1, 1.0, %v8515_v37  ;;  %vm4841_vm10 = vmand %vm4691_vm4, %vm8587_vm13  ;;  %v4854_v35 = vmul.f32 %v2170_v5, %v4294_v49  ;;  %vm8594_vm1 = vnez %v8425_v60 }
 0x4be   :  { %1171 = vrot.lane.b32.xlu1 %v4181_v26, %s3876_s12  ;;  %8586 = vst [vmem:[#allocation59_spill] sm:$0xff] %v4835_v63  ;;  %vm4849_vm14 = vmand %vm4724_vm15, %vm8590_vm3  ;;  %v4859_v1 = vsel %vm8594_vm1, 1.0, %v8515_v37  ;;  %v4864_v51 = vsel %vm4362_vm0, 1.0, %v8515_v37  ;;  %v4867_v63 = vstv %s4576_s26  ;;  %vm8595_vm11 = vcmp.ge.s32.totalorder %v4345_v22, 0  ;;  %s3884_s26 = smov 18  }
 0x4bf   :  { %1173 = vrot.lane.b32.xlu0 %v4184_v27, %s3876_s12  ;;  %8593 = vst [vmem:[#allocation60_spill] sm:$0xff] %v4854_v35  ;;  %vm4877_vm13 = vmand %vm4605_vm5, %vm8595_vm11  ;;  %v4882_v49 = vmul.f32 %v2171_v46, %v4299_v6  ;;  %v4894_v5 = vsel %vm4386_vm7, 1.0, %v8515_v37  ;;  %v4897_v35 = vstv %s4620_s27  ;;  %vm8599_vm0 = vcmp.ge.s32.totalorder %v4348_v23, 0  ;;  %s5365_s27 = sld [smem:[#allocation2 + $0x41]] }
 0x4c0   :  { %vm4903_vm3 = vmand %vm4640_vm2, %vm8599_vm0  ;;  %v4908_v2 = vmul.f32 %v2172_v42, %v4309_v34  ;;  %vm8603_vm12 = vnez %v8498_v40  ;;  %vm8605_vm7 = vnez %v8501_v36  ;;  %vm8608_vm1 = vcmp.ge.s32.totalorder %v4354_v53, 0 }
 0x4c1   :  { %8598 = vst [vmem:[#allocation61_spill] sm:$0xff] %v4882_v49  ;;  %v4915_v48 = vsel %vm8603_vm12, 1.0, %v8515_v37  ;;  %v4920_v46 = vsel %vm8605_vm7, 1.0, %v8515_v37  ;;  %v4923_v49 = vstv %s4655_s29  ;;  %vm4933_vm11 = vmand %vm4691_vm4, %vm8608_vm1  ;;  %v8609_v34 = vmov 0  ;;  %s5524_s29 = sld [smem:[#allocation2 + $0x11]] }
 0x4c2   :  { %1175 = vrot.lane.b32.xlu1 %v4189_v45, %s3876_s12  ;;  %8602 = vst [vmem:[#allocation62_spill] sm:$0xff] %v4908_v2  ;;  %8604 = vst [vmem:[#allocation63_spill] sm:$0xff] %v4915_v48  ;;  %v8610_v34 = vsel %vm4933_vm11, 4294967295, %v8609_v34  ;;  %v4938_v40 = vmul.f32 %v2173_v30, %v4314_v9  ;;  %vm8612_vm0 = vnez %v8504_v8  ;;  %vm8614_vm12 = vnez %v8507_v57  ;;  %s4980_s12 = sld [smem:[#allocation2 + $0x3a]] }
 0x4c3   :  { %1226 = vrot.lane.b32.xlu0 %v4177_v17, %s3877_s13  ;;  %8606 = vst [vmem:[#allocation64_spill] sm:$0xff] %v4920_v46  ;;  %8607 = vst [vmem:[#allocation65_spill] sm:$0xff] %v4923_v49  ;;  %v4943_v36 = vsel %vm8612_vm0, 1.0, %v8515_v37  ;;  %v4948_v42 = vsel %vm8614_vm12, 1.0, %v8515_v37  ;;  %vm8616_vm7 = vnez %v8510_v32  ;;  %vm8618_vm1 = vcmp.ge.s32.totalorder %v4357_v54, 0 }
 0x4c4   :  { %8611 = vst [vmem:[#allocation66_spill] sm:$0xff] %v4938_v40  ;;  %8613 = vst [vmem:[#allocation67_spill] sm:$0xff] %v4943_v36  ;;  %v4953_v2 = vsel %vm8616_vm7, 1.0, %v8515_v37  ;;  %v695_v8 = vadd.s32 4294967295, %v4226_v29  ;;  %v4965_v30 = vstv %s4742_s30  ;;  %vm8621_vm0 = vnez %v8520_v41  ;;  %s5544_s30 = sld [smem:[#allocation2 + $0x42]] }
 0x4c5   :  { %8615 = vst [vmem:[#allocation68_spill] sm:$0xff] %v4948_v42  ;;  %8617 = vst [vmem:[#allocation69_spill] sm:$0xff] %v4953_v2  ;;  %v4970_v57 = vsel %vm8621_vm0, 1.0, %v8515_v37  ;;  %vm8623_vm12 = vnez %v8523_v43  ;;  %v4978_v40 = vstv %s4744_s4  ;;  %vm8626_vm7 = vcmp.le.s32.totalorder %v4380_v28, 15  ;;  %v8637_v2 = vld [vmem:[#allocation37_spill] sm:$0xff]  ;;  %v8663_v42 = vld [vmem:[#allocation42_spill] sm:$0xff] }
 0x4c6   :  { %1228 = vrot.lane.b32.xlu1 %v4181_v26, %s3877_s13  ;;  %vm4959_vm11 = vmand %vm4724_vm15, %vm8618_vm1  ;;  %8622 = vst [vmem:[#allocation70_spill] sm:$0xff] %v4970_v57  ;;  %v4975_v32 = vsel %vm8623_vm12, 1.0, %v8515_v37  ;;  %v8627_v41 = vmov 0  ;;  %vm8629_vm12 = vnez %v8532_v20  ;;  %v5003_v29 = vsel %vm4669_vm8, 1.0, %v8515_v37  ;;  %s3886_s4 = smov 16  }
 0x4c7   :  { %1230 = vrot.lane.b32.xlu0 %v4184_v27, %s3877_s13  ;;  %8624 = vst [vmem:[#allocation71_spill] sm:$0xff] %v4975_v32  ;;  %8625 = vst [vmem:[#allocation72_spill] sm:$0xff] %v4978_v40  ;;  %v4998_v43 = vsel %vm8629_vm12, 1.0, %v8515_v37  ;;  %v8632_v32 = vld [vmem:[#allocation52_spill] sm:$0xff]  ;;  %vm8638_vm0 = vcmp.le.s32.totalorder %v8637_v2, 15  ;;  %v8647_v38 = vmov 0  ;;  %v5094_v46 = vstv %s4869_s7 }
 0x4c8   :  { %vm4988_vm1 = vmand %vm4605_vm5, %vm8626_vm7  ;;  %8630 = vst [vmem:[#allocation73_spill] sm:$0xff] %v4998_v43  ;;  %vm8633_vm7 = vnez %v8632_v32  ;;  %v5036_v32 = vsel %vm4718_vm6, 1.0, %v8515_v37  ;;  %v8651_v10 = vmov 0  ;;  %v8659_v43 = vld [vmem:[#allocation41_spill] sm:$0xff]  ;;  %v8665_v36 = vmov 0  ;;  %s5653_s7 = sld [smem:[#allocation2 + $0x43]] }
 0x4c9   :  { %v8628_v41 = vsel %vm4988_vm1, 4294967295, %v8627_v41  ;;  %8631 = vst [vmem:[#allocation74_spill] sm:$0xff] %v5003_v29  ;;  %v5008_v40 = vsel %vm8633_vm7, 1.0, %v8515_v37  ;;  %vm8635_vm1 = vnez %v8542_v7  ;;  %vm5019_vm12 = vmand %vm4640_vm2, %vm8638_vm0  ;;  %v5031_v7 = vsel %vm4710_vm9, 1.0, %v8515_v37 }
 0x4ca   :  { %1232 = vrot.lane.b32.xlu1 %v4189_v45, %s3877_s13  ;;  %s4982_s13 = sld [smem:[#allocation2 + $0xa]]  ;;  %8634 = vst [vmem:[#allocation52_spill] sm:$0xff] %v5008_v40  ;;  %v5013_v57 = vsel %vm8635_vm1, 1.0, %v8515_v37  ;;  %8642 = vst [vmem:[#allocation77_spill] sm:$0xff] %v5031_v7  ;;  %v8645_v40 = vld [vmem:[#allocation38_spill] sm:$0xff]  ;;  %v8649_v7 = vld [vmem:[#allocation39_spill] sm:$0xff]  ;;  %v5102_v49 = vstv %s4871_s8  ;;  %v5246_v9 = vstv %s5041_s14 }
 0x4cb   :  { %1283 = vrot.lane.b32.xlu0 %v4177_v17, %s3878_s18  ;;  %8636 = vst [vmem:[#allocation75_spill] sm:$0xff] %v5013_v57  ;;  %8643 = vst [vmem:[#allocation78_spill] sm:$0xff] %v5036_v32  ;;  %v5039_v57 = vstv %s4796_s6  ;;  %vm8646_vm8 = vcmp.le.s32.totalorder %v8645_v40, 15  ;;  %vm8650_vm9 = vcmp.le.s32.totalorder %v8649_v7, 15  ;;  %v8653_v32 = vld [vmem:[#allocation40_spill] sm:$0xff]  ;;  %v5184_v59 = vsel %vm4877_vm13, 1.0, %v8515_v37 }
 0x4cc   :  { %8644 = vst [vmem:[#allocation79_spill] sm:$0xff] %v5039_v57  ;;  %vm5049_vm1 = vmand %vm4691_vm4, %vm8646_vm8  ;;  %vm8654_vm0 = vcmp.le.s32.totalorder %v8653_v32, 15  ;;  %v8655_v57 = vmov 0  ;;  %vm8657_vm8 = vnez %v8562_v24  ;;  %v8667_v24 = vld [vmem:[#allocation15_spill] sm:$0xff]  ;;  %v8687_v32 = vld [vmem:[#allocation45_spill] sm:$0xff]  ;;  %v5269_v31 = vsel %vm4691_vm4, 1.0, %v8515_v37 }
 0x4cd   :  { %v8648_v38 = vsel %vm5049_vm1, 4294967295, %v8647_v38  ;;  %vm5057_vm6 = vmand %vm4724_vm15, %vm8650_vm9  ;;  %v5072_v29 = vsel %vm8657_vm8, 1.0, %v8515_v37  ;;  %vm8660_vm9 = vcmp.le.s32.totalorder %v8659_v43, 15  ;;  %8668 = vst [vmem:[#allocation81_spill] sm:$0xff] %v5094_v46  ;;  %v8676_v46 = vld [vmem:[#allocation44_spill] sm:$0xff]  ;;  %s3887_s6 = smov 15  }
 0x4ce   :  { %1285 = vrot.lane.b32.xlu1 %v4181_v26, %s3878_s18  ;;  %v8652_v10 = vsel %vm5057_vm6, 4294967295, %v8651_v10  ;;  %vm5065_vm7 = vmand %vm4605_vm5, %vm8654_vm0  ;;  %8658 = vst [vmem:[#allocation80_spill] sm:$0xff] %v5072_v29  ;;  %vm8664_vm0 = vcmp.le.s32.totalorder %v8663_v42, 15  ;;  %v696_v29 = vadd.s32 4294967295, %v8667_v24  ;;  %v8672_v42 = vld [vmem:[#allocation43_spill] sm:$0xff]  ;;  %v8674_v24 = vmov 0 }
 0x4cf   :  { %1287 = vrot.lane.b32.xlu0 %v4184_v27, %s3878_s18  ;;  %v8656_v57 = vsel %vm5065_vm7, 4294967295, %v8655_v57  ;;  %vm5080_vm6 = vmand %vm4640_vm2, %vm8660_vm9  ;;  %vm8669_vm9 = vnez %v8569_v4  ;;  %8671 = vst [vmem:[#allocation83_spill] sm:$0xff] %v5102_v49  ;;  %vm8677_vm1 = vcmp.le.s32.totalorder %v8676_v46, 15  ;;  %v8678_v4 = vmov 0  ;;  %v8680_v49 = vld [vmem:[#allocation14_spill] sm:$0xff]  ;;  %s3888_s8 = smov 14  }
 0x4d0   :  { %vm5088_vm7 = vmand %vm4691_vm4, %vm8664_vm0  ;;  %v5099_v43 = vsel %vm8669_vm9, 1.0, %v8515_v37  ;;  %vm8673_vm0 = vcmp.le.s32.totalorder %v8672_v42, 15  ;;  %8699 = vst [vmem:[#allocation90_spill] sm:$0xff] %v5184_v59  ;;  %v5203_v60 = vstv %s4982_s13  ;;  %v8707_v59 = vld [vmem:[#allocation47_spill] sm:$0xff]  ;;  %s5865_s13 = sld [smem:[#allocation2 + $0x14]]  ;;  %s5867_s14 = sld [smem:[#allocation2 + $0x45]] }
 0x4d1   :  { %v8666_v36 = vsel %vm5088_vm7, 4294967295, %v8665_v36  ;;  %8670 = vst [vmem:[#allocation82_spill] sm:$0xff] %v5099_v43  ;;  %vm5112_vm8 = vmand %vm4724_vm15, %vm8673_vm0  ;;  %v694_v43 = vadd.s32 4294967295, %v8680_v49  ;;  %vm8681_vm7 = vnez %v8576_v50  ;;  %vm8683_vm0 = vnez %v8579_v18  ;;  %v8691_v50 = vld [vmem:[#allocation16_spill] sm:$0xff] }
 0x4d2   :  { %1289 = vrot.lane.b32.xlu1 %v4189_v45, %s3878_s18  ;;  %s5106_s18 = sld [smem:[#allocation2 + $0x3d]]  ;;  %v8675_v24 = vsel %vm5112_vm8, 4294967295, %v8674_v24  ;;  %vm5120_vm9 = vmand %vm4605_vm5, %vm8677_vm1  ;;  %v5130_v42 = vsel %vm8681_vm7, 1.0, %v8515_v37  ;;  %v5135_v46 = vsel %vm8683_vm0, 1.0, %v8515_v37  ;;  %vm8685_vm1 = vnez %v8582_v61  ;;  %8706 = vst [vmem:[#allocation93_spill] sm:$0xff] %v5203_v60 }
 0x4d3   :  { %1340 = vrot.lane.b32.xlu0 %v4177_v17, %s3879_s19  ;;  %v8679_v4 = vsel %vm5120_vm9, 4294967295, %v8678_v4  ;;  %8682 = vst [vmem:[#allocation84_spill] sm:$0xff] %v5130_v42  ;;  %8684 = vst [vmem:[#allocation85_spill] sm:$0xff] %v5135_v46  ;;  %v5140_v48 = vsel %vm8685_vm1, 1.0, %v8515_v37  ;;  %vm8688_vm9 = vcmp.le.s32.totalorder %v8687_v32, 15  ;;  %v697_v42 = vadd.s32 4294967295, %v8691_v50 }
 0x4d4   :  { %8686 = vst [vmem:[#allocation86_spill] sm:$0xff] %v5140_v48  ;;  %vm5146_vm8 = vmand %vm4640_vm2, %vm8688_vm9  ;;  %v5154_v18 = vstv %s4925_s10  ;;  %v5159_v61 = vsel %vm4841_vm10, 1.0, %v8515_v37  ;;  %v5164_v48 = vsel %vm4849_vm14, 1.0, %v8515_v37  ;;  %v5167_v46 = vstv %s4927_s11  ;;  %s5747_s10 = sld [smem:[#allocation2 + $0x44]]  ;;  %s3889_s11 = smov 13  }
 0x4d5   :  { %8692 = vst [vmem:[#allocation87_spill] sm:$0xff] %v5159_v61  ;;  %8693 = vst [vmem:[#allocation88_spill] sm:$0xff] %v5164_v48  ;;  %vm8695_vm7 = vcmp.le.s32.totalorder %v695_v8, 15  ;;  %vm8696_vm9 = vcmp.ge.s32.totalorder %v695_v8, 0  ;;  %v5189_v48 = vsel %vm4903_vm3, 1.0, %v8515_v37  ;;  %v8701_v61 = vld [vmem:[#allocation46_spill] sm:$0xff] }
 0x4d6   :  { %1342 = vrot.lane.b32.xlu1 %v4181_v26, %s3879_s19  ;;  %8694 = vst [vmem:[#allocation89_spill] sm:$0xff] %v5167_v46  ;;  %vm5175_vm0 = vmand %vm8696_vm9, %vm8695_vm7  ;;  %vm8702_vm10 = vcmp.le.s32.totalorder %v8701_v61, 15  ;;  %v5200_v46 = vstv %s4980_s12  ;;  %vm8708_vm13 = vcmp.le.s32.totalorder %v8707_v59, 15  ;;  %vm8711_vm7 = vnez %v8610_v34  ;;  %s3890_s12 = smov 3  }
 0x4d7   :  { %1344 = vrot.lane.b32.xlu0 %v4184_v27, %s3879_s19  ;;  %8700 = vst [vmem:[#allocation91_spill] sm:$0xff] %v5189_v48  ;;  %vm5195_vm14 = vmand %vm4691_vm4, %vm8702_vm10  ;;  %v5223_v60 = vsel %vm8711_vm7, 1.0, %v8515_v37  ;;  %v5228_v48 = vsel %vm4959_vm11, 1.0, %v8515_v37  ;;  %vm701_vm1 = vcmp.ge.s32.totalorder %v697_v42, 0  ;;  %vm705_vm10 = vcmp.le.s32.totalorder %v697_v42, 15 }
 0x4d8   :  { %8705 = vst [vmem:[#allocation92_spill] sm:$0xff] %v5200_v46  ;;  %vm5209_vm3 = vmand %vm4724_vm15, %vm8708_vm13  ;;  %v8714_v46 = vld [vmem:[#allocation17_spill] sm:$0xff]  ;;  %v5243_v34 = vsel %vm4605_vm5, 1.0, %v8515_v37  ;;  %vm8722_vm11 = vcmp.le.s32.totalorder %v696_v29, 15  ;;  %vm8723_vm7 = vcmp.ge.s32.totalorder %v696_v29, 0  ;;  %vm8728_vm5 = vnez %v8628_v41 }
 0x4d9   :  { %8712 = vst [vmem:[#allocation94_spill] sm:$0xff] %v5223_v60  ;;  %8713 = vst [vmem:[#allocation95_spill] sm:$0xff] %v5228_v48  ;;  %vm8715_vm13 = vcmp.ge.s32.totalorder %v8714_v46, 0  ;;  %v5251_v48 = vsel %vm4640_vm2, 1.0, %v8515_v37  ;;  %v5254_v60 = vstv %s5043_s15  ;;  %v5279_v29 = vsel %vm8728_vm5, 1.0, %v8515_v37  ;;  %s3891_s15 = smov 2  }
 0x4da   :  { %1346 = vrot.lane.b32.xlu1 %v4189_v45, %s3879_s19  ;;  %s3883_s19 = smov 19   ;;  %vm5234_vm9 = vmand %vm5175_vm0, %vm8715_vm13  ;;  %8718 = vst [vmem:[#allocation96_spill] sm:$0xff] %v5243_v34  ;;  %vm8731_vm2 = vcmp.le.s32.totalorder %v694_v43, 15  ;;  %vm8735_vm4 = vcmp.lt.s32.totalorder %v4214_v47, 51  ;;  %v5296_v41 = vsel %vm5019_vm12, 1.0, %v8515_v37  ;;  %vm8742_vm12 = vnez %v8648_v38 }
 0x4db   :  { %1397 = vrot.lane.b32.xlu0 %v4177_v17, %s3880_s21  ;;  %8719 = vst [vmem:[#allocation97_spill] sm:$0xff] %v5246_v9  ;;  %8720 = vst [vmem:[#allocation98_spill] sm:$0xff] %v5251_v48  ;;  %v5274_v48 = vsel %vm4724_vm15, 1.0, %v8515_v37  ;;  %v5317_v20 = vsel %vm8742_vm12, 1.0, %v8515_v37  ;;  %v5442_v59 = vstv %s5262_s23  ;;  %s6295_s23 = sld [smem:[#allocation2 + $0x19]] }
 0x4dc   :  { %8721 = vst [vmem:[#allocation99_spill] sm:$0xff] %v5254_v60  ;;  %vm5258_vm13 = vmand %vm8723_vm7, %vm8722_vm11  ;;  %v5282_v60 = vstv %s5074_s16  ;;  %vm8732_vm11 = vcmp.ge.s32.totalorder %v694_v43, 0  ;;  %s5940_s16 = sld [smem:[#allocation2 + $0x15]] }
 0x4dd   :  { %8726 = vst [vmem:[#allocation100_spill] sm:$0xff] %v5269_v31  ;;  %8727 = vst [vmem:[#allocation101_spill] sm:$0xff] %v5274_v48  ;;  %v5302_v48 = vstv %s5106_s18  ;;  %s3892_s18 = smov 127  }
 0x4de   :  { %1399 = vrot.lane.b32.xlu1 %v4181_v26, %s3880_s21  ;;  %8729 = vst [vmem:[#allocation102_spill] sm:$0xff] %v5279_v29  ;;  %8730 = vst [vmem:[#allocation103_spill] sm:$0xff] %v5282_v60  ;;  %v5299_v29 = vstv %s5104_s17  ;;  %s5984_s17 = sld [smem:[#allocation2 + $0x46]] }
 0x4df   :  { %1401 = vrot.lane.b32.xlu0 %v4184_v27, %s3880_s21  ;;  %vm5286_vm7 = vmand %vm8732_vm11, %vm8731_vm2  ;;  %8736 = vst [vmem:[#allocation104_spill] sm:$0xff] %v5296_v41  ;;  %vm8744_vm2 = vnez %v8652_v10  ;;  %v5352_v10 = vstv %s5169_s20  ;;  %s3893_s20 = smov 125  }
 0x4e0   :  { %8737 = vst [vmem:[#allocation105_spill] sm:$0xff] %v5299_v29  ;;  %8738 = vst [vmem:[#allocation106_spill] sm:$0xff] %v5302_v48  ;;  %v5322_v29 = vsel %vm8744_vm2, 1.0, %v8515_v37  ;;  %vm8762_vm2 = vnez %v8679_v4 }
 0x4e1   :  { %vm5306_vm15 = vmand %vm701_vm1, %vm705_vm10  ;;  %8743 = vst [vmem:[#allocation107_spill] sm:$0xff] %v5317_v20  ;;  %vm8746_vm1 = vnez %v8656_v57  ;;  %vm8748_vm10 = vcmp.ge.s32.totalorder %v4320_v55, 0  ;;  %v5344_v57 = vsel %vm5080_vm6, 1.0, %v8515_v37  ;;  %vm8760_vm6 = vnez %v8675_v24 }
 0x4e2   :  { %1403 = vrot.lane.b32.xlu1 %v4189_v45, %s3880_s21  ;;  %s5213_s21 = sld [smem:[#allocation2 + $0xe]]  ;;  %vm8741_vm5 = vmmov %vm8735_vm4  ;;  %8745 = vst [vmem:[#allocation108_spill] sm:$0xff] %v5322_v29  ;;  %v5327_v42 = vsel %vm8746_vm1, 1.0, %v8515_v37  ;;  %vm8765_vm1 = vcmp.ge.s32.totalorder %v4327_v12, 0 }
 0x4e3   :  { %1454 = vrot.lane.b32.xlu0 %v4177_v17, %s3881_s28  ;;  %8747 = vst [vmem:[#allocation109_spill] sm:$0xff] %v5327_v42  ;;  %vm5333_vm11 = vmand %vm5258_vm13, %vm8748_vm10  ;;  %v5355_v42 = vstv %s5171_s2  ;;  %s6177_s2 = sld [smem:[#allocation2 + $0x48]] }
 0x4e4   :  { %8751 = vst [vmem:[#allocation110_spill] sm:$0xff] %v5344_v57  ;;  %8754 = vst [vmem:[#allocation112_spill] sm:$0xff] %v5352_v10  ;;  %v5376_v10 = vsel %vm8762_vm2, 1.0, %v8515_v37  ;;  %v5430_v41 = vsel %vm5333_vm11, 1.0, %v8515_v37  ;;  %vm8778_vm2 = vcmp.ge.s32.totalorder %v4334_v14, 0 }
 0x4e5   :  { %8755 = vst [vmem:[#allocation113_spill] sm:$0xff] %v5355_v42  ;;  %8763 = vst [vmem:[#allocation114_spill] sm:$0xff] %v5376_v10  ;;  %v5381_v42 = vsel %vm5146_vm8, 1.0, %v8515_v37  ;;  %vm8771_vm8 = vcmp.ge.s32.totalorder %v4330_v13, 0 }
 0x4e6   :  { %1456 = vrot.lane.b32.xlu1 %v4181_v26, %s3881_s28  ;;  %8764 = vst [vmem:[#allocation115_spill] sm:$0xff] %v5381_v42  ;;  %vm5387_vm10 = vmand %vm5306_vm15, %vm8765_vm1  ;;  %v5399_v42 = vstv %s5215_s22  ;;  %s3895_s22 = smov 114  }
 0x4e7   :  { %1458 = vrot.lane.b32.xlu0 %v4184_v27, %s3881_s28  ;;  %8770 = vst [vmem:[#allocation117_spill] sm:$0xff] %v5399_v42  ;;  %v5425_v42 = vsel %vm5234_vm9, 1.0, %v8515_v37  ;;  %8777 = vst [vmem:[#allocation121_spill] sm:$0xff] %v5430_v41  ;;  %vm8788_vm9 = vcmp.ge.s32.totalorder %v4337_v15, 0 }
 0x4e8   :  { %v5396_v49 = vstv %s5213_s21  ;;  %8776 = vst [vmem:[#allocation120_spill] sm:$0xff] %v5425_v42  ;;  %8780 = vst [vmem:[#allocation122_spill] sm:$0xff] %v5442_v59  ;;  %v5445_v42 = vstv %s5264_s24  ;;  %v8785_v59 = vld [vmem:[#allocation22_spill] sm:$0xff]  ;;  %s3894_s21 = smov 115   ;;  %s6297_s24 = sld [smem:[#allocation2 + $0x4a]] }
 0x4e9   :  { %8769 = vst [vmem:[#allocation116_spill] sm:$0xff] %v5396_v49  ;;  %v5420_v49 = vsel %vm5209_vm3, 1.0, %v8515_v37  ;;  %8781 = vst [vmem:[#allocation123_spill] sm:$0xff] %v5445_v42  ;;  %vm8786_vm3 = vcmp.lt.s32.totalorder %v4214_v47, 50 }
 0x4ea   :  { %1460 = vrot.lane.b32.xlu1 %v4189_v45, %s3881_s28  ;;  %8775 = vst [vmem:[#allocation119_spill] sm:$0xff] %v5420_v49  ;;  %vm5472_vm11 = vmand %vm5286_vm7, %vm8788_vm9  ;;  %s3885_s28 = smov 17  }
 0x4eb   :  { %1511 = vrot.lane.b32.xlu0 %v4177_v17, %s3882_s9 }
 0x4ee   :  { %1513 = vrot.lane.b32.xlu1 %v4181_v26, %s3882_s9 }
 0x4ef   :  { %1515 = vrot.lane.b32.xlu0 %v4184_v27, %s3882_s9 }
 0x4f2   :  { %1517 = vrot.lane.b32.xlu1 %v4189_v45, %s3882_s9  ;;  %s5745_s9 = sld [smem:[#allocation2 + $0x13]] }
 0x4f3   :  { %1568 = vrot.lane.b32.xlu0 %v4177_v17, %s3883_s19 }
 0x4f4   :  { %v5179_v21 = vpop.permute.xlu1 %770 }
 0x4f6   :  { %1570 = vrot.lane.b32.xlu1 %v4181_v26, %s3883_s19 }
 0x4f7   :  { %1572 = vrot.lane.b32.xlu0 %v4184_v27, %s3883_s19 }
 0x4f8   :  { %v773_v56 = vpop.permute.xlu1 %772 }
 0x4f9   :  { %v781_v19 = vsel %vm8735_vm4, %v5179_v21, %v773_v56  ;;  %v775_v52 = vpop.permute.xlu0 %774  ;;  %vm8752_vm4 = vnez %v8666_v36 }
 0x4fa   :  { %v780_v31 = vsel %vm8741_vm5, %v773_v56, %v775_v52  ;;  %1574 = vrot.lane.b32.xlu1 %v4189_v45, %s3883_s19  ;;  %v5349_v38 = vsel %vm8752_vm4, 1.0, %v8515_v37  ;;  %vm8756_vm5 = vcmp.ge.s32.totalorder %v4324_v11, 0  ;;  %v800_v57 = vmul.f32 %v8759_v44, %v781_v19  ;;  %s6080_s19 = sld [smem:[#allocation2 + $0x47]] }
 0x4fb   :  { %1625 = vrot.lane.b32.xlu0 %v4177_v17, %s3884_s26  ;;  %8753 = vst [vmem:[#allocation111_spill] sm:$0xff] %v5349_v38  ;;  %vm5361_vm12 = vmand %vm5286_vm7, %vm8756_vm5  ;;  %v5371_v38 = vsel %vm8760_vm6, 1.0, %v8515_v37  ;;  %v801_v24 = vmul.f32 %v8759_v44, %v780_v31  ;;  %vm8768_vm4 = vcmp.lt.s32.totalorder %v4214_v47, 51  ;;  %vm892_vm6 = vcmp.lt.s32.totalorder %v4214_v47, 49 }
 0x4fc   :  { %v777_v36 = vpop.permute.xlu1 %776  ;;  %8761 = vst [vmem:[#allocation23_spill] sm:$0xff] %v5371_v38  ;;  %vm5405_vm5 = vmand %vm5175_vm0, %vm8771_vm8  ;;  %v808_v56 = vrot.slane %v800_v57, 1  ;;  %v5450_v49 = vsel %vm5361_vm12, 1.0, %v8515_v37  ;;  %v795_v42 = vmul.f32 %v8785_v59, %v781_v19  ;;  %v8791_v19 = vld [vmem:[#allocation50_spill] sm:$0xff] }
 0x4fd   :  { %v782_v4 = vsel %vm8768_vm4, %v777_v36, %v5179_v21  ;;  %v828_v10 = vpop.permute.xlu0 %827  ;;  %v5415_v21 = vsel %vm5195_vm14, 1.0, %v8515_v37  ;;  %vm1640_vm14 = vmand %vm5258_vm13, %vm8778_vm2  ;;  %8782 = vst [vmem:[#allocation124_spill] sm:$0xff] %v5450_v49  ;;  %v809_v57 = vrot.slane %v801_v24, 1  ;;  %vm949_vm2 = vcmp.lt.s32.totalorder %v4214_v47, 48 }
 0x4fe   :  { %1627 = vrot.lane.b32.xlu1 %v4181_v26, %s3884_s26  ;;  %8774 = vst [vmem:[#allocation118_spill] sm:$0xff] %v5415_v21  ;;  %vm8779_vm1 = vmmov %vm8768_vm4  ;;  %v799_v6 = vmul.f32 %v8759_v44, %v782_v4  ;;  %v5466_v49 = vsel %vm1640_vm14, 1.0, %v8515_v37  ;;  %v816_v14 = vadd.f32 %v808_v56, %v795_v42  ;;  %v794_v60 = vmul.f32 %v8785_v59, %v782_v4 }
 0x4ff   :  { %v779_v8 = vsel %vm8779_vm1, %v775_v52, %v777_v36  ;;  %1629 = vrot.lane.b32.xlu0 %v4184_v27, %s3884_s26  ;;  %v5455_v52 = vsel %vm5387_vm10, 1.0, %v8515_v37  ;;  %v5460_v36 = vsel %vm5405_vm5, 1.0, %v8515_v37  ;;  %8787 = vst [vmem:[#allocation22_spill] sm:$0xff] %v5466_v49  ;;  %vm8792_vm12 = vmmov %vm8786_vm3  ;;  %v796_v49 = vmul.f32 %v8785_v59, %v780_v31 }
 0x500   :  { %v830_v41 = vpop.permute.xlu1 %829  ;;  %8783 = vst [vmem:[#allocation125_spill] sm:$0xff] %v5455_v52  ;;  %8784 = vst [vmem:[#allocation126_spill] sm:$0xff] %v5460_v36  ;;  %v802_v38 = vmul.f32 %v8759_v44, %v779_v8  ;;  %v5483_v52 = vstv %s5337_s25  ;;  %v807_v48 = vrot.slane %v799_v6, 1  ;;  %v5490_v44 = vstv %s5365_s27  ;;  %s3896_s25 = smov 113   ;;  %s3897_s27 = smov 112  }
 0x501   :  { %v838_v21 = vsel %vm8786_vm3, %v828_v10, %v830_v41  ;;  %v832_v29 = vpop.permute.xlu0 %831  ;;  %8793 = vst [vmem:[#allocation50_spill] sm:$0xff] %v5483_v52  ;;  %8794 = vst [vmem:[#allocation127_spill] sm:$0xff] %v5490_v44  ;;  %vm8795_vm10 = vcmp.ge.s32.totalorder %v4340_v16, 0  ;;  %v5504_v6 = vsel %vm5472_vm11, 1.0, %v8515_v37  ;;  %v817_v52 = vadd.f32 %v809_v57, %v796_v49  ;;  %v8801_v16 = vld [vmem:[#allocation49_spill] sm:$0xff] }
 0x502   :  { %v857_v36 = vmul.f32 %v8791_v19, %v838_v21  ;;  %v837_v24 = vsel %vm8792_vm12, %v830_v41, %v832_v29  ;;  %1631 = vrot.lane.b32.xlu1 %v4189_v45, %s3884_s26  ;;  %vm5497_vm4 = vmand %vm5306_vm15, %vm8795_vm10  ;;  %8798 = vst [vmem:[#allocation128_spill] sm:$0xff] %v5504_v6  ;;  %v852_v9 = vmul.f32 %v8801_v16, %v838_v21  ;;  %vm8802_vm14 = vcmp.ge.s32.totalorder %v4345_v22, 0  ;;  %s6395_s26 = sld [smem:[#allocation2 + $0x1a]] }
 0x503   :  { %v858_v15 = vmul.f32 %v8791_v19, %v837_v24  ;;  %1682 = vrot.lane.b32.xlu0 %v4177_v17, %s3885_s28  ;;  %vm8799_vm8 = vmmov %vm8786_vm3  ;;  %v853_v12 = vmul.f32 %v8801_v16, %v837_v24  ;;  %v5533_v21 = vsel %vm5497_vm4, 1.0, %v8515_v37  ;;  %vm8811_vm11 = vcmp.ge.s32.totalorder %v4354_v53, 0 }
 0x504   :  { %v865_v41 = vrot.slane %v857_v36, 1  ;;  %v834_v13 = vpop.permute.xlu1 %833  ;;  %vm8800_vm5 = vmmov %vm8786_vm3  ;;  %v810_v36 = vrot.slane %v802_v38, 1  ;;  %8805 = vst [vmem:[#allocation49_spill] sm:$0xff] %v5533_v21  ;;  %vm8806_vm3 = vcmp.ge.s32.totalorder %v4348_v23, 0  ;;  %vm8817_vm10 = vcmp.ge.s32.totalorder %v4357_v54, 0 }
 0x505   :  { %v866_v44 = vrot.slane %v858_v15, 1  ;;  %v836_v42 = vsel %vm8799_vm8, %v832_v29, %v834_v13  ;;  %v839_v4 = vsel %vm8800_vm5, %v834_v13, %v828_v10  ;;  %v885_v56 = vpop.permute.xlu0 %884  ;;  %vm5520_vm1 = vmand %vm5175_vm0, %vm8802_vm14  ;;  %v797_v13 = vmul.f32 %v8785_v59, %v779_v8  ;;  %v8809_v8 = vld [vmem:[#allocation24_spill] sm:$0xff]  ;;  %v8816_v15 = vld [vmem:[#allocation53_spill] sm:$0xff] }
 0x506   :  { %v856_v11 = vmul.f32 %v8791_v19, %v839_v4  ;;  %1684 = vrot.lane.b32.xlu1 %v4181_v26, %s3885_s28  ;;  %v815_v10 = vadd.f32 %v807_v48, %v794_v60  ;;  %v859_v49 = vmul.f32 %v8791_v19, %v836_v42  ;;  %vm5539_vm9 = vmand %vm5258_vm13, %vm8806_vm3  ;;  %v820_v48 = vmul.f32 %v816_v14, %v8809_v8 }
 0x507   :  { %1686 = vrot.lane.b32.xlu0 %v4184_v27, %s3885_s28  ;;  %v873_v60 = vadd.f32 %v865_v41, %v852_v9  ;;  %v874_v59 = vadd.f32 %v866_v44, %v853_v12  ;;  %v851_v38 = vmul.f32 %v8801_v16, %v839_v4  ;;  %v5552_v21 = vsel %vm5520_vm1, 1.0, %v8515_v37  ;;  %vm5558_vm12 = vmand %vm5286_vm7, %vm8811_vm11  ;;  %v8814_v12 = vld [vmem:[#allocation48_spill] sm:$0xff]  ;;  %v8815_v44 = vld [vmem:[#allocation54_spill] sm:$0xff] }
 0x508   :  { %v864_v29 = vrot.slane %v856_v11, 1  ;;  %v887_v20 = vpop.permute.xlu1 %886  ;;  %v867_v19 = vrot.slane %v859_v49, 1  ;;  %8810 = vst [vmem:[#allocation24_spill] sm:$0xff] %v5552_v21  ;;  %v821_v14 = vmul.f32 %v817_v52, %v8814_v12  ;;  %v818_v9 = vadd.f32 %v810_v36, %v797_v13  ;;  %vm1698_vm4 = vmand %vm5306_vm15, %vm8817_vm10 }
 0x509   :  { %v895_v24 = vsel %vm892_vm6, %v885_v56, %v887_v20  ;;  %v889_v31 = vpop.permute.xlu0 %888  ;;  %v5569_v4 = vsel %vm5539_vm9, 1.0, %v8515_v37  ;;  %v819_v49 = vmul.f32 %v815_v10, %v8816_v15  ;;  %v854_v8 = vmul.f32 %v8801_v16, %v836_v42 }
 0x50a   :  { %v914_v41 = vmul.f32 %v8815_v44, %v895_v24  ;;  %1688 = vrot.lane.b32.xlu1 %v4189_v45, %s3885_s28  ;;  %v872_v21 = vadd.f32 %v864_v29, %v851_v38  ;;  %v894_v6 = vsel %vm892_vm6, %v887_v20, %v889_v31  ;;  %v877_v52 = vmul.f32 %v873_v60, %v4740_v0  ;;  %s6416_s28 = sld [smem:[#allocation2 + $0x4b]] }
 0x50b   :  { %1739 = vrot.lane.b32.xlu0 %v4177_v17, %s3886_s4  ;;  %v878_v36 = vmul.f32 %v874_v59, %v4761_v39  ;;  %v915_v16 = vmul.f32 %v8815_v44, %v894_v6  ;;  %v5587_v13 = vsel %vm5558_vm12, 1.0, %v8515_v37  ;;  %v875_v10 = vadd.f32 %v867_v19, %v854_v8  ;;  %v8822_v19 = vld [vmem:[#allocation51_spill] sm:$0xff] }
 0x50c   :  { %v891_v42 = vpop.permute.xlu1 %890  ;;  %8818 = vst [vmem:[#allocation48_spill] sm:$0xff] %v5587_v13  ;;  %v922_v57 = vrot.slane %v914_v41, 1  ;;  %v822_v39 = vmul.f32 %v818_v9, %v4735_v58  ;;  %vm1006_vm8 = vcmp.lt.s32.totalorder %v4214_v47, 47  ;;  %v5598_v60 = vsel %vm1698_vm4, 1.0, %v8515_v37 }
 0x50d   :  { %v893_v29 = vsel %vm892_vm6, %v889_v31, %v891_v42  ;;  %v896_v20 = vsel %vm892_vm6, %v891_v42, %v885_v56  ;;  %v942_v0 = vpop.permute.xlu0 %941  ;;  %8819 = vst [vmem:[#allocation54_spill] sm:$0xff] %v5598_v60  ;;  %v5603_v59 = vsel %vm5175_vm0, 1.0, %v8515_v37  ;;  %v5606_v38 = vstv %s5524_s29  ;;  %v8825_v60 = vld [vmem:[#allocation58_spill] sm:$0xff]  ;;  %s3898_s29 = smov 111  }
 0x50e   :  { %1741 = vrot.lane.b32.xlu1 %v4181_v26, %s3886_s4  ;;  %8820 = vst [vmem:[#allocation53_spill] sm:$0xff] %v5603_v59  ;;  %8821 = vst [vmem:[#allocation129_spill] sm:$0xff] %v5606_v38  ;;  %v876_v56 = vmul.f32 %v872_v21, %v4766_v33  ;;  %v909_v31 = vmul.f32 %v8822_v19, %v895_v24  ;;  %v913_v58 = vmul.f32 %v8815_v44, %v896_v20  ;;  %v8824_v21 = vld [vmem:[#allocation55_spill] sm:$0xff] }
 0x50f   :  { %v916_v11 = vmul.f32 %v8815_v44, %v893_v29  ;;  %1743 = vrot.lane.b32.xlu0 %v4184_v27, %s3886_s4  ;;  %v881_v12 = vadd.f32 %v877_v52, %v820_v48  ;;  %v923_v9 = vrot.slane %v915_v16, 1  ;;  %v5615_v15 = vstv %s5544_s30  ;;  %s6508_s30 = sld [smem:[#allocation2 + $0x1b]] }
 0x510   :  { %v944_v41 = vpop.permute.xlu1 %943  ;;  %v5620_v8 = vsel %vm5258_vm13, 1.0, %v8515_v37  ;;  %v882_v33 = vadd.f32 %v878_v36, %v821_v14  ;;  %v879_v24 = vmul.f32 %v875_v10, %v8824_v21  ;;  %v930_v42 = vadd.f32 %v922_v57, %v909_v31 }
 0x511   :  { %8823 = vst [vmem:[#allocation51_spill] sm:$0xff] %v5620_v8  ;;  %v952_v44 = vsel %vm949_vm2, %v942_v0, %v944_v41  ;;  %v946_v59 = vpop.permute.xlu0 %945  ;;  %v910_v48 = vmul.f32 %v8822_v19, %v894_v6  ;;  %v921_v52 = vrot.slane %v913_v58, 1  ;;  %v924_v16 = vrot.slane %v916_v11, 1  ;;  %v8830_v11 = vld [vmem:[#allocation56_spill] sm:$0xff] }
 0x512   :  { %v971_v13 = vmul.f32 %v8825_v60, %v952_v44  ;;  %1745 = vrot.lane.b32.xlu1 %v4189_v45, %s3886_s4  ;;  %v5631_v8 = vadd.f32 %v876_v56, %v819_v49  ;;  %v908_v14 = vmul.f32 %v8822_v19, %v896_v20  ;;  %v951_v36 = vsel %vm949_vm2, %v944_v41, %v946_v59  ;;  %s6524_s4 = sld [smem:[#allocation2 + $0x4c]] }
 0x513   :  { %1796 = vrot.lane.b32.xlu0 %v4177_v17, %s3887_s6  ;;  %v5641_v6 = vsel %vm5286_vm7, 1.0, %v8515_v37  ;;  %v931_v10 = vadd.f32 %v923_v9, %v910_v48  ;;  %v911_v57 = vmul.f32 %v8822_v19, %v893_v29  ;;  %v972_v49 = vmul.f32 %v8825_v60, %v951_v36  ;;  %v8831_v48 = vld [vmem:[#allocation57_spill] sm:$0xff] }
 0x514   :  { %8826 = vst [vmem:[#allocation55_spill] sm:$0xff] %v5641_v6  ;;  %v979_v31 = vrot.slane %v971_v13, 1  ;;  %v948_v56 = vpop.permute.xlu1 %947  ;;  %vm8827_vm6 = vcmp.le.s32.totalorder %v4380_v28, 15  ;;  %v883_v58 = vadd.f32 %v879_v24, %v822_v39  ;;  %v934_v41 = vmul.f32 %v930_v42, %v8830_v11 }
 0x515   :  { %vm5649_vm5 = vmand %vm5175_vm0, %vm8827_vm6  ;;  %v950_v29 = vsel %vm949_vm2, %v946_v59, %v948_v56  ;;  %v953_v13 = vsel %vm949_vm2, %v948_v56, %v942_v0  ;;  %v999_v19 = vpop.permute.xlu0 %998  ;;  %v929_v9 = vadd.f32 %v921_v52, %v908_v14  ;;  %v932_v21 = vadd.f32 %v924_v16, %v911_v57 }
 0x516   :  { %v966_v6 = vmul.f32 %v8831_v48, %v952_v44  ;;  %v980_v38 = vrot.slane %v972_v49, 1  ;;  %1798 = vrot.lane.b32.xlu1 %v4181_v26, %s3887_s6  ;;  %vm1063_vm14 = vcmp.lt.s32.totalorder %v4214_v47, 46  ;;  %v970_v39 = vmul.f32 %v8825_v60, %v953_v13 }
 0x517   :  { %v973_v24 = vmul.f32 %v8825_v60, %v950_v29  ;;  %1800 = vrot.lane.b32.xlu0 %v4184_v27, %s3887_s6  ;;  %v5671_v0 = vsel %vm5306_vm15, 1.0, %v8515_v37  ;;  %v5676_v59 = vsel %vm5649_vm5, 1.0, %v8515_v37  ;;  %v935_v42 = vmul.f32 %v931_v10, %v4825_v3 }
 0x518   :  { %8832 = vst [vmem:[#allocation58_spill] sm:$0xff] %v5671_v0  ;;  %8833 = vst [vmem:[#allocation56_spill] sm:$0xff] %v5676_v59  ;;  %v987_v44 = vadd.f32 %v979_v31, %v966_v6  ;;  %v967_v52 = vmul.f32 %v8831_v48, %v951_v36  ;;  %v1001_v16 = vpop.permute.xlu1 %1000  ;;  %v5681_v60 = vstv %s5622_s5  ;;  %v965_v14 = vmul.f32 %v8831_v48, %v953_v13  ;;  %v8834_v0 = vld [vmem:[#allocation59_spill] sm:$0xff]  ;;  %s3899_s5 = smov 110  }
 0x519   :  { %v978_v57 = vrot.slane %v970_v39, 1  ;;  %v981_v49 = vrot.slane %v973_v24, 1  ;;  %v1009_v56 = vsel %vm1006_vm8, %v999_v19, %v1001_v16  ;;  %v1003_v11 = vpop.permute.xlu0 %1002  ;;  %v933_v20 = vmul.f32 %v929_v9, %v4830_v62 }
 0x51a   :  { %v936_v59 = vmul.f32 %v932_v21, %v8834_v0  ;;  %v988_v3 = vadd.f32 %v980_v38, %v967_v52  ;;  %v1028_v6 = vmul.f32 %v4897_v35, %v1009_v56  ;;  %1802 = vrot.lane.b32.xlu1 %v4189_v45, %s3887_s6  ;;  %v938_v36 = vadd.f32 %v934_v41, %v881_v12  ;;  %s3900_s6 = smov 109  }
 0x51b   :  { %v968_v10 = vmul.f32 %v8831_v48, %v950_v29  ;;  %v986_v31 = vadd.f32 %v978_v57, %v965_v14  ;;  %v1008_v13 = vsel %vm1006_vm8, %v1001_v16, %v1003_v11  ;;  %1853 = vrot.lane.b32.xlu0 %v4177_v17, %s3888_s8  ;;  %vm8835_vm2 = vcmp.le.s32.totalorder %v8637_v2, 15 }
 0x51c   :  { %vm5700_vm1 = vmand %vm5258_vm13, %vm8835_vm2  ;;  %v939_v38 = vadd.f32 %v935_v42, %v882_v33  ;;  %v991_v12 = vmul.f32 %v987_v44, %v4859_v1  ;;  %v1029_v41 = vmul.f32 %v4897_v35, %v1008_v13  ;;  %v1005_v29 = vpop.permute.xlu1 %1004  ;;  %v5707_v9 = vstv %s5653_s7  ;;  %s6663_s7 = sld [smem:[#allocation2 + $0x1c]] }
 0x51d   :  { %vm8838_vm3 = vcmp.le.s32.totalorder %v8645_v40, 15  ;;  %v989_v48 = vadd.f32 %v981_v49, %v968_v10  ;;  %v1036_v39 = vrot.slane %v1028_v6, 1  ;;  %v1007_v33 = vsel %vm1006_vm8, %v1003_v11, %v1005_v29  ;;  %v1056_v24 = vpop.permute.xlu0 %1055 }
 0x51e   :  { %vm5713_vm9 = vmand %vm5286_vm7, %vm8838_vm3  ;;  %v1010_v1 = vsel %vm1006_vm8, %v1005_v29, %v999_v19  ;;  %vm8841_vm11 = vcmp.le.s32.totalorder %v8649_v7, 15  ;;  %v937_v42 = vadd.f32 %v933_v20, %v5631_v8  ;;  %v940_v44 = vadd.f32 %v936_v59, %v883_v58  ;;  %1855 = vrot.lane.b32.xlu1 %v4181_v26, %s3888_s8 }
 0x51f   :  { %vm5725_vm12 = vmand %vm5306_vm15, %vm8841_vm11  ;;  %v992_v52 = vmul.f32 %v988_v3, %v4864_v51  ;;  %vm1120_vm10 = vcmp.lt.s32.totalorder %v4214_v47, 45  ;;  %v5737_v19 = vsel %vm5700_vm1, 1.0, %v8515_v37  ;;  %v990_v16 = vmul.f32 %v986_v31, %v4889_v25  ;;  %1857 = vrot.lane.b32.xlu0 %v4184_v27, %s3888_s8 }
 0x520   :  { %8844 = vst [vmem:[#allocation57_spill] sm:$0xff] %v5737_v19  ;;  %v1023_v14 = vmul.f32 %v4867_v63, %v1009_v56  ;;  %v1027_v57 = vmul.f32 %v4897_v35, %v1010_v1  ;;  %v1030_v8 = vmul.f32 %v4897_v35, %v1007_v33  ;;  %v995_v51 = vadd.f32 %v991_v12, %v938_v36  ;;  %v1058_v59 = vpop.permute.xlu1 %1057 }
 0x521   :  { %v1037_v58 = vrot.slane %v1029_v41, 1  ;;  %v5752_v25 = vsel %vm5713_vm9, 1.0, %v8515_v37  ;;  %v5757_v49 = vsel %vm5725_vm12, 1.0, %v8515_v37  ;;  %v993_v35 = vmul.f32 %v989_v48, %v4894_v5  ;;  %v1060_v3 = vpop.permute.xlu0 %1059 }
 0x522   :  { %8845 = vst [vmem:[#allocation59_spill] sm:$0xff] %v5752_v25  ;;  %8846 = vst [vmem:[#allocation130_spill] sm:$0xff] %v5757_v49  ;;  %v1044_v56 = vadd.f32 %v1036_v39, %v1023_v14  ;;  %v1035_v11 = vrot.slane %v1027_v57, 1  ;;  %v1066_v20 = vsel %vm1063_vm14, %v1056_v24, %v1058_v59  ;;  %v1024_v6 = vmul.f32 %v4867_v63, %v1008_v13  ;;  %v8847_v13 = vld [vmem:[#allocation40_spill] sm:$0xff]  ;;  %v8852_v57 = vld [vmem:[#allocation65_spill] sm:$0xff] }
 0x523   :  { %v1022_v36 = vmul.f32 %v4867_v63, %v1010_v1  ;;  %v1038_v10 = vrot.slane %v1030_v8, 1  ;;  %v1085_v31 = vmul.f32 %v4965_v30, %v1066_v20  ;;  %1859 = vrot.lane.b32.xlu1 %v4189_v45, %s3888_s8  ;;  %v996_v62 = vadd.f32 %v992_v52, %v939_v38  ;;  %1910 = vrot.lane.b32.xlu0 %v4177_v17, %s3889_s11  ;;  %v8851_v1 = vld [vmem:[#allocation63_spill] sm:$0xff]  ;;  %s3901_s8 = smov 99  }
 0x524   :  { %v994_v12 = vadd.f32 %v990_v16, %v937_v42  ;;  %v1025_v5 = vmul.f32 %v4867_v63, %v1007_v33  ;;  %v1065_v41 = vsel %vm1063_vm14, %v1058_v59, %v1060_v3  ;;  %vm8848_vm4 = vcmp.le.s32.totalorder %v8847_v13, 15  ;;  %v1062_v39 = vpop.permute.xlu1 %1061 }
 0x525   :  { %vm5776_vm8 = vmand %vm5175_vm0, %vm8848_vm4  ;;  %v1045_v21 = vadd.f32 %v1037_v58, %v1024_v6  ;;  %v1043_v38 = vadd.f32 %v1035_v11, %v1022_v36  ;;  %v1093_v48 = vrot.slane %v1085_v31, 1  ;;  %v1086_v63 = vmul.f32 %v4965_v30, %v1065_v41  ;;  %v1113_v16 = vpop.permute.xlu0 %1112  ;;  %v8856_v11 = vld [vmem:[#allocation64_spill] sm:$0xff] }
 0x526   :  { %v997_v33 = vadd.f32 %v993_v35, %v940_v44  ;;  %v1048_v0 = vmul.f32 %v1044_v56, %v8851_v1  ;;  %v1064_v42 = vsel %vm1063_vm14, %v1060_v3, %v1062_v39  ;;  %v1067_v52 = vsel %vm1063_vm14, %v1062_v39, %v1056_v24  ;;  %v8857_v3 = vld [vmem:[#allocation67_spill] sm:$0xff] }
 0x527   :  { %v1046_v14 = vadd.f32 %v1038_v10, %v1025_v5  ;;  %v1080_v8 = vmul.f32 %v8852_v57, %v1066_v20  ;;  %v1094_v58 = vrot.slane %v1086_v63, 1  ;;  %1912 = vrot.lane.b32.xlu1 %v4181_v26, %s3889_s11  ;;  %vm1177_vm6 = vcmp.lt.s32.totalorder %v4214_v47, 35  ;;  %1914 = vrot.lane.b32.xlu0 %v4184_v27, %s3889_s11  ;;  %v8858_v5 = vld [vmem:[#allocation41_spill] sm:$0xff] }
 0x528   :  { %v5793_v44 = vsel %vm5776_vm8, 1.0, %v8515_v37  ;;  %v1084_v59 = vmul.f32 %v4965_v30, %v1067_v52  ;;  %v1087_v35 = vmul.f32 %v4965_v30, %v1064_v42  ;;  %v5800_v24 = vstv %s5745_s9  ;;  %v1115_v31 = vpop.permute.xlu1 %1114  ;;  %s6680_s9 = sld [smem:[#allocation2 + $0x4d]] }
 0x529   :  { %8853 = vst [vmem:[#allocation63_spill] sm:$0xff] %v5793_v44  ;;  %8854 = vst [vmem:[#allocation65_spill] sm:$0xff] %v5800_v24  ;;  %v5803_v56 = vstv %s5747_s10  ;;  %v1049_v20 = vmul.f32 %v1045_v21, %v8856_v11  ;;  %v1047_v6 = vmul.f32 %v1043_v38, %v8857_v3  ;;  %v1101_v36 = vadd.f32 %v1093_v48, %v1080_v8  ;;  %v1117_v38 = vpop.permute.xlu0 %1116  ;;  %v8862_v48 = vld [vmem:[#allocation68_spill] sm:$0xff]  ;;  %s3902_s10 = smov 98  }
 0x52a   :  { %8855 = vst [vmem:[#allocation131_spill] sm:$0xff] %v5803_v56  ;;  %v1081_v10 = vmul.f32 %v8852_v57, %v1065_v41  ;;  %vm8859_vm5 = vcmp.le.s32.totalorder %v8858_v5, 15  ;;  %v1079_v29 = vmul.f32 %v8852_v57, %v1067_v52  ;;  %v1092_v63 = vrot.slane %v1084_v59, 1  ;;  %v8863_v11 = vld [vmem:[#allocation76_spill] sm:$0xff]  ;;  %v8943_v56 = vld [vmem:[#allocation97_spill] sm:$0xff] }
 0x52b   :  { %vm5812_vm14 = vmand %vm5258_vm13, %vm8859_vm5  ;;  %v1095_v39 = vrot.slane %v1087_v35, 1  ;;  %v1123_v21 = vsel %vm1120_vm10, %v1113_v16, %v1115_v31  ;;  %v1050_v1 = vmul.f32 %v1046_v14, %v8862_v48  ;;  %v1082_v8 = vmul.f32 %v8852_v57, %v1064_v42  ;;  %1916 = vrot.lane.b32.xlu1 %v4189_v45, %s3889_s11  ;;  %1967 = vrot.lane.b32.xlu0 %v4177_v17, %s3890_s12  ;;  %v8865_v42 = vld [vmem:[#allocation42_spill] sm:$0xff]  ;;  %v8880_v57 = vld [vmem:[#allocation73_spill] sm:$0xff]  ;;  %s3903_s11 = smov 97  }
 0x52c   :  { %v1102_v41 = vadd.f32 %v1094_v58, %v1081_v10  ;;  %v1142_v3 = vmul.f32 %v8863_v11, %v1123_v21  ;;  %v1052_v44 = vadd.f32 %v1048_v0, %v995_v51  ;;  %v1100_v49 = vadd.f32 %v1092_v63, %v1079_v29  ;;  %v8869_v0 = vld [vmem:[#allocation69_spill] sm:$0xff]  ;;  %v1119_v10 = vpop.permute.xlu1 %1118 }
 0x52d   :  { %v1122_v52 = vsel %vm1120_vm10, %v1115_v31, %v1117_v38  ;;  %v5831_v14 = vsel %vm5812_vm14, 1.0, %v8515_v37  ;;  %vm8866_vm2 = vcmp.le.s32.totalorder %v8865_v42, 15  ;;  %v1053_v51 = vadd.f32 %v1049_v20, %v996_v62  ;;  %v1170_v48 = vpop.permute.xlu0 %1169 }
 0x52e   :  { %8864 = vst [vmem:[#allocation64_spill] sm:$0xff] %v5831_v14  ;;  %vm5837_vm1 = vmand %vm5286_vm7, %vm8866_vm2  ;;  %v1105_v58 = vmul.f32 %v1101_v36, %v8869_v0  ;;  %v1103_v59 = vadd.f32 %v1095_v39, %v1082_v8  ;;  %v1143_v35 = vmul.f32 %v8863_v11, %v1122_v52  ;;  %v1051_v31 = vadd.f32 %v1047_v6, %v994_v12  ;;  %v8870_v14 = vld [vmem:[#allocation43_spill] sm:$0xff]  ;;  %v8874_v36 = vld [vmem:[#allocation70_spill] sm:$0xff] }
 0x52f   :  { %v1150_v29 = vrot.slane %v1142_v3, 1  ;;  %v1121_v30 = vsel %vm1120_vm10, %v1117_v38, %v1119_v10  ;;  %v1124_v63 = vsel %vm1120_vm10, %v1119_v10, %v1113_v16  ;;  %vm8871_vm3 = vcmp.le.s32.totalorder %v8870_v14, 15  ;;  %v8875_v12 = vld [vmem:[#allocation72_spill] sm:$0xff]  ;;  %1969 = vrot.lane.b32.xlu1 %v4181_v26, %s3890_s12  ;;  %v8877_v38 = vld [vmem:[#allocation71_spill] sm:$0xff]  ;;  %1971 = vrot.lane.b32.xlu0 %v4184_v27, %s3890_s12 }
 0x530   :  { %vm5851_vm9 = vmand %vm5306_vm15, %vm8871_vm3  ;;  %v1054_v20 = vadd.f32 %v1050_v1, %v997_v33  ;;  %v1106_v39 = vmul.f32 %v1102_v41, %v8874_v36  ;;  %v1137_v6 = vmul.f32 %v8875_v12, %v1123_v21  ;;  %vm1234_vm11 = vcmp.lt.s32.totalorder %v4214_v47, 34  ;;  %v8878_v8 = vld [vmem:[#allocation44_spill] sm:$0xff]  ;;  %v1172_v36 = vpop.permute.xlu1 %1171 }
 0x531   :  { %v5863_v16 = vsel %vm5837_vm1, 1.0, %v8515_v37  ;;  %v1104_v33 = vmul.f32 %v1100_v49, %v8877_v38  ;;  %v1151_v1 = vrot.slane %v1143_v35, 1  ;;  %v1141_v41 = vmul.f32 %v8863_v11, %v1124_v63  ;;  %v1174_v25 = vpop.permute.xlu0 %1173 }
 0x532   :  { %8876 = vst [vmem:[#allocation67_spill] sm:$0xff] %v5863_v16  ;;  %v1144_v21 = vmul.f32 %v8863_v11, %v1121_v30  ;;  %vm8879_vm12 = vcmp.le.s32.totalorder %v8878_v8, 15  ;;  %v1109_v3 = vadd.f32 %v1105_v58, %v1052_v44  ;;  %v1107_v0 = vmul.f32 %v1103_v59, %v8880_v57  ;;  %v8882_v58 = vld [vmem:[#allocation81_spill] sm:$0xff] }
 0x533   :  { %vm1924_vm10 = vmand %vm5175_vm0, %vm8879_vm12  ;;  %v1138_v10 = vmul.f32 %v8875_v12, %v1122_v52  ;;  %v5883_v49 = vsel %vm5851_vm9, 1.0, %v8515_v37  ;;  %v1158_v11 = vadd.f32 %v1150_v29, %v1137_v6  ;;  %v1149_v35 = vrot.slane %v1141_v41, 1  ;;  %1973 = vrot.lane.b32.xlu1 %v4189_v45, %s3890_s12  ;;  %2024 = vrot.lane.b32.xlu0 %v4177_v17, %s3891_s15  ;;  %s3904_s12 = smov 96  }
 0x534   :  { %8881 = vst [vmem:[#allocation68_spill] sm:$0xff] %v5883_v49  ;;  %v1152_v38 = vrot.slane %v1144_v21, 1  ;;  %v1180_v16 = vsel %vm1177_vm6, %v1170_v48, %v1172_v36  ;;  %v1136_v50 = vmul.f32 %v8875_v12, %v1124_v63  ;;  %v1139_v44 = vmul.f32 %v8875_v12, %v1121_v30  ;;  %v1176_v57 = vpop.permute.xlu1 %1175 }
 0x535   :  { %v1199_v59 = vmul.f32 %v8882_v58, %v1180_v16  ;;  %v5893_v52 = vsel %vm1924_vm10, 1.0, %v8515_v37  ;;  %v1110_v62 = vadd.f32 %v1106_v39, %v1053_v51  ;;  %v1108_v29 = vadd.f32 %v1104_v33, %v1051_v31  ;;  %v1227_v33 = vpop.permute.xlu0 %1226 }
 0x536   :  { %8883 = vst [vmem:[#allocation76_spill] sm:$0xff] %v5893_v52  ;;  %v1159_v6 = vadd.f32 %v1151_v1, %v1138_v10  ;;  %v1179_v41 = vsel %vm1177_vm6, %v1172_v36, %v1174_v25  ;;  %v1157_v30 = vadd.f32 %v1149_v35, %v1136_v50  ;;  %v1160_v63 = vadd.f32 %v1152_v38, %v1139_v44  ;;  %v8884_v52 = vld [vmem:[#allocation74_spill] sm:$0xff]  ;;  %v8885_v1 = vld [vmem:[#allocation79_spill] sm:$0xff] }
 0x537   :  { %v1207_v12 = vrot.slane %v1199_v59, 1  ;;  %v1200_v21 = vmul.f32 %v8882_v58, %v1179_v41  ;;  %v1111_v49 = vadd.f32 %v1107_v0, %v1054_v20  ;;  %v1162_v51 = vmul.f32 %v1158_v11, %v8884_v52  ;;  %2026 = vrot.lane.b32.xlu1 %v4181_v26, %s3891_s15  ;;  %v8888_v0 = vld [vmem:[#allocation52_spill] sm:$0xff]  ;;  %2028 = vrot.lane.b32.xlu0 %v4184_v27, %s3891_s15  ;;  %v8892_v50 = vld [vmem:[#allocation75_spill] sm:$0xff]  ;;  %v8893_v59 = vld [vmem:[#allocation77_spill] sm:$0xff] }
 0x538   :  { %v1178_v31 = vsel %vm1177_vm6, %v1174_v25, %v1176_v57  ;;  %v1181_v39 = vsel %vm1177_vm6, %v1176_v57, %v1170_v48  ;;  %v1194_v10 = vmul.f32 %v8885_v1, %v1180_v16  ;;  %vm1291_vm0 = vcmp.lt.s32.totalorder %v4214_v47, 33 }
 0x539   :  { %v1208_v36 = vrot.slane %v1200_v21, 1  ;;  %v5910_v35 = vstv %s5865_s13  ;;  %v5913_v20 = vstv %s5867_s14  ;;  %v1163_v11 = vmul.f32 %v1159_v6, %v8888_v0  ;;  %v1229_v21 = vpop.permute.xlu1 %1228  ;;  %s6853_s13 = sld [smem:[#allocation2 + $0x1d]]  ;;  %s3905_s14 = smov 95  }
 0x53a   :  { %8886 = vst [vmem:[#allocation69_spill] sm:$0xff] %v5910_v35  ;;  %8887 = vst [vmem:[#allocation70_spill] sm:$0xff] %v5913_v20  ;;  %v1195_v25 = vmul.f32 %v8885_v1, %v1179_v41  ;;  %v1198_v38 = vmul.f32 %v8882_v58, %v1181_v39  ;;  %v1201_v48 = vmul.f32 %v8882_v58, %v1178_v31  ;;  %vm8889_vm4 = vcmp.le.s32.totalorder %v8687_v32, 15  ;;  %v8906_v58 = vld [vmem:[#allocation18_spill] sm:$0xff]  ;;  %v8931_v35 = vld [vmem:[#allocation89_spill] sm:$0xff] }
 0x53b   :  { %vm5925_vm8 = vmand %vm5258_vm13, %vm8889_vm4  ;;  %v1161_v44 = vmul.f32 %v1157_v30, %v8892_v50  ;;  %v1164_v52 = vmul.f32 %v1160_v63, %v8893_v59  ;;  %v1215_v6 = vadd.f32 %v1207_v12, %v1194_v10  ;;  %v1193_v41 = vmul.f32 %v8885_v1, %v1181_v39  ;;  %v1231_v12 = vpop.permute.xlu0 %1230  ;;  %2030 = vrot.lane.b32.xlu1 %v4189_v45, %s3891_s15  ;;  %s6868_s15 = sld [smem:[#allocation2 + $0x4e]] }
 0x53c   :  { %vm8894_vm6 = vcmp.le.s32.totalorder %v8701_v61, 15  ;;  %v1196_v46 = vmul.f32 %v8885_v1, %v1178_v31  ;;  %v1206_v57 = vrot.slane %v1198_v38, 1  ;;  %v1209_v30 = vrot.slane %v1201_v48, 1  ;;  %2081 = vrot.lane.b32.xlu0 %v4177_v17, %s3861_s0  ;;  %v8903_v48 = vld [vmem:[#allocation78_spill] sm:$0xff] }
 0x53d   :  { %vm5936_vm5 = vmand %vm5286_vm7, %vm8894_vm6  ;;  %v1237_v63 = vsel %vm1234_vm11, %v1227_v33, %v1229_v21  ;;  %v1166_v39 = vadd.f32 %v1162_v51, %v1109_v3  ;;  %v1216_v10 = vadd.f32 %v1208_v36, %v1195_v25  ;;  %v5951_v34 = vsel %vm5925_vm8, 1.0, %v8515_v37  ;;  %v8898_v3 = vld [vmem:[#allocation47_spill] sm:$0xff] }
 0x53e   :  { %v1256_v0 = vmul.f32 %v5154_v18, %v1237_v63  ;;  %8897 = vst [vmem:[#allocation72_spill] sm:$0xff] %v5951_v34  ;;  %v1214_v50 = vadd.f32 %v1206_v57, %v1193_v41  ;;  %v1217_v31 = vadd.f32 %v1209_v30, %v1196_v46  ;;  %v1236_v1 = vsel %vm1234_vm11, %v1229_v21, %v1231_v12  ;;  %v1233_v41 = vpop.permute.xlu1 %1232  ;;  %v8904_v34 = vld [vmem:[#allocation17_spill] sm:$0xff] }
 0x53f   :  { %vm8899_vm13 = vcmp.le.s32.totalorder %v8898_v3, 15  ;;  %v5968_v36 = vsel %vm5936_vm5, 1.0, %v8515_v37  ;;  %v1167_v25 = vadd.f32 %v1163_v11, %v1110_v62  ;;  %v1165_v38 = vadd.f32 %v1161_v44, %v1108_v29  ;;  %v1284_v30 = vpop.permute.xlu0 %1283  ;;  %v8910_v29 = vld [vmem:[#allocation80_spill] sm:$0xff]  ;;  %v8911_v11 = vld [vmem:[#allocation82_spill] sm:$0xff]  ;;  %2083 = vrot.lane.b32.xlu1 %v4181_v26, %s3861_s0 }
 0x540   :  { %vm5961_vm7 = vmand %vm5306_vm15, %vm8899_vm13  ;;  %8902 = vst [vmem:[#allocation71_spill] sm:$0xff] %v5968_v36  ;;  %v1219_v16 = vmul.f32 %v1215_v6, %v8903_v48  ;;  %v1257_v59 = vmul.f32 %v5154_v18, %v1236_v1  ;;  %v1168_v21 = vadd.f32 %v1164_v52, %v1111_v49  ;;  %v1264_v46 = vrot.slane %v1256_v0, 1  ;;  %v8912_v52 = vld [vmem:[#allocation83_spill] sm:$0xff]  ;;  %2085 = vrot.lane.b32.xlu0 %v4184_v27, %s3861_s0  ;;  %v8919_v62 = vld [vmem:[#allocation20_spill] sm:$0xff] }
 0x541   :  { %v1235_v43 = vsel %vm1234_vm11, %v1231_v12, %v1233_v41  ;;  %v1238_v57 = vsel %vm1234_vm11, %v1233_v41, %v1227_v33  ;;  %vm8905_vm15 = vcmp.ge.s32.totalorder %v8904_v34, 0  ;;  %vm8907_vm14 = vnez %v8906_v58  ;;  %v8914_v12 = vld [vmem:[#allocation84_spill] sm:$0xff] }
 0x542   :  { %vm5980_vm2 = vmand %vm8907_vm14, %vm8905_vm15  ;;  %v1220_v49 = vmul.f32 %v1216_v10, %v8910_v29  ;;  %v1218_v44 = vmul.f32 %v1214_v50, %v8911_v11  ;;  %v1251_v6 = vmul.f32 %v8912_v52, %v1237_v63  ;;  %vm1348_vm1 = vcmp.lt.s32.totalorder %v4214_v47, 32  ;;  %v1286_v29 = vpop.permute.xlu1 %1285 }
 0x543   :  { %v5995_v33 = vsel %vm5961_vm7, 1.0, %v8515_v37  ;;  %v1221_v0 = vmul.f32 %v1217_v31, %v8914_v12  ;;  %v1265_v48 = vrot.slane %v1257_v59, 1  ;;  %v1255_v41 = vmul.f32 %v5154_v18, %v1238_v57  ;;  %2087 = vrot.lane.b32.xlu1 %v4189_v45, %s3861_s0  ;;  %s6061_s0 = sld [smem:[#allocation2 + $0x16]] }
 0x544   :  { %8913 = vst [vmem:[#allocation73_spill] sm:$0xff] %v5995_v33  ;;  %v1258_v10 = vmul.f32 %v5154_v18, %v1235_v43  ;;  %v1223_v63 = vadd.f32 %v1219_v16, %v1166_v39  ;;  %v1252_v50 = vmul.f32 %v8912_v52, %v1236_v1  ;;  %v6006_v51 = vsel %vm5980_vm2, 1.0, %v8515_v37  ;;  %v1288_v33 = vpop.permute.xlu0 %1287  ;;  %v8917_v16 = vld [vmem:[#allocation92_spill] sm:$0xff]  ;;  %2182 = vrot.lane.b32.xlu0 %v4177_v17, %s3892_s18 }
 0x545   :  { %8915 = vst [vmem:[#allocation81_spill] sm:$0xff] %v6006_v51  ;;  %v6009_v11 = vstv %s5940_s16  ;;  %v1272_v31 = vadd.f32 %v1264_v46, %v1251_v6  ;;  %v1263_v59 = vrot.slane %v1255_v41, 1  ;;  %v1294_v18 = vsel %vm1291_vm0, %v1284_v30, %v1286_v29  ;;  %v8941_v41 = vld [vmem:[#allocation87_spill] sm:$0xff]  ;;  %s3906_s16 = smov 94  }
 0x546   :  { %8916 = vst [vmem:[#allocation74_spill] sm:$0xff] %v6009_v11  ;;  %v1266_v12 = vrot.slane %v1258_v10, 1  ;;  %v1224_v36 = vadd.f32 %v1220_v49, %v1167_v25  ;;  %v1250_v39 = vmul.f32 %v8912_v52, %v1238_v57  ;;  %v1253_v1 = vmul.f32 %v8912_v52, %v1235_v43  ;;  %v8923_v57 = vld [vmem:[#allocation26_spill] sm:$0xff]  ;;  %v8925_v52 = vld [vmem:[#allocation19_spill] sm:$0xff] }
 0x547   :  { %v1313_v34 = vmul.f32 %v8917_v16, %v1294_v18  ;;  %vm8918_vm3 = vcmp.ge.s32.totalorder %v4320_v55, 0  ;;  %vm8920_vm9 = vnez %v8919_v62  ;;  %v1222_v6 = vadd.f32 %v1218_v44, %v1165_v38  ;;  %2184 = vrot.lane.b32.xlu1 %v4181_v26, %s3892_s18 }
 0x548   :  { %vm6022_vm11 = vmand %vm8920_vm9, %vm8918_vm3  ;;  %v1225_v25 = vadd.f32 %v1221_v0, %v1168_v21  ;;  %v1273_v49 = vadd.f32 %v1265_v48, %v1252_v50  ;;  %v1293_v43 = vsel %vm1291_vm0, %v1286_v29, %v1288_v33  ;;  %vm8924_vm12 = vcmp.ge.s32.totalorder %v8923_v57, 0  ;;  %v1290_v0 = vpop.permute.xlu1 %1289  ;;  %v8929_v48 = vld [vmem:[#allocation85_spill] sm:$0xff]  ;;  %v1341_v51 = vpop.permute.xlu0 %1340  ;;  %2186 = vrot.lane.b32.xlu0 %v4184_v27, %s3892_s18 }
 0x549   :  { %vm8926_vm10 = vnez %v8925_v52  ;;  %v1271_v10 = vadd.f32 %v1263_v59, %v1250_v39  ;;  %v1274_v38 = vadd.f32 %v1266_v12, %v1253_v1  ;;  %v1321_v44 = vrot.slane %v1313_v34, 1  ;;  %v8935_v39 = vld [vmem:[#allocation27_spill] sm:$0xff]  ;;  %v8937_v1 = vld [vmem:[#allocation21_spill] sm:$0xff] }
 0x54a   :  { %vm6034_vm4 = vmand %vm8926_vm10, %vm8924_vm12  ;;  %v1314_v21 = vmul.f32 %v8917_v16, %v1293_v43  ;;  %v1276_v50 = vmul.f32 %v1272_v31, %v8929_v48  ;;  %v1292_v29 = vsel %vm1291_vm0, %v1288_v33, %v1290_v0  ;;  %v1295_v55 = vsel %vm1291_vm0, %v1290_v0, %v1284_v30  ;;  %v8934_v33 = vld [vmem:[#allocation86_spill] sm:$0xff] }
 0x54b   :  { %v6045_v11 = vstv %s5984_s17  ;;  %v1308_v20 = vmul.f32 %v8931_v35, %v1294_v18  ;;  %vm1405_vm8 = vcmp.lt.s32.totalorder %v4214_v47, 31  ;;  %v6054_v34 = vsel %vm6022_vm11, 1.0, %v8515_v37  ;;  %2188 = vrot.lane.b32.xlu1 %v4189_v45, %s3892_s18  ;;  %s3907_s17 = smov 93   ;;  %s6996_s18 = sld [smem:[#allocation2 + $0x1e]] }
 0x54c   :  { %8930 = vst [vmem:[#allocation79_spill] sm:$0xff] %v6045_v11  ;;  %v1322_v57 = vrot.slane %v1314_v21, 1  ;;  %8932 = vst [vmem:[#allocation52_spill] sm:$0xff] %v6054_v34  ;;  %v6059_v30 = vsel %vm6034_vm4, 1.0, %v8515_v37  ;;  %v1277_v31 = vmul.f32 %v1273_v49, %v8934_v33  ;;  %v1309_v59 = vmul.f32 %v8931_v35, %v1293_v43  ;;  %v8942_v49 = vld [vmem:[#allocation88_spill] sm:$0xff]  ;;  %v1343_v33 = vpop.permute.xlu1 %1342  ;;  %v1345_v11 = vpop.permute.xlu0 %1344  ;;  %2239 = vrot.lane.b32.xlu0 %v4177_v17, %s3866_s1 }
 0x54d   :  { %8933 = vst [vmem:[#allocation75_spill] sm:$0xff] %v6059_v30  ;;  %v1312_v12 = vmul.f32 %v8917_v16, %v1295_v55  ;;  %v1315_v18 = vmul.f32 %v8917_v16, %v1292_v29  ;;  %vm8936_vm0 = vcmp.ge.s32.totalorder %v8935_v39, 0  ;;  %vm8938_vm6 = vnez %v8937_v1 }
 0x54e   :  { %vm6073_vm5 = vmand %vm8938_vm6, %vm8936_vm0  ;;  %v1275_v21 = vmul.f32 %v1271_v10, %v8941_v41  ;;  %v1278_v0 = vmul.f32 %v1274_v38, %v8942_v49  ;;  %v1329_v43 = vadd.f32 %v1321_v44, %v1308_v20  ;;  %v1307_v48 = vmul.f32 %v8931_v35, %v1295_v55  ;;  %v8944_v20 = vld [vmem:[#allocation28_spill] sm:$0xff]  ;;  %v8948_v41 = vld [vmem:[#allocation91_spill] sm:$0xff] }
 0x54f   :  { %v1310_v16 = vmul.f32 %v8931_v35, %v1292_v29  ;;  %v1320_v30 = vrot.slane %v1312_v12, 1  ;;  %v1323_v39 = vrot.slane %v1315_v18, 1  ;;  %v1351_v34 = vsel %vm1348_vm1, %v1341_v51, %v1343_v33  ;;  %2241 = vrot.lane.b32.xlu1 %v4181_v26, %s3866_s1 }
 0x550   :  { %v1280_v24 = vadd.f32 %v1276_v50, %v1223_v63  ;;  %v1330_v19 = vadd.f32 %v1322_v57, %v1309_v59  ;;  %v1370_v10 = vmul.f32 %v8943_v56, %v1351_v34  ;;  %v6091_v55 = vsel %vm6073_vm5, 1.0, %v8515_v37  ;;  %v8946_v50 = vld [vmem:[#allocation90_spill] sm:$0xff]  ;;  %v1347_v18 = vpop.permute.xlu1 %1346  ;;  %2243 = vrot.lane.b32.xlu0 %v4184_v27, %s3866_s1 }
 0x551   :  { %vm8945_vm13 = vcmp.ge.s32.totalorder %v8944_v20, 0  ;;  %v1281_v35 = vadd.f32 %v1277_v31, %v1224_v36  ;;  %v1328_v38 = vadd.f32 %v1320_v30, %v1307_v48  ;;  %v1331_v44 = vadd.f32 %v1323_v39, %v1310_v16  ;;  %v1398_v31 = vpop.permute.xlu0 %1397 }
 0x552   :  { %vm2038_vm7 = vmand %vm8907_vm14, %vm8945_vm13  ;;  %v1350_v63 = vsel %vm1348_vm1, %v1343_v33, %v1345_v11  ;;  %v1279_v57 = vadd.f32 %v1275_v21, %v1222_v6  ;;  %v1333_v29 = vmul.f32 %v1329_v43, %v8946_v50  ;;  %v1378_v59 = vrot.slane %v1370_v10, 1  ;;  %v8949_v21 = vld [vmem:[#allocation93_spill] sm:$0xff] }
 0x553   :  { %v1371_v12 = vmul.f32 %v8943_v56, %v1350_v63  ;;  %v1282_v46 = vadd.f32 %v1278_v0, %v1225_v25  ;;  %v1349_v36 = vsel %vm1348_vm1, %v1345_v11, %v1347_v18  ;;  %v1352_v30 = vsel %vm1348_vm1, %v1347_v18, %v1341_v51  ;;  %v8950_v11 = vld [vmem:[#allocation94_spill] sm:$0xff]  ;;  %v8951_v51 = vld [vmem:[#allocation95_spill] sm:$0xff]  ;;  %2245 = vrot.lane.b32.xlu1 %v4189_v45, %s3866_s1  ;;  %s6175_s1 = sld [smem:[#allocation2 + $0x17]] }
 0x554   :  { %v6108_v39 = vsel %vm2038_vm7, 1.0, %v8515_v37  ;;  %v1334_v6 = vmul.f32 %v1330_v19, %v8948_v41  ;;  %v1365_v49 = vmul.f32 %v8949_v21, %v1351_v34  ;;  %vm1462_vm15 = vcmp.lt.s32.totalorder %v4214_v47, 30  ;;  %v1400_v50 = vpop.permute.xlu1 %1399  ;;  %2296 = vrot.lane.b32.xlu0 %v4177_v17, %s3893_s20 }
 0x555   :  { %8947 = vst [vmem:[#allocation77_spill] sm:$0xff] %v6108_v39  ;;  %v1379_v43 = vrot.slane %v1371_v12, 1  ;;  %v6116_v25 = vstv %s6061_s0  ;;  %v1332_v0 = vmul.f32 %v1328_v38, %v8950_v11  ;;  %v1335_v48 = vmul.f32 %v1331_v44, %v8951_v51  ;;  %v1402_v11 = vpop.permute.xlu0 %1401  ;;  %v8952_v39 = vld [vmem:[#allocation103_spill] sm:$0xff]  ;;  %s7003_s0 = sld [smem:[#allocation2 + $0x4f]] }
 0x556   :  { %v1369_v33 = vmul.f32 %v8943_v56, %v1352_v30  ;;  %v1372_v16 = vmul.f32 %v8943_v56, %v1349_v36  ;;  %v1337_v19 = vadd.f32 %v1333_v29, %v1280_v24  ;;  %v1386_v34 = vadd.f32 %v1378_v59, %v1365_v49 }
 0x557   :  { %v1366_v10 = vmul.f32 %v8949_v21, %v1350_v63  ;;  %v6126_v12 = vstv %s6080_s19  ;;  %v1364_v18 = vmul.f32 %v8949_v21, %v1352_v30  ;;  %v1408_v44 = vsel %vm1405_vm8, %v1398_v31, %v1400_v50  ;;  %v8953_v63 = vld [vmem:[#allocation29_spill] sm:$0xff]  ;;  %2298 = vrot.lane.b32.xlu1 %v4181_v26, %s3893_s20  ;;  %s3908_s19 = smov 83  }
 0x558   :  { %v1377_v41 = vrot.slane %v1369_v33, 1  ;;  %v1380_v38 = vrot.slane %v1372_v16, 1  ;;  %v1338_v51 = vadd.f32 %v1334_v6, %v1281_v35  ;;  %v1367_v20 = vmul.f32 %v8949_v21, %v1349_v36  ;;  %v8957_v36 = vld [vmem:[#allocation30_spill] sm:$0xff]  ;;  %v8961_v21 = vld [vmem:[#allocation96_spill] sm:$0xff]  ;;  %v8962_v33 = vld [vmem:[#allocation31_spill] sm:$0xff]  ;;  %2300 = vrot.lane.b32.xlu0 %v4184_v27, %s3893_s20 }
 0x559   :  { %v1387_v56 = vadd.f32 %v1379_v43, %v1366_v10  ;;  %v1427_v24 = vmul.f32 %v8952_v39, %v1408_v44  ;;  %vm8954_vm2 = vcmp.ge.s32.totalorder %v8953_v63, 0  ;;  %v1336_v59 = vadd.f32 %v1332_v0, %v1279_v57  ;;  %v8966_v10 = vld [vmem:[#allocation99_spill] sm:$0xff]  ;;  %v8974_v16 = vld [vmem:[#allocation106_spill] sm:$0xff] }
 0x55a   :  { %vm6139_vm1 = vmand %vm8920_vm9, %vm8954_vm2  ;;  %v1339_v30 = vadd.f32 %v1335_v48, %v1282_v46  ;;  %v1385_v49 = vadd.f32 %v1377_v41, %v1364_v18  ;;  %v1407_v35 = vsel %vm1405_vm8, %v1400_v50, %v1402_v11  ;;  %vm8958_vm3 = vcmp.ge.s32.totalorder %v8957_v36, 0  ;;  %v1404_v48 = vpop.permute.xlu1 %1403 }
 0x55b   :  { %vm6151_vm11 = vmand %vm8926_vm10, %vm8958_vm3  ;;  %v1390_v43 = vmul.f32 %v1386_v34, %v8961_v21  ;;  %v1388_v57 = vadd.f32 %v1380_v38, %v1367_v20  ;;  %v1435_v46 = vrot.slane %v1427_v24, 1  ;;  %v1428_v0 = vmul.f32 %v8952_v39, %v1407_v35  ;;  %v1455_v34 = vpop.permute.xlu0 %1454  ;;  %v8967_v38 = vld [vmem:[#allocation98_spill] sm:$0xff]  ;;  %v8968_v21 = vld [vmem:[#allocation100_spill] sm:$0xff]  ;;  %2302 = vrot.lane.b32.xlu1 %v4189_v45, %s3893_s20  ;;  %s7095_s20 = sld [smem:[#allocation2 + $0x1f]] }
 0x55c   :  { %vm8963_vm12 = vcmp.ge.s32.totalorder %v8962_v33, 0  ;;  %v1422_v50 = vmul.f32 %v8966_v10, %v1408_v44  ;;  %v1406_v18 = vsel %vm1405_vm8, %v1402_v11, %v1404_v48  ;;  %v1409_v20 = vsel %vm1405_vm8, %v1404_v48, %v1398_v31  ;;  %2353 = vrot.lane.b32.xlu0 %v4177_v17, %s3894_s21 }
 0x55d   :  { %vm6161_vm4 = vmand %vm8938_vm6, %vm8963_vm12  ;;  %v6173_v41 = vsel %vm6139_vm1, 1.0, %v8515_v37  ;;  %v1391_v24 = vmul.f32 %v1387_v56, %v8967_v38  ;;  %v1389_v44 = vmul.f32 %v1385_v49, %v8968_v21  ;;  %v1436_v33 = vrot.slane %v1428_v0, 1  ;;  %v8970_v0 = vld [vmem:[#allocation101_spill] sm:$0xff] }
 0x55e   :  { %vm1519_vm8 = vcmp.lt.s32.totalorder %v4214_v47, 29  ;;  %v6187_v31 = vsel %vm6151_vm11, 1.0, %v8515_v37  ;;  %v1443_v11 = vadd.f32 %v1435_v46, %v1422_v50  ;;  %v1426_v29 = vmul.f32 %v8952_v39, %v1409_v20  ;;  %v1457_v46 = vpop.permute.xlu1 %1456 }
 0x55f   :  { %8969 = vst [vmem:[#allocation78_spill] sm:$0xff] %v6187_v31  ;;  %v1429_v48 = vmul.f32 %v8952_v39, %v1406_v18  ;;  %v6196_v56 = vsel %vm6161_vm4, 1.0, %v8515_v37  ;;  %v1394_v49 = vadd.f32 %v1390_v43, %v1337_v19  ;;  %v1392_v38 = vmul.f32 %v1388_v57, %v8970_v0  ;;  %v1459_v36 = vpop.permute.xlu0 %1458  ;;  %v8982_v19 = vld [vmem:[#allocation105_spill] sm:$0xff]  ;;  %2355 = vrot.lane.b32.xlu1 %v4181_v26, %s3894_s21 }
 0x560   :  { %v1423_v6 = vmul.f32 %v8966_v10, %v1407_v35  ;;  %v1421_v21 = vmul.f32 %v8966_v10, %v1409_v20  ;;  %v1424_v50 = vmul.f32 %v8966_v10, %v1406_v18  ;;  %v1434_v63 = vrot.slane %v1426_v29, 1  ;;  %v8975_v10 = vld [vmem:[#allocation102_spill] sm:$0xff]  ;;  %2357 = vrot.lane.b32.xlu0 %v4184_v27, %s3894_s21 }
 0x561   :  { %v1437_v39 = vrot.slane %v1429_v48, 1  ;;  %v1465_v31 = vsel %vm1462_vm15, %v1455_v34, %v1457_v46  ;;  %vm8971_vm0 = vcmp.ge.s32.totalorder %v4345_v22, 0  ;;  %v1395_v35 = vadd.f32 %v1391_v24, %v1338_v51 }
 0x562   :  { %vm6208_vm5 = vmand %vm8907_vm14, %vm8971_vm0  ;;  %v1393_v43 = vadd.f32 %v1389_v44, %v1336_v59  ;;  %v1444_v57 = vadd.f32 %v1436_v33, %v1423_v6  ;;  %v1484_v20 = vmul.f32 %v8974_v16, %v1465_v31  ;;  %v1447_v18 = vmul.f32 %v1443_v11, %v8975_v10  ;;  %v1461_v24 = vpop.permute.xlu1 %1460 }
 0x563   :  { %v1442_v29 = vadd.f32 %v1434_v63, %v1421_v21  ;;  %v1445_v48 = vadd.f32 %v1437_v39, %v1424_v50  ;;  %v1464_v0 = vsel %vm1462_vm15, %v1457_v46, %v1459_v36  ;;  %v1396_v51 = vadd.f32 %v1392_v38, %v1339_v30  ;;  %v1512_v6 = vpop.permute.xlu0 %1511  ;;  %v8980_v38 = vld [vmem:[#allocation104_spill] sm:$0xff]  ;;  %v8981_v39 = vld [vmem:[#allocation107_spill] sm:$0xff]  ;;  %2359 = vrot.lane.b32.xlu1 %v4189_v45, %s3894_s21  ;;  %s3910_s21 = smov 81  }
 0x564   :  { %v1492_v59 = vrot.slane %v1484_v20, 1  ;;  %v1485_v33 = vmul.f32 %v8974_v16, %v1464_v0  ;;  %v6224_v44 = vsel %vm6208_vm5, 1.0, %v8515_v37  ;;  %v1463_v63 = vsel %vm1462_vm15, %v1459_v36, %v1461_v24  ;;  %2410 = vrot.lane.b32.xlu0 %v4177_v17, %s3895_s22 }
 0x565   :  { %8976 = vst [vmem:[#allocation18_spill] sm:$0xff] %v6224_v44  ;;  %v1466_v11 = vsel %vm1462_vm15, %v1461_v24, %v1455_v34  ;;  %v6231_v21 = vstv %s6175_s1  ;;  %v6234_v46 = vstv %s6177_s2  ;;  %vm8977_vm13 = vcmp.ge.s32.totalorder %v4348_v23, 0  ;;  %v8983_v24 = vld [vmem:[#allocation108_spill] sm:$0xff]  ;;  %s3909_s1 = smov 82   ;;  %s7120_s2 = sld [smem:[#allocation2 + $0x50]] }
 0x566   :  { %vm6240_vm7 = vmand %vm8920_vm9, %vm8977_vm13  ;;  %v1448_v50 = vmul.f32 %v1444_v57, %v8980_v38  ;;  %v1446_v36 = vmul.f32 %v1442_v29, %v8981_v39  ;;  %v1479_v20 = vmul.f32 %v8982_v19, %v1465_v31  ;;  %v1493_v34 = vrot.slane %v1485_v33, 1  ;;  %v1514_v33 = vpop.permute.xlu1 %1513 }
 0x567   :  { %vm1576_vm15 = vcmp.lt.s32.totalorder %v4214_v47, 19  ;;  %v1451_v10 = vadd.f32 %v1447_v18, %v1394_v49  ;;  %v1449_v23 = vmul.f32 %v1445_v48, %v8983_v24  ;;  %v1483_v22 = vmul.f32 %v8974_v16, %v1466_v11  ;;  %v1516_v39 = vpop.permute.xlu0 %1515  ;;  %2412 = vrot.lane.b32.xlu1 %v4181_v26, %s3895_s22 }
 0x568   :  { %v1486_v44 = vmul.f32 %v8974_v16, %v1463_v63  ;;  %v1500_v57 = vadd.f32 %v1492_v59, %v1479_v20  ;;  %v1480_v29 = vmul.f32 %v8982_v19, %v1464_v0  ;;  %v1478_v31 = vmul.f32 %v8982_v19, %v1466_v11  ;;  %v8987_v20 = vld [vmem:[#allocation113_spill] sm:$0xff]  ;;  %2414 = vrot.lane.b32.xlu0 %v4184_v27, %s3895_s22 }
 0x569   :  { %v6260_v38 = vsel %vm6240_vm7, 1.0, %v8515_v37  ;;  %v1481_v49 = vmul.f32 %v8982_v19, %v1463_v63  ;;  %v1491_v18 = vrot.slane %v1483_v22, 1  ;;  %v1522_v16 = vsel %vm1519_vm8, %v1512_v6, %v1514_v33 }
 0x56a   :  { %v1494_v48 = vrot.slane %v1486_v44, 1  ;;  %vm8984_vm2 = vcmp.ge.s32.totalorder %v4354_v53, 0  ;;  %v1452_v59 = vadd.f32 %v1448_v50, %v1395_v35  ;;  %v1450_v11 = vadd.f32 %v1446_v36, %v1393_v43  ;;  %v8991_v43 = vld [vmem:[#allocation109_spill] sm:$0xff] }
 0x56b   :  { %vm6269_vm1 = vmand %vm8926_vm10, %vm8984_vm2  ;;  %v1501_v30 = vadd.f32 %v1493_v34, %v1480_v29  ;;  %v1541_v24 = vmul.f32 %v8987_v20, %v1522_v16  ;;  %vm8988_vm3 = vcmp.ge.s32.totalorder %v4357_v54, 0  ;;  %v1453_v44 = vadd.f32 %v1449_v23, %v1396_v51  ;;  %v1518_v29 = vpop.permute.xlu1 %1517  ;;  %v8992_v23 = vld [vmem:[#allocation112_spill] sm:$0xff]  ;;  %2416 = vrot.lane.b32.xlu1 %v4189_v45, %s3895_s22  ;;  %s7173_s22 = sld [smem:[#allocation2 + $0x20]] }
 0x56c   :  { %vm6280_vm11 = vmand %vm8938_vm6, %vm8988_vm3  ;;  %v1499_v63 = vadd.f32 %v1491_v18, %v1478_v31  ;;  %v1502_v19 = vadd.f32 %v1494_v48, %v1481_v49  ;;  %v1521_v35 = vsel %vm1519_vm8, %v1514_v33, %v1516_v39  ;;  %v1504_v50 = vmul.f32 %v1500_v57, %v8991_v43  ;;  %v1569_v33 = vpop.permute.xlu0 %1568  ;;  %v8996_v48 = vld [vmem:[#allocation110_spill] sm:$0xff]  ;;  %2467 = vrot.lane.b32.xlu0 %v4177_v17, %s3896_s25 }
 0x56d   :  { %v1549_v36 = vrot.slane %v1541_v24, 1  ;;  %v1542_v34 = vmul.f32 %v8987_v20, %v1521_v35  ;;  %v6293_v54 = vsel %vm6269_vm1, 1.0, %v8515_v37  ;;  %v1536_v51 = vmul.f32 %v8992_v23, %v1522_v16  ;;  %v8998_v24 = vld [vmem:[#allocation23_spill] sm:$0xff] }
 0x56e   :  { %v1520_v31 = vsel %vm1519_vm8, %v1516_v39, %v1518_v29  ;;  %v1523_v57 = vsel %vm1519_vm8, %v1518_v29, %v1512_v6  ;;  %v6307_v49 = vsel %vm6280_vm11, 1.0, %v8515_v37  ;;  %vm8993_vm12 = vcmp.le.s32.totalorder %v8645_v40, 15  ;;  %v8997_v39 = vld [vmem:[#allocation111_spill] sm:$0xff] }
 0x56f   :  { %vm6313_vm4 = vmand %vm8926_vm10, %vm8993_vm12  ;;  %v1505_v16 = vmul.f32 %v1501_v30, %v8996_v48  ;;  %v1503_v0 = vmul.f32 %v1499_v63, %v8997_v39  ;;  %v1506_v6 = vmul.f32 %v1502_v19, %v8998_v24  ;;  %v1550_v43 = vrot.slane %v1542_v34, 1  ;;  %v1571_v34 = vpop.permute.xlu1 %1570  ;;  %v9000_v24 = vld [vmem:[#allocation117_spill] sm:$0xff]  ;;  %2469 = vrot.lane.b32.xlu1 %v4181_v26, %s3896_s25 }
 0x570   :  { %vm1633_vm8 = vcmp.lt.s32.totalorder %v4214_v47, 18  ;;  %v1557_v22 = vadd.f32 %v1549_v36, %v1536_v51  ;;  %v1537_v29 = vmul.f32 %v8992_v23, %v1521_v35  ;;  %v1540_v40 = vmul.f32 %v8987_v20, %v1523_v57  ;;  %v1573_v39 = vpop.permute.xlu0 %1572  ;;  %2471 = vrot.lane.b32.xlu0 %v4184_v27, %s3896_s25 }
 0x571   :  { %v1543_v53 = vmul.f32 %v8987_v20, %v1520_v31  ;;  %v1508_v30 = vadd.f32 %v1504_v50, %v1451_v10  ;;  %v1535_v63 = vmul.f32 %v8992_v23, %v1523_v57  ;;  %v1538_v19 = vmul.f32 %v8992_v23, %v1520_v31  ;;  %v9001_v31 = vld [vmem:[#allocation114_spill] sm:$0xff] }
 0x572   :  { %v6333_v48 = vsel %vm6313_vm4, 1.0, %v8515_v37  ;;  %v1558_v36 = vadd.f32 %v1550_v43, %v1537_v29  ;;  %v1548_v35 = vrot.slane %v1540_v40, 1  ;;  %v1579_v20 = vsel %vm1576_vm15, %v1569_v33, %v1571_v34  ;;  %v9006_v29 = vld [vmem:[#allocation116_spill] sm:$0xff] }
 0x573   :  { %8999 = vst [vmem:[#allocation80_spill] sm:$0xff] %v6333_v48  ;;  %v1551_v51 = vrot.slane %v1543_v53, 1  ;;  %v1509_v10 = vadd.f32 %v1505_v16, %v1452_v59  ;;  %v1507_v50 = vadd.f32 %v1503_v0, %v1450_v11  ;;  %v1510_v57 = vadd.f32 %v1506_v6, %v1453_v44  ;;  %v1575_v11 = vpop.permute.xlu1 %1574  ;;  %v9005_v6 = vld [vmem:[#allocation115_spill] sm:$0xff]  ;;  %2473 = vrot.lane.b32.xlu1 %v4189_v45, %s3896_s25  ;;  %s3912_s25 = smov 79  }
 0x574   :  { %v1598_v23 = vmul.f32 %v9000_v24, %v1579_v20  ;;  %v1561_v18 = vmul.f32 %v1557_v22, %v9001_v31  ;;  %v1556_v48 = vadd.f32 %v1548_v35, %v1535_v63  ;;  %v1578_v53 = vsel %vm1576_vm15, %v1571_v34, %v1573_v39  ;;  %v1626_v35 = vpop.permute.xlu0 %1625  ;;  %2524 = vrot.lane.b32.xlu0 %v4177_v17, %s3897_s27 }
 0x575   :  { %v1559_v43 = vadd.f32 %v1551_v51, %v1538_v19  ;;  %v1599_v59 = vmul.f32 %v9000_v24, %v1578_v53  ;;  %v6347_v44 = vstv %s6295_s23  ;;  %v6350_v16 = vstv %s6297_s24  ;;  %s7182_s23 = sld [smem:[#allocation2 + $0x51]]  ;;  %s3911_s24 = smov 80  }
 0x576   :  { %v1606_v40 = vrot.slane %v1598_v23, 1  ;;  %vm9002_vm0 = vcmp.le.s32.totalorder %v4380_v28, 15  ;;  %v1562_v22 = vmul.f32 %v1558_v36, %v9005_v6  ;;  %v1593_v63 = vmul.f32 %v9006_v29, %v1579_v20  ;;  %v9010_v23 = vld [vmem:[#allocation118_spill] sm:$0xff]  ;;  %v9011_v36 = vld [vmem:[#allocation119_spill] sm:$0xff] }
 0x577   :  { %vm6356_vm5 = vmand %vm8907_vm14, %vm9002_vm0  ;;  %v1577_v19 = vsel %vm1576_vm15, %v1573_v39, %v1575_v11  ;;  %v1580_v34 = vsel %vm1576_vm15, %v1575_v11, %v1569_v33  ;;  %vm9007_vm13 = vcmp.le.s32.totalorder %v8637_v2, 15  ;;  %v1560_v31 = vmul.f32 %v1556_v48, %v9010_v23  ;;  %v1628_v23 = vpop.permute.xlu1 %1627  ;;  %2526 = vrot.lane.b32.xlu1 %v4181_v26, %s3897_s27 }
 0x578   :  { %vm6370_vm7 = vmand %vm8920_vm9, %vm9007_vm13  ;;  %v1563_v6 = vmul.f32 %v1559_v43, %v9011_v36  ;;  %v1594_v20 = vmul.f32 %v9006_v29, %v1578_v53  ;;  %v1607_v28 = vrot.slane %v1599_v59, 1  ;;  %vm1690_vm15 = vcmp.lt.s32.totalorder %v4214_v47, 17  ;;  %v1630_v2 = vpop.permute.xlu0 %1629  ;;  %2528 = vrot.lane.b32.xlu0 %v4184_v27, %s3897_s27 }
 0x579   :  { %v1614_v33 = vadd.f32 %v1606_v40, %v1593_v63  ;;  %v1597_v39 = vmul.f32 %v9000_v24, %v1580_v34  ;;  %v1600_v11 = vmul.f32 %v9000_v24, %v1577_v19  ;;  %v6387_v48 = vsel %vm6356_vm5, 1.0, %v8515_v37 }
 0x57a   :  { %v1565_v43 = vadd.f32 %v1561_v18, %v1508_v30  ;;  %v1615_v53 = vadd.f32 %v1607_v28, %v1594_v20  ;;  %v1592_v59 = vmul.f32 %v9006_v29, %v1580_v34  ;;  %v6393_v40 = vsel %vm6370_vm7, 1.0, %v8515_v37  ;;  %v9013_v34 = vld [vmem:[#allocation123_spill] sm:$0xff] }
 0x57b   :  { %9012 = vst [vmem:[#allocation82_spill] sm:$0xff] %v6393_v40  ;;  %v1595_v24 = vmul.f32 %v9006_v29, %v1577_v19  ;;  %v1605_v63 = vrot.slane %v1597_v39, 1  ;;  %v1608_v36 = vrot.slane %v1600_v11, 1  ;;  %v1636_v0 = vsel %vm1633_vm8, %v1626_v35, %v1628_v23  ;;  %v9017_v19 = vld [vmem:[#allocation120_spill] sm:$0xff]  ;;  %v1632_v40 = vpop.permute.xlu1 %1631  ;;  %2530 = vrot.lane.b32.xlu1 %v4189_v45, %s3897_s27  ;;  %s7300_s27 = sld [smem:[#allocation2 + $0x52]] }
 0x57c   :  { %v1566_v30 = vadd.f32 %v1562_v22, %v1509_v10  ;;  %v1564_v28 = vadd.f32 %v1560_v31, %v1507_v50  ;;  %v1567_v18 = vadd.f32 %v1563_v6, %v1510_v57  ;;  %v1655_v20 = vmul.f32 %v9013_v34, %v1636_v0  ;;  %v9018_v50 = vld [vmem:[#allocation121_spill] sm:$0xff]  ;;  %v9019_v22 = vld [vmem:[#allocation122_spill] sm:$0xff]  ;;  %2581 = vrot.lane.b32.xlu0 %v4177_v17, %s3898_s29 }
 0x57d   :  { %vm9014_vm2 = vcmp.le.s32.totalorder %v8649_v7, 15  ;;  %v1618_v51 = vmul.f32 %v1614_v33, %v9017_v19  ;;  %v1613_v39 = vadd.f32 %v1605_v63, %v1592_v59  ;;  %v1616_v11 = vadd.f32 %v1608_v36, %v1595_v24  ;;  %v1683_v24 = vpop.permute.xlu0 %1682  ;;  %v9024_v36 = vld [vmem:[#allocation124_spill] sm:$0xff] }
 0x57e   :  { %vm6407_vm1 = vmand %vm8938_vm6, %vm9014_vm2  ;;  %v1635_v10 = vsel %vm1633_vm8, %v1628_v23, %v1630_v2  ;;  %v1619_v57 = vmul.f32 %v1615_v53, %v9018_v50  ;;  %v1650_v31 = vmul.f32 %v9019_v22, %v1636_v0  ;;  %v1663_v6 = vrot.slane %v1655_v20, 1  ;;  %v9025_v20 = vld [vmem:[#allocation125_spill] sm:$0xff] }
 0x57f   :  { %v1656_v7 = vmul.f32 %v9013_v34, %v1635_v10  ;;  %vm9020_vm3 = vcmp.le.s32.totalorder %v8865_v42, 15  ;;  %v1651_v59 = vmul.f32 %v9019_v22, %v1635_v10  ;;  %v1634_v23 = vsel %vm1633_vm8, %v1630_v2, %v1632_v40  ;;  %v1685_v10 = vpop.permute.xlu1 %1684  ;;  %2583 = vrot.lane.b32.xlu1 %v4181_v26, %s3898_s29 }
 0x580   :  { %vm6425_vm11 = vmand %vm8926_vm10, %vm9020_vm3  ;;  %v1637_v53 = vsel %vm1633_vm8, %v1632_v40, %v1626_v35  ;;  %v6437_v63 = vsel %vm6407_vm1, 1.0, %v8515_v37  ;;  %v1617_v0 = vmul.f32 %v1613_v39, %v9024_v36  ;;  %v1620_v19 = vmul.f32 %v1616_v11, %v9025_v20  ;;  %2585 = vrot.lane.b32.xlu0 %v4184_v27, %s3898_s29 }
 0x581   :  { %9023 = vst [vmem:[#allocation83_spill] sm:$0xff] %v6437_v63  ;;  %v1671_v50 = vadd.f32 %v1663_v6, %v1650_v31  ;;  %v1664_v42 = vrot.slane %v1656_v7, 1  ;;  %vm1747_vm12 = vcmp.lt.s32.totalorder %v4214_v47, 16  ;;  %v1622_v2 = vadd.f32 %v1618_v51, %v1565_v43  ;;  %v1687_v36 = vpop.permute.xlu0 %1686  ;;  %v9027_v63 = vld [vmem:[#allocation126_spill] sm:$0xff] }
 0x582   :  { %v1654_v35 = vmul.f32 %v9013_v34, %v1637_v53  ;;  %v1657_v40 = vmul.f32 %v9013_v34, %v1634_v23  ;;  %v6451_v29 = vsel %vm6425_vm11, 1.0, %v8515_v37  ;;  %v1623_v39 = vadd.f32 %v1619_v57, %v1566_v30  ;;  %v9028_v30 = vld [vmem:[#allocation127_spill] sm:$0xff] }
 0x583   :  { %9026 = vst [vmem:[#allocation84_spill] sm:$0xff] %v6451_v29  ;;  %v1672_v7 = vadd.f32 %v1664_v42, %v1651_v59  ;;  %v1649_v11 = vmul.f32 %v9019_v22, %v1637_v53  ;;  %v6455_v31 = vstv %s6395_s26  ;;  %v1652_v43 = vmul.f32 %v9019_v22, %v1634_v23  ;;  %v9032_v23 = vld [vmem:[#allocation22_spill] sm:$0xff]  ;;  %2587 = vrot.lane.b32.xlu1 %v4189_v45, %s3898_s29  ;;  %s7298_s26 = sld [smem:[#allocation2 + $0x21]]  ;;  %s7354_s29 = sld [smem:[#allocation2 + $0x22]] }
 0x584   :  { %v1662_v51 = vrot.slane %v1654_v35, 1  ;;  %v1665_v34 = vrot.slane %v1657_v40, 1  ;;  %v1693_v6 = vsel %vm1690_vm15, %v1683_v24, %v1685_v10  ;;  %v1621_v20 = vadd.f32 %v1617_v0, %v1564_v28  ;;  %v1689_v35 = vpop.permute.xlu1 %1688  ;;  %2638 = vrot.lane.b32.xlu0 %v4177_v17, %s3899_s5 }
 0x585   :  { %v1624_v33 = vadd.f32 %v1620_v19, %v1567_v18  ;;  %v1675_v29 = vmul.f32 %v1671_v50, %v9027_v63  ;;  %v1712_v42 = vmul.f32 %v9028_v30, %v1693_v6  ;;  %vm9029_vm4 = vcmp.le.s32.totalorder %v8847_v13, 15  ;;  %v9033_v63 = vld [vmem:[#allocation50_spill] sm:$0xff] }
 0x586   :  { %vm6468_vm8 = vmand %vm8907_vm14, %vm9029_vm4  ;;  %v1670_v22 = vadd.f32 %v1662_v51, %v1649_v11  ;;  %v1673_v59 = vadd.f32 %v1665_v34, %v1652_v43  ;;  %v1692_v28 = vsel %vm1690_vm15, %v1685_v10, %v1687_v36  ;;  %v6477_v18 = vstv %s6416_s28  ;;  %v1740_v43 = vpop.permute.xlu0 %1739  ;;  %s3913_s28 = smov 78  }
 0x587   :  { %v1676_v53 = vmul.f32 %v1672_v7, %v9032_v23  ;;  %v1707_v0 = vmul.f32 %v9033_v63, %v1693_v6  ;;  %v1720_v19 = vrot.slane %v1712_v42, 1  ;;  %v1713_v50 = vmul.f32 %v9028_v30, %v1692_v28  ;;  %v9040_v6 = vld [vmem:[#allocation128_spill] sm:$0xff]  ;;  %v9041_v42 = vld [vmem:[#allocation49_spill] sm:$0xff]  ;;  %2640 = vrot.lane.b32.xlu1 %v4181_v26, %s3899_s5 }
 0x588   :  { %vm9034_vm0 = vcmp.le.s32.totalorder %v8858_v5, 15  ;;  %v1708_v11 = vmul.f32 %v9033_v63, %v1692_v28  ;;  %v1691_v10 = vsel %vm1690_vm15, %v1687_v36, %v1689_v35  ;;  %v1694_v7 = vsel %vm1690_vm15, %v1689_v35, %v1683_v24  ;;  %2642 = vrot.lane.b32.xlu0 %v4184_v27, %s3899_s5 }
 0x589   :  { %vm6486_vm5 = vmand %vm8920_vm9, %vm9034_vm0  ;;  %v6498_v51 = vsel %vm6468_vm8, 1.0, %v8515_v37  ;;  %vm9037_vm13 = vcmp.le.s32.totalorder %v8870_v14, 15  ;;  %v1674_v36 = vmul.f32 %v1670_v22, %v9040_v6  ;;  %v1677_v24 = vmul.f32 %v1673_v59, %v9041_v42  ;;  %v9045_v6 = vld [vmem:[#allocation24_spill] sm:$0xff] }
 0x58a   :  { %vm6504_vm7 = vmand %vm8938_vm6, %vm9037_vm13  ;;  %v1728_v28 = vadd.f32 %v1720_v19, %v1707_v0  ;;  %v1721_v23 = vrot.slane %v1713_v50, 1  ;;  %vm1804_vm15 = vcmp.lt.s32.totalorder %v4214_v47, 15  ;;  %v1679_v57 = vadd.f32 %v1675_v29, %v1622_v2  ;;  %v1742_v50 = vpop.permute.xlu1 %1741 }
 0x58b   :  { %v1711_v35 = vmul.f32 %v9028_v30, %v1694_v7  ;;  %v1714_v14 = vmul.f32 %v9028_v30, %v1691_v10  ;;  %v6522_v22 = vsel %vm6486_vm5, 1.0, %v8515_v37  ;;  %v1680_v59 = vadd.f32 %v1676_v53, %v1623_v39  ;;  %2644 = vrot.lane.b32.xlu1 %v4189_v45, %s3899_s5  ;;  %s7417_s5 = sld [smem:[#allocation2 + $0x23]] }
 0x58c   :  { %v1729_v0 = vadd.f32 %v1721_v23, %v1708_v11  ;;  %v1706_v19 = vmul.f32 %v9033_v63, %v1694_v7  ;;  %v6530_v2 = vsel %vm6504_vm7, 1.0, %v8515_v37  ;;  %vm9042_vm2 = vcmp.le.s32.totalorder %v8701_v61, 15  ;;  %v1744_v11 = vpop.permute.xlu0 %1743  ;;  %2695 = vrot.lane.b32.xlu0 %v4177_v17, %s3900_s6 }
 0x58d   :  { %vm6536_vm1 = vmand %vm8926_vm10, %vm9042_vm2  ;;  %v1709_v30 = vmul.f32 %v9033_v63, %v1691_v10  ;;  %v1719_v39 = vrot.slane %v1711_v35, 1  ;;  %v1722_v53 = vrot.slane %v1714_v14, 1  ;;  %v1750_v40 = vsel %vm1747_vm12, %v1740_v43, %v1742_v50  ;;  %v9047_v35 = vld [vmem:[#allocation48_spill] sm:$0xff] }
 0x58e   :  { %v1678_v7 = vadd.f32 %v1674_v36, %v1621_v20  ;;  %v1681_v34 = vadd.f32 %v1677_v24, %v1624_v33  ;;  %v1732_v42 = vmul.f32 %v1728_v28, %v9045_v6  ;;  %v1769_v23 = vmul.f32 %v5615_v15, %v1750_v40  ;;  %v9046_v33 = vld [vmem:[#allocation129_spill] sm:$0xff]  ;;  %v1746_v28 = vpop.permute.xlu1 %1745 }
 0x58f   :  { %v1727_v52 = vadd.f32 %v1719_v39, %v1706_v19  ;;  %v1730_v61 = vadd.f32 %v1722_v53, %v1709_v30  ;;  %v1749_v63 = vsel %vm1747_vm12, %v1742_v50, %v1744_v11  ;;  %v6554_v14 = vsel %vm6536_vm1, 1.0, %v8515_v37  ;;  %2697 = vrot.lane.b32.xlu1 %v4181_v26, %s3900_s6 }
 0x590   :  { %v1733_v20 = vmul.f32 %v1729_v0, %v5569_v4  ;;  %v1764_v10 = vmul.f32 %v9046_v33, %v1750_v40  ;;  %v1777_v36 = vrot.slane %v1769_v23, 1  ;;  %v1770_v24 = vmul.f32 %v5615_v15, %v1749_v63  ;;  %v1797_v29 = vpop.permute.xlu0 %1796  ;;  %v9048_v4 = vld [vmem:[#allocation54_spill] sm:$0xff]  ;;  %2699 = vrot.lane.b32.xlu0 %v4184_v27, %s3900_s6 }
 0x591   :  { %v1731_v19 = vmul.f32 %v1727_v52, %v9047_v35  ;;  %v1748_v50 = vsel %vm1747_vm12, %v1744_v11, %v1746_v28  ;;  %v1751_v30 = vsel %vm1747_vm12, %v1746_v28, %v1740_v43  ;;  %v6565_v39 = vstv %s6508_s30  ;;  %v9055_v35 = vld [vmem:[#allocation53_spill] sm:$0xff]  ;;  %s7361_s30 = sld [smem:[#allocation2 + $0x53]] }
 0x592   :  { %v6567_v53 = vadd.f32 %v1732_v42, %v1679_v57  ;;  %v1734_v0 = vmul.f32 %v1730_v61, %v9048_v4  ;;  %v1785_v40 = vadd.f32 %v1777_v36, %v1764_v10  ;;  %v1778_v6 = vrot.slane %v1770_v24, 1  ;;  %v9060_v61 = vld [vmem:[#allocation51_spill] sm:$0xff] }
 0x593   :  { %vm1861_vm10 = vcmp.lt.s32.totalorder %v4214_v47, 14  ;;  %v1765_v23 = vmul.f32 %v9046_v33, %v1749_v63  ;;  %v1768_v11 = vmul.f32 %v5615_v15, %v1751_v30  ;;  %v1771_v43 = vmul.f32 %v5615_v15, %v1748_v50  ;;  %v1799_v15 = vpop.permute.xlu1 %1798  ;;  %2701 = vrot.lane.b32.xlu1 %v4189_v45, %s3900_s6  ;;  %s7419_s6 = sld [smem:[#allocation2 + $0x54]] }
 0x594   :  { %v6579_v57 = vstv %s6524_s4  ;;  %vm9049_vm3 = vcmp.le.s32.totalorder %v8878_v8, 15  ;;  %v1737_v42 = vadd.f32 %v1733_v20, %v1680_v59  ;;  %v1735_v52 = vadd.f32 %v1731_v19, %v1678_v7  ;;  %v1801_v7 = vpop.permute.xlu0 %1800  ;;  %2752 = vrot.lane.b32.xlu0 %v4177_v17, %s3901_s8  ;;  %v9079_v8 = vld [vmem:[#allocation70_spill] sm:$0xff]  ;;  %s3914_s4 = smov 77  }
 0x595   :  { %vm6585_vm11 = vmand %vm8907_vm14, %vm9049_vm3  ;;  %v1763_v63 = vmul.f32 %v9046_v33, %v1751_v30  ;;  %v1766_v10 = vmul.f32 %v9046_v33, %v1748_v50  ;;  %vm9052_vm12 = vcmp.le.s32.totalorder %v8687_v32, 15  ;;  %v1786_v58 = vadd.f32 %v1778_v6, %v1765_v23 }
 0x596   :  { %vm6595_vm4 = vmand %vm8920_vm9, %vm9052_vm12  ;;  %v1776_v24 = vrot.slane %v1768_v11, 1  ;;  %v1779_v28 = vrot.slane %v1771_v43, 1  ;;  %v1807_v59 = vsel %vm1804_vm15, %v1797_v29, %v1799_v15  ;;  %v1738_v20 = vadd.f32 %v1734_v0, %v1681_v34  ;;  %v9059_v11 = vld [vmem:[#allocation14_spill] sm:$0xff] }
 0x597   :  { %v1789_v19 = vmul.f32 %v1785_v40, %v9055_v35  ;;  %v1826_v33 = vmul.f32 %v5707_v9, %v1807_v59  ;;  %v6608_v62 = vsel %vm6585_vm11, 1.0, %v8515_v37  ;;  %vm9056_vm14 = vcmp.le.s32.totalorder %v8898_v3, 15  ;;  %v1803_v23 = vpop.permute.xlu1 %1802  ;;  %v9070_v3 = vld [vmem:[#allocation26_spill] sm:$0xff]  ;;  %2754 = vrot.lane.b32.xlu1 %v4181_v26, %s3901_s8 }
 0x598   :  { %vm6614_vm9 = vmand %vm8938_vm6, %vm9056_vm14  ;;  %v1784_v34 = vadd.f32 %v1776_v24, %v1763_v63  ;;  %v1787_v30 = vadd.f32 %v1779_v28, %v1766_v10  ;;  %v1806_v4 = vsel %vm1804_vm15, %v1799_v15, %v1801_v7  ;;  %v6625_v0 = vsel %vm6595_vm4, 1.0, %v8515_v37  ;;  %v1854_v24 = vpop.permute.xlu0 %1853  ;;  %v9062_v28 = vld [vmem:[#allocation55_spill] sm:$0xff]  ;;  %2756 = vrot.lane.b32.xlu0 %v4184_v27, %s3901_s8 }
 0x599   :  { %v1821_v1 = vmul.f32 %v5681_v60, %v1807_v59  ;;  %v1834_v40 = vrot.slane %v1826_v33, 1  ;;  %v1827_v6 = vmul.f32 %v5707_v9, %v1806_v4  ;;  %v722_v43 = vadd.s32 1, %v9059_v11 }
 0x59a   :  { %v1790_v63 = vmul.f32 %v1786_v58, %v9060_v61  ;;  %v1805_v10 = vsel %vm1804_vm15, %v1801_v7, %v1803_v23  ;;  %v1808_v15 = vsel %vm1804_vm15, %v1803_v23, %v1797_v29  ;;  %v6638_v36 = vsel %vm6614_vm9, 1.0, %v8515_v37  ;;  %v9063_v58 = vld [vmem:[#allocation58_spill] sm:$0xff] }
 0x59b   :  { %9061 = vst [vmem:[#allocation92_spill] sm:$0xff] %v6638_v36  ;;  %v1788_v59 = vmul.f32 %v1784_v34, %v9062_v28  ;;  %v1842_v35 = vadd.f32 %v1834_v40, %v1821_v1  ;;  %v1822_v33 = vmul.f32 %v5681_v60, %v1806_v4  ;;  %v1835_v11 = vrot.slane %v1827_v6, 1  ;;  %v1856_v1 = vpop.permute.xlu1 %1855  ;;  %v9064_v40 = vld [vmem:[#allocation56_spill] sm:$0xff]  ;;  %2758 = vrot.lane.b32.xlu1 %v4189_v45, %s3901_s8  ;;  %s7460_s8 = sld [smem:[#allocation2 + $0x55]] }
 0x59c   :  { %vm1918_vm6 = vcmp.lt.s32.totalorder %v4214_v47, 13  ;;  %v1791_v7 = vmul.f32 %v1787_v30, %v9063_v58  ;;  %v1820_v29 = vmul.f32 %v5681_v60, %v1808_v15  ;;  %v1825_v23 = vmul.f32 %v5707_v9, %v1808_v15  ;;  %v1858_v58 = vpop.permute.xlu0 %1857  ;;  %2809 = vrot.lane.b32.xlu0 %v4177_v17, %s3902_s10  ;;  %v9095_v36 = vld [vmem:[#allocation72_spill] sm:$0xff] }
 0x59d   :  { %v1828_v50 = vmul.f32 %v5707_v9, %v1805_v10  ;;  %v1843_v34 = vadd.f32 %v1835_v11, %v1822_v33  ;;  %v1823_v4 = vmul.f32 %v5681_v60, %v1805_v10  ;;  %vm726_vm8 = vcmp.ge.s32.totalorder %v722_v43, 0  ;;  %v9067_v60 = vld [vmem:[#allocation131_spill] sm:$0xff] }
 0x59e   :  { %vm730_vm0 = vcmp.le.s32.totalorder %v722_v43, 15  ;;  %v1846_v6 = vmul.f32 %v1842_v35, %v9064_v40  ;;  %v1833_v61 = vrot.slane %v1825_v23, 1  ;;  %v1864_v30 = vsel %vm1861_vm10, %v1854_v24, %v1856_v1  ;;  %v9068_v43 = vld [vmem:[#allocation57_spill] sm:$0xff] }
 0x59f   :  { %v1836_v28 = vrot.slane %v1828_v50, 1  ;;  %vm6655_vm5 = vmand %vm726_vm8, %vm730_vm0  ;;  %v1793_v9 = vadd.f32 %v1789_v19, %v6567_v53  ;;  %v1794_v11 = vadd.f32 %v1790_v63, %v1737_v42  ;;  %v1792_v33 = vadd.f32 %v1788_v59, %v1735_v52  ;;  %v9069_v42 = vld [vmem:[#allocation65_spill] sm:$0xff]  ;;  %v1860_v59 = vpop.permute.xlu1 %1859  ;;  %2811 = vrot.lane.b32.xlu1 %v4181_v26, %s3902_s10 }
 0x5a0   :  { %v1883_v10 = vmul.f32 %v9067_v60, %v1864_v30  ;;  %v1847_v35 = vmul.f32 %v1843_v34, %v9068_v43  ;;  %v1841_v23 = vadd.f32 %v1833_v61, %v1820_v29  ;;  %v1863_v40 = vsel %vm1861_vm10, %v1856_v1, %v1858_v58  ;;  %v1911_v1 = vpop.permute.xlu0 %1910  ;;  %v9074_v61 = vld [vmem:[#allocation59_spill] sm:$0xff]  ;;  %2813 = vrot.lane.b32.xlu0 %v4184_v27, %s3902_s10 }
 0x5a1   :  { %v1844_v50 = vadd.f32 %v1836_v28, %v1823_v4  ;;  %v1795_v53 = vadd.f32 %v1791_v7, %v1738_v20  ;;  %v1878_v52 = vmul.f32 %v9069_v42, %v1864_v30  ;;  %v1884_v63 = vmul.f32 %v9067_v60, %v1863_v40  ;;  %v9075_v30 = vld [vmem:[#allocation130_spill] sm:$0xff] }
 0x5a2   :  { %v1891_v19 = vrot.slane %v1883_v10, 1  ;;  %vm9071_vm13 = vcmp.ge.s32.totalorder %v9070_v3, 0  ;;  %v1850_v34 = vadd.f32 %v1846_v6, %v1793_v9  ;;  %v1879_v4 = vmul.f32 %v9069_v42, %v1863_v40 }
 0x5a3   :  { %vm6676_vm7 = vmand %vm6655_vm5, %vm9071_vm13  ;;  %v1862_v20 = vsel %vm1861_vm10, %v1858_v58, %v1860_v59  ;;  %v1865_v7 = vsel %vm1861_vm10, %v1860_v59, %v1854_v24  ;;  %v1845_v28 = vmul.f32 %v1841_v23, %v9074_v61  ;;  %v1848_v10 = vmul.f32 %v1844_v50, %v9075_v30  ;;  %v9077_v23 = vld [vmem:[#allocation63_spill] sm:$0xff]  ;;  %v9078_v61 = vld [vmem:[#allocation13_spill] sm:$0xff]  ;;  %2815 = vrot.lane.b32.xlu1 %v4189_v45, %s3902_s10  ;;  %s7516_s10 = sld [smem:[#allocation2 + $0x56]] }
 0x5a4   :  { %v1899_v43 = vadd.f32 %v1891_v19, %v1878_v52  ;;  %v1892_v3 = vrot.slane %v1884_v63, 1  ;;  %vm1975_vm15 = vcmp.lt.s32.totalorder %v4214_v47, 3  ;;  %v1851_v6 = vadd.f32 %v1847_v35, %v1794_v11  ;;  %v1913_v35 = vpop.permute.xlu1 %1912  ;;  %v1915_v59 = vpop.permute.xlu0 %1914  ;;  %2866 = vrot.lane.b32.xlu0 %v4177_v17, %s3903_s11 }
 0x5a5   :  { %v1882_v9 = vmul.f32 %v9067_v60, %v1865_v7  ;;  %v1885_v58 = vmul.f32 %v9067_v60, %v1862_v20  ;;  %v6699_v24 = vsel %vm6676_vm7, 1.0, %v8515_v37  ;;  %v1877_v52 = vmul.f32 %v9069_v42, %v1865_v7 }
 0x5a6   :  { %9076 = vst [vmem:[#allocation20_spill] sm:$0xff] %v6699_v24  ;;  %v1903_v50 = vmul.f32 %v1899_v43, %v9077_v23  ;;  %v1900_v40 = vadd.f32 %v1892_v3, %v1879_v4  ;;  %v1880_v11 = vmul.f32 %v9069_v42, %v1862_v20  ;;  %v1921_v60 = vsel %vm1918_vm6, %v1911_v1, %v1913_v35  ;;  %v9080_v42 = vld [vmem:[#allocation64_spill] sm:$0xff] }
 0x5a7   :  { %v1890_v19 = vrot.slane %v1882_v9, 1  ;;  %v1893_v63 = vrot.slane %v1885_v58, 1  ;;  %v723_v30 = vadd.s32 1, %v9078_v61  ;;  %v1849_v29 = vadd.f32 %v1845_v28, %v1792_v33  ;;  %v9081_v33 = vld [vmem:[#allocation69_spill] sm:$0xff]  ;;  %2868 = vrot.lane.b32.xlu1 %v4181_v26, %s3903_s11 }
 0x5a8   :  { %v1852_v32 = vadd.f32 %v1848_v10, %v1795_v53  ;;  %v1940_v5 = vmul.f32 %v9079_v8, %v1921_v60  ;;  %v6711_v3 = vstv %s6663_s7  ;;  %v1904_v4 = vmul.f32 %v1900_v40, %v9080_v42  ;;  %v1917_v9 = vpop.permute.xlu1 %1916  ;;  %2870 = vrot.lane.b32.xlu0 %v4184_v27, %s3903_s11  ;;  %s7458_s7 = sld [smem:[#allocation2 + $0x24]] }
 0x5a9   :  { %v1898_v20 = vadd.f32 %v1890_v19, %v1877_v52  ;;  %v1901_v7 = vadd.f32 %v1893_v63, %v1880_v11  ;;  %v1920_v43 = vsel %vm1918_vm6, %v1913_v35, %v1915_v59  ;;  %v1935_v53 = vmul.f32 %v9081_v33, %v1921_v60  ;;  %v1968_v11 = vpop.permute.xlu0 %1967  ;;  %v9082_v35 = vld [vmem:[#allocation67_spill] sm:$0xff]  ;;  %v9083_v63 = vld [vmem:[#allocation68_spill] sm:$0xff] }
 0x5aa   :  { %v1948_v28 = vrot.slane %v1940_v5, 1  ;;  %v1941_v10 = vmul.f32 %v9079_v8, %v1920_v43  ;;  %v6721_v58 = vstv %s6680_s9  ;;  %v1907_v23 = vadd.f32 %v1903_v50, %v1850_v34  ;;  %s7514_s9 = sld [smem:[#allocation2 + $0x25]] }
 0x5ab   :  { %v1919_v40 = vsel %vm1918_vm6, %v1915_v59, %v1917_v9  ;;  %v1922_v52 = vsel %vm1918_vm6, %v1917_v9, %v1911_v1  ;;  %vm727_vm2 = vcmp.ge.s32.totalorder %v723_v30, 0  ;;  %v1902_v19 = vmul.f32 %v1898_v20, %v9082_v35  ;;  %v9084_v20 = vld [vmem:[#allocation76_spill] sm:$0xff]  ;;  %2872 = vrot.lane.b32.xlu1 %v4189_v45, %s3903_s11  ;;  %s7561_s11 = sld [smem:[#allocation2 + $0x57]] }
 0x5ac   :  { %v1905_v42 = vmul.f32 %v1901_v7, %v9083_v63  ;;  %v1956_v60 = vadd.f32 %v1948_v28, %v1935_v53  ;;  %v1949_v5 = vrot.slane %v1941_v10, 1  ;;  %vm2032_vm1 = vcmp.lt.s32.totalorder %v4214_v47, 2  ;;  %v1970_v28 = vpop.permute.xlu1 %1969  ;;  %2923 = vrot.lane.b32.xlu0 %v4177_v17, %s3904_s12 }
 0x5ad   :  { %v1908_v34 = vadd.f32 %v1904_v4, %v1851_v6  ;;  %v1936_v50 = vmul.f32 %v9081_v33, %v1920_v43  ;;  %v1939_v59 = vmul.f32 %v9079_v8, %v1922_v52  ;;  %v1942_v1 = vmul.f32 %v9079_v8, %v1919_v40  ;;  %v1972_v43 = vpop.permute.xlu0 %1971 }
 0x5ae   :  { %v1960_v9 = vmul.f32 %v1956_v60, %v9084_v20  ;;  %v1934_v7 = vmul.f32 %v9081_v33, %v1922_v52  ;;  %v1937_v53 = vmul.f32 %v9081_v33, %v1919_v40  ;;  %vm731_vm10 = vcmp.le.s32.totalorder %v723_v30, 15  ;;  %v9087_v20 = vld [vmem:[#allocation79_spill] sm:$0xff]  ;;  %v9088_v33 = vld [vmem:[#allocation17_spill] sm:$0xff] }
 0x5af   :  { %v1957_v10 = vadd.f32 %v1949_v5, %v1936_v50  ;;  %v1947_v35 = vrot.slane %v1939_v59, 1  ;;  %v1950_v6 = vrot.slane %v1942_v1, 1  ;;  %v1978_v4 = vsel %vm1975_vm15, %v1968_v11, %v1970_v28  ;;  %vm6743_vm3 = vmand %vm727_vm2, %vm731_vm10  ;;  %v9092_v30 = vld [vmem:[#allocation15_spill] sm:$0xff]  ;;  %v9094_v1 = vld [vmem:[#allocation74_spill] sm:$0xff]  ;;  %2925 = vrot.lane.b32.xlu1 %v4181_v26, %s3904_s12 }
 0x5b0   :  { %v1906_v63 = vadd.f32 %v1902_v19, %v1849_v29  ;;  %v1909_v60 = vadd.f32 %v1905_v42, %v1852_v32  ;;  %v1997_v52 = vmul.f32 %v9087_v20, %v1978_v4  ;;  %vm9089_vm11 = vcmp.ge.s32.totalorder %v9088_v33, 0  ;;  %v9093_v29 = vld [vmem:[#allocation16_spill] sm:$0xff]  ;;  %v1974_v24 = vpop.permute.xlu1 %1973  ;;  %2927 = vrot.lane.b32.xlu0 %v4184_v27, %s3904_s12 }
 0x5b1   :  { %vm6754_vm12 = vmand %vm6743_vm3, %vm9089_vm11  ;;  %v724_v5 = vadd.s32 1, %v9092_v30  ;;  %v1955_v50 = vadd.f32 %v1947_v35, %v1934_v7  ;;  %v1958_v59 = vadd.f32 %v1950_v6, %v1937_v53  ;;  %v1977_v32 = vsel %vm1975_vm15, %v1970_v28, %v1972_v43  ;;  %v2025_v28 = vpop.permute.xlu0 %2024 }
 0x5b2   :  { %v725_v19 = vadd.s32 1, %v9093_v29  ;;  %v1964_v42 = vadd.f32 %v1960_v9, %v1907_v23  ;;  %v1992_v33 = vmul.f32 %v9094_v1, %v1978_v4  ;;  %v2005_v61 = vrot.slane %v1997_v52, 1  ;;  %v9097_v23 = vld [vmem:[#allocation71_spill] sm:$0xff] }
 0x5b3   :  { %v1998_v13 = vmul.f32 %v9087_v20, %v1977_v32  ;;  %v1961_v30 = vmul.f32 %v1957_v10, %v9095_v36  ;;  %v1976_v7 = vsel %vm1975_vm15, %v1972_v43, %v1974_v24  ;;  %v1979_v53 = vsel %vm1975_vm15, %v1974_v24, %v1968_v11  ;;  %v9098_v36 = vld [vmem:[#allocation73_spill] sm:$0xff]  ;;  %2929 = vrot.lane.b32.xlu1 %v4189_v45, %s3904_s12  ;;  %s7581_s12 = sld [smem:[#allocation2 + $0x26]] }
 0x5b4   :  { %v6774_v35 = vsel %vm6754_vm12, 1.0, %v8515_v37  ;;  %v1959_v9 = vmul.f32 %v1955_v50, %v9097_v23  ;;  %v2013_v6 = vadd.f32 %v2005_v61, %v1992_v33  ;;  %v1993_v4 = vmul.f32 %v9094_v1, %v1977_v32  ;;  %2980 = vrot.lane.b32.xlu0 %v4177_v17, %s3905_s14 }
 0x5b5   :  { %9096 = vst [vmem:[#allocation19_spill] sm:$0xff] %v6774_v35  ;;  %v2006_v52 = vrot.slane %v1998_v13, 1  ;;  %vm2089_vm4 = vcmp.lt.s32.totalorder %v4214_v47, 1  ;;  %v1962_v10 = vmul.f32 %v1958_v59, %v9098_v36  ;;  %v1991_v24 = vmul.f32 %v9094_v1, %v1979_v53  ;;  %v2027_v13 = vpop.permute.xlu1 %2026  ;;  %v2029_v32 = vpop.permute.xlu0 %2028 }
 0x5b6   :  { %v1996_v11 = vmul.f32 %v9087_v20, %v1979_v53  ;;  %v1999_v43 = vmul.f32 %v9087_v20, %v1976_v7  ;;  %v1994_v33 = vmul.f32 %v9094_v1, %v1976_v7  ;;  %vm728_vm14 = vcmp.ge.s32.totalorder %v724_v5, 0  ;;  %v9099_v53 = vld [vmem:[#allocation81_spill] sm:$0xff]  ;;  %v9100_v20 = vld [vmem:[#allocation52_spill] sm:$0xff] }
 0x5b7   :  { %v2014_v61 = vadd.f32 %v2006_v52, %v1993_v4  ;;  %vm729_vm9 = vcmp.ge.s32.totalorder %v725_v19, 0  ;;  %v2035_v59 = vsel %vm2032_vm1, %v2025_v28, %v2027_v13  ;;  %vm732_vm6 = vcmp.le.s32.totalorder %v724_v5, 15  ;;  %2982 = vrot.lane.b32.xlu1 %v4181_v26, %s3905_s14 }
 0x5b8   :  { %v2004_v40 = vrot.slane %v1996_v11, 1  ;;  %v2007_v50 = vrot.slane %v1999_v43, 1  ;;  %v1965_v23 = vadd.f32 %v1961_v30, %v1908_v34  ;;  %v2017_v36 = vmul.f32 %v2013_v6, %v9099_v53  ;;  %vm6800_vm0 = vmand %vm728_vm14, %vm732_vm6  ;;  %v9110_v53 = vld [vmem:[#allocation27_spill] sm:$0xff]  ;;  %2984 = vrot.lane.b32.xlu0 %v4184_v27, %s3905_s14 }
 0x5b9   :  { %v2018_v29 = vmul.f32 %v2014_v61, %v9100_v20  ;;  %v2054_v35 = vmul.f32 %v6126_v12, %v2035_v59  ;;  %v2034_v4 = vsel %vm2032_vm1, %v2027_v13, %v2029_v32  ;;  %vm733_vm8 = vcmp.le.s32.totalorder %v725_v19, 15  ;;  %v2031_v11 = vpop.permute.xlu1 %2030  ;;  %v9112_v20 = vld [vmem:[#allocation77_spill] sm:$0xff] }
 0x5ba   :  { %v2012_v1 = vadd.f32 %v2004_v40, %v1991_v24  ;;  %v2015_v7 = vadd.f32 %v2007_v50, %v1994_v33  ;;  %v1963_v30 = vadd.f32 %v1959_v9, %v1906_v63  ;;  %v2049_v6 = vmul.f32 %v6116_v25, %v2035_v59  ;;  %vm6807_vm13 = vmand %vm729_vm9, %vm733_vm8  ;;  %v9105_v33 = vld [vmem:[#allocation75_spill] sm:$0xff]  ;;  %v2082_v9 = vpop.permute.xlu0 %2081 }
 0x5bb   :  { %v2062_v52 = vrot.slane %v2054_v35, 1  ;;  %v2055_v24 = vmul.f32 %v6126_v12, %v2034_v4  ;;  %v1966_v61 = vadd.f32 %v1962_v10, %v1909_v60  ;;  %v2033_v5 = vsel %vm2032_vm1, %v2029_v32, %v2031_v11  ;;  %v9106_v60 = vld [vmem:[#allocation25_spill] sm:$0xff]  ;;  %2986 = vrot.lane.b32.xlu1 %v4189_v45, %s3905_s14  ;;  %s3705_s14 = sld [smem:[#allocation2 + $0x27]] }
 0x5bc   :  { %v2016_v13 = vmul.f32 %v2012_v1, %v9105_v33  ;;  %v2036_v63 = vsel %vm2032_vm1, %v2031_v11, %v2025_v28  ;;  %v2019_v35 = vmul.f32 %v2015_v7, %v6091_v55  ;;  %v2050_v50 = vmul.f32 %v6116_v25, %v2034_v4  ;;  %3037 = vrot.lane.b32.xlu0 %v4177_v17, %s3906_s16 }
 0x5bd   :  { %v2070_v40 = vadd.f32 %v2062_v52, %v2049_v6  ;;  %v2063_v19 = vrot.slane %v2055_v24, 1  ;;  %vm2190_vm7 = vcmp.lt.s32.totalorder %v4214_v47, 127  ;;  %vm9107_vm15 = vcmp.ge.s32.totalorder %v9106_v60, 0 }
 0x5be   :  { %vm6825_vm2 = vmand %vm6800_vm0, %vm9107_vm15  ;;  %v2021_v28 = vadd.f32 %v2017_v36, %v1964_v42  ;;  %v2022_v59 = vadd.f32 %v2018_v29, %v1965_v23  ;;  %v2053_v55 = vmul.f32 %v6126_v12, %v2036_v63  ;;  %v2056_v32 = vmul.f32 %v6126_v12, %v2033_v5  ;;  %v2084_v29 = vpop.permute.xlu1 %2083  ;;  %v2086_v52 = vpop.permute.xlu0 %2085 }
 0x5bf   :  { %vm9111_vm1 = vcmp.ge.s32.totalorder %v9110_v53, 0  ;;  %v2074_v1 = vmul.f32 %v2070_v40, %v9112_v20  ;;  %v2071_v7 = vadd.f32 %v2063_v19, %v2050_v50  ;;  %v2048_v4 = vmul.f32 %v6116_v25, %v2036_v63  ;;  %v9113_v63 = vld [vmem:[#allocation30_spill] sm:$0xff]  ;;  %3039 = vrot.lane.b32.xlu1 %v4181_v26, %s3906_s16 }
 0x5c0   :  { %vm2369_vm10 = vmand %vm6807_vm13, %vm9111_vm1  ;;  %v2051_v42 = vmul.f32 %v6116_v25, %v2033_v5  ;;  %v2020_v23 = vadd.f32 %v2016_v13, %v1963_v30  ;;  %v2061_v36 = vrot.slane %v2053_v55, 1  ;;  %v2064_v6 = vrot.slane %v2056_v32, 1  ;;  %v9117_v55 = vld [vmem:[#allocation78_spill] sm:$0xff]  ;;  %3041 = vrot.lane.b32.xlu0 %v4184_v27, %s3906_s16 }
 0x5c1   :  { %v2092_v12 = vsel %vm2089_vm4, %v2082_v9, %v2084_v29  ;;  %v2023_v24 = vadd.f32 %v2019_v35, %v1966_v61  ;;  %v6848_v33 = vsel %vm6825_vm2, 1.0, %v8515_v37  ;;  %v6851_v25 = vsel %vm2369_vm10, 1.0, %v8515_v37 }
 0x5c2   :  { %v2111_v11 = vmul.f32 %v6234_v46, %v2092_v12  ;;  %v2075_v30 = vmul.f32 %v2071_v7, %v6173_v41  ;;  %v2069_v13 = vadd.f32 %v2061_v36, %v2048_v4  ;;  %v2072_v5 = vadd.f32 %v2064_v6, %v2051_v42  ;;  %v2088_v10 = vpop.permute.xlu1 %2087  ;;  %v2183_v42 = vpop.permute.xlu0 %2182 }
 0x5c3   :  { %v2091_v61 = vsel %vm2089_vm4, %v2084_v29, %v2086_v52  ;;  %vm9114_vm11 = vcmp.ge.s32.totalorder %v9113_v63, 0  ;;  %v2078_v41 = vadd.f32 %v2074_v1, %v2021_v28  ;;  %v2106_v40 = vmul.f32 %v6231_v21, %v2092_v12  ;;  %3043 = vrot.lane.b32.xlu1 %v4189_v45, %s3906_s16  ;;  %s7631_s16 = sld [smem:[#allocation2 + $0x28]] }
 0x5c4   :  { %vm6864_vm12 = vmand %vm6655_vm5, %vm9114_vm11  ;;  %v2119_v50 = vrot.slane %v2111_v11, 1  ;;  %v2112_v19 = vmul.f32 %v6234_v46, %v2091_v61  ;;  %v2073_v32 = vmul.f32 %v2069_v13, %v9117_v55  ;;  %v2076_v20 = vmul.f32 %v2072_v5, %v6196_v56  ;;  %v9118_v11 = vld [vmem:[#allocation18_spill] sm:$0xff]  ;;  %3094 = vrot.lane.b32.xlu0 %v4177_v17, %s3907_s17 }
 0x5c5   :  { %v2090_v7 = vsel %vm2089_vm4, %v2086_v52, %v2088_v10  ;;  %v2093_v4 = vsel %vm2089_vm4, %v2088_v10, %v2082_v9  ;;  %v2107_v28 = vmul.f32 %v6231_v21, %v2091_v61  ;;  %vm2247_vm14 = vcmp.lt.s32.totalorder %v4214_v47, 126 }
 0x5c6   :  { %v2127_v29 = vadd.f32 %v2119_v50, %v2106_v40  ;;  %v2120_v1 = vrot.slane %v2112_v19, 1  ;;  %v6885_v56 = vsel %vm6864_vm12, 1.0, %v8515_v37  ;;  %v2079_v36 = vadd.f32 %v2075_v30, %v2022_v59  ;;  %v2185_v35 = vpop.permute.xlu1 %2184  ;;  %v2187_v19 = vpop.permute.xlu0 %2186 }
 0x5c7   :  { %v2105_v6 = vmul.f32 %v6231_v21, %v2093_v4  ;;  %v2110_v9 = vmul.f32 %v6234_v46, %v2093_v4  ;;  %v2113_v12 = vmul.f32 %v6234_v46, %v2090_v7  ;;  %v2077_v52 = vadd.f32 %v2073_v32, %v2020_v23  ;;  %v9119_v46 = vld [vmem:[#allocation28_spill] sm:$0xff]  ;;  %3096 = vrot.lane.b32.xlu1 %v4181_v26, %s3907_s17 }
 0x5c8   :  { %v2131_v13 = vmul.f32 %v2127_v29, %v9118_v11  ;;  %v2128_v5 = vadd.f32 %v2120_v1, %v2107_v28  ;;  %v2108_v61 = vmul.f32 %v6231_v21, %v2090_v7  ;;  %v2080_v40 = vadd.f32 %v2076_v20, %v2023_v24  ;;  %3098 = vrot.lane.b32.xlu0 %v4184_v27, %s3907_s17 }
 0x5c9   :  { %v2118_v59 = vrot.slane %v2110_v9, 1  ;;  %v2121_v30 = vrot.slane %v2113_v12, 1  ;;  %v2193_v50 = vsel %vm2190_vm7, %v2183_v42, %v2185_v35  ;;  %vm9120_vm4 = vcmp.ge.s32.totalorder %v9119_v46, 0 }
 0x5ca   :  { %vm6900_vm9 = vmand %vm6743_vm3, %vm9120_vm4  ;;  %v2135_v10 = vadd.f32 %v2131_v13, %v2078_v41  ;;  %v2132_v21 = vmul.f32 %v2128_v5, %v6260_v38  ;;  %v2211_v24 = vmul.f32 %v6350_v16, %v2193_v50  ;;  %v6909_v55 = vstv %s6853_s13  ;;  %v9123_v41 = vld [vmem:[#allocation29_spill] sm:$0xff]  ;;  %v9130_v38 = vld [vmem:[#allocation31_spill] sm:$0xff]  ;;  %s3706_s13 = sld [smem:[#allocation2 + $0x58]] }
 0x5cb   :  { %v2126_v32 = vadd.f32 %v2118_v59, %v2105_v6  ;;  %v2129_v20 = vadd.f32 %v2121_v30, %v2108_v61  ;;  %v2192_v7 = vsel %vm2190_vm7, %v2185_v35, %v2187_v19  ;;  %v6916_v4 = vstv %s6868_s15  ;;  %v2189_v6 = vpop.permute.xlu1 %2188  ;;  %v2240_v61 = vpop.permute.xlu0 %2239  ;;  %v9127_v35 = vld [vmem:[#allocation61_spill] sm:$0xff]  ;;  %3100 = vrot.lane.b32.xlu1 %v4189_v45, %s3907_s17  ;;  %s7621_s15 = sld [smem:[#allocation2 + $0x59]]  ;;  %s7690_s17 = sld [smem:[#allocation2 + $0x5a]] }
 0x5cc   :  { %vm9124_vm6 = vcmp.ge.s32.totalorder %v9123_v41, 0  ;;  %v2136_v29 = vadd.f32 %v2132_v21, %v2079_v36  ;;  %v2206_v28 = vmul.f32 %v6347_v44, %v2193_v50  ;;  %v2219_v1 = vrot.slane %v2211_v24, 1  ;;  %v9129_v21 = vld [vmem:[#allocation62_spill] sm:$0xff]  ;;  %3151 = vrot.lane.b32.xlu0 %v4177_v17, %s3908_s19 }
 0x5cd   :  { %vm6922_vm8 = vmand %vm6800_vm0, %vm9124_vm6  ;;  %v6930_v9 = vsel %vm6900_vm9, 1.0, %v8515_v37  ;;  %v2130_v12 = vmul.f32 %v2126_v32, %v6293_v54  ;;  %v2133_v11 = vmul.f32 %v2129_v20, %v6307_v49  ;;  %v2212_v13 = vmul.f32 %v6350_v16, %v2192_v7 }
 0x5ce   :  { %v2191_v5 = vsel %vm2190_vm7, %v2187_v19, %v2189_v6  ;;  %v2227_v36 = vadd.f32 %v2219_v1, %v2206_v28  ;;  %v6938_v59 = vadd.f32 %v9127_v35, %v2135_v10  ;;  %v2194_v30 = vsel %vm2190_vm7, %v2189_v6, %v2183_v42  ;;  %v9128_v10 = vld [vmem:[#allocation80_spill] sm:$0xff] }
 0x5cf   :  { %vm2304_vm15 = vcmp.lt.s32.totalorder %v4214_v47, 125  ;;  %v6948_v54 = vsel %vm6922_vm8, 1.0, %v8515_v37  ;;  %v2134_v49 = vadd.f32 %v2130_v12, %v2077_v52  ;;  %v2137_v50 = vadd.f32 %v2133_v11, %v2080_v40  ;;  %v2242_v28 = vpop.permute.xlu1 %2241  ;;  %v9134_v40 = vld [vmem:[#allocation60_spill] sm:$0xff]  ;;  %v2244_v12 = vpop.permute.xlu0 %2243  ;;  %v9136_v52 = vld [vmem:[#allocation82_spill] sm:$0xff]  ;;  %3153 = vrot.lane.b32.xlu1 %v4181_v26, %s3908_s19 }
 0x5d0   :  { %v2207_v19 = vmul.f32 %v6347_v44, %v2192_v7  ;;  %v2220_v23 = vrot.slane %v2212_v13, 1  ;;  %v2231_v42 = vmul.f32 %v2227_v36, %v9128_v10  ;;  %v2180_v24 = vadd.f32 %v9129_v21, %v2136_v29  ;;  %v9135_v10 = vld [vmem:[#allocation66_spill] sm:$0xff]  ;;  %3155 = vrot.lane.b32.xlu0 %v4184_v27, %s3908_s19 }
 0x5d1   :  { %v2213_v32 = vmul.f32 %v6350_v16, %v2191_v5  ;;  %v2214_v20 = vmul.f32 %v6350_v16, %v2194_v30  ;;  %vm9131_vm7 = vcmp.ge.s32.totalorder %v9130_v38, 0  ;;  %v2178_v7 = vadd.f32 %v9134_v40, %v2134_v49 }
 0x5d2   :  { %vm6961_vm2 = vmand %vm6807_vm13, %vm9131_vm7  ;;  %v2228_v1 = vadd.f32 %v2220_v23, %v2207_v19  ;;  %v2208_v6 = vmul.f32 %v6347_v44, %v2191_v5  ;;  %v2250_v29 = vsel %vm2247_vm14, %v2240_v61, %v2242_v28  ;;  %v2209_v16 = vmul.f32 %v6347_v44, %v2194_v30 }
 0x5d3   :  { %v2221_v11 = vrot.slane %v2213_v32, 1  ;;  %v2222_v13 = vrot.slane %v2214_v20, 1  ;;  %v2268_v36 = vmul.f32 %v6477_v18, %v2250_v29  ;;  %v2235_v35 = vadd.f32 %v2231_v42, %v2178_v7  ;;  %v2246_v42 = vpop.permute.xlu1 %2245  ;;  %v2297_v40 = vpop.permute.xlu0 %2296  ;;  %3157 = vrot.lane.b32.xlu1 %v4189_v45, %s3908_s19  ;;  %s7800_s19 = sld [smem:[#allocation2 + $0x2a]] }
 0x5d4   :  { %v2181_v21 = vadd.f32 %v9135_v10, %v2137_v50  ;;  %v2249_v49 = vsel %vm2247_vm14, %v2242_v28, %v2244_v12  ;;  %v6981_v44 = vsel %vm6961_vm2, 1.0, %v8515_v37  ;;  %v2263_v19 = vmul.f32 %v6455_v31, %v2250_v29  ;;  %v9137_v10 = vld [vmem:[#allocation83_spill] sm:$0xff]  ;;  %3208 = vrot.lane.b32.xlu0 %v4177_v17, %s3909_s1 }
 0x5d5   :  { %v2229_v5 = vadd.f32 %v2221_v11, %v2208_v6  ;;  %v2230_v30 = vadd.f32 %v2222_v13, %v2209_v16  ;;  %v2276_v23 = vrot.slane %v2268_v36, 1  ;;  %v2232_v50 = vmul.f32 %v2228_v1, %v6387_v48  ;;  %v9138_v36 = vld [vmem:[#allocation84_spill] sm:$0xff] }
 0x5d6   :  { %v2269_v32 = vmul.f32 %v6477_v18, %v2249_v49  ;;  %v2248_v20 = vsel %vm2247_vm14, %v2244_v12, %v2246_v42  ;;  %v2251_v28 = vsel %vm2247_vm14, %v2246_v42, %v2240_v61  ;;  %v2264_v29 = vmul.f32 %v6455_v31, %v2249_v49 }
 0x5d7   :  { %v2233_v7 = vmul.f32 %v2229_v5, %v9136_v52  ;;  %v2234_v6 = vmul.f32 %v2230_v30, %v9137_v10  ;;  %v2284_v16 = vadd.f32 %v2276_v23, %v2263_v19  ;;  %vm2361_vm1 = vcmp.lt.s32.totalorder %v4214_v47, 115  ;;  %v2299_v30 = vpop.permute.xlu1 %2298  ;;  %v9139_v19 = vld [vmem:[#allocation34_spill] sm:$0xff]  ;;  %3210 = vrot.lane.b32.xlu1 %v4181_v26, %s3909_s1 }
 0x5d8   :  { %v2277_v48 = vrot.slane %v2269_v32, 1  ;;  %v2265_v1 = vmul.f32 %v6455_v31, %v2248_v20  ;;  %v2270_v61 = vmul.f32 %v6477_v18, %v2248_v20  ;;  %v2271_v12 = vmul.f32 %v6477_v18, %v2251_v28  ;;  %3212 = vrot.lane.b32.xlu0 %v4184_v27, %s3909_s1 }
 0x5d9   :  { %v2237_v11 = vadd.f32 %v2233_v7, %v2180_v24  ;;  %v2238_v13 = vadd.f32 %v2234_v6, %v2181_v21  ;;  %v2288_v49 = vmul.f32 %v2284_v16, %v9138_v36  ;;  %v2266_v5 = vmul.f32 %v6455_v31, %v2251_v28  ;;  %v2301_v21 = vpop.permute.xlu0 %2300 }
 0x5da   :  { %vm9140_vm10 = vcmp.ge.s32.totalorder %v9139_v19, 0  ;;  %v2285_v18 = vadd.f32 %v2277_v48, %v2264_v29  ;;  %v2278_v42 = vrot.slane %v2270_v61, 1  ;;  %v2279_v32 = vrot.slane %v2271_v12, 1 }
 0x5db   :  { %vm7011_vm11 = vmand %vm6655_vm5, %vm9140_vm10  ;;  %v2307_v24 = vsel %vm2304_vm15, %v2297_v40, %v2299_v30  ;;  %v2236_v20 = vadd.f32 %v2232_v50, %v6938_v59  ;;  %v2292_v52 = vadd.f32 %v2288_v49, %v2235_v35  ;;  %v2306_v28 = vsel %vm2304_vm15, %v2299_v30, %v2301_v21  ;;  %3214 = vrot.lane.b32.xlu1 %v4189_v45, %s3909_s1  ;;  %s7865_s1 = sld [smem:[#allocation2 + $0x2b]] }
 0x5dc   :  { %v2325_v31 = vmul.f32 %v6579_v57, %v2307_v24  ;;  %v2289_v7 = vmul.f32 %v2285_v18, %v6498_v51  ;;  %v2286_v10 = vadd.f32 %v2278_v42, %v2265_v1  ;;  %v2287_v6 = vadd.f32 %v2279_v32, %v2266_v5  ;;  %v2303_v51 = vpop.permute.xlu1 %2302  ;;  %v9143_v18 = vld [vmem:[#allocation32_spill] sm:$0xff]  ;;  %3265 = vrot.lane.b32.xlu0 %v4177_v17, %s3910_s21 }
 0x5dd   :  { %v7029_v59 = vsel %vm7011_vm11, 1.0, %v8515_v37  ;;  %v2320_v35 = vmul.f32 %v6565_v39, %v2307_v24  ;;  %v2321_v16 = vmul.f32 %v6565_v39, %v2306_v28  ;;  %v2326_v29 = vmul.f32 %v6579_v57, %v2306_v28  ;;  %v2354_v36 = vpop.permute.xlu0 %2353  ;;  %v9147_v24 = vld [vmem:[#allocation33_spill] sm:$0xff] }
 0x5de   :  { %v2333_v50 = vrot.slane %v2325_v31, 1  ;;  %v2293_v48 = vadd.f32 %v2289_v7, %v2236_v20  ;;  %v2290_v1 = vmul.f32 %v2286_v10, %v6522_v22  ;;  %v2291_v61 = vmul.f32 %v2287_v6, %v6530_v2  ;;  %v9151_v7 = vld [vmem:[#allocation35_spill] sm:$0xff] }
 0x5df   :  { %v2305_v12 = vsel %vm2304_vm15, %v2301_v21, %v2303_v51  ;;  %v2334_v5 = vrot.slane %v2326_v29, 1  ;;  %v2308_v30 = vsel %vm2304_vm15, %v2303_v51, %v2297_v40  ;;  %vm2418_vm12 = vcmp.lt.s32.totalorder %v4214_v47, 114  ;;  %3267 = vrot.lane.b32.xlu1 %v4181_v26, %s3910_s21 }
 0x5e0   :  { %v2341_v49 = vadd.f32 %v2333_v50, %v2320_v35  ;;  %v7044_v23 = vstv %s6996_s18  ;;  %vm9144_vm14 = vcmp.ge.s32.totalorder %v9143_v18, 0  ;;  %v2294_v2 = vadd.f32 %v2290_v1, %v2237_v11  ;;  %v2356_v28 = vpop.permute.xlu1 %2355  ;;  %3269 = vrot.lane.b32.xlu0 %v4184_v27, %s3910_s21  ;;  %s7738_s18 = sld [smem:[#allocation2 + $0x29]] }
 0x5e1   :  { %vm7050_vm4 = vmand %vm6743_vm3, %vm9144_vm14  ;;  %v2295_v42 = vadd.f32 %v2291_v61, %v2238_v13  ;;  %v2327_v32 = vmul.f32 %v6579_v57, %v2305_v12  ;;  %v7058_v40 = vstv %s7003_s0  ;;  %vm9148_vm9 = vcmp.ge.s32.totalorder %v9147_v24, 0  ;;  %v2358_v50 = vpop.permute.xlu0 %2357  ;;  %s7773_s0 = sld [smem:[#allocation2 + $0x5b]] }
 0x5e2   :  { %vm7064_vm6 = vmand %vm6800_vm0, %vm9148_vm9  ;;  %v2345_v20 = vmul.f32 %v2341_v49, %v6554_v14  ;;  %v2342_v31 = vadd.f32 %v2334_v5, %v2321_v16  ;;  %v2322_v11 = vmul.f32 %v6565_v39, %v2305_v12  ;;  %v2328_v13 = vmul.f32 %v6579_v57, %v2308_v30 }
 0x5e3   :  { %vm9152_vm8 = vcmp.ge.s32.totalorder %v9151_v7, 0  ;;  %v2323_v6 = vmul.f32 %v6565_v39, %v2308_v30  ;;  %v2335_v35 = vrot.slane %v2327_v32, 1  ;;  %v2364_v14 = vsel %vm2361_vm1, %v2354_v36, %v2356_v28  ;;  %3271 = vrot.lane.b32.xlu1 %v4189_v45, %s3910_s21  ;;  %s7932_s21 = sld [smem:[#allocation2 + $0x5d]] }
 0x5e4   :  { %vm7075_vm15 = vmand %vm6807_vm13, %vm9152_vm8  ;;  %v7085_v57 = vsel %vm7050_vm4, 1.0, %v8515_v37  ;;  %v2349_v16 = vadd.f32 %v2345_v20, %v2292_v52  ;;  %v2346_v29 = vmul.f32 %v2342_v31, %v6608_v62  ;;  %v2336_v51 = vrot.slane %v2328_v13, 1  ;;  %v2360_v22 = vpop.permute.xlu1 %2359  ;;  %v9155_v13 = vld [vmem:[#allocation92_spill] sm:$0xff]  ;;  %3322 = vrot.lane.b32.xlu0 %v4177_v17, %s3911_s24 }
 0x5e5   :  { %v7093_v39 = vsel %vm7064_vm6, 1.0, %v8515_v37  ;;  %v2343_v1 = vadd.f32 %v2335_v35, %v2322_v11  ;;  %v2382_v61 = vmul.f32 %v6721_v58, %v2364_v14  ;;  %v2363_v12 = vsel %vm2361_vm1, %v2356_v28, %v2358_v50  ;;  %v2411_v11 = vpop.permute.xlu0 %2410 }
 0x5e6   :  { %v7105_v62 = vsel %vm7075_vm15, 1.0, %v8515_v37  ;;  %v2350_v52 = vadd.f32 %v2346_v29, %v2293_v48  ;;  %v2344_v49 = vadd.f32 %v2336_v51, %v2323_v6  ;;  %v2377_v5 = vmul.f32 %v6711_v3, %v2364_v14 }
 0x5e7   :  { %v2383_v30 = vmul.f32 %v6721_v58, %v2363_v12  ;;  %v2347_v32 = vmul.f32 %v2343_v1, %v6625_v0  ;;  %v2390_v21 = vrot.slane %v2382_v61, 1  ;;  %v2362_v20 = vsel %vm2361_vm1, %v2358_v50, %v2360_v22  ;;  %3324 = vrot.lane.b32.xlu1 %v4181_v26, %s3911_s24 }
 0x5e8   :  { %v2365_v31 = vsel %vm2361_vm1, %v2360_v22, %v2354_v36  ;;  %v2348_v28 = vmul.f32 %v2344_v49, %v9155_v13  ;;  %v2378_v48 = vmul.f32 %v6711_v3, %v2363_v12  ;;  %v2379_v6 = vmul.f32 %v6711_v3, %v2362_v20  ;;  %v2413_v1 = vpop.permute.xlu1 %2412  ;;  %v9157_v22 = vld [vmem:[#allocation19_spill] sm:$0xff]  ;;  %3326 = vrot.lane.b32.xlu0 %v4184_v27, %s3911_s24 }
 0x5e9   :  { %v2391_v10 = vrot.slane %v2383_v30, 1  ;;  %vm2475_vm7 = vcmp.lt.s32.totalorder %v4214_v47, 113  ;;  %v2351_v0 = vadd.f32 %v2347_v32, %v2294_v2  ;;  %v2398_v35 = vadd.f32 %v2390_v21, %v2377_v5  ;;  %v9156_v2 = vld [vmem:[#allocation20_spill] sm:$0xff]  ;;  %v2415_v30 = vpop.permute.xlu0 %2414 }
 0x5ea   :  { %v2384_v14 = vmul.f32 %v6721_v58, %v2362_v20  ;;  %v2385_v36 = vmul.f32 %v6721_v58, %v2365_v31  ;;  %v2352_v50 = vadd.f32 %v2348_v28, %v2295_v42  ;;  %v2380_v51 = vmul.f32 %v6711_v3, %v2365_v31 }
 0x5eb   :  { %v2399_v29 = vadd.f32 %v2391_v10, %v2378_v48  ;;  %v7130_v61 = vsel %vm6655_vm5, 1.0, %v8515_v37  ;;  %v2402_v12 = vmul.f32 %v2398_v35, %v9156_v2  ;;  %v2421_v58 = vsel %vm2418_vm12, %v2411_v11, %v2413_v1  ;;  %3328 = vrot.lane.b32.xlu1 %v4189_v45, %s3911_s24  ;;  %s8060_s24 = sld [smem:[#allocation2 + $0x5f]] }
 0x5ec   :  { %v2392_v49 = vrot.slane %v2384_v14, 1  ;;  %v2393_v5 = vrot.slane %v2385_v36, 1  ;;  %v2439_v42 = vmul.f32 %v6916_v4, %v2421_v58  ;;  %v2420_v3 = vsel %vm2418_vm12, %v2413_v1, %v2415_v30  ;;  %v2417_v36 = vpop.permute.xlu1 %2416  ;;  %3379 = vrot.lane.b32.xlu0 %v4177_v17, %s3912_s25 }
 0x5ed   :  { %v2403_v32 = vmul.f32 %v2399_v29, %v9157_v22  ;;  %v7142_v21 = vstv %s7095_s20  ;;  %v2406_v20 = vadd.f32 %v2402_v12, %v2349_v16  ;;  %v2434_v28 = vmul.f32 %v6909_v55, %v2421_v58  ;;  %v2468_v1 = vpop.permute.xlu0 %2467  ;;  %s7853_s20 = sld [smem:[#allocation2 + $0x5c]] }
 0x5ee   :  { %v2400_v31 = vadd.f32 %v2392_v49, %v2379_v6  ;;  %v2401_v13 = vadd.f32 %v2393_v5, %v2380_v51  ;;  %v2447_v10 = vrot.slane %v2439_v42, 1  ;;  %v2435_v35 = vmul.f32 %v6909_v55, %v2420_v3 }
 0x5ef   :  { %v2407_v48 = vadd.f32 %v2403_v32, %v2350_v52  ;;  %v2440_v14 = vmul.f32 %v6916_v4, %v2420_v3  ;;  %v2419_v6 = vsel %vm2418_vm12, %v2415_v30, %v2417_v36  ;;  %v2422_v51 = vsel %vm2418_vm12, %v2417_v36, %v2411_v11  ;;  %3381 = vrot.lane.b32.xlu1 %v4181_v26, %s3912_s25 }
 0x5f0   :  { %v2404_v29 = vmul.f32 %v2400_v31, %v6848_v33  ;;  %v2405_v16 = vmul.f32 %v2401_v13, %v6851_v25  ;;  %v2455_v2 = vadd.f32 %v2447_v10, %v2434_v28  ;;  %v2436_v52 = vmul.f32 %v6909_v55, %v2419_v6  ;;  %v2470_v32 = vpop.permute.xlu1 %2469  ;;  %3383 = vrot.lane.b32.xlu0 %v4184_v27, %s3912_s25 }
 0x5f1   :  { %v2448_v12 = vrot.slane %v2440_v14, 1  ;;  %vm2532_vm2 = vcmp.lt.s32.totalorder %v4214_v47, 112  ;;  %v7160_v49 = vstv %s7120_s2  ;;  %v2441_v5 = vmul.f32 %v6916_v4, %v2419_v6  ;;  %v2472_v3 = vpop.permute.xlu0 %2471  ;;  %s7930_s2 = sld [smem:[#allocation2 + $0x2c]] }
 0x5f2   :  { %v2408_v33 = vadd.f32 %v2404_v29, %v2351_v0  ;;  %v2409_v25 = vadd.f32 %v2405_v16, %v2352_v50  ;;  %v2442_v58 = vmul.f32 %v6916_v4, %v2422_v51  ;;  %v2459_v11 = vmul.f32 %v2455_v2, %v6885_v56 }
 0x5f3   :  { %v2456_v30 = vadd.f32 %v2448_v12, %v2435_v35  ;;  %v2437_v22 = vmul.f32 %v6909_v55, %v2422_v51  ;;  %v7171_v42 = vsel %vm6743_vm3, 1.0, %v8515_v37  ;;  %v2449_v0 = vrot.slane %v2441_v5, 1  ;;  %3385 = vrot.lane.b32.xlu1 %v4189_v45, %s3912_s25  ;;  %s8071_s25 = sld [smem:[#allocation2 + $0x2e]] }
 0x5f4   :  { %v2450_v50 = vrot.slane %v2442_v58, 1  ;;  %v2478_v4 = vsel %vm2475_vm7, %v2468_v1, %v2470_v32  ;;  %v7180_v56 = vsel %vm6800_vm0, 1.0, %v8515_v37  ;;  %v2463_v55 = vadd.f32 %v2459_v11, %v2406_v20  ;;  %v2474_v6 = vpop.permute.xlu1 %2473  ;;  %v9158_v58 = vld [vmem:[#allocation38_spill] sm:$0xff]  ;;  %3436 = vrot.lane.b32.xlu0 %v4177_v17, %s3913_s28 }
 0x5f5   :  { %v2460_v31 = vmul.f32 %v2456_v30, %v6930_v9  ;;  %v2496_v13 = vmul.f32 %v7058_v40, %v2478_v4  ;;  %v7191_v28 = vsel %vm6807_vm13, 1.0, %v8515_v37  ;;  %v2457_v10 = vadd.f32 %v2449_v0, %v2436_v52  ;;  %v2525_v5 = vpop.permute.xlu0 %2524 }
 0x5f6   :  { %v2458_v35 = vadd.f32 %v2450_v50, %v2437_v22  ;;  %v2491_v14 = vmul.f32 %v7044_v23, %v2478_v4  ;;  %v2477_v36 = vsel %vm2475_vm7, %v2470_v32, %v2472_v3  ;;  %v2476_v12 = vsel %vm2475_vm7, %v2472_v3, %v2474_v6 }
 0x5f7   :  { %v2464_v9 = vadd.f32 %v2460_v31, %v2407_v48  ;;  %v2504_v20 = vrot.slane %v2496_v13, 1  ;;  %v2492_v29 = vmul.f32 %v7044_v23, %v2477_v36  ;;  %v2497_v16 = vmul.f32 %v7058_v40, %v2477_v36  ;;  %v9160_v31 = vld [vmem:[#allocation36_spill] sm:$0xff]  ;;  %3438 = vrot.lane.b32.xlu1 %v4181_v26, %s3913_s28 }
 0x5f8   :  { %v2461_v51 = vmul.f32 %v2457_v10, %v6948_v54  ;;  %v2462_v2 = vmul.f32 %v2458_v35, %v6981_v44  ;;  %v2479_v52 = vsel %vm2475_vm7, %v2474_v6, %v2468_v1  ;;  %vm9159_vm1 = vcmp.le.s32.totalorder %v9158_v58, 15  ;;  %v2527_v4 = vpop.permute.xlu1 %2526  ;;  %3440 = vrot.lane.b32.xlu0 %v4184_v27, %s3913_s28 }
 0x5f9   :  { %vm2594_vm10 = vmand %vm6655_vm5, %vm9159_vm1  ;;  %v2512_v48 = vadd.f32 %v2504_v20, %v2491_v14  ;;  %v2505_v11 = vrot.slane %v2497_v16, 1  ;;  %v2493_v30 = vmul.f32 %v7044_v23, %v2476_v12  ;;  %v2494_v54 = vmul.f32 %v7044_v23, %v2479_v52  ;;  %v2529_v13 = vpop.permute.xlu0 %2528 }
 0x5fa   :  { %vm2589_vm11 = vcmp.lt.s32.totalorder %v4214_v47, 111  ;;  %v2465_v44 = vadd.f32 %v2461_v51, %v2408_v33  ;;  %v2466_v1 = vadd.f32 %v2462_v2, %v2409_v25  ;;  %v2498_v22 = vmul.f32 %v7058_v40, %v2476_v12 }
 0x5fb   :  { %v2499_v32 = vmul.f32 %v7058_v40, %v2479_v52  ;;  %v2516_v0 = vmul.f32 %v2512_v48, %v7029_v59  ;;  %v2513_v50 = vadd.f32 %v2505_v11, %v2492_v29  ;;  %v7221_v23 = vsel %vm2594_vm10, 1.0, %v8515_v37  ;;  %v9164_v48 = vld [vmem:[#allocation37_spill] sm:$0xff]  ;;  %3442 = vrot.lane.b32.xlu1 %v4189_v45, %s3913_s28  ;;  %s8145_s28 = sld [smem:[#allocation2 + $0x61]] }
 0x5fc   :  { %v7224_v3 = vstv %s7173_s22  ;;  %vm9161_vm12 = vcmp.le.s32.totalorder %v9160_v31, 15  ;;  %v2506_v40 = vrot.slane %v2498_v22, 1  ;;  %v2535_v59 = vsel %vm2532_vm2, %v2525_v5, %v2527_v4  ;;  %v2531_v52 = vpop.permute.xlu1 %2530  ;;  %3493 = vrot.lane.b32.xlu0 %v4177_v17, %s3914_s4  ;;  %s8007_s22 = sld [smem:[#allocation2 + $0x5e]] }
 0x5fd   :  { %vm7230_vm14 = vmand %vm6743_vm3, %vm9161_vm12  ;;  %v2507_v25 = vrot.slane %v2499_v32, 1  ;;  %v7237_v10 = vstv %s7182_s23  ;;  %v2520_v35 = vadd.f32 %v2516_v0, %v2463_v55  ;;  %v2517_v14 = vmul.f32 %v2513_v50, %v7085_v57  ;;  %v2582_v32 = vpop.permute.xlu0 %2581  ;;  %v9168_v0 = vld [vmem:[#allocation39_spill] sm:$0xff]  ;;  %s8033_s23 = sld [smem:[#allocation2 + $0x2d]] }
 0x5fe   :  { %v2548_v36 = vmul.f32 %v7142_v21, %v2535_v59  ;;  %v2553_v20 = vmul.f32 %v7160_v49, %v2535_v59  ;;  %v2514_v29 = vadd.f32 %v2506_v40, %v2493_v30  ;;  %v2534_v6 = vsel %vm2532_vm2, %v2527_v4, %v2529_v13 }
 0x5ff   :  { %v2515_v16 = vadd.f32 %v2507_v25, %v2494_v54  ;;  %v7251_v57 = vsel %vm7230_vm14, 1.0, %v8515_v37  ;;  %v2521_v55 = vadd.f32 %v2517_v14, %v2464_v9  ;;  %v2549_v2 = vmul.f32 %v7142_v21, %v2534_v6  ;;  %3495 = vrot.lane.b32.xlu1 %v4181_v26, %s3914_s4 }
 0x600   :  { %v2561_v51 = vrot.slane %v2553_v20, 1  ;;  %v2554_v12 = vmul.f32 %v7160_v49, %v2534_v6  ;;  %vm9165_vm4 = vcmp.le.s32.totalorder %v9164_v48, 15  ;;  %v2518_v30 = vmul.f32 %v2514_v29, %v7093_v39  ;;  %v2584_v14 = vpop.permute.xlu1 %2583  ;;  %3497 = vrot.lane.b32.xlu0 %v4184_v27, %s3914_s4 }
 0x601   :  { %vm7259_vm9 = vmand %vm6800_vm0, %vm9165_vm4  ;;  %v2519_v54 = vmul.f32 %v2515_v16, %v7105_v62  ;;  %v2533_v9 = vsel %vm2532_vm2, %v2529_v13, %v2531_v52  ;;  %v2536_v22 = vsel %vm2532_vm2, %v2531_v52, %v2525_v5  ;;  %vm9169_vm6 = vcmp.le.s32.totalorder %v9168_v0, 15  ;;  %v2586_v29 = vpop.permute.xlu0 %2585 }
 0x602   :  { %vm2597_vm8 = vmand %vm6807_vm13, %vm9169_vm6  ;;  %v2569_v50 = vadd.f32 %v2561_v51, %v2548_v36  ;;  %v2562_v4 = vrot.slane %v2554_v12, 1  ;;  %v2550_v33 = vmul.f32 %v7142_v21, %v2533_v9  ;;  %v2551_v39 = vmul.f32 %v7142_v21, %v2536_v22 }
 0x603   :  { %v2522_v62 = vadd.f32 %v2518_v30, %v2465_v44  ;;  %v2523_v40 = vadd.f32 %v2519_v54, %v2466_v1  ;;  %v2555_v25 = vmul.f32 %v7160_v49, %v2533_v9  ;;  %v2556_v5 = vmul.f32 %v7160_v49, %v2536_v22  ;;  %v9170_v44 = vld [vmem:[#allocation42_spill] sm:$0xff]  ;;  %3499 = vrot.lane.b32.xlu1 %v4189_v45, %s3914_s4 }
 0x604   :  { %v2573_v59 = vmul.f32 %v2569_v50, %v7130_v61  ;;  %v2570_v13 = vadd.f32 %v2562_v4, %v2549_v2  ;;  %v7285_v21 = vsel %vm7259_vm9, 1.0, %v8515_v37  ;;  %v7288_v36 = vsel %vm2597_vm8, 1.0, %v8515_v37  ;;  %v2588_v22 = vpop.permute.xlu1 %2587 }
 0x605   :  { %vm9171_vm15 = vcmp.le.s32.totalorder %v9170_v44, 15  ;;  %v2563_v61 = vrot.slane %v2555_v25, 1  ;;  %v2564_v1 = vrot.slane %v2556_v5, 1  ;;  %v2592_v20 = vsel %vm2589_vm11, %v2582_v32, %v2584_v14  ;;  %v2639_v25 = vpop.permute.xlu0 %2638 }
 0x606   :  { %vm7294_vm7 = vmand %vm6655_vm5, %vm9171_vm15  ;;  %vm2646_vm2 = vcmp.lt.s32.totalorder %v4214_v47, 110  ;;  %v2577_v16 = vadd.f32 %v2573_v59, %v2520_v35  ;;  %v2574_v6 = vmul.f32 %v2570_v13, %v7171_v42  ;;  %v2605_v51 = vmul.f32 %v7224_v3, %v2592_v20 }
 0x607   :  { %v2610_v2 = vmul.f32 %v7237_v10, %v2592_v20  ;;  %v2571_v12 = vadd.f32 %v2563_v61, %v2550_v33  ;;  %v2572_v52 = vadd.f32 %v2564_v1, %v2551_v39  ;;  %v2591_v11 = vsel %vm2589_vm11, %v2584_v14, %v2586_v29 }
 0x608   :  { %v7317_v42 = vsel %vm7294_vm7, 1.0, %v8515_v37  ;;  %v2578_v35 = vadd.f32 %v2574_v6, %v2521_v55  ;;  %v2606_v54 = vmul.f32 %v7224_v3, %v2591_v11  ;;  %v2611_v9 = vmul.f32 %v7237_v10, %v2591_v11  ;;  %v2641_v6 = vpop.permute.xlu1 %2640 }
 0x609   :  { %v2618_v30 = vrot.slane %v2610_v2, 1  ;;  %v2575_v50 = vmul.f32 %v2571_v12, %v7180_v56  ;;  %v2576_v4 = vmul.f32 %v2572_v52, %v7191_v28  ;;  %v2590_v33 = vsel %vm2589_vm11, %v2586_v29, %v2588_v22  ;;  %v9174_v56 = vld [vmem:[#allocation40_spill] sm:$0xff]  ;;  %v2643_v12 = vpop.permute.xlu0 %2642 }
 0x60a   :  { %v2593_v39 = vsel %vm2589_vm11, %v2588_v22, %v2582_v32  ;;  %v2619_v5 = vrot.slane %v2611_v9, 1  ;;  %v2607_v59 = vmul.f32 %v7224_v3, %v2590_v33  ;;  %vm9175_vm1 = vcmp.le.s32.totalorder %v9174_v56, 15  ;;  %v9182_v9 = vld [vmem:[#allocation43_spill] sm:$0xff] }
 0x60b   :  { %v2626_v55 = vadd.f32 %v2618_v30, %v2605_v51  ;;  %v2608_v13 = vmul.f32 %v7224_v3, %v2593_v39  ;;  %vm7335_vm10 = vmand %vm6743_vm3, %vm9175_vm1  ;;  %v2579_v32 = vadd.f32 %v2575_v50, %v2522_v62  ;;  %v2580_v14 = vadd.f32 %v2576_v4, %v2523_v40  ;;  %v9178_v51 = vld [vmem:[#allocation41_spill] sm:$0xff] }
 0x60c   :  { %v2612_v49 = vmul.f32 %v7237_v10, %v2590_v33  ;;  %v2613_v61 = vmul.f32 %v7237_v10, %v2593_v39  ;;  %v2627_v1 = vadd.f32 %v2619_v5, %v2606_v54  ;;  %v2661_v20 = vstv %s7298_s26  ;;  %v2645_v5 = vpop.permute.xlu1 %2644  ;;  %s8093_s26 = sld [smem:[#allocation2 + $0x60]] }
 0x60d   :  { %v2630_v3 = vmul.f32 %v2626_v55, %v7221_v23  ;;  %v2666_v29 = vstv %s7300_s27  ;;  %vm9179_vm11 = vcmp.le.s32.totalorder %v9178_v51, 15  ;;  %v2649_v2 = vsel %vm2646_vm2, %v2639_v25, %v2641_v6  ;;  %s8112_s27 = sld [smem:[#allocation2 + $0x2f]] }
 0x60e   :  { %vm7350_vm12 = vmand %vm6800_vm0, %vm9179_vm11  ;;  %v2620_v10 = vrot.slane %v2612_v49, 1  ;;  %v2621_v40 = vrot.slane %v2613_v61, 1  ;;  %v2656_v23 = vsel %vm7335_vm10, 1.0, %v8515_v37  ;;  %v2631_v11 = vmul.f32 %v2627_v1, %v7251_v57  ;;  %v2696_v61 = vpop.permute.xlu0 %2695 }
 0x60f   :  { %v2634_v52 = vadd.f32 %v2630_v3, %v2577_v16  ;;  %v2662_v30 = vmul.f32 %v2661_v20, %v2649_v2  ;;  %v2667_v54 = vmul.f32 %v2666_v29, %v2649_v2  ;;  %vm9183_vm14 = vcmp.le.s32.totalorder %v9182_v9, 15 }
 0x610   :  { %vm2654_vm4 = vmand %vm6807_vm13, %vm9183_vm14  ;;  %v2628_v22 = vadd.f32 %v2620_v10, %v2607_v59  ;;  %v2629_v50 = vadd.f32 %v2621_v40, %v2608_v13  ;;  %v2648_v4 = vsel %vm2646_vm2, %v2641_v6, %v2643_v12  ;;  %v2657_v57 = vsel %vm7350_vm12, 1.0, %v8515_v37  ;;  %v9184_v6 = vld [vmem:[#allocation46_spill] sm:$0xff]  ;;  %v2698_v26 = vpop.permute.xlu1 %2697 }
 0x611   :  { %v2635_v16 = vadd.f32 %v2631_v11, %v2578_v35  ;;  %v2675_v33 = vrot.slane %v2667_v54, 1  ;;  %v2663_v39 = vmul.f32 %v2661_v20, %v2648_v4  ;;  %v2668_v55 = vmul.f32 %v2666_v29, %v2648_v4 }
 0x612   :  { %v2632_v28 = vmul.f32 %v2628_v22, %v7285_v21  ;;  %v2633_v59 = vmul.f32 %v2629_v50, %v7288_v36  ;;  %v2658_v13 = vsel %vm2654_vm4, 1.0, %v8515_v37  ;;  %v2647_v49 = vsel %vm2646_vm2, %v2643_v12, %v2645_v5  ;;  %v9186_v12 = vld [vmem:[#allocation44_spill] sm:$0xff]  ;;  %v2700_v11 = vpop.permute.xlu0 %2699 }
 0x613   :  { %v2683_v17 = vadd.f32 %v2675_v33, %v2662_v30  ;;  %v2676_v3 = vrot.slane %v2668_v55, 1  ;;  %v2650_v1 = vsel %vm2646_vm2, %v2645_v5, %v2639_v25  ;;  %v2664_v35 = vmul.f32 %v2661_v20, %v2647_v49 }
 0x614   :  { %vm9185_vm9 = vcmp.le.s32.totalorder %v9184_v6, 15  ;;  %v2636_v21 = vadd.f32 %v2632_v28, %v2579_v32  ;;  %v2637_v36 = vadd.f32 %v2633_v59, %v2580_v14  ;;  %v2665_v62 = vmul.f32 %v2661_v20, %v2650_v1  ;;  %v2702_v5 = vpop.permute.xlu1 %2701 }
 0x615   :  { %vm2708_vm6 = vmand %vm6655_vm5, %vm9185_vm9  ;;  %v2669_v10 = vmul.f32 %v2666_v29, %v2647_v49  ;;  %v2687_v25 = vmul.f32 %v2683_v17, %v7317_v42  ;;  %v2684_v40 = vadd.f32 %v2676_v3, %v2663_v39  ;;  %v2670_v2 = vmul.f32 %v2666_v29, %v2650_v1  ;;  %v9190_v42 = vld [vmem:[#allocation45_spill] sm:$0xff] }
 0x616   :  { %vm2703_vm8 = vcmp.lt.s32.totalorder %v4214_v47, 109  ;;  %vm9187_vm15 = vcmp.le.s32.totalorder %v9186_v12, 15  ;;  %v2712_v14 = vsel %vm2708_vm6, 1.0, %v8515_v37  ;;  %v2718_v20 = vstv %s7354_s29  ;;  %v2753_v3 = vpop.permute.xlu0 %2752  ;;  %s8153_s29 = sld [smem:[#allocation2 + $0x30]] }
 0x617   :  { %vm7398_vm7 = vmand %vm6743_vm3, %vm9187_vm15  ;;  %v2677_v32 = vrot.slane %v2669_v10, 1  ;;  %v2723_v27 = vstv %s7361_s30  ;;  %vm9191_vm5 = vcmp.le.s32.totalorder %v9190_v42, 15  ;;  %v2691_v30 = vadd.f32 %v2687_v25, %v2634_v52  ;;  %v9194_v52 = vld [vmem:[#allocation47_spill] sm:$0xff] }
 0x618   :  { %vm7409_vm2 = vmand %vm6800_vm0, %vm9191_vm5  ;;  %v2688_v8 = vmul.f32 %v2684_v40, %v2656_v23  ;;  %v2678_v54 = vrot.slane %v2670_v2, 1  ;;  %v2706_v22 = vsel %vm2703_vm8, %v2696_v61, %v2698_v26  ;;  %v2713_v33 = vsel %vm7398_vm7, 1.0, %v8515_v37 }
 0x619   :  { %v2685_v50 = vadd.f32 %v2677_v32, %v2664_v35  ;;  %v2719_v4 = vmul.f32 %v2718_v20, %v2706_v22  ;;  %v2724_v34 = vmul.f32 %v2723_v27, %v2706_v22  ;;  %vm9195_vm3 = vcmp.le.s32.totalorder %v9194_v52, 15  ;;  %v2755_v32 = vpop.permute.xlu1 %2754 }
 0x61a   :  { %vm2711_vm0 = vmand %vm6807_vm13, %vm9195_vm3  ;;  %v2692_v23 = vadd.f32 %v2688_v8, %v2635_v16  ;;  %v2686_v39 = vadd.f32 %v2678_v54, %v2665_v62  ;;  %v2705_v45 = vsel %vm2703_vm8, %v2698_v26, %v2700_v11  ;;  %v2714_v55 = vsel %vm7409_vm2, 1.0, %v8515_v37  ;;  %v9196_v8 = vld [vmem:[#allocation14_spill] sm:$0xff] }
 0x61b   :  { %v2689_v28 = vmul.f32 %v2685_v50, %v2657_v57  ;;  %v2732_v59 = vrot.slane %v2724_v34, 1  ;;  %v2720_v49 = vmul.f32 %v2718_v20, %v2705_v45  ;;  %v2725_v17 = vmul.f32 %v2723_v27, %v2705_v45 }
 0x61c   :  { %v2690_v1 = vmul.f32 %v2686_v39, %v2658_v13  ;;  %v2715_v35 = vsel %vm2711_vm0, 1.0, %v8515_v37  ;;  %v2704_v43 = vsel %vm2703_vm8, %v2700_v11, %v2702_v5  ;;  %v2707_v16 = vsel %vm2703_vm8, %v2702_v5, %v2696_v61  ;;  %v2757_v11 = vpop.permute.xlu0 %2756  ;;  %v9199_v39 = vld [vmem:[#allocation13_spill] sm:$0xff] }
 0x61d   :  { %v2693_v62 = vadd.f32 %v2689_v28, %v2636_v21  ;;  %v2740_v10 = vadd.f32 %v2732_v59, %v2719_v4  ;;  %v2733_v25 = vrot.slane %v2725_v17, 1  ;;  %v2721_v40 = vmul.f32 %v2718_v20, %v2704_v43  ;;  %v2759_v5 = vpop.permute.xlu1 %2758  ;;  %v9200_v59 = vld [vmem:[#allocation26_spill] sm:$0xff] }
 0x61e   :  { %v2694_v57 = vadd.f32 %v2690_v1, %v2637_v36  ;;  %v2722_v2 = vmul.f32 %v2718_v20, %v2707_v16  ;;  %v2726_v26 = vmul.f32 %v2723_v27, %v2704_v43  ;;  %v2727_v15 = vmul.f32 %v2723_v27, %v2707_v16 }
 0x61f   :  { %v2744_v13 = vmul.f32 %v2740_v10, %v2712_v14  ;;  %v2741_v29 = vadd.f32 %v2733_v25, %v2720_v49  ;;  %v738_v54 = vadd.s32 2, %v9196_v8  ;;  %vm2760_vm13 = vcmp.lt.s32.totalorder %v4214_v47, 99 }
 0x620   :  { %v2734_v22 = vrot.slane %v2726_v26, 1  ;;  %v2735_v61 = vrot.slane %v2727_v15, 1  ;;  %v2775_v21 = vstv %s7417_s5  ;;  %v2780_v50 = vstv %s7419_s6  ;;  %v7455_v17 = vpop.permute.xlu0 %2809  ;;  %v9207_v26 = vld [vmem:[#allocation15_spill] sm:$0xff] }
 0x621   :  { %v2748_v4 = vadd.f32 %v2744_v13, %v2691_v30  ;;  %v2745_v34 = vmul.f32 %v2741_v29, %v2713_v33  ;;  %vm742_vm1 = vcmp.ge.s32.totalorder %v738_v54, 0  ;;  %vm746_vm10 = vcmp.le.s32.totalorder %v738_v54, 15  ;;  %v2812_v29 = vpop.permute.xlu1 %2811 }
 0x622   :  { %v2742_v36 = vadd.f32 %v2734_v22, %v2721_v40  ;;  %v2743_v20 = vadd.f32 %v2735_v61, %v2722_v2  ;;  %vm7442_vm11 = vmand %vm742_vm1, %vm746_vm10  ;;  %v2763_v14 = vsel %vm2760_vm13, %v2753_v3, %v2755_v32  ;;  %v739_v45 = vadd.s32 2, %v9199_v39  ;;  %v9209_v22 = vld [vmem:[#allocation17_spill] sm:$0xff] }
 0x623   :  { %v2749_v28 = vadd.f32 %v2745_v34, %v2692_v23  ;;  %vm9201_vm12 = vcmp.ge.s32.totalorder %v9200_v59, 0  ;;  %v2776_v30 = vmul.f32 %v2775_v21, %v2763_v14  ;;  %v2781_v33 = vmul.f32 %v2780_v50, %v2763_v14 }
 0x624   :  { %vm2765_vm14 = vmand %vm7442_vm11, %vm9201_vm12  ;;  %v2762_v49 = vsel %vm2760_vm13, %v2755_v32, %v2757_v11  ;;  %v2746_v1 = vmul.f32 %v2742_v36, %v2714_v55  ;;  %v2747_v43 = vmul.f32 %v2743_v20, %v2715_v35  ;;  %vm743_vm4 = vcmp.ge.s32.totalorder %v739_v45, 0  ;;  %v9208_v32 = vld [vmem:[#allocation16_spill] sm:$0xff]  ;;  %v2814_v34 = vpop.permute.xlu0 %2813 }
 0x625   :  { %v2769_v16 = vsel %vm2765_vm14, 1.0, %v8515_v37  ;;  %v2789_v23 = vrot.slane %v2781_v33, 1  ;;  %vm747_vm9 = vcmp.le.s32.totalorder %v739_v45, 15  ;;  %v2777_v10 = vmul.f32 %v2775_v21, %v2762_v49  ;;  %v2816_v33 = vpop.permute.xlu1 %2815 }
 0x626   :  { %v2782_v25 = vmul.f32 %v2780_v50, %v2762_v49  ;;  %vm9202_vm6 = vcmp.ge.s32.totalorder %v9113_v63, 0  ;;  %v2750_v55 = vadd.f32 %v2746_v1, %v2693_v62  ;;  %v2751_v35 = vadd.f32 %v2747_v43, %v2694_v57  ;;  %vm7470_vm15 = vmand %vm743_vm4, %vm747_vm9 }
 0x627   :  { %vm7466_vm8 = vmand %vm7442_vm11, %vm9202_vm6  ;;  %v740_v15 = vadd.s32 2, %v9207_v26  ;;  %v741_v13 = vadd.s32 2, %v9208_v32  ;;  %v2797_v54 = vadd.f32 %v2789_v23, %v2776_v30  ;;  %vm9210_vm7 = vcmp.ge.s32.totalorder %v9209_v22, 0 }
 0x628   :  { %vm2766_vm5 = vmand %vm7470_vm15, %vm9210_vm7  ;;  %v2790_v61 = vrot.slane %v2782_v25, 1  ;;  %v2761_v62 = vsel %vm2760_vm13, %v2757_v11, %v2759_v5  ;;  %v2764_v57 = vsel %vm2760_vm13, %v2759_v5, %v2753_v3  ;;  %vm9211_vm1 = vcmp.ge.s32.totalorder %v9119_v46, 0  ;;  %v7506_v23 = vpop.permute.xlu0 %2866 }
 0x629   :  { %v2770_v36 = vsel %vm2766_vm5, 1.0, %v8515_v37  ;;  %vm744_vm2 = vcmp.ge.s32.totalorder %v740_v15, 0  ;;  %vm745_vm3 = vcmp.ge.s32.totalorder %v741_v13, 0  ;;  %vm748_vm0 = vcmp.le.s32.totalorder %v740_v15, 15  ;;  %vm7489_vm10 = vmand %vm7470_vm15, %vm9211_vm1 }
 0x62a   :  { %v2801_v14 = vmul.f32 %v2797_v54, %v2769_v16  ;;  %v2798_v45 = vadd.f32 %v2790_v61, %v2777_v10  ;;  %vm749_vm12 = vcmp.le.s32.totalorder %v741_v13, 15  ;;  %vm7493_vm14 = vmand %vm744_vm2, %vm748_vm0  ;;  %v2783_v5 = vmul.f32 %v2780_v50, %v2761_v62 }
 0x62b   :  { %vm7497_vm13 = vmand %vm745_vm3, %vm749_vm12  ;;  %v2784_v30 = vmul.f32 %v2780_v50, %v2764_v57  ;;  %vm2817_vm4 = vcmp.lt.s32.totalorder %v4214_v47, 98  ;;  %vm9218_vm9 = vcmp.ge.s32.totalorder %v9106_v60, 0  ;;  %v2778_v43 = vmul.f32 %v2775_v21, %v2761_v62 }
 0x62c   :  { %v2805_v49 = vadd.f32 %v2801_v14, %v2748_v4  ;;  %v2802_v1 = vmul.f32 %v2798_v45, %v2770_v36  ;;  %vm2767_vm6 = vmand %vm7493_vm14, %vm9218_vm9  ;;  %v2779_v16 = vmul.f32 %v2775_v21, %v2764_v57  ;;  %vm9219_vm7 = vcmp.ge.s32.totalorder %v9110_v53, 0  ;;  %v2869_v36 = vpop.permute.xlu1 %2868 }
 0x62d   :  { %vm2768_vm5 = vmand %vm7497_vm13, %vm9219_vm7  ;;  %v2791_v50 = vrot.slane %v2783_v5, 1  ;;  %v2792_v10 = vrot.slane %v2784_v30, 1  ;;  %v2832_v25 = vstv %s7458_s7  ;;  %v2837_v15 = vstv %s7460_s8 }
 0x62e   :  { %v2806_v4 = vadd.f32 %v2802_v1, %v2749_v28  ;;  %v2771_v13 = vsel %vm2767_vm6, 1.0, %v8515_v37  ;;  %v2772_v21 = vsel %vm2768_vm5, 1.0, %v8515_v37  ;;  %v2820_v54 = vsel %vm2817_vm4, %v7455_v17, %v2812_v29  ;;  %v2871_v1 = vpop.permute.xlu0 %2870 }
 0x62f   :  { %vm9220_vm2 = vcmp.ge.s32.totalorder %v9123_v41, 0  ;;  %v2799_v61 = vadd.f32 %v2791_v50, %v2778_v43  ;;  %v2800_v62 = vadd.f32 %v2792_v10, %v2779_v16  ;;  %v2826_v57 = vsel %vm7466_vm8, 1.0, %v8515_v37 }
 0x630   :  { %vm2824_vm3 = vmand %vm7493_vm14, %vm9220_vm2  ;;  %v2838_v28 = vmul.f32 %v2837_v15, %v2820_v54  ;;  %v2833_v14 = vmul.f32 %v2832_v25, %v2820_v54  ;;  %v2827_v45 = vsel %vm7489_vm10, 1.0, %v8515_v37  ;;  %v2819_v5 = vsel %vm2817_vm4, %v2812_v29, %v2814_v34 }
 0x631   :  { %v2818_v30 = vsel %vm2817_vm4, %v2814_v34, %v2816_v33  ;;  %v2803_v43 = vmul.f32 %v2799_v61, %v2771_v13  ;;  %v2804_v16 = vmul.f32 %v2800_v62, %v2772_v21  ;;  %v2828_v40 = vsel %vm2824_vm3, 1.0, %v8515_v37  ;;  %v2873_v34 = vpop.permute.xlu1 %2872 }
 0x632   :  { %v2846_v50 = vrot.slane %v2838_v28, 1  ;;  %v2834_v10 = vmul.f32 %v2832_v25, %v2819_v5  ;;  %v2839_v41 = vmul.f32 %v2837_v15, %v2819_v5  ;;  %v2821_v20 = vsel %vm2817_vm4, %v2816_v33, %v7455_v17  ;;  %v7550_v17 = vpop.permute.xlu0 %2923 }
 0x633   :  { %v2840_v54 = vmul.f32 %v2837_v15, %v2818_v30  ;;  %v2807_v46 = vadd.f32 %v2803_v43, %v2750_v55  ;;  %v2808_v29 = vadd.f32 %v2804_v16, %v2751_v35  ;;  %v2835_v63 = vmul.f32 %v2832_v25, %v2818_v30 }
 0x634   :  { %v2854_v53 = vadd.f32 %v2846_v50, %v2833_v14  ;;  %v2847_v60 = vrot.slane %v2839_v41, 1  ;;  %vm9221_vm8 = vcmp.ge.s32.totalorder %v9130_v38, 0  ;;  %v2841_v21 = vmul.f32 %v2837_v15, %v2821_v20 }
 0x635   :  { %vm7545_vm0 = vmand %vm7497_vm13, %vm9221_vm8  ;;  %v2848_v61 = vrot.slane %v2840_v54, 1  ;;  %vm2874_vm1 = vcmp.lt.s32.totalorder %v4214_v47, 97  ;;  %v2836_v35 = vmul.f32 %v2832_v25, %v2821_v20  ;;  %v2889_v33 = vstv %s7514_s9 }
 0x636   :  { %v2858_v55 = vmul.f32 %v2854_v53, %v2826_v57  ;;  %v2894_v62 = vstv %s7516_s10  ;;  %v2855_v28 = vadd.f32 %v2847_v60, %v2834_v10  ;;  %v2849_v41 = vrot.slane %v2841_v21, 1  ;;  %v2926_v60 = vpop.permute.xlu1 %2925  ;;  %v2928_v16 = vpop.permute.xlu0 %2927 }
 0x637   :  { %v2856_v14 = vadd.f32 %v2848_v61, %v2835_v63  ;;  %vm9224_vm10 = vcmp.ge.s32.totalorder %v9139_v19, 0  ;;  %v2877_v15 = vsel %vm2874_vm1, %v7506_v23, %v2869_v36  ;;  %v2829_v53 = vsel %vm7545_vm0, 1.0, %v8515_v37 }
 0x638   :  { %vm2879_vm12 = vmand %vm7442_vm11, %vm9224_vm10  ;;  %v2862_v5 = vadd.f32 %v2858_v55, %v2805_v49  ;;  %v2895_v25 = vmul.f32 %v2894_v62, %v2877_v15  ;;  %v2859_v57 = vmul.f32 %v2855_v28, %v2827_v45  ;;  %v2857_v63 = vadd.f32 %v2849_v41, %v2836_v35 }
 0x639   :  { %v2860_v30 = vmul.f32 %v2856_v14, %v2828_v40  ;;  %vm9225_vm4 = vcmp.ge.s32.totalorder %v9143_v18, 0  ;;  %v2876_v49 = vsel %vm2874_vm1, %v2869_v36, %v2871_v1  ;;  %v2883_v50 = vsel %vm2879_vm12, 1.0, %v8515_v37 }
 0x63a   :  { %vm7570_vm9 = vmand %vm7470_vm15, %vm9225_vm4  ;;  %v2890_v10 = vmul.f32 %v2889_v33, %v2877_v15  ;;  %v2903_v20 = vrot.slane %v2895_v25, 1  ;;  %v2896_v54 = vmul.f32 %v2894_v62, %v2876_v49  ;;  %vm9228_vm6 = vcmp.ge.s32.totalorder %v9147_v24, 0  ;;  %v2930_v28 = vpop.permute.xlu1 %2929  ;;  %v7592_v15 = vpop.permute.xlu0 %2980 }
 0x63b   :  { %vm2881_vm7 = vmand %vm7493_vm14, %vm9228_vm6  ;;  %v2863_v45 = vadd.f32 %v2859_v57, %v2806_v4  ;;  %v2861_v40 = vmul.f32 %v2857_v63, %v2829_v53  ;;  %v2864_v13 = vadd.f32 %v2860_v30, %v2807_v46  ;;  %v2891_v21 = vmul.f32 %v2889_v33, %v2876_v49 }
 0x63c   :  { %v2911_v61 = vadd.f32 %v2903_v20, %v2890_v10  ;;  %v2904_v55 = vrot.slane %v2896_v54, 1  ;;  %v2875_v36 = vsel %vm2874_vm1, %v2871_v1, %v2873_v34  ;;  %v2878_v35 = vsel %vm2874_vm1, %v2873_v34, %v7506_v23 }
 0x63d   :  { %v2865_v41 = vadd.f32 %v2861_v40, %v2808_v29  ;;  %v2884_v4 = vsel %vm7570_vm9, 1.0, %v8515_v37  ;;  %v2885_v46 = vsel %vm2881_vm7, 1.0, %v8515_v37  ;;  %v2897_v14 = vmul.f32 %v2894_v62, %v2875_v36 }
 0x63e   :  { %v2915_v53 = vmul.f32 %v2911_v61, %v2883_v50  ;;  %v2912_v25 = vadd.f32 %v2904_v55, %v2891_v21  ;;  %vm9229_vm5 = vcmp.ge.s32.totalorder %v9151_v7, 0  ;;  %v2898_v1 = vmul.f32 %v2894_v62, %v2878_v35  ;;  %v2983_v50 = vpop.permute.xlu1 %2982  ;;  %v2985_v54 = vpop.permute.xlu0 %2984 }
 0x63f   :  { %vm2882_vm2 = vmand %vm7497_vm13, %vm9229_vm5  ;;  %vm2931_vm3 = vcmp.lt.s32.totalorder %v4214_v47, 96  ;;  %v2892_v23 = vmul.f32 %v2889_v33, %v2875_v36  ;;  %v2893_v29 = vmul.f32 %v2889_v33, %v2878_v35  ;;  %v2905_v34 = vrot.slane %v2897_v14, 1 }
 0x640   :  { %v2951_v57 = vstv %s7561_s11  ;;  %v7600_v63 = vadd.f32 %v2915_v53, %v2862_v5  ;;  %v2916_v30 = vmul.f32 %v2912_v25, %v2884_v4  ;;  %v2906_v43 = vrot.slane %v2898_v1, 1 }
 0x641   :  { %v2934_v49 = vsel %vm2931_vm3, %v7550_v17, %v2926_v60  ;;  %v2886_v10 = vsel %vm2882_vm2, 1.0, %v8515_v37  ;;  %v2913_v62 = vadd.f32 %v2905_v34, %v2892_v23  ;;  %v2933_v5 = vsel %vm2931_vm3, %v2926_v60, %v2928_v16 }
 0x642   :  { %v2952_v20 = vmul.f32 %v2951_v57, %v2934_v49  ;;  %v7606_v40 = vadd.f32 %v2916_v30, %v2863_v45  ;;  %v2914_v33 = vadd.f32 %v2906_v43, %v2893_v29  ;;  %v2946_v61 = vstv %s7581_s12  ;;  %v2987_v14 = vpop.permute.xlu1 %2986  ;;  %v7618_v25 = vpop.permute.xlu0 %3037 }
 0x643   :  { %v2917_v21 = vmul.f32 %v2913_v62, %v2885_v46  ;;  %v2953_v36 = vmul.f32 %v2951_v57, %v2933_v5  ;;  %v2932_v35 = vsel %vm2931_vm3, %v2928_v16, %v2930_v28  ;;  %v2935_v4 = vsel %vm2931_vm3, %v2930_v28, %v7550_v17 }
 0x644   :  { %v2918_v55 = vmul.f32 %v2914_v33, %v2886_v10  ;;  %v2960_v45 = vrot.slane %v2952_v20, 1  ;;  %v2954_v60 = vmul.f32 %v2951_v57, %v2932_v35  ;;  %v2955_v23 = vmul.f32 %v2951_v57, %v2935_v4 }
 0x645   :  { %v7616_v53 = vadd.f32 %v2917_v21, %v2864_v13  ;;  %v2947_v46 = vmul.f32 %v2946_v61, %v2934_v49  ;;  %vm2988_vm8 = vcmp.lt.s32.totalorder %v4214_v47, 95  ;;  %v2961_v29 = vrot.slane %v2953_v36, 1 }
 0x646   :  { %v2922_v1 = vadd.f32 %v2918_v55, %v2865_v41  ;;  %v2950_v34 = vmul.f32 %v2946_v61, %v2935_v4  ;;  %v2963_v30 = vrot.slane %v2955_v23, 1  ;;  %v3008_v16 = vstv %s3706_s13  ;;  %v3040_v43 = vpop.permute.xlu1 %3039  ;;  %v7629_v57 = vpop.permute.xlu0 %3041 }
 0x647   :  { %v2968_v17 = vadd.f32 %v2960_v45, %v2947_v46  ;;  %v2948_v28 = vmul.f32 %v2946_v61, %v2933_v5  ;;  %v2943_v13 = vsel %vm7497_vm13, 1.0, %v8515_v37  ;;  %v2991_v41 = vsel %vm2988_vm8, %v7592_v15, %v2983_v50 }
 0x648   :  { %v2962_v49 = vrot.slane %v2954_v60, 1  ;;  %v2971_v10 = vadd.f32 %v2963_v30, %v2950_v34  ;;  %v3003_v62 = vstv %s3705_s14  ;;  %v3009_v20 = vmul.f32 %v3008_v16, %v2991_v41 }
 0x649   :  { %v2940_v33 = vsel %vm7442_vm11, 1.0, %v8515_v37  ;;  %v2941_v5 = vsel %vm7470_vm15, 1.0, %v8515_v37  ;;  %v2942_v21 = vsel %vm7493_vm14, 1.0, %v8515_v37  ;;  %v2990_v55 = vsel %vm2988_vm8, %v2983_v50, %v2985_v54 }
 0x64a   :  { %v2969_v36 = vadd.f32 %v2961_v29, %v2948_v28  ;;  %v2949_v4 = vmul.f32 %v2946_v61, %v2932_v35  ;;  %v2975_v45 = vmul.f32 %v2971_v10, %v2943_v13  ;;  %v3017_v60 = vrot.slane %v3009_v20, 1  ;;  %v3044_v23 = vpop.permute.xlu1 %3043  ;;  %v7653_v29 = vpop.permute.xlu0 %3094 }
 0x64b   :  { %vm9230_vm0 = vcmp.le.s32.totalorder %v9158_v58, 15  ;;  %v3004_v46 = vmul.f32 %v3003_v62, %v2991_v41  ;;  %v3010_v34 = vmul.f32 %v3008_v16, %v2990_v55  ;;  %v2989_v30 = vsel %vm2988_vm8, %v2985_v54, %v2987_v14 }
 0x64c   :  { %vm2993_vm1 = vmand %vm7442_vm11, %vm9230_vm0  ;;  %v2992_v50 = vsel %vm2988_vm8, %v2987_v14, %v7592_v15  ;;  %v2972_v61 = vmul.f32 %v2968_v17, %v2940_v33  ;;  %v2970_v35 = vadd.f32 %v2962_v49, %v2949_v4  ;;  %v7655_v28 = vadd.f32 %v2975_v45, %v2922_v1 }
 0x64d   :  { %vm3045_vm10 = vcmp.lt.s32.totalorder %v4214_v47, 94  ;;  %v3025_v13 = vadd.f32 %v3017_v60, %v3004_v46  ;;  %v3018_v10 = vrot.slane %v3010_v34, 1  ;;  %v3011_v41 = vmul.f32 %v3008_v16, %v2989_v30 }
 0x64e   :  { %v3012_v20 = vmul.f32 %v3008_v16, %v2992_v50  ;;  %v2973_v58 = vmul.f32 %v2969_v36, %v2941_v5  ;;  %v2997_v54 = vsel %vm2993_vm1, 1.0, %v8515_v37  ;;  %vm9231_vm12 = vcmp.le.s32.totalorder %v9160_v31, 15  ;;  %v3097_v17 = vpop.permute.xlu1 %3096  ;;  %v7679_v4 = vpop.permute.xlu0 %3098 }
 0x64f   :  { %vm7663_vm4 = vmand %vm7470_vm15, %vm9231_vm12  ;;  %v3005_v14 = vmul.f32 %v3003_v62, %v2990_v55  ;;  %v3065_v1 = vstv %s7621_s15  ;;  %vm9234_vm9 = vcmp.le.s32.totalorder %v9164_v48, 15  ;;  %v3006_v49 = vmul.f32 %v3003_v62, %v2989_v30 }
 0x650   :  { %vm7672_vm6 = vmand %vm7493_vm14, %vm9234_vm9  ;;  %v3019_v33 = vrot.slane %v3011_v41, 1  ;;  %v3020_v5 = vrot.slane %v3012_v20, 1  ;;  %v3048_v36 = vsel %vm3045_vm10, %v7618_v25, %v3040_v43  ;;  %vm9237_vm7 = vcmp.le.s32.totalorder %v9168_v0, 15 }
 0x651   :  { %v3026_v55 = vadd.f32 %v3018_v10, %v3005_v14  ;;  %vm7685_vm5 = vmand %vm7497_vm13, %vm9237_vm7  ;;  %v3007_v60 = vmul.f32 %v3003_v62, %v2992_v50  ;;  %v3060_v46 = vstv %s7631_s16  ;;  %v3066_v34 = vmul.f32 %v3065_v1, %v3048_v36 }
 0x652   :  { %v2974_v30 = vmul.f32 %v2970_v35, %v2942_v21  ;;  %v3029_v41 = vmul.f32 %v3025_v13, %v2997_v54  ;;  %v2998_v20 = vsel %vm7663_vm4, 1.0, %v8515_v37  ;;  %v3047_v10 = vsel %vm3045_vm10, %v3040_v43, %v7629_v57  ;;  %v3101_v35 = vpop.permute.xlu1 %3100 }
 0x653   :  { %v3027_v14 = vadd.f32 %v3019_v33, %v3006_v49  ;;  %v3028_v0 = vadd.f32 %v3020_v5, %v3007_v60  ;;  %vm9240_vm2 = vcmp.le.s32.totalorder %v9170_v44, 15  ;;  %v3074_v21 = vrot.slane %v3066_v34, 1  ;;  %v7721_v33 = vpop.permute.xlu0 %3151 }
 0x654   :  { %vm7702_vm3 = vmand %vm7442_vm11, %vm9240_vm2  ;;  %v3067_v50 = vmul.f32 %v3065_v1, %v3047_v10  ;;  %v2976_v13 = vadd.f32 %v2972_v61, %v7600_v63  ;;  %v2999_v54 = vsel %vm7672_vm6, 1.0, %v8515_v37  ;;  %v3000_v43 = vsel %vm7685_vm5, 1.0, %v8515_v37 }
 0x655   :  { %v3061_v15 = vmul.f32 %v3060_v46, %v3048_v36  ;;  %vm9243_vm8 = vcmp.le.s32.totalorder %v9174_v56, 15  ;;  %v2977_v63 = vadd.f32 %v2973_v58, %v7606_v40  ;;  %v3030_v61 = vmul.f32 %v3026_v55, %v2998_v20 }
 0x656   :  { %vm7717_vm0 = vmand %vm7470_vm15, %vm9243_vm8  ;;  %vm9246_vm1 = vcmp.le.s32.totalorder %v9178_v51, 15  ;;  %v3046_v5 = vsel %vm3045_vm10, %v7629_v57, %v3044_v23  ;;  %v3049_v36 = vsel %vm3045_vm10, %v3044_v23, %v7618_v25  ;;  %v2978_v58 = vadd.f32 %v2974_v30, %v7616_v53  ;;  %v7748_v23 = vpop.permute.xlu1 %3153 }
 0x657   :  { %vm7728_vm12 = vmand %vm7493_vm14, %vm9246_vm1  ;;  %v3054_v40 = vsel %vm7702_vm3, 1.0, %v8515_v37  ;;  %v3082_v55 = vadd.f32 %v3074_v21, %v3061_v15  ;;  %v3075_v45 = vrot.slane %v3067_v50, 1  ;;  %vm9249_vm4 = vcmp.le.s32.totalorder %v9182_v9, 15  ;;  %v7754_v62 = vpop.permute.xlu0 %3155 }
 0x658   :  { %vm3053_vm9 = vmand %vm7497_vm13, %vm9249_vm4  ;;  %v3033_v57 = vadd.f32 %v3029_v41, %v2976_v13  ;;  %v3031_v60 = vmul.f32 %v3027_v14, %v2999_v54  ;;  %v3032_v34 = vmul.f32 %v3028_v0, %v3000_v43  ;;  %v3068_v25 = vmul.f32 %v3065_v1, %v3046_v5 }
 0x659   :  { %v3055_v53 = vsel %vm7717_vm0, 1.0, %v8515_v37  ;;  %v3062_v30 = vmul.f32 %v3060_v46, %v3047_v10  ;;  %v3069_v20 = vmul.f32 %v3065_v1, %v3049_v36  ;;  %vm3102_vm10 = vcmp.lt.s32.totalorder %v4214_v47, 93 }
 0x65a   :  { %v7756_v21 = vadd.f32 %v3030_v61, %v2977_v63  ;;  %v3056_v41 = vsel %vm7728_vm12, 1.0, %v8515_v37  ;;  %v7762_v0 = vsel %vm3053_vm9, 1.0, %v8515_v37  ;;  %vm9250_vm6 = vcmp.le.s32.totalorder %v9184_v6, 15  ;;  %v7798_v2 = vpop.permute.xlu1 %3157 }
 0x65b   :  { %vm7768_vm7 = vmand %vm7442_vm11, %vm9250_vm6  ;;  %v3122_v1 = vstv %s7690_s17  ;;  %v3086_v14 = vmul.f32 %v3082_v55, %v3054_v40  ;;  %v3083_v50 = vadd.f32 %v3075_v45, %v3062_v30  ;;  %v3105_v13 = vsel %vm3102_vm10, %v7653_v29, %v3097_v17 }
 0x65c   :  { %vm9253_vm5 = vcmp.le.s32.totalorder %v9186_v12, 15  ;;  %v3104_v54 = vsel %vm3102_vm10, %v3097_v17, %v7679_v4  ;;  %v7789_v43 = vadd.f32 %v3031_v60, %v2978_v58  ;;  %v7792_v15 = vadd.f32 %v3032_v34, %v7655_v28  ;;  %v7802_v17 = vpop.permute.xlu0 %3208 }
 0x65d   :  { %vm7782_vm2 = vmand %vm7470_vm15, %vm9253_vm5  ;;  %v3063_v49 = vmul.f32 %v3060_v46, %v3046_v5  ;;  %v3076_v63 = vrot.slane %v3068_v25, 1  ;;  %vm9256_vm11 = vcmp.le.s32.totalorder %v9190_v42, 15  ;;  %v3064_v61 = vmul.f32 %v3060_v46, %v3049_v36 }
 0x65e   :  { %vm3109_vm3 = vmand %vm7493_vm14, %vm9256_vm11  ;;  %v3077_v16 = vrot.slane %v3069_v20, 1  ;;  %v3123_v40 = vmul.f32 %v3122_v1, %v3105_v13  ;;  %v3124_v55 = vmul.f32 %v3122_v1, %v3104_v54  ;;  %v3111_v28 = vsel %vm7768_vm7, 1.0, %v8515_v37  ;;  %v7820_v10 = vpop.permute.xlu1 %3210 }
 0x65f   :  { %v3117_v5 = vstv %s7738_s18  ;;  %v3103_v3 = vsel %vm3102_vm10, %v7679_v4, %v3101_v35  ;;  %v3106_v46 = vsel %vm3102_vm10, %v3101_v35, %v7653_v29  ;;  %v7814_v36 = vadd.f32 %v3086_v14, %v3033_v57 }
 0x660   :  { %v3087_v58 = vmul.f32 %v3083_v50, %v3055_v53  ;;  %v3112_v45 = vsel %vm7782_vm2, 1.0, %v8515_v37  ;;  %v3113_v60 = vsel %vm3109_vm3, 1.0, %v8515_v37  ;;  %v3084_v34 = vadd.f32 %v3076_v63, %v3063_v49  ;;  %v7824_v35 = vpop.permute.xlu0 %3212 }
 0x661   :  { %v3131_v25 = vrot.slane %v3123_v40, 1  ;;  %v3125_v30 = vmul.f32 %v3122_v1, %v3103_v3  ;;  %v3126_v20 = vmul.f32 %v3122_v1, %v3106_v46  ;;  %v3085_v4 = vadd.f32 %v3077_v16, %v3064_v61 }
 0x662   :  { %v3132_v42 = vrot.slane %v3124_v55, 1  ;;  %v754_v29 = vadd.s32 3, %v9196_v8  ;;  %vm3159_vm15 = vcmp.lt.s32.totalorder %v4214_v47, 83  ;;  %v3118_v57 = vmul.f32 %v3117_v5, %v3105_v13  ;;  %v7836_v61 = vpop.permute.xlu1 %3214 }
 0x663   :  { %vm9257_vm14 = vcmp.le.s32.totalorder %v9194_v52, 15  ;;  %v3133_v53 = vrot.slane %v3125_v30, 1  ;;  %v3134_v14 = vrot.slane %v3126_v20, 1  ;;  %v3179_v1 = vstv %s7773_s0 }
 0x664   :  { %vm3110_vm8 = vmand %vm7497_vm13, %vm9257_vm14  ;;  %v3119_v50 = vmul.f32 %v3117_v5, %v3104_v54  ;;  %v3120_v27 = vmul.f32 %v3117_v5, %v3103_v3  ;;  %vm758_vm0 = vcmp.ge.s32.totalorder %v754_v29, 0  ;;  %vm762_vm1 = vcmp.le.s32.totalorder %v754_v29, 15 }
 0x665   :  { %v3139_v49 = vadd.f32 %v3131_v25, %v3118_v57  ;;  %v3121_v8 = vmul.f32 %v3117_v5, %v3106_v46  ;;  %v3162_v13 = vsel %vm3159_vm15, %v7721_v33, %v7748_v23  ;;  %v755_v63 = vadd.s32 3, %v9199_v39  ;;  %vm7839_vm13 = vmand %vm758_vm0, %vm762_vm1  ;;  %v7846_v5 = vpop.permute.xlu0 %3265 }
 0x666   :  { %v3140_v11 = vadd.f32 %v3132_v42, %v3119_v50  ;;  %v3114_v16 = vsel %vm3110_vm8, 1.0, %v8515_v37  ;;  %v7844_v54 = vstv %s7800_s19  ;;  %v3180_v55 = vmul.f32 %v3179_v1, %v3162_v13 }
 0x667   :  { %v3088_v3 = vmul.f32 %v3084_v34, %v3056_v41  ;;  %v3141_v46 = vadd.f32 %v3133_v53, %v3120_v27  ;;  %v3142_v25 = vadd.f32 %v3134_v14, %v3121_v8  ;;  %vm759_vm12 = vcmp.ge.s32.totalorder %v755_v63, 0 }
 0x668   :  { %v3188_v30 = vrot.slane %v3180_v55, 1  ;;  %vm763_vm4 = vcmp.le.s32.totalorder %v755_v63, 15  ;;  %v3161_v42 = vsel %vm3159_vm15, %v7748_v23, %v7754_v62  ;;  %v756_v39 = vadd.s32 3, %v9207_v26  ;;  %v7867_v23 = vpop.permute.xlu1 %3267 }
 0x669   :  { %v3089_v20 = vmul.f32 %v3085_v4, %v7762_v0  ;;  %v3143_v29 = vmul.f32 %v3139_v49, %v3111_v28  ;;  %vm9260_vm9 = vcmp.ge.s32.totalorder %v9200_v59, 0  ;;  %v3175_v34 = vmul.f32 %v7844_v54, %v3162_v13  ;;  %v7870_v0 = vpop.permute.xlu0 %3269  ;;  %vm7874_vm5 = vmand %vm759_vm12, %vm763_vm4 }
 0x66a   :  { %vm7860_vm10 = vmand %vm7839_vm13, %vm9260_vm9  ;;  %v3181_v57 = vmul.f32 %v3179_v1, %v3161_v42  ;;  %v3144_v26 = vmul.f32 %v3140_v11, %v3112_v45  ;;  %v757_v53 = vadd.s32 3, %v9208_v32  ;;  %vm760_vm6 = vcmp.ge.s32.totalorder %v756_v39, 0 }
 0x66b   :  { %vm764_vm7 = vcmp.le.s32.totalorder %v756_v39, 15  ;;  %v3145_v59 = vmul.f32 %v3141_v46, %v3113_v60  ;;  %v3196_v28 = vadd.f32 %v3188_v30, %v3175_v34  ;;  %v3160_v14 = vsel %vm3159_vm15, %v7754_v62, %v7798_v2  ;;  %v9274_v34 = vld [vmem:[#allocation30_spill] sm:$0xff] }
 0x66c   :  { %v3163_v32 = vsel %vm3159_vm15, %v7798_v2, %v7721_v33  ;;  %v3091_v45 = vadd.f32 %v3087_v58, %v7756_v21  ;;  %v3146_v60 = vmul.f32 %v3142_v25, %v3114_v16  ;;  %v3168_v50 = vsel %vm7860_vm10, 1.0, %v8515_v37  ;;  %vm7890_vm2 = vmand %vm760_vm6, %vm764_vm7  ;;  %v7895_v13 = vpop.permute.xlu1 %3271  ;;  %v9270_v16 = vld [vmem:[#allocation25_spill] sm:$0xff] }
 0x66d   :  { %v3189_v27 = vrot.slane %v3181_v57, 1  ;;  %v3092_v8 = vadd.f32 %v3088_v3, %v7789_v43  ;;  %vm761_vm11 = vcmp.ge.s32.totalorder %v757_v53, 0  ;;  %vm765_vm3 = vcmp.le.s32.totalorder %v757_v53, 15 }
 0x66e   :  { %v3182_v62 = vmul.f32 %v3179_v1, %v3160_v14  ;;  %v3093_v33 = vadd.f32 %v3089_v20, %v7792_v15  ;;  %vm9267_vm15 = vcmp.ge.s32.totalorder %v9209_v22, 0  ;;  %v3176_v2 = vmul.f32 %v7844_v54, %v3161_v42  ;;  %v7915_v22 = vpop.permute.xlu0 %3322  ;;  %vm7921_vm12 = vmand %vm761_vm11, %vm765_vm3 }
 0x66f   :  { %vm7902_vm14 = vmand %vm7874_vm5, %vm9267_vm15  ;;  %v3183_v58 = vmul.f32 %v3179_v1, %v3163_v32  ;;  %vm3216_vm8 = vcmp.lt.s32.totalorder %v4214_v47, 82  ;;  %v3147_v43 = vadd.f32 %v3143_v29, %v7814_v36  ;;  %v3148_v63 = vadd.f32 %v3144_v26, %v3091_v45 }
 0x670   :  { %v7909_v11 = vadd.f32 %v3145_v59, %v3092_v8  ;;  %v3200_v15 = vmul.f32 %v3196_v28, %v3168_v50  ;;  %vm9271_vm0 = vcmp.ge.s32.totalorder %v9270_v16, 0  ;;  %v7917_v55 = vadd.f32 %v3146_v60, %v3093_v33  ;;  %v9278_v59 = vld [vmem:[#allocation27_spill] sm:$0xff]  ;;  %v7961_v50 = vpop.permute.xlu1 %3324 }
 0x671   :  { %vm3166_vm1 = vmand %vm7890_vm2, %vm9271_vm0  ;;  %v3197_v3 = vadd.f32 %v3189_v27, %v3176_v2  ;;  %v3236_v36 = vstv %s7853_s20  ;;  %v3219_v46 = vsel %vm3216_vm8, %v7802_v17, %v7820_v10  ;;  %v3169_v25 = vsel %vm7902_vm14, 1.0, %v8515_v37 }
 0x672   :  { %v3190_v30 = vrot.slane %v3182_v62, 1  ;;  %v3231_v42 = vstv %s7865_s1  ;;  %v3237_v39 = vmul.f32 %v3236_v36, %v3219_v46  ;;  %v3170_v20 = vsel %vm3166_vm1, 1.0, %v8515_v37  ;;  %v9282_v62 = vld [vmem:[#allocation28_spill] sm:$0xff]  ;;  %v7976_v2 = vpop.permute.xlu0 %3326 }
 0x673   :  { %v3177_v29 = vmul.f32 %v7844_v54, %v3160_v14  ;;  %v3191_v41 = vrot.slane %v3183_v58, 1  ;;  %vm9275_vm4 = vcmp.ge.s32.totalorder %v9274_v34, 0  ;;  %v3218_v26 = vsel %vm3216_vm8, %v7820_v10, %v7824_v35 }
 0x674   :  { %vm7944_vm9 = vmand %vm7839_vm13, %vm9275_vm4  ;;  %v3204_v53 = vadd.f32 %v3200_v15, %v3147_v43  ;;  %vm9279_vm10 = vcmp.ge.s32.totalorder %v9278_v59, 0  ;;  %v3178_v14 = vmul.f32 %v7844_v54, %v3163_v32  ;;  %v3245_v45 = vrot.slane %v3237_v39, 1  ;;  %v3329_v28 = vpop.permute.xlu1 %3328 }
 0x675   :  { %vm7956_vm6 = vmand %vm7921_vm12, %vm9279_vm10  ;;  %v3238_v60 = vmul.f32 %v3236_v36, %v3218_v26  ;;  %v3201_v27 = vmul.f32 %v3197_v3, %v3169_v25  ;;  %v3232_v8 = vmul.f32 %v3231_v42, %v3219_v46  ;;  %vm9283_vm7 = vcmp.ge.s32.totalorder %v9282_v62, 0  ;;  %v9284_v46 = vld [vmem:[#allocation29_spill] sm:$0xff] }
 0x676   :  { %vm3222_vm11 = vmand %vm7874_vm5, %vm9283_vm7  ;;  %v3217_v10 = vsel %vm3216_vm8, %v7824_v35, %v7836_v61  ;;  %v3220_v54 = vsel %vm3216_vm8, %v7836_v61, %v7802_v17  ;;  %v3198_v32 = vadd.f32 %v3190_v30, %v3177_v29  ;;  %v3233_v33 = vmul.f32 %v3231_v42, %v3218_v26 }
 0x677   :  { %v3246_v21 = vrot.slane %v3238_v60, 1  ;;  %vm3273_vm3 = vcmp.lt.s32.totalorder %v4214_v47, 81  ;;  %v3199_v58 = vadd.f32 %v3191_v41, %v3178_v14  ;;  %v3253_v43 = vadd.f32 %v3245_v45, %v3232_v8 }
 0x678   :  { %v3239_v15 = vmul.f32 %v3236_v36, %v3217_v10  ;;  %v3240_v16 = vmul.f32 %v3236_v36, %v3220_v54  ;;  %v3171_v35 = vsel %vm7956_vm6, 1.0, %v8515_v37  ;;  %v3225_v17 = vsel %vm7944_vm9, 1.0, %v8515_v37 }
 0x679   :  { %v3226_v61 = vsel %vm3222_vm11, 1.0, %v8515_v37  ;;  %v3254_v3 = vadd.f32 %v3246_v21, %v3233_v33  ;;  %vm9285_vm15 = vcmp.ge.s32.totalorder %v9284_v46, 0  ;;  %v3288_v30 = vstv %s7930_s2 }
 0x67a   :  { %vm7989_vm14 = vmand %vm7890_vm2, %vm9285_vm15  ;;  %v3247_v36 = vrot.slane %v3239_v15, 1  ;;  %v3293_v39 = vstv %s7932_s21  ;;  %v3276_v29 = vsel %vm3273_vm3, %v7846_v5, %v7867_v23  ;;  %v3205_v41 = vadd.f32 %v3201_v27, %v3148_v63 }
 0x67b   :  { %vm9288_vm8 = vcmp.ge.s32.totalorder %v9130_v38, 0  ;;  %v3234_v57 = vmul.f32 %v3231_v42, %v3217_v10  ;;  %v3248_v26 = vrot.slane %v3240_v16, 1  ;;  %v3294_v59 = vmul.f32 %v3293_v39, %v3276_v29 }
 0x67c   :  { %vm8003_vm0 = vmand %vm7921_vm12, %vm9288_vm8  ;;  %v3202_v14 = vmul.f32 %v3198_v32, %v3170_v20  ;;  %v3203_v45 = vmul.f32 %v3199_v58, %v3171_v35  ;;  %v3257_v60 = vmul.f32 %v3253_v43, %v3225_v17  ;;  %v3275_v38 = vsel %vm3273_vm3, %v7867_v23, %v7870_v0  ;;  %v8021_v20 = vpop.permute.xlu0 %3379 }
 0x67d   :  { %v3235_v63 = vmul.f32 %v3231_v42, %v3220_v54  ;;  %v3255_v27 = vadd.f32 %v3247_v36, %v3234_v57  ;;  %vm9291_vm1 = vcmp.ge.s32.totalorder %v9139_v19, 0  ;;  %v3289_v62 = vmul.f32 %v3288_v30, %v3276_v29 }
 0x67e   :  { %vm8017_vm4 = vmand %vm7839_vm13, %vm9291_vm1  ;;  %v3302_v10 = vrot.slane %v3294_v59, 1  ;;  %v3258_v32 = vmul.f32 %v3254_v3, %v3226_v61  ;;  %v3227_v33 = vsel %vm7989_vm14, 1.0, %v8515_v37  ;;  %v3228_v23 = vsel %vm8003_vm0, 1.0, %v8515_v37 }
 0x67f   :  { %vm9294_vm9 = vcmp.ge.s32.totalorder %v9143_v18, 0  ;;  %v3295_v19 = vmul.f32 %v3293_v39, %v3275_v38  ;;  %v3256_v42 = vadd.f32 %v3248_v26, %v3235_v63  ;;  %v3274_v21 = vsel %vm3273_vm3, %v7870_v0, %v7895_v13 }
 0x680   :  { %vm3279_vm10 = vmand %vm7874_vm5, %vm9294_vm9  ;;  %v3310_v54 = vadd.f32 %v3302_v10, %v3289_v62  ;;  %v3277_v58 = vsel %vm3273_vm3, %v7895_v13, %v7846_v5  ;;  %v3206_v18 = vadd.f32 %v3202_v14, %v7909_v11  ;;  %v3207_v43 = vadd.f32 %v3203_v45, %v7917_v55  ;;  %v3382_v13 = vpop.permute.xlu1 %3381  ;;  %v3384_v25 = vpop.permute.xlu0 %3383 }
 0x681   :  { %v3261_v15 = vadd.f32 %v3257_v60, %v3204_v53  ;;  %v3282_v16 = vsel %vm8017_vm4, 1.0, %v8515_v37  ;;  %vm9295_vm6 = vcmp.ge.s32.totalorder %v9147_v24, 0  ;;  %v3259_v0 = vmul.f32 %v3255_v27, %v3227_v33 }
 0x682   :  { %vm3280_vm7 = vmand %vm7890_vm2, %vm9295_vm6  ;;  %v3283_v35 = vsel %vm3279_vm10, 1.0, %v8515_v37  ;;  %v3296_v17 = vmul.f32 %v3293_v39, %v3274_v21  ;;  %v3297_v5 = vmul.f32 %v3293_v39, %v3277_v58  ;;  %v3262_v11 = vadd.f32 %v3258_v32, %v3205_v41 }
 0x683   :  { %v3290_v61 = vmul.f32 %v3288_v30, %v3275_v38  ;;  %v3303_v55 = vrot.slane %v3295_v19, 1  ;;  %vm9296_vm11 = vcmp.ge.s32.totalorder %v9151_v7, 0  ;;  %vm3330_vm15 = vcmp.lt.s32.totalorder %v4214_v47, 80 }
 0x684   :  { %vm3281_vm3 = vmand %vm7921_vm12, %vm9296_vm11  ;;  %v3260_v24 = vmul.f32 %v3256_v42, %v3228_v23  ;;  %v3314_v53 = vmul.f32 %v3310_v54, %v3282_v16  ;;  %v3284_v3 = vsel %vm3280_vm7, 1.0, %v8515_v37  ;;  %v3350_v46 = vstv %s8007_s22  ;;  %v8083_v54 = vpop.permute.xlu0 %3436 }
 0x685   :  { %v3304_v36 = vrot.slane %v3296_v17, 1  ;;  %v3305_v39 = vrot.slane %v3297_v5, 1  ;;  %v3333_v7 = vsel %vm3330_vm15, %v7915_v22, %v7961_v50  ;;  %v3332_v29 = vsel %vm3330_vm15, %v7961_v50, %v7976_v2 }
 0x686   :  { %v3263_v41 = vadd.f32 %v3259_v0, %v3206_v18  ;;  %v3285_v34 = vsel %vm3281_vm3, 1.0, %v8515_v37  ;;  %v3291_v57 = vmul.f32 %v3288_v30, %v3274_v21  ;;  %v3292_v26 = vmul.f32 %v3288_v30, %v3277_v58  ;;  %v3386_v30 = vpop.permute.xlu1 %3385 }
 0x687   :  { %v3311_v59 = vadd.f32 %v3303_v55, %v3290_v61  ;;  %v3345_v14 = vstv %s8033_s23  ;;  %v3351_v45 = vmul.f32 %v3350_v46, %v3333_v7  ;;  %v3352_v60 = vmul.f32 %v3350_v46, %v3332_v29 }
 0x688   :  { %v3264_v38 = vadd.f32 %v3260_v24, %v3207_v43  ;;  %v3339_v63 = vsel %vm7839_vm13, 1.0, %v8515_v37  ;;  %v3331_v50 = vsel %vm3330_vm15, %v7976_v2, %v3329_v28  ;;  %v3334_v27 = vsel %vm3330_vm15, %v3329_v28, %v7915_v22 }
 0x689   :  { %v3318_v8 = vadd.f32 %v3314_v53, %v3261_v15  ;;  %v3312_v62 = vadd.f32 %v3304_v36, %v3291_v57  ;;  %v3313_v10 = vadd.f32 %v3305_v39, %v3292_v26  ;;  %v3359_v32 = vrot.slane %v3351_v45, 1  ;;  %v9297_v36 = vld [vmem:[#allocation38_spill] sm:$0xff]  ;;  %v3441_v26 = vpop.permute.xlu0 %3440 }
 0x68a   :  { %v3346_v33 = vmul.f32 %v3345_v14, %v3333_v7  ;;  %v3360_v23 = vrot.slane %v3352_v60, 1  ;;  %v3353_v19 = vmul.f32 %v3350_v46, %v3331_v50  ;;  %v3354_v42 = vmul.f32 %v3350_v46, %v3334_v27  ;;  %v3439_v24 = vpop.permute.xlu1 %3438 }
 0x68b   :  { %v3315_v21 = vmul.f32 %v3311_v59, %v3283_v35  ;;  %v3340_v2 = vsel %vm7874_vm5, 1.0, %v8515_v37  ;;  %v3347_v58 = vmul.f32 %v3345_v14, %v3332_v29  ;;  %vm3387_vm14 = vcmp.lt.s32.totalorder %v4214_v47, 79 }
 0x68c   :  { %v3367_v22 = vadd.f32 %v3359_v32, %v3346_v33  ;;  %v3361_v28 = vrot.slane %v3353_v19, 1  ;;  %v3362_v18 = vrot.slane %v3354_v42, 1  ;;  %v3407_v43 = vstv %s8060_s24 }
 0x68d   :  { %v3316_v15 = vmul.f32 %v3312_v62, %v3284_v3  ;;  %v3317_v16 = vmul.f32 %v3313_v10, %v3285_v34  ;;  %v3348_v0 = vmul.f32 %v3345_v14, %v3331_v50  ;;  %v3390_v17 = vsel %vm3387_vm14, %v8021_v20, %v3382_v13 }
 0x68e   :  { %v3368_v35 = vadd.f32 %v3360_v23, %v3347_v58  ;;  %v3349_v5 = vmul.f32 %v3345_v14, %v3334_v27  ;;  %v3402_v61 = vstv %s8071_s25  ;;  %v3408_v55 = vmul.f32 %v3407_v43, %v3390_v17  ;;  %v9303_v23 = vld [vmem:[#allocation39_spill] sm:$0xff]  ;;  %v8143_v58 = vpop.permute.xlu0 %3493 }
 0x68f   :  { %v3319_v53 = vadd.f32 %v3315_v21, %v3262_v11  ;;  %v3341_v46 = vsel %vm7890_vm2, 1.0, %v8515_v37  ;;  %v3342_v3 = vsel %vm7921_vm12, 1.0, %v8515_v37  ;;  %vm9298_vm8 = vcmp.le.s32.totalorder %v9297_v36, 15 }
 0x690   :  { %vm8106_vm0 = vmand %vm7839_vm13, %vm9298_vm8  ;;  %v3389_v7 = vsel %vm3387_vm14, %v3382_v13, %v3384_v25  ;;  %v3371_v11 = vmul.f32 %v3367_v22, %v3339_v63  ;;  %v3369_v29 = vadd.f32 %v3361_v28, %v3348_v0  ;;  %v3370_v34 = vadd.f32 %v3362_v18, %v3349_v5 }
 0x691   :  { %v3416_v57 = vrot.slane %v3408_v55, 1  ;;  %v3403_v59 = vmul.f32 %v3402_v61, %v3390_v17  ;;  %vm9301_vm1 = vcmp.le.s32.totalorder %v9160_v31, 15  ;;  %v3409_v14 = vmul.f32 %v3407_v43, %v3389_v7 }
 0x692   :  { %vm3393_vm4 = vmand %vm7874_vm5, %vm9301_vm1  ;;  %v3388_v45 = vsel %vm3387_vm14, %v3384_v25, %v3386_v30  ;;  %v3391_v13 = vsel %vm3387_vm14, %v3386_v30, %v8021_v20  ;;  %v3320_v60 = vadd.f32 %v3316_v15, %v3263_v41  ;;  %v3321_v63 = vadd.f32 %v3317_v16, %v3264_v38  ;;  %v3443_v41 = vpop.permute.xlu1 %3442 }
 0x693   :  { %v3372_v50 = vmul.f32 %v3368_v35, %v3340_v2  ;;  %v3396_v27 = vsel %vm8106_vm0, 1.0, %v8515_v37  ;;  %v3424_v31 = vadd.f32 %v3416_v57, %v3403_v59  ;;  %v3417_v62 = vrot.slane %v3409_v14, 1 }
 0x694   :  { %vm9302_vm9 = vcmp.le.s32.totalorder %v9164_v48, 15  ;;  %v3410_v25 = vmul.f32 %v3407_v43, %v3388_v45  ;;  %v3411_v10 = vmul.f32 %v3407_v43, %v3391_v13  ;;  %v3375_v32 = vadd.f32 %v3371_v11, %v3318_v8 }
 0x695   :  { %vm3394_vm10 = vmand %vm7890_vm2, %vm9302_vm9  ;;  %v3373_v33 = vmul.f32 %v3369_v29, %v3341_v46  ;;  %v3397_v20 = vsel %vm3393_vm4, 1.0, %v8515_v37  ;;  %vm3444_vm6 = vcmp.lt.s32.totalorder %v4214_v47, 78  ;;  %v3374_v38 = vmul.f32 %v3370_v34, %v3342_v3 }
 0x696   :  { %v3404_v30 = vmul.f32 %v3402_v61, %v3389_v7  ;;  %vm9304_vm7 = vcmp.le.s32.totalorder %v9303_v23, 15  ;;  %v3418_v48 = vrot.slane %v3410_v25, 1  ;;  %v3464_v19 = vstv %s8093_s26  ;;  %v3496_v36 = vpop.permute.xlu1 %3495 }
 0x697   :  { %vm3395_vm11 = vmand %vm7921_vm12, %vm9304_vm7  ;;  %v3376_v42 = vadd.f32 %v3372_v50, %v3319_v53  ;;  %v3398_v21 = vsel %vm3394_vm10, 1.0, %v8515_v37  ;;  %v3447_v8 = vsel %vm3444_vm6, %v8083_v54, %v3439_v24  ;;  %v3446_v2 = vsel %vm3444_vm6, %v3439_v24, %v3441_v26 }
 0x698   :  { %v3428_v22 = vmul.f32 %v3424_v31, %v3396_v27  ;;  %v3425_v28 = vadd.f32 %v3417_v62, %v3404_v30  ;;  %v3405_v18 = vmul.f32 %v3402_v61, %v3388_v45  ;;  %v3419_v43 = vrot.slane %v3411_v10, 1 }
 0x699   :  { %vm9305_vm3 = vcmp.le.s32.totalorder %v9170_v44, 15  ;;  %v3399_v15 = vsel %vm3395_vm11, 1.0, %v8515_v37  ;;  %v3459_v16 = vstv %s8112_s27  ;;  %v3465_v0 = vmul.f32 %v3464_v19, %v3447_v8 }
 0x69a   :  { %vm3449_vm15 = vmand %vm7839_vm13, %vm9305_vm3  ;;  %v3466_v17 = vmul.f32 %v3464_v19, %v3446_v2  ;;  %v3377_v35 = vadd.f32 %v3373_v33, %v3320_v60  ;;  %v8155_v5 = vadd.f32 %v3374_v38, %v3321_v63  ;;  %v3406_v55 = vmul.f32 %v3402_v61, %v3391_v13  ;;  %v3500_v33 = vpop.permute.xlu1 %3499 }
 0x69b   :  { %v3426_v24 = vadd.f32 %v3418_v48, %v3405_v18  ;;  %vm9306_vm14 = vcmp.le.s32.totalorder %v9174_v56, 15  ;;  %v3453_v44 = vsel %vm3449_vm15, 1.0, %v8515_v37  ;;  %v3473_v53 = vrot.slane %v3465_v0, 1 }
 0x69c   :  { %vm3450_vm8 = vmand %vm7874_vm5, %vm9306_vm14  ;;  %v3445_v46 = vsel %vm3444_vm6, %v3441_v26, %v3443_v41  ;;  %v3448_v3 = vsel %vm3444_vm6, %v3443_v41, %v8083_v54  ;;  %v3432_v39 = vadd.f32 %v3428_v22, %v3375_v32  ;;  %v3429_v7 = vmul.f32 %v3425_v28, %v3397_v20  ;;  %v3498_v26 = vpop.permute.xlu0 %3497  ;;  %v9313_v28 = vld [vmem:[#allocation45_spill] sm:$0xff] }
 0x69d   :  { %v3427_v61 = vadd.f32 %v3419_v43, %v3406_v55  ;;  %v3460_v11 = vmul.f32 %v3459_v16, %v3447_v8  ;;  %vm9307_vm0 = vcmp.le.s32.totalorder %v9178_v51, 15  ;;  %v3454_v56 = vsel %vm3450_vm8, 1.0, %v8515_v37 }
 0x69e   :  { %vm3451_vm1 = vmand %vm7890_vm2, %vm9307_vm0  ;;  %v3474_v29 = vrot.slane %v3466_v17, 1  ;;  %v3467_v34 = vmul.f32 %v3464_v19, %v3445_v46  ;;  %v3468_v57 = vmul.f32 %v3464_v19, %v3448_v3  ;;  %v3430_v59 = vmul.f32 %v3426_v24, %v3398_v21 }
 0x69f   :  { %v3481_v14 = vadd.f32 %v3473_v53, %v3460_v11  ;;  %v3461_v54 = vmul.f32 %v3459_v16, %v3446_v2  ;;  %vm3501_vm4 = vcmp.lt.s32.totalorder %v4214_v47, 77  ;;  %vm9308_vm9 = vcmp.le.s32.totalorder %v9182_v9, 15 }
 0x6a0   :  { %vm8177_vm10 = vmand %vm7921_vm12, %vm9308_vm9  ;;  %v3455_v45 = vsel %vm3451_vm1, 1.0, %v8515_v37  ;;  %v3475_v13 = vrot.slane %v3467_v34, 1  ;;  %v3476_v60 = vrot.slane %v3468_v57, 1  ;;  %v3521_v63 = vstv %s8145_s28 }
 0x6a1   :  { %v3433_v50 = vadd.f32 %v3429_v7, %v3376_v42  ;;  %v3431_v27 = vmul.f32 %v3427_v61, %v3399_v15  ;;  %vm9311_vm6 = vcmp.le.s32.totalorder %v9184_v6, 15  ;;  %v3504_v9 = vsel %vm3501_vm4, %v8143_v58, %v3496_v36 }
 0x6a2   :  { %vm3506_vm7 = vmand %vm7839_vm13, %vm9311_vm6  ;;  %v3503_v31 = vsel %vm3501_vm4, %v3496_v36, %v3498_v26  ;;  %v3482_v62 = vadd.f32 %v3474_v29, %v3461_v54  ;;  %v3462_v25 = vmul.f32 %v3459_v16, %v3445_v46  ;;  %v3463_v10 = vmul.f32 %v3459_v16, %v3448_v3 }
 0x6a3   :  { %v3516_v32 = vstv %s8153_s29  ;;  %v3434_v20 = vadd.f32 %v3430_v59, %v3377_v35  ;;  %v3485_v41 = vmul.f32 %v3481_v14, %v3453_v44  ;;  %v3456_v6 = vsel %vm8177_vm10, 1.0, %v8515_v37 }
 0x6a4   :  { %v3522_v40 = vmul.f32 %v3521_v63, %v3504_v9  ;;  %vm9312_vm13 = vcmp.le.s32.totalorder %v9186_v12, 15  ;;  %v3483_v38 = vadd.f32 %v3475_v13, %v3462_v25  ;;  %v3484_v30 = vadd.f32 %v3476_v60, %v3463_v10 }
 0x6a5   :  { %vm3507_vm11 = vmand %vm7874_vm5, %vm9312_vm13  ;;  %v3510_v23 = vsel %vm3506_vm7, 1.0, %v8515_v37  ;;  %v3523_v48 = vmul.f32 %v3521_v63, %v3503_v31  ;;  %v3517_v19 = vmul.f32 %v3516_v32, %v3504_v9  ;;  %v3502_v21 = vsel %vm3501_vm4, %v3498_v26, %v3500_v33 }
 0x6a6   :  { %v3530_v42 = vrot.slane %v3522_v40, 1  ;;  %v3505_v8 = vsel %vm3501_vm4, %v3500_v33, %v8143_v58  ;;  %v3486_v2 = vmul.f32 %v3482_v62, %v3454_v56  ;;  %v3511_v12 = vsel %vm3507_vm11, 1.0, %v8515_v37 }
 0x6a7   :  { %v3518_v22 = vmul.f32 %v3516_v32, %v3503_v31  ;;  %v3531_v4 = vrot.slane %v3523_v48, 1  ;;  %vm9314_vm5 = vcmp.le.s32.totalorder %v9313_v28, 15  ;;  %v3489_v43 = vadd.f32 %v3485_v41, %v3432_v39 }
 0x6a8   :  { %vm8211_vm3 = vmand %vm7890_vm2, %vm9314_vm5  ;;  %v3538_v15 = vadd.f32 %v3530_v42, %v3517_v19  ;;  %vm9317_vm15 = vcmp.le.s32.totalorder %v9194_v52, 15  ;;  %v3524_v47 = vmul.f32 %v3521_v63, %v3502_v21  ;;  %v3525_v58 = vmul.f32 %v3521_v63, %v3505_v8  ;;  %v9321_v42 = vld [vmem:[#allocation6_spill] sm:$0xff] }
 0x6a9   :  { %vm3509_vm14 = vmand %vm7921_vm12, %vm9317_vm15  ;;  %v3487_v16 = vmul.f32 %v3483_v38, %v3455_v45  ;;  %v3488_v0 = vmul.f32 %v3484_v30, %v3456_v6  ;;  %v3539_v17 = vadd.f32 %v3531_v4, %v3518_v22  ;;  %v3519_v35 = vmul.f32 %v3516_v32, %v3502_v21  ;;  %v9319_v38 = vld [vmem:[#allocation5_spill] sm:$0xff] }
 0x6aa   :  { %v3542_v55 = vmul.f32 %v3538_v15, %v3510_v23  ;;  %v3520_v24 = vmul.f32 %v3516_v32, %v3505_v8  ;;  %v3532_v49 = vrot.slane %v3524_v47, 1  ;;  %v3533_v44 = vrot.slane %v3525_v58, 1  ;;  %v9320_v23 = vld [vmem:[#allocation7_spill] sm:$0xff]  ;;  %v9322_v8 = vld [vmem:[#allocation8_spill] sm:$0xff] }
 0x6ab   :  { %v3490_v53 = vadd.f32 %v3486_v2, %v3433_v50  ;;  %v3543_v46 = vmul.f32 %v3539_v17, %v3511_v12  ;;  %v3512_v3 = vsel %vm8211_vm3, 1.0, %v8515_v37  ;;  %v3513_v52 = vsel %vm3509_vm14, 1.0, %v8515_v37  ;;  %v9323_v47 = vld [vmem:[#allocation11_spill] sm:$0xff]  ;;  %v9325_v17 = vld [vmem:[#allocation12_spill] sm:$0xff] }
 0x6ac   :  { %v3435_v1 = vadd.f32 %v3431_v27, %v8155_v5  ;;  %v3546_v36 = vadd.f32 %v3542_v55, %v3489_v43  ;;  %v3540_v39 = vadd.f32 %v3532_v49, %v3519_v35  ;;  %v3541_v7 = vadd.f32 %v3533_v44, %v3520_v24  ;;  %v9326_v55 = vld [vmem:[#allocation10_spill] sm:$0xff] }
 0x6ad   :  { %v3491_v61 = vadd.f32 %v3487_v16, %v3434_v20  ;;  %v3547_v11 = vadd.f32 %v3543_v46, %v3490_v53  ;;  %v9318_v25 = vlaneseq  ;;  %v9324_v16 = vld [vmem:[#allocation9_spill] sm:$0xff] }
 0x6ae   :  { %v3492_v56 = vadd.f32 %v3488_v0, %v3435_v1  ;;  %v3550_v29 = vsub.f32 0.0, %v3546_v36  ;;  %v3544_v34 = vmul.f32 %v3540_v39, %v3512_v3  ;;  %v3545_v57 = vmul.f32 %v3541_v7, %v3513_v52 }
 0x6af   :  { %v3551_v26 = vsub.f32 0.0, %v3547_v11  ;;  %v3575_v10 = vshrl.u32 %v9318_v25, 7 }
 0x6b0   :  { %v3554_v59 = vmul.f32 1.442695, %v3550_v29  ;;  %v3548_v14 = vadd.f32 %v3544_v34, %v3491_v61  ;;  %v3549_v54 = vadd.f32 %v3545_v57, %v3492_v56 }
 0x6b1   :  { %v3556_v51 = vmul.f32 1.442695, %v3551_v26  ;;  %v3576_v33 = vsub.s32 0, %v3575_v10 }
 0x6b2   :  { %3827 = vpow2.f32 %v3554_v59  ;;  %v3552_v45 = vsub.f32 0.0, %v3548_v14  ;;  %v3553_v13 = vsub.f32 0.0, %v3549_v54 }
 0x6b3   :  { %3829 = vpow2.f32 %v3556_v51 }
 0x6b4   :  { %v3558_v37 = vmul.f32 1.442695, %v3552_v45  ;;  %v3560_v5 = vmul.f32 1.442695, %v3553_v13 }
 0x6b6   :  { %3831 = vpow2.f32 %v3558_v37 }
 0x6b7   :  { %3833 = vpow2.f32 %v3560_v5 }
 0x6bc   :  { %v3828_v60 = vpop.eup %3827 }
 0x6bd   :  { %v3830_v63 = vpop.eup %3829  ;;  %v3562_v50 = vadd.f32 1.0, %v3828_v60 }
 0x6be   :  { %v3563_v27 = vadd.f32 1.0, %v3830_v63 }
 0x6bf   :  { %3835 = vrcp.f32 %v3562_v50 }
 0x6c0   :  { %v3832_v9 = vpop.eup %3831  ;;  %3837 = vrcp.f32 %v3563_v27 }
 0x6c1   :  { %v3834_v31 = vpop.eup %3833  ;;  %v3564_v62 = vadd.f32 1.0, %v3832_v9 }
 0x6c2   :  { %v3565_v32 = vadd.f32 1.0, %v3834_v31 }
 0x6c3   :  { %3839 = vrcp.f32 %v3564_v62 }
 0x6c4   :  { %3841 = vrcp.f32 %v3565_v32 }
 0x6c9   :  { %v3836_v20 = vpop.eup %3835 }
 0x6ca   :  { %v3838_v41 = vpop.eup %3837  ;;  %v3577_v6 = vrot.slane %v3836_v20, %v3576_v33 }
 0x6cb   :  { %v3581_v40 = vrot.slane %v3838_v41, %v3576_v33 }
 0x6cc   :  { %v3590_v30 = vmul.f32 %v3577_v6, %v9319_v38  ;;  %v3594_v48 = vmul.f32 %v3577_v6, %v9320_v23 }
 0x6cd   :  { %v3840_v19 = vpop.eup %3839  ;;  %v3591_v21 = vmul.f32 %v3581_v40, %v9321_v42  ;;  %v3595_v2 = vmul.f32 %v3581_v40, %v9322_v8 }
 0x6ce   :  { %v3842_v12 = vpop.eup %3841  ;;  %v3598_v22 = vmax.f32 %v3590_v30, 0.0  ;;  %v3602_v4 = vmax.f32 %v3594_v48, 0.0  ;;  %v3585_v28 = vrot.slane %v3840_v19, %v3576_v33 }
 0x6cf   :  { %v3599_v18 = vmax.f32 %v3591_v21, 0.0  ;;  %v3603_v43 = vmax.f32 %v3595_v2, 0.0  ;;  %v3589_v15 = vrot.slane %v3842_v12, %v3576_v33 }
 0x6d0   :  { %3606 = vst [vmem:[%s8260_s3] sm:$0xff] %v3598_v22  ;;  %3608 = vst [vmem:[%s8260_s3 + $0x10] sm:$0xff] %v3602_v4  ;;  %v3592_v58 = vmul.f32 %v3585_v28, %v9323_v47  ;;  %v3596_v0 = vmul.f32 %v3585_v28, %v9324_v16 }
 0x6d1   :  { %3607 = vst [vmem:[%s8260_s3 + $0x8] sm:$0xff] %v3599_v18  ;;  %3609 = vst [vmem:[%s8260_s3 + $0x18] sm:$0xff] %v3603_v43  ;;  %v3593_v35 = vmul.f32 %v3589_v15, %v9325_v17  ;;  %v3597_v24 = vmul.f32 %v3589_v15, %v9326_v55 }
 0x6d2   :  { %v3600_v49 = vmax.f32 %v3592_v58, 0.0  ;;  %v3604_v44 = vmax.f32 %v3596_v0, 0.0 }
 0x6d3   :  { %v3601_v53 = vmax.f32 %v3593_v35, 0.0  ;;  %v3605_v46 = vmax.f32 %v3597_v24, 0.0 }
 0x6d4   :  { %3725 = vst [vmem:[%s8260_s3 + $0x20] sm:$0xff] %v3600_v49  ;;  %3727 = vst [vmem:[%s8260_s3 + $0x30] sm:$0xff] %v3604_v44 }
 0x6d5   :  { %3726 = vst [vmem:[%s8260_s3 + $0x28] sm:$0xff] %v3601_v53  ;;  %3728 = vst [vmem:[%s8260_s3 + $0x38] sm:$0xff] %v3605_v46 }
 0x6d6   :  { %3619 = vsyncpa [#allocation3], 1 }

</bundles_post_ra>
